<compile_context>
chip_gen: v6e
topology: v6e:2x2x1
jax: 0.10.0
libtpu: 0.0.40
codegen_flags: <defaults>
</compile_context>

<pallas_src>
import functools

import jax
import jax.numpy as jnp
from jax.experimental import pallas as pl
from jax.experimental.pallas import tpu as pltpu

BN_EPS = 1e-5


# ----------------------------------------------------------------------------
# Pallas kernels
# ----------------------------------------------------------------------------
def _mm_kernel(a_ref, w_ref, b_ref, o_ref, *, relu):
    acc = jnp.dot(a_ref[...], w_ref[...], preferred_element_type=jnp.float32)
    acc = acc + b_ref[...]                    # (1,N) or (tm,N) bias, broadcasting
    if relu:
        acc = jnp.maximum(acc, 0.0)
    o_ref[...] = acc.astype(o_ref.dtype)


def _mm_stats_kernel(a_ref, w_ref, b_ref, o_ref, sum_ref, ssq_ref, *, relu):
    acc = jnp.dot(a_ref[...], w_ref[...], preferred_element_type=jnp.float32)
    acc = acc + b_ref[...]
    if relu:
        acc = jnp.maximum(acc, 0.0)
    o_ref[...] = acc.astype(o_ref.dtype)

    # Per-channel sum / sum-of-squares of the post-ReLU activation, accumulated
    # across the (sequential, "arbitrary") M grid axis into resident outputs.
    @pl.when(pl.program_id(0) == 0)
    def _():
        sum_ref[...] = jnp.zeros_like(sum_ref)
        ssq_ref[...] = jnp.zeros_like(ssq_ref)

    sum_ref[...] += jnp.sum(acc, axis=0, keepdims=True)
    ssq_ref[...] += jnp.sum(acc * acc, axis=0, keepdims=True)


# ----------------------------------------------------------------------------
# Pallas wrappers
# ----------------------------------------------------------------------------
def _pick_tm(M, K, N, budget_bytes=8 * 1024 * 1024):
    # bf16 A row + f32 output row + (worst case) f32 per-row bias.
    row_bytes = K * 2 + N * 4 + N * 4
    tm = M
    while tm * row_bytes > budget_bytes and tm % 16 == 0:
        tm //= 2                              # keeps tm | M -> no padding ever
    return tm


def fused_matmul(a, w, bias, *, relu, want_stats=False):
    """[relu](a @ w + bias) with optional per-column (sum, sum-of-squares).

    a: (M, K); w: (K, N); bias: (1, N) broadcast or (M, N) per-row, f32.
    a / w are cast to bf16 (MXU-native), accumulation and outputs are f32.
    """
    M, K = a.shape
    Kw, N = w.shape
    assert K == Kw
    a = a.astype(jnp.bfloat16)
    w = w.astype(jnp.bfloat16)
    bias = bias.astype(jnp.float32)
    per_row_bias = bias.shape[0] != 1
    if per_row_bias:
        assert bias.shape == (M, N)

    tm = _pick_tm(M, K, N)
    grid = (M // tm,)

    a_spec = pl.BlockSpec((tm, K), lambda i: (i, 0))
    w_spec = pl.BlockSpec((K, N), lambda i: (0, 0))
    if per_row_bias:
        b_spec = pl.BlockSpec((tm, N), lambda i: (i, 0))
    else:
        b_spec = pl.BlockSpec((1, N), lambda i: (0, 0))
    o_spec = pl.BlockSpec((tm, N), lambda i: (i, 0))

    if not want_stats:
        out = pl.pallas_call(
            functools.partial(_mm_kernel, relu=relu),
            out_shape=jax.ShapeDtypeStruct((M, N), jnp.float32),
            grid_spec=pltpu.PrefetchScalarGridSpec(
                num_scalar_prefetch=0,
                grid=grid,
                in_specs=[a_spec, w_spec, b_spec],
                out_specs=o_spec,
            ),
            compiler_params=pltpu.CompilerParams(
                dimension_semantics=("parallel",)),
        )(a, w, bias)
        return out

    stat_spec = pl.BlockSpec((1, N), lambda i: (0, 0))   # resident accumulators
    out, col_sum, col_ssq = pl.pallas_call(
        functools.partial(_mm_stats_kernel, relu=relu),
        out_shape=(
            jax.ShapeDtypeStruct((M, N), jnp.float32),
            jax.ShapeDtypeStruct((1, N), jnp.float32),
            jax.ShapeDtypeStruct((1, N), jnp.float32),
        ),
        grid_spec=pltpu.PrefetchScalarGridSpec(
            num_scalar_prefetch=0,
            grid=grid,
            in_specs=[a_spec, w_spec, b_spec],
            out_specs=(o_spec, stat_spec, stat_spec),
        ),
        compiler_params=pltpu.CompilerParams(
            dimension_semantics=("arbitrary",)),   # accumulator across M axis
    )(a, w, bias)
    return out, col_sum[0], col_ssq[0]


# ----------------------------------------------------------------------------
# JAX glue: im2col, weight prep, BN folding
# ----------------------------------------------------------------------------
def _im2col(x_nhwc, ksize, stride, pad):
    N, H, W, C = x_nhwc.shape
    KH, KW = ksize
    OH = (H + 2 * pad - KH) // stride + 1
    OW = (W + 2 * pad - KW) // stride + 1
    xp = jnp.pad(x_nhwc, ((0, 0), (pad, pad), (pad, pad), (0, 0)))
    cols = []
    for kh in range(KH):
        for kw in range(KW):
            cols.append(xp[:, kh:kh + stride * OH:stride,
                           kw:kw + stride * OW:stride, :])
    patches = jnp.stack(cols, axis=3)                   # (N, OH, OW, KH*KW, C)
    return patches.reshape(N * OH * OW, KH * KW * C), OH, OW


def _oihw_to_mat(w):
    # (Cout, Cin, KH, KW) -> (KH*KW*Cin, Cout), rows ordered (kh, kw, cin).
    Cout, Cin, KH, KW = w.shape
    return jnp.transpose(w, (2, 3, 1, 0)).reshape(KH * KW * Cin, Cout)


def _conv_inbounds_mask(H, W, KH, KW, stride, pad):
    # mask[(oh*OW+ow), (kh*KW+kw)] = 1 if that kernel tap lands inside the
    # unpadded input (0 if it falls on zero padding).  Static geometry.
    OH = (H + 2 * pad - KH) // stride + 1
    OW = (W + 2 * pad - KW) // stride + 1
    hin = jnp.arange(OH)[:, None] * stride - pad + jnp.arange(KH)[None, :]
    win = jnp.arange(OW)[:, None] * stride - pad + jnp.arange(KW)[None, :]
    vh = ((hin >= 0) & (hin < H)).astype(jnp.float32)   # (OH, KH)
    vw = ((win >= 0) & (win < W)).astype(jnp.float32)   # (OW, KW)
    m = jnp.einsum("ok,pl->opkl", vh, vw)               # (OH, OW, KH, KW)
    return m.reshape(OH * OW, KH * KW)


def init_params(key):
    def uniform(k, shape, bound):
        return jax.random.uniform(k, shape, jnp.float32, -bound, bound)

    ks = jax.random.split(key, 8)
    p = {}
    b = 1.0 / (3 * 4 * 4) ** 0.5
    p["w1"] = uniform(ks[0], (32, 3, 4, 4), b)
    p["b1"] = uniform(ks[1], (32,), b)
    b = 1.0 / (32 * 4 * 4) ** 0.5
    p["w2"] = uniform(ks[2], (64, 32, 4, 4), b)
    p["b2"] = uniform(ks[3], (64,), b)
    b = 1.0 / (64 * 4 * 4) ** 0.5
    p["w3"] = uniform(ks[4], (128, 64, 4, 4), b)
    p["b3"] = uniform(ks[5], (128,), b)
    b = 1.0 / (128 * 8 * 8) ** 0.5
    p["wf"] = uniform(ks[6], (10, 128 * 8 * 8), b)
    p["bf"] = uniform(ks[7], (10,), b)
    p["bn1_g"] = jnp.ones((32,), jnp.float32)
    p["bn1_b"] = jnp.zeros((32,), jnp.float32)
    p["bn2_g"] = jnp.ones((128,), jnp.float32)
    p["bn2_b"] = jnp.zeros((128,), jnp.float32)
    return p


def prepare_params(p, *, in_hw=(64, 64)):
    """One-time, batch-independent weight transforms (hoisted out of forward)."""
    prep = {}
    # conv1 / conv3: no BN fold -> precast to bf16 once.
    prep["w1_mat"] = _oihw_to_mat(p["w1"]).astype(jnp.bfloat16)     # (48, 32)
    prep["w3_mat"] = _oihw_to_mat(p["w3"]).astype(jnp.bfloat16)     # (1024, 128)
    prep["b1_row"] = p["b1"].reshape(1, -1)
    prep["b3_row"] = p["b3"].reshape(1, -1)
    # conv2 / fc: BN fold is data-dependent -> keep f32 matrices ready.
    prep["w2_mat"] = _oihw_to_mat(p["w2"])                          # (512, 64)
    prep["b2"] = p["b2"]
    # FC weight, permuted so it consumes the NHWC-flattened activation directly
    # (equivalent to torch.flatten on NCHW); rows ordered (h, w, c).
    wf_chwn = p["wf"].T.reshape(128, 8, 8, 10)                      # (c, h, w, n)
    prep["wf_mat"] = jnp.transpose(wf_chwn, (1, 2, 0, 3)).reshape(8 * 8 * 128, 10)
    prep["bf"] = p["bf"]
    # Static in-bounds mask for conv2 (corrects the BN1-shift fold under zero pad).
    h1 = (in_hw[0] + 2 * 1 - 4) // 2 + 1                            # conv1 out spatial
    w1 = (in_hw[1] + 2 * 1 - 4) // 2 + 1
    prep["mask2"] = _conv_inbounds_mask(h1, w1, 4, 4, 2, 1)         # (256, 16)
    # BN affine params.
    prep["bn1_g"], prep["bn1_b"] = p["bn1_g"], p["bn1_b"]
    prep["bn2_g"], prep["bn2_b"] = p["bn2_g"], p["bn2_b"]
    return prep


def _bn_scale_shift(col_sum, col_ssq, n_rows, gamma, beta, eps=BN_EPS):
    # Training-mode BatchNorm (fresh nn.Module): biased batch stats.
    mean = col_sum / n_rows
    var = jnp.maximum(col_ssq / n_rows - mean * mean, 0.0)
    scale = gamma / jnp.sqrt(var + eps)
    shift = beta - mean * scale
    return scale, shift


# ----------------------------------------------------------------------------
# Model forward
# ----------------------------------------------------------------------------
def face_rec_celeba_forward(prep, x_nchw):
    B = x_nchw.shape[0]
    x = jnp.transpose(x_nchw, (0, 2, 3, 1)).astype(jnp.bfloat16)    # NHWC

    # --- conv1 + ReLU (+ fused per-channel sum/sumsq for BN1) ---------------
    a1, oh1, ow1 = _im2col(x, (4, 4), 2, 1)                         # (B*1024, 48)
    y1, s1, q1 = fused_matmul(a1, prep["w1_mat"], prep["b1_row"],
                              relu=True, want_stats=True)           # (B*1024, 32)
    scale1, shift1 = _bn_scale_shift(s1, q1, y1.shape[0],
                                     prep["bn1_g"], prep["bn1_b"])

    # --- conv2 + ReLU, BN1 folded into weights + position-dependent bias ----
    y1 = y1.reshape(B, oh1, ow1, 32).astype(jnp.bfloat16)
    a2, oh2, ow2 = _im2col(y1, (4, 4), 2, 1)                        # (B*256, 512)
    s1_rows = jnp.tile(scale1, 16)                                  # (512,)
    t1_rows = jnp.tile(shift1, 16)
    w2_fold = (prep["w2_mat"] * s1_rows[:, None]).astype(jnp.bfloat16)
    # shift contribution: only taps landing inside the unpadded input carry it
    vk = (prep["w2_mat"] * t1_rows[:, None]).reshape(16, 32, 64).sum(axis=1)
    pos_bias = prep["mask2"] @ vk + prep["b2"][None, :]             # (256, 64)
    row_bias2 = jnp.tile(pos_bias, (B, 1))                          # (B*256, 64)
    y2 = fused_matmul(a2, w2_fold, row_bias2, relu=True)            # (B*256, 64)

    # --- conv3 + ReLU (+ fused stats for BN2) --------------------------------
    y2 = y2.reshape(B, oh2, ow2, 64).astype(jnp.bfloat16)
    a3, oh3, ow3 = _im2col(y2, (4, 4), 2, 1)                        # (B*64, 1024)
    y3, s3, q3 = fused_matmul(a3, prep["w3_mat"], prep["b3_row"],
                              relu=True, want_stats=True)           # (B*64, 128)
    scale2, shift2 = _bn_scale_shift(s3, q3, y3.shape[0],
                                     prep["bn2_g"], prep["bn2_b"])

    # --- fc1, BN2 + NCHW-flatten permutation folded into the weight ---------
    af = y3.reshape(B, oh3 * ow3 * 128)                             # NHWC flatten
    s2_rep = jnp.tile(scale2, oh3 * ow3)                            # (8192,)
    t2_rep = jnp.tile(shift2, oh3 * ow3)
    wf_fold = (prep["wf_mat"] * s2_rep[:, None]).astype(jnp.bfloat16)
    bf_fold = (prep["bf"] + t2_rep @ prep["wf_mat"]).reshape(1, -1)
    out = fused_matmul(af, wf_fold, bf_fold, relu=False)            # (B, 10)
    return out


if __name__ == "__main__":
    key = jax.random.PRNGKey(0)
    pkey, xkey = jax.random.split(key)
    params = init_params(pkey)
    prep = prepare_params(params)

    # Module structure (fc1 = 128*8*8) implies 3x64x64 inputs; batch kept small.
    x = jax.random.normal(xkey, (2, 3, 64, 64), dtype=jnp.float32)

    fwd = jax.jit(face_rec_celeba_forward)
    out = jax.block_until_ready(fwd(prep, x))
    assert out.shape == (2, 10)
    assert bool(jnp.all(jnp.isfinite(out)))
    print("KERNEL_OK")
</pallas_src>

<mosaic_0001>
module attributes {stable_mosaic.version = 11 : i64} {
  func.func @_mm_stats_kernel(%arg0: i32, %arg1: memref<2048x48xbf16, #tpu.memory_space<vmem>>, %arg2: memref<48x32xbf16, #tpu.memory_space<vmem>>, %arg3: memref<1x32xf32, #tpu.memory_space<vmem>>, %arg4: memref<2048x32xf32, #tpu.memory_space<vmem>>, %arg5: memref<1x32xf32, #tpu.memory_space<vmem>>, %arg6: memref<1x32xf32, #tpu.memory_space<vmem>>) attributes {dimension_semantics = [#tpu.dimension_semantics<arbitrary>], iteration_bounds = array<i64: 1>, scalar_prefetch = 0 : i64, scratch_operands = 0 : i64, tpu.core_type = #tpu.core_type<tc>, window_params = [{transform_indices = @transform_0, window_bounds = array<i64: 2048, 48>}, {pipeline_mode = #tpu.pipeline_mode<synchronous>, transform_indices = @transform_1, window_bounds = array<i64: 48, 32>}, {pipeline_mode = #tpu.pipeline_mode<synchronous>, transform_indices = @transform_2, window_bounds = array<i64: 1, 32>}, {transform_indices = @transform_3, window_bounds = array<i64: 2048, 32>}, {pipeline_mode = #tpu.pipeline_mode<synchronous>, transform_indices = @transform_4, window_bounds = array<i64: 1, 32>}, {pipeline_mode = #tpu.pipeline_mode<synchronous>, transform_indices = @transform_5, window_bounds = array<i64: 1, 32>}]} {
    %c0 = arith.constant 0 : index
    %c0_0 = arith.constant 0 : index
    %0 = vector.load %arg1[%c0, %c0_0] : memref<2048x48xbf16, #tpu.memory_space<vmem>>, vector<2048x48xbf16>
    %c0_1 = arith.constant 0 : index
    %c0_2 = arith.constant 0 : index
    %1 = vector.load %arg2[%c0_1, %c0_2] : memref<48x32xbf16, #tpu.memory_space<vmem>>, vector<48x32xbf16>
    %cst = arith.constant dense<0.000000e+00> : vector<2048x32xf32>
    %2 = tpu.matmul %0, %1, %cst {dimension_numbers = #tpu.dot_dimension_numbers<[1], [0], [0], [1], [0, 0, 1, 1], [], []>} : vector<2048x48xbf16>, vector<48x32xbf16>, vector<2048x32xf32> -> vector<2048x32xf32>
    %c0_3 = arith.constant 0 : index
    %c0_4 = arith.constant 0 : index
    %3 = vector.load %arg3[%c0_3, %c0_4] : memref<1x32xf32, #tpu.memory_space<vmem>>, vector<1x32xf32>
    %4 = vector.broadcast %3 : vector<1x32xf32> to vector<2048x32xf32>
    %5 = arith.addf %2, %4 : vector<2048x32xf32>
    %cst_5 = arith.constant 0.000000e+00 : f32
    %6 = vector.broadcast %cst_5 : f32 to vector<2048x32xf32>
    %7 = arith.maximumf %5, %6 : vector<2048x32xf32>
    %c0_6 = arith.constant 0 : index
    %c0_7 = arith.constant 0 : index
    %8 = vector.load %arg4[%c0_6, %c0_7] : memref<2048x32xf32, #tpu.memory_space<vmem>>, vector<2048x32xf32>
    tpu.vector_store %arg4[%c0_6, %c0_7], %7 {strides = array<i32>} : memref<2048x32xf32, #tpu.memory_space<vmem>>, vector<2048x32xf32>,
    %c0_i32 = arith.constant 0 : i32
    %9 = arith.cmpi eq, %arg0, %c0_i32 : i32
    %10 = arith.extui %9 : i1 to i32
    %c0_i32_8 = arith.constant 0 : i32
    %11 = arith.cmpi ne, %10, %c0_i32_8 : i32
    scf.if %11 {
      %cst_19 = arith.constant 0.000000e+00 : f32
      %23 = vector.broadcast %cst_19 : f32 to vector<1x32xf32>
      %c0_20 = arith.constant 0 : index
      %c0_21 = arith.constant 0 : index
      %24 = vector.load %arg5[%c0_20, %c0_21] : memref<1x32xf32, #tpu.memory_space<vmem>>, vector<1x32xf32>
      tpu.vector_store %arg5[%c0_20, %c0_21], %23 {strides = array<i32>} : memref<1x32xf32, #tpu.memory_space<vmem>>, vector<1x32xf32>,
      %cst_22 = arith.constant 0.000000e+00 : f32
      %25 = vector.broadcast %cst_22 : f32 to vector<1x32xf32>
      %c0_23 = arith.constant 0 : index
      %c0_24 = arith.constant 0 : index
      %26 = vector.load %arg6[%c0_23, %c0_24] : memref<1x32xf32, #tpu.memory_space<vmem>>, vector<1x32xf32>
      tpu.vector_store %arg6[%c0_23, %c0_24], %25 {strides = array<i32>} : memref<1x32xf32, #tpu.memory_space<vmem>>, vector<1x32xf32>,
    } else {
    }
    %c0_9 = arith.constant 0 : index
    %c0_10 = arith.constant 0 : index
    %12 = vector.load %arg5[%c0_9, %c0_10] : memref<1x32xf32, #tpu.memory_space<vmem>>, vector<1x32xf32>
    %cst_11 = arith.constant dense<0.000000e+00> : vector<32xf32>
    %13 = vector.multi_reduction <add>, %7, %cst_11 [0] : vector<2048x32xf32> to vector<32xf32>
    %14 = vector.shape_cast %13 : vector<32xf32> to vector<1x32xf32>
    %15 = arith.addf %12, %14 : vector<1x32xf32>
    %c0_12 = arith.constant 0 : index
    %c0_13 = arith.constant 0 : index
    %16 = vector.load %arg5[%c0_12, %c0_13] : memref<1x32xf32, #tpu.memory_space<vmem>>, vector<1x32xf32>
    tpu.vector_store %arg5[%c0_12, %c0_13], %15 {strides = array<i32>} : memref<1x32xf32, #tpu.memory_space<vmem>>, vector<1x32xf32>,
    %c0_14 = arith.constant 0 : index
    %c0_15 = arith.constant 0 : index
    %17 = vector.load %arg6[%c0_14, %c0_15] : memref<1x32xf32, #tpu.memory_space<vmem>>, vector<1x32xf32>
    %18 = arith.mulf %7, %7 : vector<2048x32xf32>
    %cst_16 = arith.constant dense<0.000000e+00> : vector<32xf32>
    %19 = vector.multi_reduction <add>, %18, %cst_16 [0] : vector<2048x32xf32> to vector<32xf32>
    %20 = vector.shape_cast %19 : vector<32xf32> to vector<1x32xf32>
    %21 = arith.addf %17, %20 : vector<1x32xf32>
    %c0_17 = arith.constant 0 : index
    %c0_18 = arith.constant 0 : index
    %22 = vector.load %arg6[%c0_17, %c0_18] : memref<1x32xf32, #tpu.memory_space<vmem>>, vector<1x32xf32>
    tpu.vector_store %arg6[%c0_17, %c0_18], %21 {strides = array<i32>} : memref<1x32xf32, #tpu.memory_space<vmem>>, vector<1x32xf32>,
    return
  }
  func.func @transform_0(%arg0: i32) -> (i32, i32) {
    %c0_i32 = arith.constant 0 : i32
    %c0_i32_0 = arith.constant 0 : i32
    return %arg0, %c0_i32 : i32, i32
  }
  func.func @transform_1(%arg0: i32) -> (i32, i32) {
    %c0_i32 = arith.constant 0 : i32
    %c0_i32_0 = arith.constant 0 : i32
    %c0_i32_1 = arith.constant 0 : i32
    return %c0_i32, %c0_i32_0 : i32, i32
  }
  func.func @transform_2(%arg0: i32) -> (i32, i32) {
    %c0_i32 = arith.constant 0 : i32
    %c0_i32_0 = arith.constant 0 : i32
    %c0_i32_1 = arith.constant 0 : i32
    return %c0_i32, %c0_i32_0 : i32, i32
  }
  func.func @transform_3(%arg0: i32) -> (i32, i32) {
    %c0_i32 = arith.constant 0 : i32
    %c0_i32_0 = arith.constant 0 : i32
    return %arg0, %c0_i32 : i32, i32
  }
  func.func @transform_4(%arg0: i32) -> (i32, i32) {
    %c0_i32 = arith.constant 0 : i32
    %c0_i32_0 = arith.constant 0 : i32
    %c0_i32_1 = arith.constant 0 : i32
    return %c0_i32, %c0_i32_0 : i32, i32
  }
  func.func @transform_5(%arg0: i32) -> (i32, i32) {
    %c0_i32 = arith.constant 0 : i32
    %c0_i32_0 = arith.constant 0 : i32
    %c0_i32_1 = arith.constant 0 : i32
    return %c0_i32, %c0_i32_0 : i32, i32
  }
}

module attributes {stable_mosaic.version = 11 : i64} {
  func.func @_mm_kernel(%arg0: i32, %arg1: memref<512x512xbf16, #tpu.memory_space<vmem>>, %arg2: memref<512x64xbf16, #tpu.memory_space<vmem>>, %arg3: memref<512x64xf32, #tpu.memory_space<vmem>>, %arg4: memref<512x64xf32, #tpu.memory_space<vmem>>) attributes {dimension_semantics = [#tpu.dimension_semantics<parallel>], iteration_bounds = array<i64: 1>, scalar_prefetch = 0 : i64, scratch_operands = 0 : i64, tpu.core_type = #tpu.core_type<tc>, window_params = [{transform_indices = @transform_0, window_bounds = array<i64: 512, 512>}, {pipeline_mode = #tpu.pipeline_mode<synchronous>, transform_indices = @transform_1, window_bounds = array<i64: 512, 64>}, {transform_indices = @transform_2, window_bounds = array<i64: 512, 64>}, {transform_indices = @transform_3, window_bounds = array<i64: 512, 64>}]} {
    %c0 = arith.constant 0 : index
    %c0_0 = arith.constant 0 : index
    %0 = vector.load %arg1[%c0, %c0_0] : memref<512x512xbf16, #tpu.memory_space<vmem>>, vector<512x512xbf16>
    %c0_1 = arith.constant 0 : index
    %c0_2 = arith.constant 0 : index
    %1 = vector.load %arg2[%c0_1, %c0_2] : memref<512x64xbf16, #tpu.memory_space<vmem>>, vector<512x64xbf16>
    %cst = arith.constant dense<0.000000e+00> : vector<512x64xf32>
    %2 = tpu.matmul %0, %1, %cst {dimension_numbers = #tpu.dot_dimension_numbers<[1], [0], [0], [1], [0, 0, 1, 1], [], []>} : vector<512x512xbf16>, vector<512x64xbf16>, vector<512x64xf32> -> vector<512x64xf32>
    %c0_3 = arith.constant 0 : index
    %c0_4 = arith.constant 0 : index
    %3 = vector.load %arg3[%c0_3, %c0_4] : memref<512x64xf32, #tpu.memory_space<vmem>>, vector<512x64xf32>
    %4 = arith.addf %2, %3 : vector<512x64xf32>
    %cst_5 = arith.constant 0.000000e+00 : f32
    %5 = vector.broadcast %cst_5 : f32 to vector<512x64xf32>
    %6 = arith.maximumf %4, %5 : vector<512x64xf32>
    %c0_6 = arith.constant 0 : index
    %c0_7 = arith.constant 0 : index
    %7 = vector.load %arg4[%c0_6, %c0_7] : memref<512x64xf32, #tpu.memory_space<vmem>>, vector<512x64xf32>
    tpu.vector_store %arg4[%c0_6, %c0_7], %6 {strides = array<i32>} : memref<512x64xf32, #tpu.memory_space<vmem>>, vector<512x64xf32>,
    return
  }
  func.func @transform_0(%arg0: i32) -> (i32, i32) {
    %c0_i32 = arith.constant 0 : i32
    %c0_i32_0 = arith.constant 0 : i32
    return %arg0, %c0_i32 : i32, i32
  }
  func.func @transform_1(%arg0: i32) -> (i32, i32) {
    %c0_i32 = arith.constant 0 : i32
    %c0_i32_0 = arith.constant 0 : i32
    %c0_i32_1 = arith.constant 0 : i32
    return %c0_i32, %c0_i32_0 : i32, i32
  }
  func.func @transform_2(%arg0: i32) -> (i32, i32) {
    %c0_i32 = arith.constant 0 : i32
    %c0_i32_0 = arith.constant 0 : i32
    return %arg0, %c0_i32 : i32, i32
  }
  func.func @transform_3(%arg0: i32) -> (i32, i32) {
    %c0_i32 = arith.constant 0 : i32
    %c0_i32_0 = arith.constant 0 : i32
    return %arg0, %c0_i32 : i32, i32
  }
}

module attributes {stable_mosaic.version = 11 : i64} {
  func.func @_mm_stats_kernel(%arg0: i32, %arg1: memref<128x1024xbf16, #tpu.memory_space<vmem>>, %arg2: memref<1024x128xbf16, #tpu.memory_space<vmem>>, %arg3: memref<1x128xf32, #tpu.memory_space<vmem>>, %arg4: memref<128x128xf32, #tpu.memory_space<vmem>>, %arg5: memref<1x128xf32, #tpu.memory_space<vmem>>, %arg6: memref<1x128xf32, #tpu.memory_space<vmem>>) attributes {dimension_semantics = [#tpu.dimension_semantics<arbitrary>], iteration_bounds = array<i64: 1>, scalar_prefetch = 0 : i64, scratch_operands = 0 : i64, tpu.core_type = #tpu.core_type<tc>, window_params = [{transform_indices = @transform_0, window_bounds = array<i64: 128, 1024>}, {pipeline_mode = #tpu.pipeline_mode<synchronous>, transform_indices = @transform_1, window_bounds = array<i64: 1024, 128>}, {pipeline_mode = #tpu.pipeline_mode<synchronous>, transform_indices = @transform_2, window_bounds = array<i64: 1, 128>}, {transform_indices = @transform_3, window_bounds = array<i64: 128, 128>}, {pipeline_mode = #tpu.pipeline_mode<synchronous>, transform_indices = @transform_4, window_bounds = array<i64: 1, 128>}, {pipeline_mode = #tpu.pipeline_mode<synchronous>, transform_indices = @transform_5, window_bounds = array<i64: 1, 128>}]} {
    %c0 = arith.constant 0 : index
    %c0_0 = arith.constant 0 : index
    %0 = vector.load %arg1[%c0, %c0_0] : memref<128x1024xbf16, #tpu.memory_space<vmem>>, vector<128x1024xbf16>
    %c0_1 = arith.constant 0 : index
    %c0_2 = arith.constant 0 : index
    %1 = vector.load %arg2[%c0_1, %c0_2] : memref<1024x128xbf16, #tpu.memory_space<vmem>>, vector<1024x128xbf16>
    %cst = arith.constant dense<0.000000e+00> : vector<128x128xf32>
    %2 = tpu.matmul %0, %1, %cst {dimension_numbers = #tpu.dot_dimension_numbers<[1], [0], [0], [1], [0, 0, 1, 1], [], []>} : vector<128x1024xbf16>, vector<1024x128xbf16>, vector<128x128xf32> -> vector<128x128xf32>
    %c0_3 = arith.constant 0 : index
    %c0_4 = arith.constant 0 : index
    %3 = vector.load %arg3[%c0_3, %c0_4] : memref<1x128xf32, #tpu.memory_space<vmem>>, vector<1x128xf32>
    %4 = vector.broadcast %3 : vector<1x128xf32> to vector<128x128xf32>
    %5 = arith.addf %2, %4 : vector<128x128xf32>
    %cst_5 = arith.constant 0.000000e+00 : f32
    %6 = vector.broadcast %cst_5 : f32 to vector<128x128xf32>
    %7 = arith.maximumf %5, %6 : vector<128x128xf32>
    %c0_6 = arith.constant 0 : index
    %c0_7 = arith.constant 0 : index
    %8 = vector.load %arg4[%c0_6, %c0_7] : memref<128x128xf32, #tpu.memory_space<vmem>>, vector<128x128xf32>
    tpu.vector_store %arg4[%c0_6, %c0_7], %7 {strides = array<i32>} : memref<128x128xf32, #tpu.memory_space<vmem>>, vector<128x128xf32>,
    %c0_i32 = arith.constant 0 : i32
    %9 = arith.cmpi eq, %arg0, %c0_i32 : i32
    %10 = arith.extui %9 : i1 to i32
    %c0_i32_8 = arith.constant 0 : i32
    %11 = arith.cmpi ne, %10, %c0_i32_8 : i32
    scf.if %11 {
      %cst_19 = arith.constant 0.000000e+00 : f32
      %23 = vector.broadcast %cst_19 : f32 to vector<1x128xf32>
      %c0_20 = arith.constant 0 : index
      %c0_21 = arith.constant 0 : index
      %24 = vector.load %arg5[%c0_20, %c0_21] : memref<1x128xf32, #tpu.memory_space<vmem>>, vector<1x128xf32>
      tpu.vector_store %arg5[%c0_20, %c0_21], %23 {strides = array<i32>} : memref<1x128xf32, #tpu.memory_space<vmem>>, vector<1x128xf32>,
      %cst_22 = arith.constant 0.000000e+00 : f32
      %25 = vector.broadcast %cst_22 : f32 to vector<1x128xf32>
      %c0_23 = arith.constant 0 : index
      %c0_24 = arith.constant 0 : index
      %26 = vector.load %arg6[%c0_23, %c0_24] : memref<1x128xf32, #tpu.memory_space<vmem>>, vector<1x128xf32>
      tpu.vector_store %arg6[%c0_23, %c0_24], %25 {strides = array<i32>} : memref<1x128xf32, #tpu.memory_space<vmem>>, vector<1x128xf32>,
    } else {
    }
    %c0_9 = arith.constant 0 : index
    %c0_10 = arith.constant 0 : index
    %12 = vector.load %arg5[%c0_9, %c0_10] : memref<1x128xf32, #tpu.memory_space<vmem>>, vector<1x128xf32>
    %cst_11 = arith.constant dense<0.000000e+00> : vector<128xf32>
    %13 = vector.multi_reduction <add>, %7, %cst_11 [0] : vector<128x128xf32> to vector<128xf32>
    %14 = vector.shape_cast %13 : vector<128xf32> to vector<1x128xf32>
    %15 = arith.addf %12, %14 : vector<1x128xf32>
    %c0_12 = arith.constant 0 : index
    %c0_13 = arith.constant 0 : index
    %16 = vector.load %arg5[%c0_12, %c0_13] : memref<1x128xf32, #tpu.memory_space<vmem>>, vector<1x128xf32>
    tpu.vector_store %arg5[%c0_12, %c0_13], %15 {strides = array<i32>} : memref<1x128xf32, #tpu.memory_space<vmem>>, vector<1x128xf32>,
    %c0_14 = arith.constant 0 : index
    %c0_15 = arith.constant 0 : index
    %17 = vector.load %arg6[%c0_14, %c0_15] : memref<1x128xf32, #tpu.memory_space<vmem>>, vector<1x128xf32>
    %18 = arith.mulf %7, %7 : vector<128x128xf32>
    %cst_16 = arith.constant dense<0.000000e+00> : vector<128xf32>
    %19 = vector.multi_reduction <add>, %18, %cst_16 [0] : vector<128x128xf32> to vector<128xf32>
    %20 = vector.shape_cast %19 : vector<128xf32> to vector<1x128xf32>
    %21 = arith.addf %17, %20 : vector<1x128xf32>
    %c0_17 = arith.constant 0 : index
    %c0_18 = arith.constant 0 : index
    %22 = vector.load %arg6[%c0_17, %c0_18] : memref<1x128xf32, #tpu.memory_space<vmem>>, vector<1x128xf32>
    tpu.vector_store %arg6[%c0_17, %c0_18], %21 {strides = array<i32>} : memref<1x128xf32, #tpu.memory_space<vmem>>, vector<1x128xf32>,
    return
  }
  func.func @transform_0(%arg0: i32) -> (i32, i32) {
    %c0_i32 = arith.constant 0 : i32
    %c0_i32_0 = arith.constant 0 : i32
    return %arg0, %c0_i32 : i32, i32
  }
  func.func @transform_1(%arg0: i32) -> (i32, i32) {
    %c0_i32 = arith.constant 0 : i32
    %c0_i32_0 = arith.constant 0 : i32
    %c0_i32_1 = arith.constant 0 : i32
    return %c0_i32, %c0_i32_0 : i32, i32
  }
  func.func @transform_2(%arg0: i32) -> (i32, i32) {
    %c0_i32 = arith.constant 0 : i32
    %c0_i32_0 = arith.constant 0 : i32
    %c0_i32_1 = arith.constant 0 : i32
    return %c0_i32, %c0_i32_0 : i32, i32
  }
  func.func @transform_3(%arg0: i32) -> (i32, i32) {
    %c0_i32 = arith.constant 0 : i32
    %c0_i32_0 = arith.constant 0 : i32
    return %arg0, %c0_i32 : i32, i32
  }
  func.func @transform_4(%arg0: i32) -> (i32, i32) {
    %c0_i32 = arith.constant 0 : i32
    %c0_i32_0 = arith.constant 0 : i32
    %c0_i32_1 = arith.constant 0 : i32
    return %c0_i32, %c0_i32_0 : i32, i32
  }
  func.func @transform_5(%arg0: i32) -> (i32, i32) {
    %c0_i32 = arith.constant 0 : i32
    %c0_i32_0 = arith.constant 0 : i32
    %c0_i32_1 = arith.constant 0 : i32
    return %c0_i32, %c0_i32_0 : i32, i32
  }
}

module attributes {stable_mosaic.version = 11 : i64} {
  func.func @_mm_kernel(%arg0: i32, %arg1: memref<2x8192xbf16, #tpu.memory_space<vmem>>, %arg2: memref<8192x10xbf16, #tpu.memory_space<vmem>>, %arg3: memref<1x10xf32, #tpu.memory_space<vmem>>, %arg4: memref<2x10xf32, #tpu.memory_space<vmem>>) attributes {dimension_semantics = [#tpu.dimension_semantics<parallel>], iteration_bounds = array<i64: 1>, scalar_prefetch = 0 : i64, scratch_operands = 0 : i64, tpu.core_type = #tpu.core_type<tc>, window_params = [{transform_indices = @transform_0, window_bounds = array<i64: 2, 8192>}, {pipeline_mode = #tpu.pipeline_mode<synchronous>, transform_indices = @transform_1, window_bounds = array<i64: 8192, 10>}, {pipeline_mode = #tpu.pipeline_mode<synchronous>, transform_indices = @transform_2, window_bounds = array<i64: 1, 10>}, {transform_indices = @transform_3, window_bounds = array<i64: 2, 10>}]} {
    %c0 = arith.constant 0 : index
    %c0_0 = arith.constant 0 : index
    %0 = vector.load %arg1[%c0, %c0_0] : memref<2x8192xbf16, #tpu.memory_space<vmem>>, vector<2x8192xbf16>
    %c0_1 = arith.constant 0 : index
    %c0_2 = arith.constant 0 : index
    %1 = vector.load %arg2[%c0_1, %c0_2] : memref<8192x10xbf16, #tpu.memory_space<vmem>>, vector<8192x10xbf16>
    %cst = arith.constant dense<0.000000e+00> : vector<2x10xf32>
    %2 = tpu.matmul %0, %1, %cst {dimension_numbers = #tpu.dot_dimension_numbers<[1], [0], [0], [1], [0, 0, 1, 1], [], []>} : vector<2x8192xbf16>, vector<8192x10xbf16>, vector<2x10xf32> -> vector<2x10xf32>
    %c0_3 = arith.constant 0 : index
    %c0_4 = arith.constant 0 : index
    %3 = vector.load %arg3[%c0_3, %c0_4] : memref<1x10xf32, #tpu.memory_space<vmem>>, vector<1x10xf32>
    %4 = vector.broadcast %3 : vector<1x10xf32> to vector<2x10xf32>
    %5 = arith.addf %2, %4 : vector<2x10xf32>
    %c0_5 = arith.constant 0 : index
    %c0_6 = arith.constant 0 : index
    %6 = vector.load %arg4[%c0_5, %c0_6] : memref<2x10xf32, #tpu.memory_space<vmem>>, vector<2x10xf32>
    tpu.vector_store %arg4[%c0_5, %c0_6], %5 {strides = array<i32>} : memref<2x10xf32, #tpu.memory_space<vmem>>, vector<2x10xf32>,
    return
  }
  func.func @transform_0(%arg0: i32) -> (i32, i32) {
    %c0_i32 = arith.constant 0 : i32
    %c0_i32_0 = arith.constant 0 : i32
    return %arg0, %c0_i32 : i32, i32
  }
  func.func @transform_1(%arg0: i32) -> (i32, i32) {
    %c0_i32 = arith.constant 0 : i32
    %c0_i32_0 = arith.constant 0 : i32
    %c0_i32_1 = arith.constant 0 : i32
    return %c0_i32, %c0_i32_0 : i32, i32
  }
  func.func @transform_2(%arg0: i32) -> (i32, i32) {
    %c0_i32 = arith.constant 0 : i32
    %c0_i32_0 = arith.constant 0 : i32
    %c0_i32_1 = arith.constant 0 : i32
    return %c0_i32, %c0_i32_0 : i32, i32
  }
  func.func @transform_3(%arg0: i32) -> (i32, i32) {
    %c0_i32 = arith.constant 0 : i32
    %c0_i32_0 = arith.constant 0 : i32
    return %arg0, %c0_i32 : i32, i32
  }
}

</mosaic_0001>

<bundles_post_ra>
// kernel: face_rec_celeba_forward.4
= control target key start
LH: loop header
LB: loop body
LE: loop exit
PB: predicated region body
PF: predicated region fallthrough
CT: control target
= control target key end

     0   :  { %vm945_vm0 = vcmask 392192   ;;  %vm2643_vm1 = vcmask 261120   ;;  %vm2904_vm2 = vcmask 253952   ;;  %s8539_s1 = inlined_call_operand.vmem [shape: bf16[48,32], index: 1, kind: input, shape index: {}]   ;;  %s8540_s0 = inlined_call_operand.vmem [shape: bf16[2048,48], index: 0, kind: input, shape index: {}]   ;;  %s8541_s2 = inlined_call_operand.vmem [shape: f32[1,32], index: 2, kind: input, shape index: {}]   ;;  %s8542_s3 = inlined_call_operand.vmem [shape: f32[2048,32], index: 3, kind: output, shape index: {0}]   ;;  %s8543_s4 = inlined_call_operand.vmem [shape: f32[1,32], index: 4, kind: output, shape index: {1}]   ;;  %s8544_s5 = inlined_call_operand.vmem [shape: f32[1,32], index: 5, kind: output, shape index: {2}]  }
   0x1   :  { %v4876_v0 = vld [vmem:[%s8539_s1 + $0x10] sm:$0xff]   ;;  %v4877_v1 = vld [vmem:[%s8539_s1 + $0x8] sm:$0xff]   ;;  %v4879_v2 = vld [vmem:[%s8540_s0] sm:$0xff]  }
   0x2   :  { %4607 = vmatprep.subr.bf16.mxu0 %v4876_v0  ;;  %4869 = vmatprep.subr.bf16.mxu1 %v4876_v0  ;;  %v4878_v3 = vld [vmem:[%s8539_s1] sm:$0xff]   ;;  %v4880_v4 = vld [vmem:[%s8540_s0 + $0x8] sm:$0xff]   ;;  %v4881_v5 = vld [vmem:[%s8540_s0 + $0x10] sm:$0xff]  }
   0x3   :  { %4608 = vmatpush3.bf16.msra.mxu0 %v4876_v0  ;;  %4872 = vmatpush3.bf16.msra.mxu1 %v4876_v0  ;;  %v4882_v6 = vld [vmem:[%s8540_s0 + $0x18] sm:$0xff]   ;;  %v4883_v7 = vld [vmem:[%s8540_s0 + $0x20] sm:$0xff]   ;;  %v4884_v8 = vld [vmem:[%s8540_s0 + $0x28] sm:$0xff]  }
   0x4   :  { %4609 = vmatprep.subr.bf16.mxu0 %v4877_v1  ;;  %4870 = vmatprep.subr.bf16.mxu1 %v4877_v1  ;;  %v4885_v9 = vld [vmem:[%s8540_s0 + $0x30] sm:$0xff]   ;;  %v4886_v10 = vld [vmem:[%s8540_s0 + $0x38] sm:$0xff]   ;;  %v4887_v11 = vld [vmem:[%s8540_s0 + $0x40] sm:$0xff]  }
   0x5   :  { %4613 = vmatprep.mubr.msk.bf16.mxu0 %vm945_vm0, %v4879_v2  ;;  %v4888_v12 = vld [vmem:[%s8540_s0 + $0x48] sm:$0xff]   ;;  %v4889_v13 = vld [vmem:[%s8540_s0 + $0x50] sm:$0xff]   ;;  %v4890_v14 = vld [vmem:[%s8540_s0 + $0x58] sm:$0xff]  }
   0x6   :  { %v4891_v15 = vld [vmem:[%s8540_s0 + $0x60] sm:$0xff]   ;;  %v4892_v16 = vld [vmem:[%s8540_s0 + $0x68] sm:$0xff]   ;;  %v4893_v17 = vld [vmem:[%s8540_s0 + $0x70] sm:$0xff]  }
   0x7   :  { %4610 = vmatpush3.bf16.msra.mxu0 %v4877_v1  ;;  %4873 = vmatpush3.bf16.msra.mxu1 %v4877_v1  ;;  %v4894_v18 = vld [vmem:[%s8540_s0 + $0x78] sm:$0xff]   ;;  %v4895_v19 = vld [vmem:[%s8540_s0 + $0x80] sm:$0xff]   ;;  %v4896_v20 = vld [vmem:[%s8540_s0 + $0x88] sm:$0xff]  }
   0x8   :  { %4611 = vmatprep.subr.bf16.mxu0 %v4878_v3  ;;  %4871 = vmatprep.subr.bf16.mxu1 %v4878_v3  ;;  %v4897_v21 = vld [vmem:[%s8540_s0 + $0x90] sm:$0xff]   ;;  %v4898_v22 = vld [vmem:[%s8540_s0 + $0x98] sm:$0xff]   ;;  %v4899_v23 = vld [vmem:[%s8540_s0 + $0xa0] sm:$0xff]  }
   0x9   :  { %v4900_v24 = vld [vmem:[%s8540_s0 + $0xa8] sm:$0xff]   ;;  %v4901_v25 = vld [vmem:[%s8540_s0 + $0xb0] sm:$0xff]   ;;  %v4902_v26 = vld [vmem:[%s8540_s0 + $0xb8] sm:$0xff]  }
   0xa   :  { %v4903_v27 = vld [vmem:[%s8540_s0 + $0xc0] sm:$0xff]   ;;  %v4904_v28 = vld [vmem:[%s8540_s0 + $0xc8] sm:$0xff]   ;;  %v4905_v29 = vld [vmem:[%s8540_s0 + $0xd0] sm:$0xff]  }
   0xb   :  { %4612 = vmatpush3.bf16.msra.mxu0 %v4878_v3  ;;  %4874 = vmatpush3.bf16.msra.mxu1 %v4878_v3  ;;  %v4906_v30 = vld [vmem:[%s8540_s0 + $0xd8] sm:$0xff]   ;;  %v4907_v31 = vld [vmem:[%s8540_s0 + $0xe0] sm:$0xff]   ;;  %v4908_v32 = vld [vmem:[%s8540_s0 + $0xe8] sm:$0xff]  }
   0xc   :  { %v4909_v33 = vld [vmem:[%s8540_s0 + $0xf0] sm:$0xff]   ;;  %v4910_v34 = vld [vmem:[%s8540_s0 + $0xf8] sm:$0xff]   ;;  %v4911_v35 = vld [vmem:[%s8540_s0 + $0x100] sm:$0xff]  }
   0xd   :  { %v4943_v36 = vld [vmem:[%s8540_s0 + $0x200] sm:$0xff]   ;;  %v4944_v37 = vld [vmem:[%s8540_s0 + $0x208] sm:$0xff]   ;;  %v4913_v39 = vld [vmem:[%s8540_s0 + $0x110] sm:$0xff]  }
   0xe   :  { %4614 = vmatmul.mubr.msk.bf16.vlgmr.msra.gmra.mxu0 %vm945_vm0, %v4880_v4  ;;  %4741 = vmatprep.mubr.msk.bf16.mxu1 %vm945_vm0, %v4943_v36  ;;  %v4912_v38 = vld [vmem:[%s8540_s0 + $0x108] sm:$0xff]   ;;  %v4945_v40 = vld [vmem:[%s8540_s0 + $0x210] sm:$0xff]   ;;  %v4946_v41 = vld [vmem:[%s8540_s0 + $0x218] sm:$0xff]  }
   0xf   :  { %4617 = vmatprep.mubr.msk.bf16.mxu0 %vm945_vm0, %v4881_v5  ;;  %4742 = vmatmul.mubr.msk.bf16.vlgmr.msra.gmra.mxu1 %vm945_vm0, %v4944_v37  ;;  %v4914_v42 = vld [vmem:[%s8540_s0 + $0x118] sm:$0xff]   ;;  %v4915_v43 = vld [vmem:[%s8540_s0 + $0x120] sm:$0xff]   ;;  %v4948_v45 = vld [vmem:[%s8540_s0 + $0x228] sm:$0xff]  }
  0x10   :  { %4745 = vmatprep.mubr.msk.bf16.mxu1 %vm945_vm0, %v4945_v40  ;;  %v4947_v44 = vld [vmem:[%s8540_s0 + $0x220] sm:$0xff]   ;;  %v4916_v46 = vld [vmem:[%s8540_s0 + $0x128] sm:$0xff]   ;;  %v4917_v47 = vld [vmem:[%s8540_s0 + $0x130] sm:$0xff]  }
  0x11   :  { %v4949_v48 = vld [vmem:[%s8540_s0 + $0x230] sm:$0xff]   ;;  %v4950_v49 = vld [vmem:[%s8540_s0 + $0x238] sm:$0xff]   ;;  %v4919_v51 = vld [vmem:[%s8540_s0 + $0x140] sm:$0xff]  }
  0x12   :  { %v4918_v50 = vld [vmem:[%s8540_s0 + $0x138] sm:$0xff]   ;;  %v4951_v52 = vld [vmem:[%s8540_s0 + $0x240] sm:$0xff]   ;;  %v4952_v53 = vld [vmem:[%s8540_s0 + $0x248] sm:$0xff]  }
  0x13   :  { %v4920_v54 = vld [vmem:[%s8540_s0 + $0x148] sm:$0xff]   ;;  %v4921_v55 = vld [vmem:[%s8540_s0 + $0x150] sm:$0xff]   ;;  %v4954_v57 = vld [vmem:[%s8540_s0 + $0x258] sm:$0xff]  }
  0x14   :  { %v4953_v56 = vld [vmem:[%s8540_s0 + $0x250] sm:$0xff]   ;;  %v4922_v58 = vld [vmem:[%s8540_s0 + $0x158] sm:$0xff]   ;;  %v4923_v59 = vld [vmem:[%s8540_s0 + $0x160] sm:$0xff]  }
  0x15   :  { %v4955_v60 = vld [vmem:[%s8540_s0 + $0x260] sm:$0xff]   ;;  %v4956_v61 = vld [vmem:[%s8540_s0 + $0x268] sm:$0xff]   ;;  %v4925_v63 = vld [vmem:[%s8540_s0 + $0x170] sm:$0xff]  }
  0x16   :  { %4618 = vmatmul.mubr.msk.bf16.gmra.mxu0 %vm945_vm0, %v4882_v6  ;;  %v4924_v62 = vld [vmem:[%s8540_s0 + $0x168] sm:$0xff]   ;;  %v4957_v0 = vld [vmem:[%s8540_s0 + $0x270] sm:$0xff]   ;;  %v4958_v1 = vld [vmem:[%s8540_s0 + $0x278] sm:$0xff]  }
  0x17   :  { %4621 = vmatprep.mubr.msk.bf16.mxu0 %vm945_vm0, %v4883_v7  ;;  %4746 = vmatmul.mubr.msk.bf16.gmra.mxu1 %vm945_vm0, %v4946_v41  ;;  %v4926_v2 = vld [vmem:[%s8540_s0 + $0x178] sm:$0xff]   ;;  %v4927_v3 = vld [vmem:[%s8540_s0 + $0x180] sm:$0xff]   ;;  %v4960_v5 = vld [vmem:[%s8540_s0 + $0x288] sm:$0xff]  }
  0x18   :  { %4749 = vmatprep.mubr.msk.bf16.mxu1 %vm945_vm0, %v4947_v44  ;;  %v4959_v4 = vld [vmem:[%s8540_s0 + $0x280] sm:$0xff]   ;;  %v4928_v6 = vld [vmem:[%s8540_s0 + $0x188] sm:$0xff]   ;;  %v4929_v7 = vld [vmem:[%s8540_s0 + $0x190] sm:$0xff]  }
  0x1e   :  { %4622 = vmatmul.mubr.msk.bf16.gmra.mxu0 %vm945_vm0, %v4884_v8  ;;  %v5328_v8 = vld [vmem:[%s8541_s2] ss:$0 sm:$0xff] }
  0x1f   :  { %4625 = vmatprep.mubr.msk.bf16.mxu0 %vm945_vm0, %v4885_v9  ;;  %4750 = vmatmul.mubr.msk.bf16.gmra.mxu1 %vm945_vm0, %v4948_v45 }
  0x20   :  { %4753 = vmatprep.mubr.msk.bf16.mxu1 %vm945_vm0, %v4949_v48 }
  0x26   :  { %4626 = vmatmul.mubr.msk.bf16.gmra.mxu0 %vm945_vm0, %v4886_v10  ;;  %v4961_v10 = vld [vmem:[%s8540_s0 + $0x290] sm:$0xff]  }
  0x27   :  { %4629 = vmatprep.mubr.msk.bf16.mxu0 %vm945_vm0, %v4887_v11  ;;  %4754 = vmatmul.mubr.msk.bf16.gmra.mxu1 %vm945_vm0, %v4950_v49 }
  0x28   :  { %4757 = vmatprep.mubr.msk.bf16.mxu1 %vm945_vm0, %v4951_v52 }
  0x2e   :  { %4630 = vmatmul.mubr.msk.bf16.gmra.mxu0 %vm945_vm0, %v4888_v12  ;;  %v4962_v12 = vld [vmem:[%s8540_s0 + $0x298] sm:$0xff]  }
  0x2f   :  { %4633 = vmatprep.mubr.msk.bf16.mxu0 %vm945_vm0, %v4889_v13  ;;  %4758 = vmatmul.mubr.msk.bf16.gmra.mxu1 %vm945_vm0, %v4952_v53 }
  0x30   :  { %4761 = vmatprep.mubr.msk.bf16.mxu1 %vm945_vm0, %v4953_v56  ;;  %v4965_v56 = vld [vmem:[%s8540_s0 + $0x2b0] sm:$0xff]  }
  0x36   :  { %4634 = vmatmul.mubr.msk.bf16.gmra.mxu0 %vm945_vm0, %v4890_v14 }
  0x37   :  { %4637 = vmatprep.mubr.msk.bf16.mxu0 %vm945_vm0, %v4891_v15  ;;  %4762 = vmatmul.mubr.msk.bf16.gmra.mxu1 %vm945_vm0, %v4954_v57 }
  0x38   :  { %4765 = vmatprep.mubr.msk.bf16.mxu1 %vm945_vm0, %v4955_v60  ;;  %v4966_v60 = vld [vmem:[%s8540_s0 + $0x2b8] sm:$0xff]  }
  0x3e   :  { %4638 = vmatmul.mubr.msk.bf16.gmra.mxu0 %vm945_vm0, %v4892_v16 }
  0x3f   :  { %4641 = vmatprep.mubr.msk.bf16.mxu0 %vm945_vm0, %v4893_v17  ;;  %4766 = vmatmul.mubr.msk.bf16.gmra.mxu1 %vm945_vm0, %v4956_v61  ;;  %v4930_v17 = vld [vmem:[%s8540_s0 + $0x198] sm:$0xff]  }
  0x40   :  { %4769 = vmatprep.mubr.msk.bf16.mxu1 %vm945_vm0, %v4957_v0 }
  0x46   :  { %4642 = vmatmul.mubr.msk.bf16.gmra.mxu0 %vm945_vm0, %v4894_v18 }
  0x47   :  { %4645 = vmatprep.mubr.msk.bf16.mxu0 %vm945_vm0, %v4895_v19  ;;  %4770 = vmatmul.mubr.msk.bf16.gmra.mxu1 %vm945_vm0, %v4958_v1 }
  0x48   :  { %4773 = vmatprep.mubr.msk.bf16.mxu1 %vm945_vm0, %v4959_v4 }
  0x4e   :  { %4646 = vmatmul.mubr.msk.bf16.gmra.mxu0 %vm945_vm0, %v4896_v20  ;;  %v4931_v20 = vld [vmem:[%s8540_s0 + $0x1a0] sm:$0xff]  }
  0x4f   :  { %4649 = vmatprep.mubr.msk.bf16.mxu0 %vm945_vm0, %v4897_v21  ;;  %4774 = vmatmul.mubr.msk.bf16.gmra.mxu1 %vm945_vm0, %v4960_v5 }
  0x50   :  { %4777 = vmatprep.mubr.msk.bf16.mxu1 %vm945_vm0, %v4961_v10 }
  0x56   :  { %4650 = vmatmul.mubr.msk.bf16.gmra.mxu0 %vm945_vm0, %v4898_v22 }
  0x57   :  { %4653 = vmatprep.mubr.msk.bf16.mxu0 %vm945_vm0, %v4899_v23  ;;  %4778 = vmatmul.mubr.msk.bf16.gmra.mxu1 %vm945_vm0, %v4962_v12 }
  0x5e   :  { %4654 = vmatmul.mubr.msk.bf16.gmra.mxu0 %vm945_vm0, %v4900_v24 }
  0x5f   :  { %4657 = vmatprep.mubr.msk.bf16.mxu0 %vm945_vm0, %v4901_v25  ;;  %v4963_v25 = vld [vmem:[%s8540_s0 + $0x2a0] sm:$0xff]  }
  0x60   :  { %4781 = vmatprep.mubr.msk.bf16.mxu1 %vm945_vm0, %v4963_v25 }
  0x66   :  { %4658 = vmatmul.mubr.msk.bf16.gmra.mxu0 %vm945_vm0, %v4902_v26 }
  0x67   :  { %4661 = vmatprep.mubr.msk.bf16.mxu0 %vm945_vm0, %v4903_v27  ;;  %v4964_v27 = vld [vmem:[%s8540_s0 + $0x2a8] sm:$0xff]  }
  0x68   :  { %4782 = vmatmul.mubr.msk.bf16.gmra.mxu1 %vm945_vm0, %v4964_v27 }
  0x69   :  { %4785 = vmatprep.mubr.msk.bf16.mxu1 %vm945_vm0, %v4965_v56 }
  0x6e   :  { %4662 = vmatmul.mubr.msk.bf16.gmra.mxu0 %vm945_vm0, %v4904_v28 }
  0x6f   :  { %4665 = vmatprep.mubr.msk.bf16.mxu0 %vm945_vm0, %v4905_v29 }
  0x70   :  { %4786 = vmatmul.mubr.msk.bf16.gmra.mxu1 %vm945_vm0, %v4966_v60 }
  0x76   :  { %4666 = vmatmul.mubr.msk.bf16.gmra.mxu0 %vm945_vm0, %v4906_v30 }
  0x77   :  { %4669 = vmatprep.mubr.msk.bf16.mxu0 %vm945_vm0, %v4907_v31 }
  0x7e   :  { %4670 = vmatmul.mubr.msk.bf16.gmra.mxu0 %vm945_vm0, %v4908_v32 }
  0x7f   :  { %4673 = vmatprep.mubr.msk.bf16.mxu0 %vm945_vm0, %v4909_v33 }
  0x86   :  { %4674 = vmatmul.mubr.msk.bf16.gmra.mxu0 %vm945_vm0, %v4910_v34 }
  0x87   :  { %4677 = vmatprep.mubr.msk.bf16.mxu0 %vm945_vm0, %v4911_v35 }
  0x8e   :  { %4678 = vmatmul.mubr.msk.bf16.gmra.mxu0 %vm945_vm0, %v4912_v38  ;;  %v4932_v38 = vld [vmem:[%s8540_s0 + $0x1a8] sm:$0xff]  }
  0x8f   :  { %4681 = vmatprep.mubr.msk.bf16.mxu0 %vm945_vm0, %v4913_v39 }
  0x96   :  { %4682 = vmatmul.mubr.msk.bf16.gmra.mxu0 %vm945_vm0, %v4914_v42  ;;  %v4933_v42 = vld [vmem:[%s8540_s0 + $0x1b0] sm:$0xff]  }
  0x97   :  { %4685 = vmatprep.mubr.msk.bf16.mxu0 %vm945_vm0, %v4915_v43 }
  0x9e   :  { %4686 = vmatmul.mubr.msk.bf16.gmra.mxu0 %vm945_vm0, %v4916_v46 }
  0x9f   :  { %4689 = vmatprep.mubr.msk.bf16.mxu0 %vm945_vm0, %v4917_v47 }
  0xa6   :  { %4690 = vmatmul.mubr.msk.bf16.gmra.mxu0 %vm945_vm0, %v4918_v50 }
  0xa7   :  { %4693 = vmatprep.mubr.msk.bf16.mxu0 %vm945_vm0, %v4919_v51 }
  0xae   :  { %4694 = vmatmul.mubr.msk.bf16.gmra.mxu0 %vm945_vm0, %v4920_v54 }
  0xaf   :  { %4697 = vmatprep.mubr.msk.bf16.mxu0 %vm945_vm0, %v4921_v55 }
  0xb6   :  { %4698 = vmatmul.mubr.msk.bf16.gmra.mxu0 %vm945_vm0, %v4922_v58 }
  0xb7   :  { %4701 = vmatprep.mubr.msk.bf16.mxu0 %vm945_vm0, %v4923_v59 }
  0xbe   :  { %4702 = vmatmul.mubr.msk.bf16.gmra.mxu0 %vm945_vm0, %v4924_v62 }
  0xbf   :  { %4705 = vmatprep.mubr.msk.bf16.mxu0 %vm945_vm0, %v4925_v63 }
  0xc6   :  { %4706 = vmatmul.mubr.msk.bf16.gmra.mxu0 %vm945_vm0, %v4926_v2 }
  0xc7   :  { %4709 = vmatprep.mubr.msk.bf16.mxu0 %vm945_vm0, %v4927_v3 }
  0xce   :  { %v4615_v9 = vpop.f32.mrf.mxu0  ;;  %4710 = vmatmul.mubr.msk.bf16.gmra.mxu0 %vm945_vm0, %v4928_v6 }
  0xcf   :  { %v1373_v11 = vadd.f32 %v4615_v9, %v5328_v8  ;;  %4713 = vmatprep.mubr.msk.bf16.mxu0 %vm945_vm0, %v4929_v7 }
  0xd0   :  { %v1364_v13 = vpop.f32.mrf.mxu0 }
  0xd1   :  { %v2389_v14 = vmax.f32 %v1373_v11, 0.0  ;;  %v1365_v15 = vadd.f32 %v5328_v8, %v1364_v13  ;;  %v4934_v11 = vld [vmem:[%s8540_s0 + $0x1b8] sm:$0xff]  }
  0xd2   :  { %v4616_v16 = vpop.f32.mrf.mxu0 }
  0xd3   :  { %2646 = vst.msk [vmem:[%s8542_s3 + $0x10] sm:$0xff] %vm2643_vm1, %v2389_v14  ;;  %v2387_v18 = vmax.f32 %v1365_v15, 0.0  ;;  %v1376_v19 = vadd.f32 %v4616_v16, %v5328_v8  ;;  %v3431_v31 = vmul.f32 %v2389_v14, %v2389_v14  ;;  %v2911_v39 = vsel %vm2643_vm1, %v2389_v14, 0.0  ;;  %v4935_v15 = vld [vmem:[%s8540_s0 + $0x1c0] sm:$0xff]  }
  0xd4   :  { %v1367_v21 = vpop.f32.mrf.mxu0 }
  0xd5   :  { %2644 = vst.msk [vmem:[%s8542_s3] sm:$0xff] %vm2643_vm1, %v2387_v18  ;;  %v2390_v22 = vmax.f32 %v1376_v19, 0.0  ;;  %v1368_v23 = vadd.f32 %v5328_v8, %v1367_v21  ;;  %v3429_v28 = vmul.f32 %v2387_v18, %v2387_v18  ;;  %v2908_v34 = vsel %vm2643_vm1, %v2387_v18, 0.0 }
  0xd6   :  { %v4619_v24 = vpop.f32.mrf.mxu0  ;;  %4714 = vmatmul.mubr.msk.bf16.gmra.mxu0 %vm945_vm0, %v4930_v17  ;;  %v3688_v48 = vsel %vm2643_vm1, %v3431_v31, 0.0 }
  0xd7   :  { %2647 = vst.msk [vmem:[%s8542_s3 + $0x18] sm:$0xff] %vm2643_vm1, %v2390_v22  ;;  %v1389_v26 = vadd.f32 %v4619_v24, %v5328_v8  ;;  %4717 = vmatprep.mubr.msk.bf16.mxu0 %vm945_vm0, %v4931_v20  ;;  %v2388_v29 = vmax.f32 %v1368_v23, 0.0  ;;  %v3685_v43 = vsel %vm2643_vm1, %v3429_v28, 0.0  ;;  %v3432_v44 = vmul.f32 %v2390_v22, %v2390_v22 }
  0xd8   :  { %v1380_v30 = vpop.f32.mrf.mxu0  ;;  %v2913_v51 = vsel %vm2643_vm1, %v2390_v22, 0.0 }
  0xd9   :  { %v2393_v32 = vmax.f32 %v1389_v26, 0.0  ;;  %v1381_v33 = vadd.f32 %v5328_v8, %v1380_v30  ;;  %2645 = vst.msk [vmem:[%s8542_s3 + $0x8] sm:$0xff] %vm2643_vm1, %v2388_v29  ;;  %v2909_v35 = vsel %vm2643_vm1, %v2388_v29, 0.0  ;;  %v3430_v36 = vmul.f32 %v2388_v29, %v2388_v29  ;;  %v4967_v29 = vld [vmem:[%s8540_s0 + $0x2c0] sm:$0xff]  }
  0xda   :  { %v4620_v37 = vpop.f32.mrf.mxu0  ;;  %v2910_v40 = vadd.f32 %v2909_v35, %v2908_v34  ;;  %v3690_v61 = vsel %vm2643_vm1, %v3432_v44, 0.0  ;;  %v4968_v34 = vld [vmem:[%s8540_s0 + $0x2c8] sm:$0xff]   ;;  %4789 = vmatprep.mubr.msk.bf16.mxu1 %vm945_vm0, %v4967_v29 }
  0xdb   :  { %2650 = vst.msk [vmem:[%s8542_s3 + $0x30] sm:$0xff] %vm2643_vm1, %v2393_v32  ;;  %v2391_v41 = vmax.f32 %v1381_v33, 0.0  ;;  %v3686_v45 = vsel %vm2643_vm1, %v3430_v36, 0.0  ;;  %v1392_v46 = vadd.f32 %v4620_v37, %v5328_v8  ;;  %v3435_v5 = vmul.f32 %v2393_v32, %v2393_v32  ;;  %4790 = vmatmul.mubr.msk.bf16.gmra.mxu1 %vm945_vm0, %v4968_v34 }
  0xdc   :  { %v1383_v47 = vpop.f32.mrf.mxu0  ;;  %v2912_v49 = vadd.f32 %v2911_v39, %v2910_v40  ;;  %v3687_v50 = vadd.f32 %v3686_v45, %v3685_v43  ;;  %v2919_v12 = vsel %vm2643_vm1, %v2393_v32, 0.0 }
  0xdd   :  { %2648 = vst.msk [vmem:[%s8542_s3 + $0x20] sm:$0xff] %vm2643_vm1, %v2391_v41  ;;  %v3433_v52 = vmul.f32 %v2391_v41, %v2391_v41  ;;  %v2394_v53 = vmax.f32 %v1392_v46, 0.0  ;;  %v1384_v54 = vadd.f32 %v5328_v8, %v1383_v47  ;;  %v2915_v62 = vsel %vm2643_vm1, %v2391_v41, 0.0  ;;  %v4936_v47 = vld [vmem:[%s8540_s0 + $0x1c8] sm:$0xff]  }
  0xde   :  { %v4623_v55 = vpop.f32.mrf.mxu0  ;;  %4718 = vmatmul.mubr.msk.bf16.gmra.mxu0 %vm945_vm0, %v4932_v38  ;;  %v2914_v57 = vadd.f32 %v2913_v51, %v2912_v49  ;;  %v3689_v58 = vadd.f32 %v3688_v48, %v3687_v50  ;;  %v3696_v24 = vsel %vm2643_vm1, %v3435_v5, 0.0 }
  0xdf   :  { %v1405_v59 = vadd.f32 %v4623_v55, %v5328_v8  ;;  %4721 = vmatprep.mubr.msk.bf16.mxu0 %vm945_vm0, %v4933_v42  ;;  %2651 = vst.msk [vmem:[%s8542_s3 + $0x38] sm:$0xff] %vm2643_vm1, %v2394_v53  ;;  %v2392_v63 = vmax.f32 %v1384_v54, 0.0  ;;  %v3692_v6 = vsel %vm2643_vm1, %v3433_v52, 0.0  ;;  %v3436_v16 = vmul.f32 %v2394_v53, %v2394_v53  ;;  %v4937_v52 = vld [vmem:[%s8540_s0 + $0x1d0] sm:$0xff]  }
  0xe0   :  { %v1396_v0 = vpop.f32.mrf.mxu0  ;;  %v3691_v1 = vadd.f32 %v3690_v61, %v3689_v58  ;;  %v2916_v2 = vadd.f32 %v2915_v62, %v2914_v57  ;;  %v2921_v25 = vsel %vm2643_vm1, %v2394_v53, 0.0 }
  0xe1   :  { %v2397_v3 = vmax.f32 %v1405_v59, 0.0  ;;  %v1397_v4 = vadd.f32 %v5328_v8, %v1396_v0  ;;  %2649 = vst.msk [vmem:[%s8542_s3 + $0x28] sm:$0xff] %vm2643_vm1, %v2392_v63  ;;  %v2917_v7 = vsel %vm2643_vm1, %v2392_v63, 0.0  ;;  %v3434_v9 = vmul.f32 %v2392_v63, %v2392_v63 }
  0xe2   :  { %v4624_v10 = vpop.f32.mrf.mxu0  ;;  %v3693_v13 = vadd.f32 %v3692_v6, %v3691_v1  ;;  %v2918_v14 = vadd.f32 %v2917_v7, %v2916_v2  ;;  %v3698_v35 = vsel %vm2643_vm1, %v3436_v16, 0.0  ;;  %v4969_v1 = vld [vmem:[%s8540_s0 + $0x2d0] sm:$0xff]  }
  0xe3   :  { %2654 = vst.msk [vmem:[%s8542_s3 + $0x50] sm:$0xff] %vm2643_vm1, %v2397_v3  ;;  %v3694_v17 = vsel %vm2643_vm1, %v3434_v9, 0.0  ;;  %v2395_v18 = vmax.f32 %v1397_v4, 0.0  ;;  %v1408_v19 = vadd.f32 %v4624_v10, %v5328_v8  ;;  %v3439_v42 = vmul.f32 %v2397_v3, %v2397_v3  ;;  %v4970_v4 = vld [vmem:[%s8540_s0 + $0x2d8] sm:$0xff]   ;;  %4793 = vmatprep.mubr.msk.bf16.mxu1 %vm945_vm0, %v4969_v1 }
  0xe4   :  { %v1399_v20 = vpop.f32.mrf.mxu0  ;;  %v2920_v21 = vadd.f32 %v2919_v12, %v2918_v14  ;;  %v3695_v22 = vadd.f32 %v3694_v17, %v3693_v13  ;;  %v2927_v53 = vsel %vm2643_vm1, %v2397_v3, 0.0  ;;  %4794 = vmatmul.mubr.msk.bf16.gmra.mxu1 %vm945_vm0, %v4970_v4 }
  0xe5   :  { %v1400_v23 = vadd.f32 %v5328_v8, %v1399_v20  ;;  %2652 = vst.msk [vmem:[%s8542_s3 + $0x40] sm:$0xff] %vm2643_vm1, %v2395_v18  ;;  %v3437_v26 = vmul.f32 %v2395_v18, %v2395_v18  ;;  %v2398_v27 = vmax.f32 %v1408_v19, 0.0  ;;  %v2923_v36 = vsel %vm2643_vm1, %v2395_v18, 0.0  ;;  %v4938_v20 = vld [vmem:[%s8540_s0 + $0x1d8] sm:$0xff]  }
  0xe6   :  { %v4627_v28 = vpop.f32.mrf.mxu0  ;;  %4722 = vmatmul.mubr.msk.bf16.gmra.mxu0 %vm945_vm0, %v4934_v11  ;;  %v2922_v30 = vadd.f32 %v2921_v25, %v2920_v21  ;;  %v3697_v31 = vadd.f32 %v3696_v24, %v3695_v22  ;;  %v3704_v61 = vsel %vm2643_vm1, %v3439_v42, 0.0  ;;  %v4939_v25 = vld [vmem:[%s8540_s0 + $0x1e0] sm:$0xff]   ;;  %v4972_v42 = vld [vmem:[%s8540_s0 + $0x2e8] sm:$0xff]  }
  0xe7   :  { %v2396_v32 = vmax.f32 %v1400_v23, 0.0  ;;  %v1421_v33 = vadd.f32 %v4627_v28, %v5328_v8  ;;  %4725 = vmatprep.mubr.msk.bf16.mxu0 %vm945_vm0, %v4935_v15  ;;  %2655 = vst.msk [vmem:[%s8542_s3 + $0x58] sm:$0xff] %vm2643_vm1, %v2398_v27  ;;  %v3700_v43 = vsel %vm2643_vm1, %v3437_v26, 0.0  ;;  %v3440_v54 = vmul.f32 %v2398_v27, %v2398_v27 }
  0xe8   :  { %v1412_v37 = vpop.f32.mrf.mxu0  ;;  %v3699_v38 = vadd.f32 %v3698_v35, %v3697_v31  ;;  %v2924_v39 = vadd.f32 %v2923_v36, %v2922_v30  ;;  %v2929_v62 = vsel %vm2643_vm1, %v2398_v27, 0.0 }
  0xe9   :  { %2653 = vst.msk [vmem:[%s8542_s3 + $0x48] sm:$0xff] %vm2643_vm1, %v2396_v32  ;;  %v2925_v40 = vsel %vm2643_vm1, %v2396_v32, 0.0  ;;  %v3438_v41 = vmul.f32 %v2396_v32, %v2396_v32  ;;  %v2401_v44 = vmax.f32 %v1421_v33, 0.0  ;;  %v1413_v45 = vadd.f32 %v5328_v8, %v1412_v37 }
  0xea   :  { %v4628_v46 = vpop.f32.mrf.mxu0  ;;  %v3701_v48 = vadd.f32 %v3700_v43, %v3699_v38  ;;  %v2926_v49 = vadd.f32 %v2925_v40, %v2924_v39  ;;  %v3706_v5 = vsel %vm2643_vm1, %v3440_v54, 0.0  ;;  %v4971_v38 = vld [vmem:[%s8540_s0 + $0x2e0] sm:$0xff]  }
  0xeb   :  { %v3702_v50 = vsel %vm2643_vm1, %v3438_v41, 0.0  ;;  %v1424_v51 = vadd.f32 %v4628_v46, %v5328_v8  ;;  %2658 = vst.msk [vmem:[%s8542_s3 + $0x70] sm:$0xff] %vm2643_vm1, %v2401_v44  ;;  %v2399_v55 = vmax.f32 %v1413_v45, 0.0  ;;  %v3443_v12 = vmul.f32 %v2401_v44, %v2401_v44  ;;  %4797 = vmatprep.mubr.msk.bf16.mxu1 %vm945_vm0, %v4971_v38 }
  0xec   :  { %v1415_v56 = vpop.f32.mrf.mxu0  ;;  %v2928_v57 = vadd.f32 %v2927_v53, %v2926_v49  ;;  %v3703_v58 = vadd.f32 %v3702_v50, %v3701_v48  ;;  %v2935_v26 = vsel %vm2643_vm1, %v2401_v44, 0.0  ;;  %4798 = vmatmul.mubr.msk.bf16.gmra.mxu1 %vm945_vm0, %v4972_v42 }
  0xed   :  { %v2402_v59 = vmax.f32 %v1424_v51, 0.0  ;;  %v1416_v60 = vadd.f32 %v5328_v8, %v1415_v56  ;;  %2656 = vst.msk [vmem:[%s8542_s3 + $0x60] sm:$0xff] %vm2643_vm1, %v2399_v55  ;;  %v3441_v63 = vmul.f32 %v2399_v55, %v2399_v55  ;;  %v2931_v6 = vsel %vm2643_vm1, %v2399_v55, 0.0  ;;  %v4940_v56 = vld [vmem:[%s8540_s0 + $0x1e8] sm:$0xff]  }
  0xee   :  { %v4631_v0 = vpop.f32.mrf.mxu0  ;;  %4726 = vmatmul.mubr.msk.bf16.gmra.mxu0 %vm945_vm0, %v4936_v47  ;;  %v2930_v2 = vadd.f32 %v2929_v62, %v2928_v57  ;;  %v3705_v3 = vadd.f32 %v3704_v61, %v3703_v58  ;;  %v3712_v30 = vsel %vm2643_vm1, %v3443_v12, 0.0 }
  0xef   :  { %2659 = vst.msk [vmem:[%s8542_s3 + $0x78] sm:$0xff] %vm2643_vm1, %v2402_v59  ;;  %4729 = vmatprep.mubr.msk.bf16.mxu0 %vm945_vm0, %v4937_v52  ;;  %v2400_v7 = vmax.f32 %v1416_v60, 0.0  ;;  %v1437_v9 = vadd.f32 %v4631_v0, %v5328_v8  ;;  %v3708_v15 = vsel %vm2643_vm1, %v3441_v63, 0.0  ;;  %v3444_v27 = vmul.f32 %v2402_v59, %v2402_v59  ;;  %v4941_v60 = vld [vmem:[%s8540_s0 + $0x1f0] sm:$0xff]  }
  0xf0   :  { %v1428_v10 = vpop.f32.mrf.mxu0  ;;  %v3707_v11 = vadd.f32 %v3706_v5, %v3705_v3  ;;  %v2932_v13 = vadd.f32 %v2931_v6, %v2930_v2  ;;  %v2937_v33 = vsel %vm2643_vm1, %v2402_v59, 0.0 }
  0xf1   :  { %v1429_v14 = vadd.f32 %v5328_v8, %v1428_v10  ;;  %2657 = vst.msk [vmem:[%s8542_s3 + $0x68] sm:$0xff] %vm2643_vm1, %v2400_v7  ;;  %v2933_v16 = vsel %vm2643_vm1, %v2400_v7, 0.0  ;;  %v3442_v17 = vmul.f32 %v2400_v7, %v2400_v7  ;;  %v2405_v18 = vmax.f32 %v1437_v9, 0.0 }
  0xf2   :  { %v4632_v19 = vpop.f32.mrf.mxu0  ;;  %v3709_v21 = vadd.f32 %v3708_v15, %v3707_v11  ;;  %v2934_v22 = vadd.f32 %v2933_v16, %v2932_v13  ;;  %v3714_v43 = vsel %vm2643_vm1, %v3444_v27, 0.0  ;;  %v4973_v11 = vld [vmem:[%s8540_s0 + $0x2f0] sm:$0xff]   ;;  %v4974_v16 = vld [vmem:[%s8540_s0 + $0x2f8] sm:$0xff]  }
  0xf3   :  { %v2403_v23 = vmax.f32 %v1429_v14, 0.0  ;;  %v1440_v24 = vadd.f32 %v4632_v19, %v5328_v8  ;;  %v3710_v28 = vsel %vm2643_vm1, %v3442_v17, 0.0  ;;  %2662 = vst.msk [vmem:[%s8542_s3 + $0x90] sm:$0xff] %vm2643_vm1, %v2405_v18  ;;  %v3447_v51 = vmul.f32 %v2405_v18, %v2405_v18  ;;  %4801 = vmatprep.mubr.msk.bf16.mxu1 %vm945_vm0, %v4973_v11 }
  0xf4   :  { %v1431_v29 = vpop.f32.mrf.mxu0  ;;  %v2936_v31 = vadd.f32 %v2935_v26, %v2934_v22  ;;  %v3711_v32 = vadd.f32 %v3710_v28, %v3709_v21  ;;  %v2943_v57 = vsel %vm2643_vm1, %v2405_v18, 0.0  ;;  %4802 = vmatmul.mubr.msk.bf16.gmra.mxu1 %vm945_vm0, %v4974_v16 }
  0xf5   :  { %2660 = vst.msk [vmem:[%s8542_s3 + $0x80] sm:$0xff] %vm2643_vm1, %v2403_v23  ;;  %v3445_v34 = vmul.f32 %v2403_v23, %v2403_v23  ;;  %v2406_v35 = vmax.f32 %v1440_v24, 0.0  ;;  %v1432_v36 = vadd.f32 %v5328_v8, %v1431_v29  ;;  %v2939_v44 = vsel %vm2643_vm1, %v2403_v23, 0.0  ;;  %v4942_v29 = vld [vmem:[%s8540_s0 + $0x1f8] sm:$0xff]  }
  0xf6   :  { %v4635_v37 = vpop.f32.mrf.mxu0  ;;  %4730 = vmatmul.mubr.msk.bf16.gmra.mxu0 %vm945_vm0, %v4938_v20  ;;  %v2938_v39 = vadd.f32 %v2937_v33, %v2936_v31  ;;  %v3713_v40 = vadd.f32 %v3712_v30, %v3711_v32  ;;  %v3720_v5 = vsel %vm2643_vm1, %v3447_v51, 0.0 }
  0xf7   :  { %v1453_v41 = vadd.f32 %v4635_v37, %v5328_v8  ;;  %4733 = vmatprep.mubr.msk.bf16.mxu0 %vm945_vm0, %v4939_v25  ;;  %2663 = vst.msk [vmem:[%s8542_s3 + $0x98] sm:$0xff] %vm2643_vm1, %v2406_v35  ;;  %v2404_v45 = vmax.f32 %v1432_v36, 0.0  ;;  %v3716_v52 = vsel %vm2643_vm1, %v3445_v34, 0.0  ;;  %v3448_v61 = vmul.f32 %v2406_v35, %v2406_v35 }
  0xf8   :  { %v1444_v46 = vpop.f32.mrf.mxu0  ;;  %v3715_v47 = vadd.f32 %v3714_v43, %v3713_v40  ;;  %v2940_v48 = vadd.f32 %v2939_v44, %v2938_v39  ;;  %v2945_v6 = vsel %vm2643_vm1, %v2406_v35, 0.0 }
  0xf9   :  { %v2409_v49 = vmax.f32 %v1453_v41, 0.0  ;;  %v1445_v50 = vadd.f32 %v5328_v8, %v1444_v46  ;;  %2661 = vst.msk [vmem:[%s8542_s3 + $0x88] sm:$0xff] %vm2643_vm1, %v2404_v45  ;;  %v2941_v53 = vsel %vm2643_vm1, %v2404_v45, 0.0  ;;  %v3446_v54 = vmul.f32 %v2404_v45, %v2404_v45  ;;  %v4975_v46 = vld [vmem:[%s8540_s0 + $0x300] sm:$0xff]  }
  0xfa   :  { %v4636_v55 = vpop.f32.mrf.mxu0  ;;  %v3717_v58 = vadd.f32 %v3716_v52, %v3715_v47  ;;  %v2942_v59 = vadd.f32 %v2941_v53, %v2940_v48  ;;  %v3722_v17 = vsel %vm2643_vm1, %v3448_v61, 0.0  ;;  %4805 = vmatprep.mubr.msk.bf16.mxu1 %vm945_vm0, %v4975_v46 }
  0xfb   :  { %2666 = vst.msk [vmem:[%s8542_s3 + $0xb0] sm:$0xff] %vm2643_vm1, %v2409_v49  ;;  %v3718_v62 = vsel %vm2643_vm1, %v3446_v54, 0.0  ;;  %v2407_v63 = vmax.f32 %v1445_v50, 0.0  ;;  %v1456_v0 = vadd.f32 %v4636_v55, %v5328_v8  ;;  %v3451_v24 = vmul.f32 %v2409_v49, %v2409_v49 }
  0xfc   :  { %v1447_v1 = vpop.f32.mrf.mxu0  ;;  %v2944_v2 = vadd.f32 %v2943_v57, %v2942_v59  ;;  %v3719_v3 = vadd.f32 %v3718_v62, %v3717_v58  ;;  %v2951_v34 = vsel %vm2643_vm1, %v2409_v49, 0.0  ;;  %v4976_v49 = vld [vmem:[%s8540_s0 + $0x308] sm:$0xff]  }
  0xfd   :  { %v1448_v4 = vadd.f32 %v5328_v8, %v1447_v1  ;;  %2664 = vst.msk [vmem:[%s8542_s3 + $0xa0] sm:$0xff] %vm2643_vm1, %v2407_v63  ;;  %v3449_v7 = vmul.f32 %v2407_v63, %v2407_v63  ;;  %v2410_v9 = vmax.f32 %v1456_v0, 0.0  ;;  %v2947_v18 = vsel %vm2643_vm1, %v2407_v63, 0.0  ;;  %4806 = vmatmul.mubr.msk.bf16.gmra.mxu1 %vm945_vm0, %v4976_v49 }
  0xfe   :  { %v4639_v10 = vpop.f32.mrf.mxu0  ;;  %4734 = vmatmul.mubr.msk.bf16.gmra.mxu0 %vm945_vm0, %v4940_v56  ;;  %v2946_v12 = vadd.f32 %v2945_v6, %v2944_v2  ;;  %v3721_v13 = vadd.f32 %v3720_v5, %v3719_v3  ;;  %v3728_v42 = vsel %vm2643_vm1, %v3451_v24, 0.0 }
  0xff   :  { %v2408_v14 = vmax.f32 %v1448_v4, 0.0  ;;  %v1469_v15 = vadd.f32 %v4639_v10, %v5328_v8  ;;  %4737 = vmatprep.mubr.msk.bf16.mxu0 %vm945_vm0, %v4941_v60  ;;  %2667 = vst.msk [vmem:[%s8542_s3 + $0xb8] sm:$0xff] %vm2643_vm1, %v2410_v9  ;;  %v3724_v25 = vsel %vm2643_vm1, %v3449_v7, 0.0  ;;  %v3452_v35 = vmul.f32 %v2410_v9, %v2410_v9 }
 0x100   :  { %v1460_v19 = vpop.f32.mrf.mxu0  ;;  %v3723_v20 = vadd.f32 %v3722_v17, %v3721_v13  ;;  %v2948_v21 = vadd.f32 %v2947_v18, %v2946_v12  ;;  %v2953_v43 = vsel %vm2643_vm1, %v2410_v9, 0.0  ;;  %v4977_v17 = vld [vmem:[%s8540_s0 + $0x310] sm:$0xff]  }
 0x101   :  { %2665 = vst.msk [vmem:[%s8542_s3 + $0xa8] sm:$0xff] %vm2643_vm1, %v2408_v14  ;;  %v2949_v22 = vsel %vm2643_vm1, %v2408_v14, 0.0  ;;  %v3450_v23 = vmul.f32 %v2408_v14, %v2408_v14  ;;  %v2413_v26 = vmax.f32 %v1469_v15, 0.0  ;;  %v1461_v27 = vadd.f32 %v5328_v8, %v1460_v19  ;;  %4809 = vmatprep.mubr.msk.bf16.mxu1 %vm945_vm0, %v4977_v17 }
 0x102   :  { %v4640_v28 = vpop.f32.mrf.mxu0  ;;  %v3725_v30 = vadd.f32 %v3724_v25, %v3723_v20  ;;  %v2950_v31 = vadd.f32 %v2949_v22, %v2948_v21  ;;  %v3730_v50 = vsel %vm2643_vm1, %v3452_v35, 0.0  ;;  %v4978_v21 = vld [vmem:[%s8540_s0 + $0x318] sm:$0xff]  }
 0x103   :  { %v3726_v32 = vsel %vm2643_vm1, %v3450_v23, 0.0  ;;  %v1472_v33 = vadd.f32 %v4640_v28, %v5328_v8  ;;  %2670 = vst.msk [vmem:[%s8542_s3 + $0xd0] sm:$0xff] %vm2643_vm1, %v2413_v26  ;;  %v2411_v36 = vmax.f32 %v1461_v27, 0.0  ;;  %v3455_v56 = vmul.f32 %v2413_v26, %v2413_v26 }
 0x104   :  { %v1463_v37 = vpop.f32.mrf.mxu0  ;;  %v2952_v38 = vadd.f32 %v2951_v34, %v2950_v31  ;;  %v3727_v39 = vadd.f32 %v3726_v32, %v3725_v30  ;;  %v2959_v4 = vsel %vm2643_vm1, %v2413_v26, 0.0 }
 0x105   :  { %v2414_v40 = vmax.f32 %v1472_v33, 0.0  ;;  %v1464_v41 = vadd.f32 %v5328_v8, %v1463_v37  ;;  %2668 = vst.msk [vmem:[%s8542_s3 + $0xc0] sm:$0xff] %vm2643_vm1, %v2411_v36  ;;  %v3453_v44 = vmul.f32 %v2411_v36, %v2411_v36  ;;  %v2955_v51 = vsel %vm2643_vm1, %v2411_v36, 0.0  ;;  %4810 = vmatmul.mubr.msk.bf16.gmra.mxu1 %vm945_vm0, %v4978_v21 }
 0x106   :  { %v4643_v45 = vpop.f32.mrf.mxu0  ;;  %4738 = vmatmul.mubr.msk.bf16.gmra.mxu0 %vm945_vm0, %v4942_v29  ;;  %v2954_v47 = vadd.f32 %v2953_v43, %v2952_v38  ;;  %v3729_v48 = vadd.f32 %v3728_v42, %v3727_v39  ;;  %v3736_v9 = vsel %vm2643_vm1, %v3455_v56, 0.0  ;;  %v4980_v56 = vld [vmem:[%s8540_s0 + $0x328] sm:$0xff]  }
 0x107   :  { %2671 = vst.msk [vmem:[%s8542_s3 + $0xd8] sm:$0xff] %vm2643_vm1, %v2414_v40  ;;  %v2412_v52 = vmax.f32 %v1464_v41, 0.0  ;;  %v1485_v53 = vadd.f32 %v4643_v45, %v5328_v8  ;;  %v3732_v59 = vsel %vm2643_vm1, %v3453_v44, 0.0  ;;  %v3456_v5 = vmul.f32 %v2414_v40, %v2414_v40 }
 0x108   :  { %v1476_v54 = vpop.f32.mrf.mxu0  ;;  %v3731_v55 = vadd.f32 %v3730_v50, %v3729_v48  ;;  %v2956_v57 = vadd.f32 %v2955_v51, %v2954_v47  ;;  %v2961_v12 = vsel %vm2643_vm1, %v2414_v40, 0.0  ;;  %v4979_v51 = vld [vmem:[%s8540_s0 + $0x320] sm:$0xff]  }
 0x109   :  { %v1477_v58 = vadd.f32 %v5328_v8, %v1476_v54  ;;  %2669 = vst.msk [vmem:[%s8542_s3 + $0xc8] sm:$0xff] %vm2643_vm1, %v2412_v52  ;;  %v2957_v60 = vsel %vm2643_vm1, %v2412_v52, 0.0  ;;  %v3454_v61 = vmul.f32 %v2412_v52, %v2412_v52  ;;  %v2417_v62 = vmax.f32 %v1485_v53, 0.0  ;;  %4813 = vmatprep.mubr.msk.bf16.mxu1 %vm945_vm0, %v4979_v51 }
 0x10a   :  { %v4644_v63 = vpop.f32.mrf.mxu0  ;;  %v3733_v0 = vadd.f32 %v3732_v59, %v3731_v55  ;;  %v2958_v1 = vadd.f32 %v2957_v60, %v2956_v57  ;;  %v3738_v22 = vsel %vm2643_vm1, %v3456_v5, 0.0 }
 0x10b   :  { %v2415_v2 = vmax.f32 %v1477_v58, 0.0  ;;  %v1488_v3 = vadd.f32 %v4644_v63, %v5328_v8  ;;  %v3734_v6 = vsel %vm2643_vm1, %v3454_v61, 0.0  ;;  %2674 = vst.msk [vmem:[%s8542_s3 + $0xf0] sm:$0xff] %vm2643_vm1, %v2417_v62  ;;  %v3459_v30 = vmul.f32 %v2417_v62, %v2417_v62 }
 0x10c   :  { %v1479_v7 = vpop.f32.mrf.mxu0  ;;  %v2960_v10 = vadd.f32 %v2959_v4, %v2958_v1  ;;  %v3735_v11 = vadd.f32 %v3734_v6, %v3733_v0  ;;  %v2967_v35 = vsel %vm2643_vm1, %v2417_v62, 0.0 }
 0x10d   :  { %2672 = vst.msk [vmem:[%s8542_s3 + $0xe0] sm:$0xff] %vm2643_vm1, %v2415_v2  ;;  %v3457_v13 = vmul.f32 %v2415_v2, %v2415_v2  ;;  %v2418_v14 = vmax.f32 %v1488_v3, 0.0  ;;  %v1480_v15 = vadd.f32 %v5328_v8, %v1479_v7  ;;  %v2963_v23 = vsel %vm2643_vm1, %v2415_v2, 0.0  ;;  %4814 = vmatmul.mubr.msk.bf16.gmra.mxu1 %vm945_vm0, %v4980_v56  ;;  %v4983_v56 = vld [vmem:[%s8540_s0 + $0x340] sm:$0xff]  }
 0x10e   :  { %v4647_v16 = vpop.f32.mrf.mxu0  ;;  %v2962_v18 = vadd.f32 %v2961_v12, %v2960_v10  ;;  %v3737_v19 = vadd.f32 %v3736_v9, %v3735_v11  ;;  %v3744_v46 = vsel %vm2643_vm1, %v3459_v30, 0.0 }
 0x10f   :  { %v1501_v20 = vadd.f32 %v4647_v16, %v5328_v8  ;;  %2675 = vst.msk [vmem:[%s8542_s3 + $0xf8] sm:$0xff] %vm2643_vm1, %v2418_v14  ;;  %v2416_v24 = vmax.f32 %v1480_v15, 0.0  ;;  %v3740_v31 = vsel %vm2643_vm1, %v3457_v13, 0.0  ;;  %v3460_v38 = vmul.f32 %v2418_v14, %v2418_v14 }
 0x110   :  { %v1492_v25 = vpop.f32.mrf.mxu0  ;;  %v3739_v26 = vadd.f32 %v3738_v22, %v3737_v19  ;;  %v2964_v27 = vadd.f32 %v2963_v23, %v2962_v18  ;;  %v2969_v47 = vsel %vm2643_vm1, %v2418_v14, 0.0  ;;  %v4981_v22 = vld [vmem:[%s8540_s0 + $0x330] sm:$0xff]  }
 0x111   :  { %v2421_v28 = vmax.f32 %v1501_v20, 0.0  ;;  %v1493_v29 = vadd.f32 %v5328_v8, %v1492_v25  ;;  %2673 = vst.msk [vmem:[%s8542_s3 + $0xe8] sm:$0xff] %vm2643_vm1, %v2416_v24  ;;  %v2965_v32 = vsel %vm2643_vm1, %v2416_v24, 0.0  ;;  %v3458_v33 = vmul.f32 %v2416_v24, %v2416_v24  ;;  %v4982_v25 = vld [vmem:[%s8540_s0 + $0x338] sm:$0xff]   ;;  %4817 = vmatprep.mubr.msk.bf16.mxu1 %vm945_vm0, %v4981_v22 }
 0x112   :  { %v4648_v34 = vpop.f32.mrf.mxu0  ;;  %v3741_v36 = vadd.f32 %v3740_v31, %v3739_v26  ;;  %v2966_v37 = vadd.f32 %v2965_v32, %v2964_v27  ;;  %v3746_v57 = vsel %vm2643_vm1, %v3460_v38, 0.0 }
 0x113   :  { %2678 = vst.msk [vmem:[%s8542_s3 + $0x110] sm:$0xff] %vm2643_vm1, %v2421_v28  ;;  %v3742_v39 = vsel %vm2643_vm1, %v3458_v33, 0.0  ;;  %v2419_v40 = vmax.f32 %v1493_v29, 0.0  ;;  %v1504_v41 = vadd.f32 %v4648_v34, %v5328_v8  ;;  %v3463_v0 = vmul.f32 %v2421_v28, %v2421_v28 }
 0x114   :  { %v1495_v42 = vpop.f32.mrf.mxu0  ;;  %v2968_v43 = vadd.f32 %v2967_v35, %v2966_v37  ;;  %v3743_v44 = vadd.f32 %v3742_v39, %v3741_v36  ;;  %v2975_v10 = vsel %vm2643_vm1, %v2421_v28, 0.0 }
 0x115   :  { %v1496_v45 = vadd.f32 %v5328_v8, %v1495_v42  ;;  %2676 = vst.msk [vmem:[%s8542_s3 + $0x100] sm:$0xff] %vm2643_vm1, %v2419_v40  ;;  %v3461_v48 = vmul.f32 %v2419_v40, %v2419_v40  ;;  %v2422_v49 = vmax.f32 %v1504_v41, 0.0  ;;  %v2971_v58 = vsel %vm2643_vm1, %v2419_v40, 0.0  ;;  %4818 = vmatmul.mubr.msk.bf16.gmra.mxu1 %vm945_vm0, %v4982_v25 }
 0x116   :  { %v4651_v50 = vpop.f32.mrf.mxu0  ;;  %v2970_v52 = vadd.f32 %v2969_v47, %v2968_v43  ;;  %v3745_v53 = vadd.f32 %v3744_v46, %v3743_v44  ;;  %v3752_v18 = vsel %vm2643_vm1, %v3463_v0, 0.0  ;;  %4821 = vmatprep.mubr.msk.bf16.mxu1 %vm945_vm0, %v4983_v56  ;;  %v5831_v56 = vld [vmem:[%s8541_s2] ss:$0 sm:$0xff] }
 0x117   :  { %v2420_v54 = vmax.f32 %v1496_v45, 0.0  ;;  %v1517_v55 = vadd.f32 %v4651_v50, %v5328_v8  ;;  %2679 = vst.msk [vmem:[%s8542_s3 + $0x118] sm:$0xff] %vm2643_vm1, %v2422_v49  ;;  %v3748_v1 = vsel %vm2643_vm1, %v3461_v48, 0.0  ;;  %v3464_v11 = vmul.f32 %v2422_v49, %v2422_v49 }
 0x118   :  { %v1508_v59 = vpop.f32.mrf.mxu0  ;;  %v3747_v60 = vadd.f32 %v3746_v57, %v3745_v53  ;;  %v2972_v61 = vadd.f32 %v2971_v58, %v2970_v52  ;;  %v2977_v19 = vsel %vm2643_vm1, %v2422_v49, 0.0 }
 0x119   :  { %2677 = vst.msk [vmem:[%s8542_s3 + $0x108] sm:$0xff] %vm2643_vm1, %v2420_v54  ;;  %v2973_v62 = vsel %vm2643_vm1, %v2420_v54, 0.0  ;;  %v3462_v63 = vmul.f32 %v2420_v54, %v2420_v54  ;;  %v2425_v2 = vmax.f32 %v1517_v55, 0.0  ;;  %v1509_v3 = vadd.f32 %v5328_v8, %v1508_v59 }
 0x11a   :  { %v4652_v4 = vpop.f32.mrf.mxu0  ;;  %v3749_v5 = vadd.f32 %v3748_v1, %v3747_v60  ;;  %v2974_v6 = vadd.f32 %v2973_v62, %v2972_v61  ;;  %v3754_v26 = vsel %vm2643_vm1, %v3464_v11, 0.0  ;;  %v4984_v60 = vld [vmem:[%s8540_s0 + $0x348] sm:$0xff]  }
 0x11b   :  { %v3750_v7 = vsel %vm2643_vm1, %v3462_v63, 0.0  ;;  %v1520_v9 = vadd.f32 %v4652_v4, %v5328_v8  ;;  %2682 = vst.msk [vmem:[%s8542_s3 + $0x130] sm:$0xff] %vm2643_vm1, %v2425_v2  ;;  %v2423_v12 = vmax.f32 %v1509_v3, 0.0  ;;  %v3467_v32 = vmul.f32 %v2425_v2, %v2425_v2 }
 0x11c   :  { %v1511_v13 = vpop.f32.mrf.mxu0  ;;  %v2976_v14 = vadd.f32 %v2975_v10, %v2974_v6  ;;  %v3751_v15 = vadd.f32 %v3750_v7, %v3749_v5  ;;  %v2983_v44 = vsel %vm2643_vm1, %v2425_v2, 0.0 }
 0x11d   :  { %v2426_v16 = vmax.f32 %v1520_v9, 0.0  ;;  %v1512_v17 = vadd.f32 %v5328_v8, %v1511_v13  ;;  %2680 = vst.msk [vmem:[%s8542_s3 + $0x120] sm:$0xff] %vm2643_vm1, %v2423_v12  ;;  %v3465_v20 = vmul.f32 %v2423_v12, %v2423_v12  ;;  %v2979_v27 = vsel %vm2643_vm1, %v2423_v12, 0.0  ;;  %4822 = vmatmul.mubr.msk.bf16.gmra.mxu1 %vm945_vm0, %v4984_v60 }
 0x11e   :  { %v4655_v21 = vpop.f32.mrf.mxu0  ;;  %v2978_v23 = vadd.f32 %v2977_v19, %v2976_v14  ;;  %v3753_v24 = vadd.f32 %v3752_v18, %v3751_v15  ;;  %v3760_v48 = vsel %vm2643_vm1, %v3467_v32, 0.0  ;;  %v4986_v32 = vld [vmem:[%s8540_s0 + $0x358] sm:$0xff]  }
 0x11f   :  { %2683 = vst.msk [vmem:[%s8542_s3 + $0x138] sm:$0xff] %vm2643_vm1, %v2426_v16  ;;  %v2424_v28 = vmax.f32 %v1512_v17, 0.0  ;;  %v1533_v29 = vadd.f32 %v4655_v21, %v5328_v8  ;;  %v3756_v35 = vsel %vm2643_vm1, %v3465_v20, 0.0  ;;  %v3468_v45 = vmul.f32 %v2426_v16, %v2426_v16 }
 0x120   :  { %v1524_v30 = vpop.f32.mrf.mxu0  ;;  %v3755_v31 = vadd.f32 %v3754_v26, %v3753_v24  ;;  %v2980_v33 = vadd.f32 %v2979_v27, %v2978_v23  ;;  %v2985_v51 = vsel %vm2643_vm1, %v2426_v16, 0.0  ;;  %v4985_v27 = vld [vmem:[%s8540_s0 + $0x350] sm:$0xff]  }
 0x121   :  { %v1525_v34 = vadd.f32 %v5328_v8, %v1524_v30  ;;  %2681 = vst.msk [vmem:[%s8542_s3 + $0x128] sm:$0xff] %vm2643_vm1, %v2424_v28  ;;  %v2981_v36 = vsel %vm2643_vm1, %v2424_v28, 0.0  ;;  %v3466_v37 = vmul.f32 %v2424_v28, %v2424_v28  ;;  %v2429_v38 = vmax.f32 %v1533_v29, 0.0  ;;  %4825 = vmatprep.mubr.msk.bf16.mxu1 %vm945_vm0, %v4985_v27 }
 0x122   :  { %v4656_v39 = vpop.f32.mrf.mxu0  ;;  %v3757_v40 = vadd.f32 %v3756_v35, %v3755_v31  ;;  %v2982_v41 = vadd.f32 %v2981_v36, %v2980_v33  ;;  %v3762_v61 = vsel %vm2643_vm1, %v3468_v45, 0.0 }
 0x123   :  { %v2427_v42 = vmax.f32 %v1525_v34, 0.0  ;;  %v1536_v43 = vadd.f32 %v4656_v39, %v5328_v8  ;;  %v3758_v46 = vsel %vm2643_vm1, %v3466_v37, 0.0  ;;  %2686 = vst.msk [vmem:[%s8542_s3 + $0x150] sm:$0xff] %vm2643_vm1, %v2429_v38  ;;  %v3471_v5 = vmul.f32 %v2429_v38, %v2429_v38 }
 0x124   :  { %v1527_v47 = vpop.f32.mrf.mxu0  ;;  %v2984_v49 = vadd.f32 %v2983_v44, %v2982_v41  ;;  %v3759_v50 = vadd.f32 %v3758_v46, %v3757_v40  ;;  %v2991_v11 = vsel %vm2643_vm1, %v2429_v38, 0.0 }
 0x125   :  { %2684 = vst.msk [vmem:[%s8542_s3 + $0x140] sm:$0xff] %vm2643_vm1, %v2427_v42  ;;  %v3469_v52 = vmul.f32 %v2427_v42, %v2427_v42  ;;  %v2430_v53 = vmax.f32 %v1536_v43, 0.0  ;;  %v1528_v54 = vadd.f32 %v5328_v8, %v1527_v47  ;;  %v2987_v62 = vsel %vm2643_vm1, %v2427_v42, 0.0  ;;  %4826 = vmatmul.mubr.msk.bf16.gmra.mxu1 %vm945_vm0, %v4986_v32  ;;  %v4989_v32 = vld [vmem:[%s8540_s0 + $0x370] sm:$0xff]  }
 0x126   :  { %v4659_v55 = vpop.f32.mrf.mxu0  ;;  %v2986_v57 = vadd.f32 %v2985_v51, %v2984_v49  ;;  %v3761_v58 = vadd.f32 %v3760_v48, %v3759_v50  ;;  %v3768_v22 = vsel %vm2643_vm1, %v3471_v5, 0.0 }
 0x127   :  { %v1549_v59 = vadd.f32 %v4659_v55, %v5328_v8  ;;  %2687 = vst.msk [vmem:[%s8542_s3 + $0x158] sm:$0xff] %vm2643_vm1, %v2430_v53  ;;  %v2428_v63 = vmax.f32 %v1528_v54, 0.0  ;;  %v3764_v6 = vsel %vm2643_vm1, %v3469_v52, 0.0  ;;  %v3472_v14 = vmul.f32 %v2430_v53, %v2430_v53 }
 0x128   :  { %v1540_v0 = vpop.f32.mrf.mxu0  ;;  %v3763_v1 = vadd.f32 %v3762_v61, %v3761_v58  ;;  %v2988_v2 = vadd.f32 %v2987_v62, %v2986_v57  ;;  %v2993_v23 = vsel %vm2643_vm1, %v2430_v53, 0.0  ;;  %v4987_v61 = vld [vmem:[%s8540_s0 + $0x360] sm:$0xff]  }
 0x129   :  { %v2433_v3 = vmax.f32 %v1549_v59, 0.0  ;;  %v1541_v4 = vadd.f32 %v5328_v8, %v1540_v0  ;;  %2685 = vst.msk [vmem:[%s8542_s3 + $0x148] sm:$0xff] %vm2643_vm1, %v2428_v63  ;;  %v2989_v7 = vsel %vm2643_vm1, %v2428_v63, 0.0  ;;  %v3470_v9 = vmul.f32 %v2428_v63, %v2428_v63  ;;  %v4988_v0 = vld [vmem:[%s8540_s0 + $0x368] sm:$0xff]   ;;  %4829 = vmatprep.mubr.msk.bf16.mxu1 %vm945_vm0, %v4987_v61 }
 0x12a   :  { %v4660_v10 = vpop.f32.mrf.mxu0  ;;  %v3765_v12 = vadd.f32 %v3764_v6, %v3763_v1  ;;  %v2990_v13 = vadd.f32 %v2989_v7, %v2988_v2  ;;  %v3770_v33 = vsel %vm2643_vm1, %v3472_v14, 0.0 }
 0x12b   :  { %2690 = vst.msk [vmem:[%s8542_s3 + $0x170] sm:$0xff] %vm2643_vm1, %v2433_v3  ;;  %v3766_v15 = vsel %vm2643_vm1, %v3470_v9, 0.0  ;;  %v2431_v16 = vmax.f32 %v1541_v4, 0.0  ;;  %v1552_v17 = vadd.f32 %v4660_v10, %v5328_v8  ;;  %v3475_v40 = vmul.f32 %v2433_v3, %v2433_v3 }
 0x12c   :  { %v1543_v18 = vpop.f32.mrf.mxu0  ;;  %v2992_v19 = vadd.f32 %v2991_v11, %v2990_v13  ;;  %v3767_v20 = vadd.f32 %v3766_v15, %v3765_v12  ;;  %v2999_v49 = vsel %vm2643_vm1, %v2433_v3, 0.0 }
 0x12d   :  { %v1544_v21 = vadd.f32 %v5328_v8, %v1543_v18  ;;  %2688 = vst.msk [vmem:[%s8542_s3 + $0x160] sm:$0xff] %vm2643_vm1, %v2431_v16  ;;  %v3473_v24 = vmul.f32 %v2431_v16, %v2431_v16  ;;  %v2434_v25 = vmax.f32 %v1552_v17, 0.0  ;;  %v2995_v34 = vsel %vm2643_vm1, %v2431_v16, 0.0  ;;  %4830 = vmatmul.mubr.msk.bf16.gmra.mxu1 %vm945_vm0, %v4988_v0 }
 0x12e   :  { %v4663_v26 = vpop.f32.mrf.mxu0  ;;  %v2994_v28 = vadd.f32 %v2993_v23, %v2992_v19  ;;  %v3769_v29 = vadd.f32 %v3768_v22, %v3767_v20  ;;  %v3776_v57 = vsel %vm2643_vm1, %v3475_v40, 0.0  ;;  %4833 = vmatprep.mubr.msk.bf16.mxu1 %vm945_vm0, %v4989_v32 }
 0x12f   :  { %v2432_v30 = vmax.f32 %v1544_v21, 0.0  ;;  %v1565_v31 = vadd.f32 %v4663_v26, %v5328_v8  ;;  %2691 = vst.msk [vmem:[%s8542_s3 + $0x178] sm:$0xff] %vm2643_vm1, %v2434_v25  ;;  %v3772_v41 = vsel %vm2643_vm1, %v3473_v24, 0.0  ;;  %v3476_v50 = vmul.f32 %v2434_v25, %v2434_v25 }
 0x130   :  { %v1556_v35 = vpop.f32.mrf.mxu0  ;;  %v3771_v36 = vadd.f32 %v3770_v33, %v3769_v29  ;;  %v2996_v37 = vadd.f32 %v2995_v34, %v2994_v28  ;;  %v3001_v58 = vsel %vm2643_vm1, %v2434_v25, 0.0 }
 0x131   :  { %2689 = vst.msk [vmem:[%s8542_s3 + $0x168] sm:$0xff] %vm2643_vm1, %v2432_v30  ;;  %v2997_v38 = vsel %vm2643_vm1, %v2432_v30, 0.0  ;;  %v3474_v39 = vmul.f32 %v2432_v30, %v2432_v30  ;;  %v2437_v42 = vmax.f32 %v1565_v31, 0.0  ;;  %v1557_v43 = vadd.f32 %v5328_v8, %v1556_v35 }
 0x132   :  { %v4664_v44 = vpop.f32.mrf.mxu0  ;;  %v3773_v45 = vadd.f32 %v3772_v41, %v3771_v36  ;;  %v2998_v46 = vadd.f32 %v2997_v38, %v2996_v37  ;;  %v3778_v1 = vsel %vm2643_vm1, %v3476_v50, 0.0  ;;  %v4990_v36 = vld [vmem:[%s8540_s0 + $0x378] sm:$0xff]  }
 0x133   :  { %v3774_v47 = vsel %vm2643_vm1, %v3474_v39, 0.0  ;;  %v1568_v48 = vadd.f32 %v4664_v44, %v5328_v8  ;;  %2694 = vst.msk [vmem:[%s8542_s3 + $0x190] sm:$0xff] %vm2643_vm1, %v2437_v42  ;;  %v2435_v51 = vmax.f32 %v1557_v43, 0.0  ;;  %v3479_v7 = vmul.f32 %v2437_v42, %v2437_v42 }
 0x134   :  { %v1559_v52 = vpop.f32.mrf.mxu0  ;;  %v3000_v53 = vadd.f32 %v2999_v49, %v2998_v46  ;;  %v3775_v54 = vadd.f32 %v3774_v47, %v3773_v45  ;;  %v3007_v20 = vsel %vm2643_vm1, %v2437_v42, 0.0 }
 0x135   :  { %v2438_v55 = vmax.f32 %v1568_v48, 0.0  ;;  %v1560_v8 = vadd.f32 %v5831_v56, %v1559_v52  ;;  %2692 = vst.msk [vmem:[%s8542_s3 + $0x180] sm:$0xff] %vm2643_vm1, %v2435_v51  ;;  %v3477_v59 = vmul.f32 %v2435_v51, %v2435_v51  ;;  %v3003_v2 = vsel %vm2643_vm1, %v2435_v51, 0.0  ;;  %4834 = vmatmul.mubr.msk.bf16.gmra.mxu1 %vm945_vm0, %v4990_v36 }
 0x136   :  { %v4667_v60 = vpop.f32.mrf.mxu0  ;;  %v3002_v62 = vadd.f32 %v3001_v58, %v3000_v53  ;;  %v3777_v63 = vadd.f32 %v3776_v57, %v3775_v54  ;;  %v3784_v24 = vsel %vm2643_vm1, %v3479_v7, 0.0  ;;  %v4992_v7 = vld [vmem:[%s8540_s0 + $0x388] sm:$0xff]  }
 0x137   :  { %2695 = vst.msk [vmem:[%s8542_s3 + $0x198] sm:$0xff] %vm2643_vm1, %v2438_v55  ;;  %v2436_v3 = vmax.f32 %v1560_v8, 0.0  ;;  %v1581_v4 = vadd.f32 %v5831_v56, %v4667_v60  ;;  %v3780_v11 = vsel %vm2643_vm1, %v3477_v59, 0.0  ;;  %v3480_v21 = vmul.f32 %v2438_v55, %v2438_v55 }
 0x138   :  { %v1572_v5 = vpop.f32.mrf.mxu0  ;;  %v3779_v6 = vadd.f32 %v3778_v1, %v3777_v63  ;;  %v3004_v9 = vadd.f32 %v3003_v2, %v3002_v62  ;;  %v3009_v27 = vsel %vm2643_vm1, %v2438_v55, 0.0  ;;  %v4991_v2 = vld [vmem:[%s8540_s0 + $0x380] sm:$0xff]  }
 0x139   :  { %v1573_v10 = vadd.f32 %v5831_v56, %v1572_v5  ;;  %2693 = vst.msk [vmem:[%s8542_s3 + $0x188] sm:$0xff] %vm2643_vm1, %v2436_v3  ;;  %v3005_v12 = vsel %vm2643_vm1, %v2436_v3, 0.0  ;;  %v3478_v13 = vmul.f32 %v2436_v3, %v2436_v3  ;;  %v2441_v14 = vmax.f32 %v1581_v4, 0.0  ;;  %4837 = vmatprep.mubr.msk.bf16.mxu1 %vm945_vm0, %v4991_v2 }
 0x13a   :  { %v4668_v15 = vpop.f32.mrf.mxu0  ;;  %v3781_v16 = vadd.f32 %v3780_v11, %v3779_v6  ;;  %v3006_v17 = vadd.f32 %v3005_v12, %v3004_v9  ;;  %v3786_v37 = vsel %vm2643_vm1, %v3480_v21, 0.0 }
 0x13b   :  { %v2439_v18 = vmax.f32 %v1573_v10, 0.0  ;;  %v1584_v19 = vadd.f32 %v5831_v56, %v4668_v15  ;;  %v3782_v22 = vsel %vm2643_vm1, %v3478_v13, 0.0  ;;  %2698 = vst.msk [vmem:[%s8542_s3 + $0x1b0] sm:$0xff] %vm2643_vm1, %v2441_v14  ;;  %v3483_v45 = vmul.f32 %v2441_v14, %v2441_v14 }
 0x13c   :  { %v1575_v23 = vpop.f32.mrf.mxu0  ;;  %v3008_v25 = vadd.f32 %v3007_v20, %v3006_v17  ;;  %v3783_v26 = vadd.f32 %v3782_v22, %v3781_v16  ;;  %v3015_v50 = vsel %vm2643_vm1, %v2441_v14, 0.0  ;;  %v4743_v17 = vpop.f32.mrf.mxu1 }
 0x13d   :  { %2696 = vst.msk [vmem:[%s8542_s3 + $0x1a0] sm:$0xff] %vm2643_vm1, %v2439_v18  ;;  %v3481_v28 = vmul.f32 %v2439_v18, %v2439_v18  ;;  %v2442_v29 = vmax.f32 %v1584_v19, 0.0  ;;  %v1576_v30 = vadd.f32 %v5831_v56, %v1575_v23  ;;  %v3011_v38 = vsel %vm2643_vm1, %v2439_v18, 0.0  ;;  %4838 = vmatmul.mubr.msk.bf16.gmra.mxu1 %vm945_vm0, %v4992_v7 }
 0x13e   :  { %v4671_v31 = vpop.f32.mrf.mxu0  ;;  %v3010_v33 = vadd.f32 %v3009_v27, %v3008_v25  ;;  %v3785_v34 = vadd.f32 %v3784_v24, %v3783_v26  ;;  %v3792_v61 = vsel %vm2643_vm1, %v3483_v45, 0.0  ;;  %v5936_v27 = vpop.f32.mrf.mxu1 }
 0x13f   :  { %v1597_v35 = vadd.f32 %v5831_v56, %v4671_v31  ;;  %2699 = vst.msk [vmem:[%s8542_s3 + $0x1b8] sm:$0xff] %vm2643_vm1, %v2442_v29  ;;  %v2440_v39 = vmax.f32 %v1576_v30, 0.0  ;;  %v3788_v46 = vsel %vm2643_vm1, %v3481_v28, 0.0  ;;  %v3484_v53 = vmul.f32 %v2442_v29, %v2442_v29 }
 0x140   :  { %v1588_v40 = vpop.f32.mrf.mxu0  ;;  %v3787_v41 = vadd.f32 %v3786_v37, %v3785_v34  ;;  %v3012_v42 = vadd.f32 %v3011_v38, %v3010_v33  ;;  %v3017_v62 = vsel %vm2643_vm1, %v2442_v29, 0.0 }
 0x141   :  { %v2445_v43 = vmax.f32 %v1597_v35, 0.0  ;;  %v1589_v44 = vadd.f32 %v5831_v56, %v1588_v40  ;;  %2697 = vst.msk [vmem:[%s8542_s3 + $0x1a8] sm:$0xff] %vm2643_vm1, %v2440_v39  ;;  %v3013_v47 = vsel %vm2643_vm1, %v2440_v39, 0.0  ;;  %v3482_v48 = vmul.f32 %v2440_v39, %v2440_v39  ;;  %v5944_v35 = vpop.f32.mrf.mxu1  ;;  %v4993_v40 = vld [vmem:[%s8540_s0 + $0x390] sm:$0xff]  }
 0x142   :  { %v4672_v49 = vpop.f32.mrf.mxu0  ;;  %v3789_v51 = vadd.f32 %v3788_v46, %v3787_v41  ;;  %v3014_v52 = vadd.f32 %v3013_v47, %v3012_v42  ;;  %v3794_v9 = vsel %vm2643_vm1, %v3484_v53, 0.0  ;;  %v4994_v46 = vld [vmem:[%s8540_s0 + $0x398] sm:$0xff]   ;;  %4841 = vmatprep.mubr.msk.bf16.mxu1 %vm945_vm0, %v4993_v40 }
 0x143   :  { %2702 = vst.msk [vmem:[%s8542_s3 + $0x1d0] sm:$0xff] %vm2643_vm1, %v2445_v43  ;;  %v3790_v54 = vsel %vm2643_vm1, %v3482_v48, 0.0  ;;  %v2443_v55 = vmax.f32 %v1589_v44, 0.0  ;;  %v1600_v8 = vadd.f32 %v5831_v56, %v4672_v49  ;;  %v3487_v10 = vmul.f32 %v2445_v43, %v2445_v43  ;;  %v5960_v45 = vpop.f32.mrf.mxu1 }
 0x144   :  { %v1591_v57 = vpop.f32.mrf.mxu0  ;;  %v3016_v58 = vadd.f32 %v3015_v50, %v3014_v52  ;;  %v3791_v59 = vadd.f32 %v3790_v54, %v3789_v51  ;;  %v3023_v28 = vsel %vm2643_vm1, %v2445_v43, 0.0  ;;  %v1885_v51 = vadd.f32 %v5831_v56, %v4743_v17  ;;  %v4995_v17 = vld [vmem:[%s8540_s0 + $0x3a0] sm:$0xff]  }
 0x145   :  { %v1592_v60 = vadd.f32 %v5831_v56, %v1591_v57  ;;  %2700 = vst.msk [vmem:[%s8542_s3 + $0x1c0] sm:$0xff] %vm2643_vm1, %v2443_v55  ;;  %v3485_v63 = vmul.f32 %v2443_v55, %v2443_v55  ;;  %v2446_v0 = vmax.f32 %v1600_v8, 0.0  ;;  %v3019_v11 = vsel %vm2643_vm1, %v2443_v55, 0.0  ;;  %v5971_v8 = vpop.f32.mrf.mxu1  ;;  %4842 = vmatmul.mubr.msk.bf16.gmra.mxu1 %vm945_vm0, %v4994_v46 }
 0x146   :  { %v4675_v1 = vpop.f32.mrf.mxu0  ;;  %v3018_v3 = vadd.f32 %v3017_v62, %v3016_v58  ;;  %v3793_v4 = vadd.f32 %v3792_v61, %v3791_v59  ;;  %v3800_v36 = vsel %vm2643_vm1, %v3487_v10, 0.0  ;;  %v5979_v61 = vmax.f32 %v1885_v51, 0.0  ;;  %4845 = vmatprep.mubr.msk.bf16.mxu1 %vm945_vm0, %v4995_v17 }
 0x147   :  { %v2444_v5 = vmax.f32 %v1592_v60, 0.0  ;;  %v1613_v6 = vadd.f32 %v5831_v56, %v4675_v1  ;;  %2703 = vst.msk [vmem:[%s8542_s3 + $0x1d8] sm:$0xff] %vm2643_vm1, %v2446_v0  ;;  %v3796_v18 = vsel %vm2643_vm1, %v3485_v63, 0.0  ;;  %v3488_v19 = vmul.f32 %v2446_v0, %v2446_v0  ;;  %v5982_v2 = vpop.f32.mrf.mxu1 }
 0x148   :  { %v1604_v12 = vpop.f32.mrf.mxu0  ;;  %v3795_v13 = vadd.f32 %v3794_v9, %v3793_v4  ;;  %v3020_v14 = vadd.f32 %v3019_v11, %v3018_v3  ;;  %v3025_v37 = vsel %vm2643_vm1, %v2446_v0, 0.0  ;;  %2774 = vst.msk [vmem:[%s8542_s3 + $0x410] sm:$0xff] %vm2643_vm1, %v5979_v61 }
 0x149   :  { %2701 = vst.msk [vmem:[%s8542_s3 + $0x1c8] sm:$0xff] %vm2643_vm1, %v2444_v5  ;;  %v3021_v15 = vsel %vm2643_vm1, %v2444_v5, 0.0  ;;  %v3486_v16 = vmul.f32 %v2444_v5, %v2444_v5  ;;  %v2449_v20 = vmax.f32 %v1613_v6, 0.0  ;;  %v1605_v21 = vadd.f32 %v5831_v56, %v1604_v12  ;;  %v6000_v11 = vpop.f32.mrf.mxu1 }
 0x14a   :  { %v4676_v22 = vpop.f32.mrf.mxu0  ;;  %v3797_v23 = vadd.f32 %v3796_v18, %v3795_v13  ;;  %v3022_v24 = vadd.f32 %v3021_v15, %v3020_v14  ;;  %v3802_v41 = vsel %vm2643_vm1, %v3488_v19, 0.0 }
 0x14b   :  { %v3798_v25 = vsel %vm2643_vm1, %v3486_v16, 0.0  ;;  %v1616_v26 = vadd.f32 %v5831_v56, %v4676_v22  ;;  %2706 = vst.msk [vmem:[%s8542_s3 + $0x1f0] sm:$0xff] %vm2643_vm1, %v2449_v20  ;;  %v2447_v29 = vmax.f32 %v1605_v21, 0.0  ;;  %v3491_v44 = vmul.f32 %v2449_v20, %v2449_v20  ;;  %v6008_v21 = vpop.f32.mrf.mxu1  ;;  %v4996_v22 = vld [vmem:[%s8540_s0 + $0x3a8] sm:$0xff]  }
 0x14c   :  { %v1607_v30 = vpop.f32.mrf.mxu0  ;;  %v3024_v31 = vadd.f32 %v3023_v28, %v3022_v24  ;;  %v3799_v32 = vadd.f32 %v3798_v25, %v3797_v23  ;;  %v3031_v3 = vsel %vm2643_vm1, %v2449_v20, 0.0 }
 0x14d   :  { %v2450_v33 = vmax.f32 %v1616_v26, 0.0  ;;  %v1608_v34 = vadd.f32 %v5831_v56, %v1607_v30  ;;  %2704 = vst.msk [vmem:[%s8542_s3 + $0x1e0] sm:$0xff] %vm2643_vm1, %v2447_v29  ;;  %v3489_v38 = vmul.f32 %v2447_v29, %v2447_v29  ;;  %v3027_v47 = vsel %vm2643_vm1, %v2447_v29, 0.0  ;;  %4846 = vmatmul.mubr.msk.bf16.gmra.mxu1 %vm945_vm0, %v4996_v22 }
 0x14e   :  { %v4679_v39 = vpop.f32.mrf.mxu0  ;;  %v3026_v42 = vadd.f32 %v3025_v37, %v3024_v31  ;;  %v3801_v43 = vadd.f32 %v3800_v36, %v3799_v32  ;;  %v3808_v7 = vsel %vm2643_vm1, %v3491_v44, 0.0 }
 0x14f   :  { %2707 = vst.msk [vmem:[%s8542_s3 + $0x1f8] sm:$0xff] %vm2643_vm1, %v2450_v33  ;;  %v2448_v48 = vmax.f32 %v1608_v34, 0.0  ;;  %v1629_v49 = vadd.f32 %v5831_v56, %v4679_v39  ;;  %v3804_v54 = vsel %vm2643_vm1, %v3489_v38, 0.0  ;;  %v3492_v4 = vmul.f32 %v2450_v33, %v2450_v33 }
 0x150   :  { %v1620_v50 = vpop.f32.mrf.mxu0  ;;  %v3803_v52 = vadd.f32 %v3802_v41, %v3801_v43  ;;  %v3028_v53 = vadd.f32 %v3027_v47, %v3026_v42  ;;  %v3033_v12 = vsel %vm2643_vm1, %v2450_v33, 0.0  ;;  %v6021_v33 = vpop.f32.mrf.mxu1  ;;  %v1877_v39 = vadd.f32 %v5831_v56, %v5936_v27 }
 0x151   :  { %v1621_v55 = vadd.f32 %v5831_v56, %v1620_v50  ;;  %2705 = vst.msk [vmem:[%s8542_s3 + $0x1e8] sm:$0xff] %vm2643_vm1, %v2448_v48  ;;  %v3029_v57 = vsel %vm2643_vm1, %v2448_v48, 0.0  ;;  %v3490_v58 = vmul.f32 %v2448_v48, %v2448_v48  ;;  %v2453_v59 = vmax.f32 %v1629_v49, 0.0 }
 0x152   :  { %v4680_v60 = vpop.f32.mrf.mxu0  ;;  %v3805_v62 = vadd.f32 %v3804_v54, %v3803_v52  ;;  %v3030_v63 = vadd.f32 %v3029_v57, %v3028_v53  ;;  %v3810_v23 = vsel %vm2643_vm1, %v3492_v4, 0.0  ;;  %v6037_v44 = vpop.f32.mrf.mxu1  ;;  %v6041_v50 = vmax.f32 %v1877_v39, 0.0  ;;  %v4998_v4 = vld [vmem:[%s8540_s0 + $0x3b8] sm:$0xff]  }
 0x153   :  { %v2451_v0 = vmax.f32 %v1621_v55, 0.0  ;;  %v1632_v1 = vadd.f32 %v5831_v56, %v4680_v60  ;;  %v3806_v5 = vsel %vm2643_vm1, %v3490_v58, 0.0  ;;  %2710 = vst.msk [vmem:[%s8542_s3 + $0x210] sm:$0xff] %vm2643_vm1, %v2453_v59  ;;  %v3495_v24 = vmul.f32 %v2453_v59, %v2453_v59  ;;  %v4997_v60 = vld [vmem:[%s8540_s0 + $0x3b0] sm:$0xff]  }
 0x154   :  { %v1623_v6 = vpop.f32.mrf.mxu0  ;;  %v3032_v9 = vadd.f32 %v3031_v3, %v3030_v63  ;;  %v3807_v10 = vadd.f32 %v3806_v5, %v3805_v62  ;;  %v3039_v40 = vsel %vm2643_vm1, %v2453_v59, 0.0  ;;  %v6044_v53 = vpop.f32.mrf.mxu1  ;;  %2772 = vst.msk [vmem:[%s8542_s3 + $0x400] sm:$0xff] %vm2643_vm1, %v6041_v50  ;;  %4849 = vmatprep.mubr.msk.bf16.mxu1 %vm945_vm0, %v4997_v60 }
 0x155   :  { %2708 = vst.msk [vmem:[%s8542_s3 + $0x200] sm:$0xff] %vm2643_vm1, %v2451_v0  ;;  %v3493_v13 = vmul.f32 %v2451_v0, %v2451_v0  ;;  %v2454_v14 = vmax.f32 %v1632_v1, 0.0  ;;  %v1624_v15 = vadd.f32 %v5831_v56, %v1623_v6  ;;  %v3035_v25 = vsel %vm2643_vm1, %v2451_v0, 0.0  ;;  %4850 = vmatmul.mubr.msk.bf16.gmra.mxu1 %vm945_vm0, %v4998_v4 }
 0x156   :  { %v4683_v16 = vpop.f32.mrf.mxu0  ;;  %v3034_v18 = vadd.f32 %v3033_v12, %v3032_v9  ;;  %v3809_v19 = vadd.f32 %v3808_v7, %v3807_v10  ;;  %v3816_v54 = vsel %vm2643_vm1, %v3495_v24, 0.0  ;;  %v6061_v3 = vpop.f32.mrf.mxu1 }
 0x157   :  { %v1645_v20 = vadd.f32 %v5831_v56, %v4683_v16  ;;  %2711 = vst.msk [vmem:[%s8542_s3 + $0x218] sm:$0xff] %vm2643_vm1, %v2454_v14  ;;  %v2452_v26 = vmax.f32 %v1624_v15, 0.0  ;;  %v3812_v34 = vsel %vm2643_vm1, %v3493_v13, 0.0  ;;  %v3496_v42 = vmul.f32 %v2454_v14, %v2454_v14 }
 0x158   :  { %v1636_v28 = vpop.f32.mrf.mxu0  ;;  %v3811_v29 = vadd.f32 %v3810_v23, %v3809_v19  ;;  %v3036_v30 = vadd.f32 %v3035_v25, %v3034_v18  ;;  %v3041_v55 = vsel %vm2643_vm1, %v2454_v14, 0.0  ;;  %v6078_v15 = vpop.f32.mrf.mxu1 }
 0x159   :  { %v2457_v31 = vmax.f32 %v1645_v20, 0.0  ;;  %v1637_v32 = vadd.f32 %v5831_v56, %v1636_v28  ;;  %2709 = vst.msk [vmem:[%s8542_s3 + $0x208] sm:$0xff] %vm2643_vm1, %v2452_v26  ;;  %v3037_v36 = vsel %vm2643_vm1, %v2452_v26, 0.0  ;;  %v3494_v37 = vmul.f32 %v2452_v26, %v2452_v26 }
 0x15a   :  { %v4684_v38 = vpop.f32.mrf.mxu0  ;;  %v3813_v41 = vadd.f32 %v3812_v34, %v3811_v29  ;;  %v3038_v43 = vadd.f32 %v3037_v36, %v3036_v30  ;;  %v3818_v5 = vsel %vm2643_vm1, %v3496_v42, 0.0  ;;  %v6085_v26 = vpop.f32.mrf.mxu1 }
 0x15b   :  { %2714 = vst.msk [vmem:[%s8542_s3 + $0x230] sm:$0xff] %vm2643_vm1, %v2457_v31  ;;  %v3814_v46 = vsel %vm2643_vm1, %v3494_v37, 0.0  ;;  %v2455_v47 = vmax.f32 %v1637_v32, 0.0  ;;  %v1648_v48 = vadd.f32 %v5831_v56, %v4684_v38  ;;  %v3499_v6 = vmul.f32 %v2457_v31, %v2457_v31 }
 0x15c   :  { %v1639_v49 = vpop.f32.mrf.mxu0  ;;  %v3040_v27 = vadd.f32 %v3039_v40, %v3038_v43  ;;  %v3815_v51 = vadd.f32 %v3814_v46, %v3813_v41  ;;  %v3047_v28 = vsel %vm2643_vm1, %v2457_v31, 0.0  ;;  %v1888_v32 = vadd.f32 %v5831_v56, %v5944_v35  ;;  %v6095_v39 = vpop.f32.mrf.mxu1  ;;  %v4999_v35 = vld [vmem:[%s8540_s0 + $0x3c0] sm:$0xff]  }
 0x15d   :  { %v1640_v52 = vadd.f32 %v5831_v56, %v1639_v49  ;;  %2712 = vst.msk [vmem:[%s8542_s3 + $0x220] sm:$0xff] %vm2643_vm1, %v2455_v47  ;;  %v3497_v57 = vmul.f32 %v2455_v47, %v2455_v47  ;;  %v2458_v58 = vmax.f32 %v1648_v48, 0.0  ;;  %v3043_v7 = vsel %vm2643_vm1, %v2455_v47, 0.0  ;;  %4853 = vmatprep.mubr.msk.bf16.mxu1 %vm945_vm0, %v4999_v35 }
 0x15e   :  { %v4687_v59 = vpop.f32.mrf.mxu0  ;;  %v3042_v62 = vadd.f32 %v3041_v55, %v3040_v27  ;;  %v3817_v63 = vadd.f32 %v3816_v54, %v3815_v51  ;;  %v3824_v40 = vsel %vm2643_vm1, %v3499_v6, 0.0  ;;  %v6103_v43 = vmax.f32 %v1888_v32, 0.0  ;;  %v6113_v49 = vpop.f32.mrf.mxu1  ;;  %v5000_v27 = vld [vmem:[%s8540_s0 + $0x3c8] sm:$0xff]   ;;  %v5001_v32 = vld [vmem:[%s8540_s0 + $0x3d0] sm:$0xff]  }
 0x15f   :  { %v2456_v0 = vmax.f32 %v1640_v52, 0.0  ;;  %v1661_v1 = vadd.f32 %v5831_v56, %v4687_v59  ;;  %2715 = vst.msk [vmem:[%s8542_s3 + $0x238] sm:$0xff] %vm2643_vm1, %v2458_v58  ;;  %v3820_v16 = vsel %vm2643_vm1, %v3497_v57, 0.0  ;;  %v3500_v17 = vmul.f32 %v2458_v58, %v2458_v58  ;;  %4854 = vmatmul.mubr.msk.bf16.gmra.mxu1 %vm945_vm0, %v5000_v27 }
 0x160   :  { %v1652_v9 = vpop.f32.mrf.mxu0  ;;  %v3819_v10 = vadd.f32 %v3818_v5, %v3817_v63  ;;  %v3044_v12 = vadd.f32 %v3043_v7, %v3042_v62  ;;  %v3049_v31 = vsel %vm2643_vm1, %v2458_v58, 0.0  ;;  %2775 = vst.msk [vmem:[%s8542_s3 + $0x418] sm:$0xff] %vm2643_vm1, %v6103_v43  ;;  %v6127_v63 = vpop.f32.mrf.mxu1  ;;  %4857 = vmatprep.mubr.msk.bf16.mxu1 %vm945_vm0, %v5001_v32 }
 0x161   :  { %2713 = vst.msk [vmem:[%s8542_s3 + $0x228] sm:$0xff] %vm2643_vm1, %v2456_v0  ;;  %v3045_v13 = vsel %vm2643_vm1, %v2456_v0, 0.0  ;;  %v3498_v14 = vmul.f32 %v2456_v0, %v2456_v0  ;;  %v2461_v18 = vmax.f32 %v1661_v1, 0.0  ;;  %v1653_v19 = vadd.f32 %v5831_v56, %v1652_v9 }
 0x162   :  { %v4688_v20 = vpop.f32.mrf.mxu0  ;;  %v3821_v22 = vadd.f32 %v3820_v16, %v3819_v10  ;;  %v3046_v23 = vadd.f32 %v3045_v13, %v3044_v12  ;;  %v3826_v46 = vsel %vm2643_vm1, %v3500_v17, 0.0  ;;  %v6137_v13 = vpop.f32.mrf.mxu1 }
 0x163   :  { %v3822_v24 = vsel %vm2643_vm1, %v3498_v14, 0.0  ;;  %v1664_v25 = vadd.f32 %v5831_v56, %v4688_v20  ;;  %2718 = vst.msk [vmem:[%s8542_s3 + $0x250] sm:$0xff] %vm2643_vm1, %v2461_v18  ;;  %v2459_v29 = vmax.f32 %v1653_v19, 0.0  ;;  %v3503_v51 = vmul.f32 %v2461_v18, %v2461_v18 }
 0x164   :  { %v1655_v30 = vpop.f32.mrf.mxu0  ;;  %v3048_v34 = vadd.f32 %v3047_v28, %v3046_v23  ;;  %v3823_v36 = vadd.f32 %v3822_v24, %v3821_v22  ;;  %v3055_v14 = vsel %vm2643_vm1, %v2461_v18, 0.0  ;;  %v6151_v18 = vpop.f32.mrf.mxu1 }
 0x165   :  { %v2462_v37 = vmax.f32 %v1664_v25, 0.0  ;;  %v1656_v38 = vadd.f32 %v5831_v56, %v1655_v30  ;;  %2716 = vst.msk [vmem:[%s8542_s3 + $0x240] sm:$0xff] %vm2643_vm1, %v2459_v29  ;;  %v3501_v41 = vmul.f32 %v2459_v29, %v2459_v29  ;;  %v3051_v52 = vsel %vm2643_vm1, %v2459_v29, 0.0 }
 0x166   :  { %v4691_v42 = vpop.f32.mrf.mxu0  ;;  %v3050_v47 = vadd.f32 %v3049_v31, %v3048_v34  ;;  %v3825_v48 = vadd.f32 %v3824_v40, %v3823_v36  ;;  %v3832_v19 = vsel %vm2643_vm1, %v3503_v51, 0.0  ;;  %v1880_v30 = vadd.f32 %v5831_v56, %v5960_v45  ;;  %v6161_v40 = vpop.f32.mrf.mxu1  ;;  %v5002_v31 = vld [vmem:[%s8540_s0 + $0x3d8] sm:$0xff]  }
 0x167   :  { %2719 = vst.msk [vmem:[%s8542_s3 + $0x258] sm:$0xff] %vm2643_vm1, %v2462_v37  ;;  %v2460_v54 = vmax.f32 %v1656_v38, 0.0  ;;  %v1677_v55 = vadd.f32 %v5831_v56, %v4691_v42  ;;  %v3504_v60 = vmul.f32 %v2462_v37, %v2462_v37  ;;  %v3828_v0 = vsel %vm2643_vm1, %v3501_v41, 0.0  ;;  %4858 = vmatmul.mubr.msk.bf16.gmra.mxu1 %vm945_vm0, %v5002_v31 }
 0x168   :  { %v1668_v57 = vpop.f32.mrf.mxu0  ;;  %v3827_v58 = vadd.f32 %v3826_v46, %v3825_v48  ;;  %v3052_v59 = vadd.f32 %v3051_v52, %v3050_v47  ;;  %v3057_v20 = vsel %vm2643_vm1, %v2462_v37, 0.0  ;;  %v6171_v46 = vmax.f32 %v1880_v30, 0.0  ;;  %v6175_v52 = vpop.f32.mrf.mxu1 }
 0x169   :  { %v1669_v62 = vadd.f32 %v5831_v56, %v1668_v57  ;;  %2717 = vst.msk [vmem:[%s8542_s3 + $0x248] sm:$0xff] %vm2643_vm1, %v2460_v54  ;;  %v3053_v1 = vsel %vm2643_vm1, %v2460_v54, 0.0  ;;  %v3502_v4 = vmul.f32 %v2460_v54, %v2460_v54  ;;  %v2465_v5 = vmax.f32 %v1677_v55, 0.0 }
 0x16a   :  { %v4692_v6 = vpop.f32.mrf.mxu0  ;;  %v3829_v7 = vadd.f32 %v3828_v0, %v3827_v58  ;;  %v3054_v9 = vadd.f32 %v3053_v1, %v3052_v59  ;;  %v3834_v34 = vsel %vm2643_vm1, %v3504_v60, 0.0  ;;  %2773 = vst.msk [vmem:[%s8542_s3 + $0x408] sm:$0xff] %vm2643_vm1, %v6171_v46  ;;  %v6193_v0 = vpop.f32.mrf.mxu1 }
 0x16b   :  { %v2463_v10 = vmax.f32 %v1669_v62, 0.0  ;;  %v1680_v12 = vadd.f32 %v5831_v56, %v4692_v6  ;;  %v3830_v16 = vsel %vm2643_vm1, %v3502_v4, 0.0  ;;  %2722 = vst.msk [vmem:[%s8542_s3 + $0x270] sm:$0xff] %vm2643_vm1, %v2465_v5  ;;  %v3507_v41 = vmul.f32 %v2465_v5, %v2465_v5 }
 0x16c   :  { %v1671_v17 = vpop.f32.mrf.mxu0  ;;  %v3056_v22 = vadd.f32 %v3055_v14, %v3054_v9  ;;  %v3831_v23 = vadd.f32 %v3830_v16, %v3829_v7  ;;  %v3063_v1 = vsel %vm2643_vm1, %v2465_v5, 0.0 }
 0x16d   :  { %2720 = vst.msk [vmem:[%s8542_s3 + $0x260] sm:$0xff] %vm2643_vm1, %v2463_v10  ;;  %v3505_v24 = vmul.f32 %v2463_v10, %v2463_v10  ;;  %v2466_v25 = vmax.f32 %v1680_v12, 0.0  ;;  %v1672_v28 = vadd.f32 %v5831_v56, %v1671_v17  ;;  %v3059_v42 = vsel %vm2643_vm1, %v2463_v10, 0.0  ;;  %v6200_v17 = vpop.f32.mrf.mxu1 }
 0x16e   :  { %v4695_v29 = vpop.f32.mrf.mxu0  ;;  %v3058_v36 = vadd.f32 %v3057_v20, %v3056_v22  ;;  %v3833_v37 = vadd.f32 %v3832_v19, %v3831_v23  ;;  %v3840_v10 = vsel %vm2643_vm1, %v3507_v41, 0.0  ;;  %v1901_v41 = vadd.f32 %v5831_v56, %v5971_v8 }
 0x16f   :  { %v1693_v38 = vadd.f32 %v5831_v56, %v4695_v29  ;;  %2723 = vst.msk [vmem:[%s8542_s3 + $0x278] sm:$0xff] %vm2643_vm1, %v2466_v25  ;;  %v2464_v45 = vmax.f32 %v1672_v28, 0.0  ;;  %v3836_v54 = vsel %vm2643_vm1, %v3505_v24, 0.0  ;;  %v3508_v55 = vmul.f32 %v2466_v25, %v2466_v25  ;;  %v5003_v24 = vld [vmem:[%s8540_s0 + $0x3e0] sm:$0xff]  }
 0x170   :  { %v1684_v35 = vpop.f32.mrf.mxu0  ;;  %v3835_v47 = vadd.f32 %v3834_v34, %v3833_v37  ;;  %v3060_v48 = vadd.f32 %v3059_v42, %v3058_v36  ;;  %v3065_v19 = vsel %vm2643_vm1, %v2466_v25, 0.0  ;;  %v6212_v25 = vpop.f32.mrf.mxu1  ;;  %v5004_v34 = vld [vmem:[%s8540_s0 + $0x3e8] sm:$0xff]   ;;  %4861 = vmatprep.mubr.msk.bf16.mxu1 %vm945_vm0, %v5003_v24 }
 0x171   :  { %v2469_v27 = vmax.f32 %v1693_v38, 0.0  ;;  %v1685_v51 = vadd.f32 %v5831_v56, %v1684_v35  ;;  %2721 = vst.msk [vmem:[%s8542_s3 + $0x268] sm:$0xff] %vm2643_vm1, %v2464_v45  ;;  %v3061_v57 = vsel %vm2643_vm1, %v2464_v45, 0.0  ;;  %v3506_v58 = vmul.f32 %v2464_v45, %v2464_v45  ;;  %4862 = vmatmul.mubr.msk.bf16.gmra.mxu1 %vm945_vm0, %v5004_v34 }
 0x172   :  { %v4696_v59 = vpop.f32.mrf.mxu0  ;;  %v3837_v60 = vadd.f32 %v3836_v54, %v3835_v47  ;;  %v3062_v62 = vadd.f32 %v3061_v57, %v3060_v48  ;;  %v3842_v20 = vsel %vm2643_vm1, %v3508_v55, 0.0  ;;  %v6231_v48 = vpop.f32.mrf.mxu1  ;;  %v6235_v57 = vmax.f32 %v1901_v41, 0.0 }
 0x173   :  { %2726 = vst.msk [vmem:[%s8542_s3 + $0x290] sm:$0xff] %vm2643_vm1, %v2469_v27  ;;  %v3838_v4 = vsel %vm2643_vm1, %v3506_v58, 0.0  ;;  %v2467_v6 = vmax.f32 %v1685_v51, 0.0  ;;  %v1696_v7 = vadd.f32 %v5831_v56, %v4696_v59  ;;  %v3511_v36 = vmul.f32 %v2469_v27, %v2469_v27 }
 0x174   :  { %v1687_v9 = vpop.f32.mrf.mxu0  ;;  %v3064_v12 = vadd.f32 %v3063_v1, %v3062_v62  ;;  %v3839_v14 = vadd.f32 %v3838_v4, %v3837_v60  ;;  %v6239_v1 = vpop.f32.mrf.mxu1  ;;  %v3071_v4 = vsel %vm2643_vm1, %v2469_v27, 0.0  ;;  %2778 = vst.msk [vmem:[%s8542_s3 + $0x430] sm:$0xff] %vm2643_vm1, %v6235_v57 }
 0x175   :  { %v1688_v16 = vadd.f32 %v5831_v56, %v1687_v9  ;;  %2724 = vst.msk [vmem:[%s8542_s3 + $0x280] sm:$0xff] %vm2643_vm1, %v2467_v6  ;;  %v3509_v5 = vmul.f32 %v2467_v6, %v2467_v6  ;;  %v2470_v22 = vmax.f32 %v1696_v7, 0.0  ;;  %v3067_v37 = vsel %vm2643_vm1, %v2467_v6, 0.0 }
 0x176   :  { %v4699_v23 = vpop.f32.mrf.mxu0  ;;  %v3066_v28 = vadd.f32 %v3065_v19, %v3064_v12  ;;  %v3841_v29 = vadd.f32 %v3840_v10, %v3839_v14  ;;  %v3848_v27 = vsel %vm2643_vm1, %v3511_v36, 0.0 }
 0x177   :  { %v2468_v30 = vmax.f32 %v1688_v16, 0.0  ;;  %v1709_v32 = vadd.f32 %v5831_v56, %v4699_v23  ;;  %v3844_v38 = vsel %vm2643_vm1, %v3509_v5, 0.0  ;;  %2727 = vst.msk [vmem:[%s8542_s3 + $0x298] sm:$0xff] %vm2643_vm1, %v2470_v22  ;;  %v3512_v51 = vmul.f32 %v2470_v22, %v2470_v22  ;;  %v6252_v16 = vpop.f32.mrf.mxu1  ;;  %v5005_v23 = vld [vmem:[%s8540_s0 + $0x3f0] sm:$0xff]  }
 0x178   :  { %v1700_v31 = vpop.f32.mrf.mxu0  ;;  %v3843_v42 = vadd.f32 %v3842_v20, %v3841_v29  ;;  %v3068_v45 = vadd.f32 %v3067_v37, %v3066_v28  ;;  %v3073_v19 = vsel %vm2643_vm1, %v2470_v22, 0.0  ;;  %4865 = vmatprep.mubr.msk.bf16.mxu1 %vm945_vm0, %v5005_v23 }
 0x179   :  { %2725 = vst.msk [vmem:[%s8542_s3 + $0x288] sm:$0xff] %vm2643_vm1, %v2468_v30  ;;  %v3069_v35 = vsel %vm2643_vm1, %v2468_v30, 0.0  ;;  %v3510_v47 = vmul.f32 %v2468_v30, %v2468_v30  ;;  %v2473_v54 = vmax.f32 %v1709_v32, 0.0  ;;  %v1701_v8 = vadd.f32 %v5831_v56, %v1700_v31  ;;  %v6268_v22 = vpop.f32.mrf.mxu1  ;;  %v5006_v30 = vld [vmem:[%s8540_s0 + $0x3f8] sm:$0xff]  }
 0x17a   :  { %v4700_v55 = vpop.f32.mrf.mxu0  ;;  %v3845_v58 = vadd.f32 %v3844_v38, %v3843_v42  ;;  %v3070_v59 = vadd.f32 %v3069_v35, %v3068_v45  ;;  %v3850_v24 = vsel %vm2643_vm1, %v3512_v51, 0.0  ;;  %4866 = vmatmul.mubr.msk.bf16.gmra.mxu1 %vm945_vm0, %v5006_v30 }
 0x17b   :  { %v3846_v60 = vsel %vm2643_vm1, %v3510_v47, 0.0  ;;  %v1712_v62 = vadd.f32 %v5831_v56, %v4700_v55  ;;  %2730 = vst.msk [vmem:[%s8542_s3 + $0x2b0] sm:$0xff] %vm2643_vm1, %v2473_v54  ;;  %v2471_v6 = vmax.f32 %v1701_v8, 0.0  ;;  %v3515_v32 = vmul.f32 %v2473_v54, %v2473_v54  ;;  %v6278_v35 = vpop.f32.mrf.mxu1 }
 0x17c   :  { %v1703_v7 = vpop.f32.mrf.mxu0  ;;  %v3072_v9 = vadd.f32 %v3071_v4, %v3070_v59  ;;  %v3847_v10 = vadd.f32 %v3846_v60, %v3845_v58  ;;  %v1893_v58 = vadd.f32 %v5831_v56, %v5982_v2 }
 0x17d   :  { %v2474_v12 = vmax.f32 %v1712_v62, 0.0  ;;  %v1704_v14 = vadd.f32 %v5831_v56, %v1703_v7  ;;  %2728 = vst.msk [vmem:[%s8542_s3 + $0x2a0] sm:$0xff] %vm2643_vm1, %v2471_v6  ;;  %v3513_v20 = vmul.f32 %v2471_v6, %v2471_v6  ;;  %v3075_v34 = vsel %vm2643_vm1, %v2471_v6, 0.0  ;;  %v6289_v6 = vpop.f32.mrf.mxu1 }
 0x17e   :  { %v4703_v5 = vpop.f32.mrf.mxu0  ;;  %v3074_v28 = vadd.f32 %v3073_v19, %v3072_v9  ;;  %v3849_v29 = vadd.f32 %v3848_v27, %v3847_v10  ;;  %v3079_v7 = vsel %vm2643_vm1, %v2473_v54, 0.0  ;;  %v6297_v27 = vmax.f32 %v1893_v58, 0.0 }
 0x17f   :  { %2731 = vst.msk [vmem:[%s8542_s3 + $0x2b8] sm:$0xff] %vm2643_vm1, %v2474_v12  ;;  %v2472_v36 = vmax.f32 %v1704_v14, 0.0  ;;  %v1725_v37 = vadd.f32 %v5831_v56, %v4703_v5  ;;  %v3852_v42 = vsel %vm2643_vm1, %v3513_v20, 0.0  ;;  %v3516_v9 = vmul.f32 %v2474_v12, %v2474_v12  ;;  %v6304_v54 = vpop.f32.mrf.mxu1 }
 0x180   :  { %v1716_v38 = vpop.f32.mrf.mxu0  ;;  %v3851_v31 = vadd.f32 %v3850_v24, %v3849_v29  ;;  %v3076_v41 = vadd.f32 %v3075_v34, %v3074_v28  ;;  %v3856_v2 = vsel %vm2643_vm1, %v3515_v32, 0.0  ;;  %v3081_v5 = vsel %vm2643_vm1, %v2474_v12, 0.0  ;;  %2776 = vst.msk [vmem:[%s8542_s3 + $0x420] sm:$0xff] %vm2643_vm1, %v6297_v27 }
 0x181   :  { %v1717_v45 = vadd.f32 %v5831_v56, %v1716_v38  ;;  %2729 = vst.msk [vmem:[%s8542_s3 + $0x2a8] sm:$0xff] %vm2643_vm1, %v2472_v36  ;;  %v3077_v47 = vsel %vm2643_vm1, %v2472_v36, 0.0  ;;  %v3514_v51 = vmul.f32 %v2472_v36, %v2472_v36  ;;  %v2477_v8 = vmax.f32 %v1725_v37, 0.0  ;;  %v6314_v36 = vpop.f32.mrf.mxu1 }
 0x182   :  { %v4704_v55 = vpop.f32.mrf.mxu0  ;;  %v3853_v59 = vadd.f32 %v3852_v42, %v3851_v31  ;;  %v3078_v60 = vadd.f32 %v3077_v47, %v3076_v41  ;;  %v3858_v37 = vsel %vm2643_vm1, %v3516_v9, 0.0 }
 0x183   :  { %v2475_v62 = vmax.f32 %v1717_v45, 0.0  ;;  %v1728_v4 = vadd.f32 %v5831_v56, %v4704_v55  ;;  %v3854_v10 = vsel %vm2643_vm1, %v3514_v51, 0.0  ;;  %2734 = vst.msk [vmem:[%s8542_s3 + $0x2d0] sm:$0xff] %vm2643_vm1, %v2477_v8  ;;  %v3519_v12 = vmul.f32 %v2477_v8, %v2477_v8  ;;  %v6323_v55 = vpop.f32.mrf.mxu1 }
 0x184   :  { %v1719_v14 = vpop.f32.mrf.mxu0  ;;  %v3080_v19 = vadd.f32 %v3079_v7, %v3078_v60  ;;  %v3855_v20 = vadd.f32 %v3854_v10, %v3853_v59 }
 0x185   :  { %2732 = vst.msk [vmem:[%s8542_s3 + $0x2c0] sm:$0xff] %vm2643_vm1, %v2475_v62  ;;  %v3517_v23 = vmul.f32 %v2475_v62, %v2475_v62  ;;  %v2478_v24 = vmax.f32 %v1728_v4, 0.0  ;;  %v1720_v28 = vadd.f32 %v5831_v56, %v1719_v14  ;;  %v3083_v38 = vsel %vm2643_vm1, %v2475_v62, 0.0  ;;  %v6336_v14 = vpop.f32.mrf.mxu1 }
 0x186   :  { %v4707_v29 = vpop.f32.mrf.mxu0  ;;  %v3082_v30 = vadd.f32 %v3081_v5, %v3080_v19  ;;  %v3857_v32 = vadd.f32 %v3856_v2, %v3855_v20  ;;  %v3087_v4 = vsel %vm2643_vm1, %v2477_v8, 0.0  ;;  %v3864_v8 = vsel %vm2643_vm1, %v3519_v12, 0.0 }
 0x187   :  { %v1741_v34 = vadd.f32 %v5831_v56, %v4707_v29  ;;  %2735 = vst.msk [vmem:[%s8542_s3 + $0x2d8] sm:$0xff] %vm2643_vm1, %v2478_v24  ;;  %v2476_v31 = vmax.f32 %v1720_v28, 0.0  ;;  %v3860_v58 = vsel %vm2643_vm1, %v3517_v23, 0.0  ;;  %v3520_v9 = vmul.f32 %v2478_v24, %v2478_v24 }
 0x188   :  { %v1732_v41 = vpop.f32.mrf.mxu0  ;;  %v3859_v42 = vadd.f32 %v3858_v37, %v3857_v32  ;;  %v3084_v45 = vadd.f32 %v3083_v38, %v3082_v30  ;;  %v1904_v23 = vadd.f32 %v5831_v56, %v6000_v11  ;;  %v6344_v32 = vpop.f32.mrf.mxu1 }
 0x189   :  { %v2481_v47 = vmax.f32 %v1741_v34, 0.0  ;;  %v1733_v51 = vadd.f32 %v5831_v56, %v1732_v41  ;;  %2733 = vst.msk [vmem:[%s8542_s3 + $0x2c8] sm:$0xff] %vm2643_vm1, %v2476_v31  ;;  %v3085_v59 = vsel %vm2643_vm1, %v2476_v31, 0.0  ;;  %v3518_v60 = vmul.f32 %v2476_v31, %v2476_v31 }
 0x18a   :  { %v4708_v62 = vpop.f32.mrf.mxu0  ;;  %v3861_v7 = vadd.f32 %v3860_v58, %v3859_v42  ;;  %v3086_v10 = vadd.f32 %v3085_v59, %v3084_v45  ;;  %v3089_v34 = vsel %vm2643_vm1, %v2478_v24, 0.0  ;;  %v6351_v41 = vmax.f32 %v1904_v23, 0.0 }
 0x18b   :  { %2738 = vst.msk [vmem:[%s8542_s3 + $0x2f0] sm:$0xff] %vm2643_vm1, %v2481_v47  ;;  %v3862_v2 = vsel %vm2643_vm1, %v3518_v60, 0.0  ;;  %v2479_v19 = vmax.f32 %v1733_v51, 0.0  ;;  %v1744_v20 = vadd.f32 %v5831_v56, %v4708_v62  ;;  %v6354_v51 = vpop.f32.mrf.mxu1  ;;  %v3866_v58 = vsel %vm2643_vm1, %v3520_v9, 0.0 }
 0x18c   :  { %v1735_v5 = vpop.f32.mrf.mxu0  ;;  %v3088_v28 = vadd.f32 %v3087_v4, %v3086_v10  ;;  %v3863_v29 = vadd.f32 %v3862_v2, %v3861_v7  ;;  %v3523_v24 = vmul.f32 %v2481_v47, %v2481_v47  ;;  %2779 = vst.msk [vmem:[%s8542_s3 + $0x438] sm:$0xff] %vm2643_vm1, %v6351_v41 }
 0x18d   :  { %v1736_v30 = vadd.f32 %v5831_v56, %v1735_v5  ;;  %2736 = vst.msk [vmem:[%s8542_s3 + $0x2e0] sm:$0xff] %vm2643_vm1, %v2479_v19  ;;  %v3521_v37 = vmul.f32 %v2479_v19, %v2479_v19  ;;  %v2482_v38 = vmax.f32 %v1744_v20, 0.0  ;;  %v3091_v59 = vsel %vm2643_vm1, %v2479_v19, 0.0  ;;  %v6372_v9 = vpop.f32.mrf.mxu1  ;;  %v6378_v20 = vld [vmem:[%s8541_s2] ss:$0 sm:$0xff] }
 0x18e   :  { %v4711_v31 = vpop.f32.mrf.mxu0  ;;  %v3090_v11 = vadd.f32 %v3089_v34, %v3088_v28  ;;  %v3865_v12 = vadd.f32 %v3864_v8, %v3863_v29 }
 0x18f   :  { %v2480_v42 = vmax.f32 %v1736_v30, 0.0  ;;  %v1757_v45 = vadd.f32 %v5831_v56, %v4711_v31  ;;  %2739 = vst.msk [vmem:[%s8542_s3 + $0x2f8] sm:$0xff] %vm2643_vm1, %v2482_v38  ;;  %v3868_v10 = vsel %vm2643_vm1, %v3521_v37, 0.0  ;;  %v3524_v2 = vmul.f32 %v2482_v38, %v2482_v38  ;;  %v6383_v34 = vpop.f32.mrf.mxu1 }
 0x190   :  { %v1748_v60 = vpop.f32.mrf.mxu0  ;;  %v3867_v56 = vadd.f32 %v3866_v58, %v3865_v12  ;;  %v3092_v62 = vadd.f32 %v3091_v59, %v3090_v11  ;;  %v3095_v37 = vsel %vm2643_vm1, %v2481_v47, 0.0 }
 0x191   :  { %2737 = vst.msk [vmem:[%s8542_s3 + $0x2e8] sm:$0xff] %vm2643_vm1, %v2480_v42  ;;  %v3093_v4 = vsel %vm2643_vm1, %v2480_v42, 0.0  ;;  %v3522_v7 = vmul.f32 %v2480_v42, %v2480_v42  ;;  %v2485_v19 = vmax.f32 %v1757_v45, 0.0  ;;  %v1749_v5 = vadd.f32 %v6378_v20, %v1748_v60  ;;  %v6391_v59 = vpop.f32.mrf.mxu1 }
 0x192   :  { %v4712_v23 = vpop.f32.mrf.mxu0  ;;  %v3869_v8 = vadd.f32 %v3868_v10, %v3867_v56  ;;  %v3094_v28 = vadd.f32 %v3093_v4, %v3092_v62  ;;  %v3872_v60 = vsel %vm2643_vm1, %v3523_v24, 0.0  ;;  %v3097_v56 = vsel %vm2643_vm1, %v2482_v38, 0.0 }
 0x193   :  { %v3870_v29 = vsel %vm2643_vm1, %v3522_v7, 0.0  ;;  %v1760_v30 = vadd.f32 %v6378_v20, %v4712_v23  ;;  %2742 = vst.msk [vmem:[%s8542_s3 + $0x310] sm:$0xff] %vm2643_vm1, %v2485_v19  ;;  %v2483_v31 = vmax.f32 %v1749_v5, 0.0  ;;  %v1896_v4 = vadd.f32 %v6378_v20, %v6008_v21  ;;  %v6406_v38 = vpop.f32.mrf.mxu1 }
 0x194   :  { %v1751_v11 = vpop.f32.mrf.mxu0  ;;  %v3096_v12 = vadd.f32 %v3095_v37, %v3094_v28  ;;  %v3871_v42 = vadd.f32 %v3870_v29, %v3869_v8  ;;  %v3874_v7 = vsel %vm2643_vm1, %v3524_v2, 0.0  ;;  %v3527_v23 = vmul.f32 %v2485_v19, %v2485_v19 }
 0x195   :  { %v2486_v45 = vmax.f32 %v1760_v30, 0.0  ;;  %v1752_v58 = vadd.f32 %v6378_v20, %v1751_v11  ;;  %2740 = vst.msk [vmem:[%s8542_s3 + $0x300] sm:$0xff] %vm2643_vm1, %v2483_v31  ;;  %v3525_v47 = vmul.f32 %v2483_v31, %v2483_v31  ;;  %v3099_v24 = vsel %vm2643_vm1, %v2483_v31, 0.0 }
 0x196   :  { %v4715_v62 = vpop.f32.mrf.mxu0  ;;  %v3098_v10 = vadd.f32 %v3097_v56, %v3096_v12  ;;  %v3873_v5 = vadd.f32 %v3872_v60, %v3871_v42  ;;  %v6410_v30 = vmax.f32 %v1896_v4, 0.0  ;;  %v6413_v12 = vpop.f32.mrf.mxu1 }
 0x197   :  { %2743 = vst.msk [vmem:[%s8542_s3 + $0x318] sm:$0xff] %vm2643_vm1, %v2486_v45  ;;  %v2484_v8 = vmax.f32 %v1752_v58, 0.0  ;;  %v1773_v28 = vadd.f32 %v6378_v20, %v4715_v62  ;;  %v3528_v37 = vmul.f32 %v2486_v45, %v2486_v45  ;;  %8551 = vst [vmem:[#allocation2_spill] sm:$0xff] %v6413_v12  ;;  %v3876_v42 = vsel %vm2643_vm1, %v3525_v47, 0.0 }
 0x198   :  { %v1764_v29 = vpop.f32.mrf.mxu0  ;;  %v3875_v21 = vadd.f32 %v3874_v7, %v3873_v5  ;;  %v3100_v2 = vadd.f32 %v3099_v24, %v3098_v10  ;;  %2777 = vst.msk [vmem:[%s8542_s3 + $0x428] sm:$0xff] %vm2643_vm1, %v6410_v30  ;;  %v6427_v10 = vpop.f32.mrf.mxu1  ;;  %v3103_v5 = vsel %vm2643_vm1, %v2485_v19, 0.0  ;;  %v3105_v19 = vsel %vm2643_vm1, %v2486_v45, 0.0 }
 0x199   :  { %v1765_v11 = vadd.f32 %v6378_v20, %v1764_v29  ;;  %2741 = vst.msk [vmem:[%s8542_s3 + $0x308] sm:$0xff] %vm2643_vm1, %v2484_v8  ;;  %v3101_v31 = vsel %vm2643_vm1, %v2484_v8, 0.0  ;;  %v3526_v58 = vmul.f32 %v2484_v8, %v2484_v8  ;;  %v2489_v60 = vmax.f32 %v1773_v28, 0.0  ;;  %8552 = vst [vmem:[#allocation3_spill] sm:$0xff] %v6427_v10 }
 0x19a   :  { %v4716_v56 = vpop.f32.mrf.mxu0  ;;  %v3877_v62 = vadd.f32 %v3876_v42, %v3875_v21  ;;  %v3102_v4 = vadd.f32 %v3101_v31, %v3100_v2  ;;  %v3880_v28 = vsel %vm2643_vm1, %v3527_v23, 0.0  ;;  %v6440_v2 = vpop.f32.mrf.mxu1 }
 0x19b   :  { %v2487_v7 = vmax.f32 %v1765_v11, 0.0  ;;  %v1776_v47 = vadd.f32 %v6378_v20, %v4716_v56  ;;  %v3878_v24 = vsel %vm2643_vm1, %v3526_v58, 0.0  ;;  %2746 = vst.msk [vmem:[%s8542_s3 + $0x330] sm:$0xff] %vm2643_vm1, %v2489_v60  ;;  %8553 = vst [vmem:[#allocation4_spill] sm:$0xff] %v6440_v2  ;;  %v3882_v56 = vsel %vm2643_vm1, %v3528_v37, 0.0 }
 0x19c   :  { %v1767_v8 = vpop.f32.mrf.mxu0  ;;  %v3104_v29 = vadd.f32 %v3103_v5, %v3102_v4  ;;  %v3879_v21 = vadd.f32 %v3878_v24, %v3877_v62  ;;  %v6446_v4 = vpop.f32.mrf.mxu1  ;;  %v3531_v5 = vmul.f32 %v2489_v60, %v2489_v60 }
 0x19d   :  { %2744 = vst.msk [vmem:[%s8542_s3 + $0x320] sm:$0xff] %vm2643_vm1, %v2487_v7  ;;  %v3529_v11 = vmul.f32 %v2487_v7, %v2487_v7  ;;  %v2490_v42 = vmax.f32 %v1776_v47, 0.0  ;;  %v1768_v31 = vadd.f32 %v6378_v20, %v1767_v8  ;;  %8554 = vst [vmem:[#allocation5_spill] sm:$0xff] %v6446_v4  ;;  %v3107_v24 = vsel %vm2643_vm1, %v2487_v7, 0.0 }
 0x19e   :  { %v4719_v58 = vpop.f32.mrf.mxu0  ;;  %v3106_v10 = vadd.f32 %v3105_v19, %v3104_v29  ;;  %v3881_v23 = vadd.f32 %v3880_v28, %v3879_v21  ;;  %v1917_v8 = vadd.f32 %v6378_v20, %v6021_v33  ;;  %v6456_v19 = vpop.f32.mrf.mxu1  ;;  %v3111_v33 = vsel %vm2643_vm1, %v2489_v60, 0.0 }
 0x19f   :  { %v1789_v62 = vadd.f32 %v6378_v20, %v4719_v58  ;;  %2747 = vst.msk [vmem:[%s8542_s3 + $0x338] sm:$0xff] %vm2643_vm1, %v2490_v42  ;;  %v2488_v45 = vmax.f32 %v1768_v31, 0.0  ;;  %8555 = vst [vmem:[#allocation6_spill] sm:$0xff] %v6456_v19  ;;  %v3884_v58 = vsel %vm2643_vm1, %v3529_v11, 0.0 }
 0x1a0   :  { %v1780_v47 = vpop.f32.mrf.mxu0  ;;  %v3883_v37 = vadd.f32 %v3882_v56, %v3881_v23  ;;  %v3108_v29 = vadd.f32 %v3107_v24, %v3106_v10  ;;  %v6464_v2 = vmax.f32 %v1917_v8, 0.0  ;;  %v6471_v11 = vpop.f32.mrf.mxu1  ;;  %v3532_v23 = vmul.f32 %v2490_v42, %v2490_v42 }
 0x1a1   :  { %v2493_v28 = vmax.f32 %v1789_v62, 0.0  ;;  %v1781_v21 = vadd.f32 %v6378_v20, %v1780_v47  ;;  %2745 = vst.msk [vmem:[%s8542_s3 + $0x328] sm:$0xff] %vm2643_vm1, %v2488_v45  ;;  %v3109_v7 = vsel %vm2643_vm1, %v2488_v45, 0.0  ;;  %v3530_v31 = vmul.f32 %v2488_v45, %v2488_v45  ;;  %8556 = vst [vmem:[#allocation7_spill] sm:$0xff] %v6471_v11 }
 0x1a2   :  { %v4720_v4 = vpop.f32.mrf.mxu0  ;;  %v3885_v10 = vadd.f32 %v3884_v58, %v3883_v37  ;;  %v3110_v56 = vadd.f32 %v3109_v7, %v3108_v29  ;;  %2782 = vst.msk [vmem:[%s8542_s3 + $0x450] sm:$0xff] %vm2643_vm1, %v6464_v2  ;;  %v6481_v29 = vpop.f32.mrf.mxu1  ;;  %v3888_v58 = vsel %vm2643_vm1, %v3531_v5, 0.0  ;;  %v3113_v7 = vsel %vm2643_vm1, %v2490_v42, 0.0 }
 0x1a3   :  { %2750 = vst.msk [vmem:[%s8542_s3 + $0x350] sm:$0xff] %vm2643_vm1, %v2493_v28  ;;  %v3886_v62 = vsel %vm2643_vm1, %v3530_v31, 0.0  ;;  %v2491_v24 = vmax.f32 %v1781_v21, 0.0  ;;  %v1792_v45 = vadd.f32 %v6378_v20, %v4720_v4  ;;  %8557 = vst [vmem:[#allocation8_spill] sm:$0xff] %v6481_v29  ;;  %v3535_v5 = vmul.f32 %v2493_v28, %v2493_v28 }
 0x1a4   :  { %v1783_v47 = vpop.f32.mrf.mxu0  ;;  %v3112_v60 = vadd.f32 %v3111_v33, %v3110_v56  ;;  %v3887_v8 = vadd.f32 %v3886_v62, %v3885_v10  ;;  %v6490_v56 = vpop.f32.mrf.mxu1  ;;  %v3890_v62 = vsel %vm2643_vm1, %v3532_v23, 0.0 }
 0x1a5   :  { %v1784_v37 = vadd.f32 %v6378_v20, %v1783_v47  ;;  %2748 = vst.msk [vmem:[%s8542_s3 + $0x340] sm:$0xff] %vm2643_vm1, %v2491_v24  ;;  %v3533_v4 = vmul.f32 %v2491_v24, %v2491_v24  ;;  %v2494_v21 = vmax.f32 %v1792_v45, 0.0  ;;  %8558 = vst [vmem:[#allocation9_spill] sm:$0xff] %v6490_v56  ;;  %v3115_v42 = vsel %vm2643_vm1, %v2491_v24, 0.0 }
 0x1a6   :  { %v4723_v31 = vpop.f32.mrf.mxu0  ;;  %v3114_v11 = vadd.f32 %v3113_v7, %v3112_v60  ;;  %v3889_v19 = vadd.f32 %v3888_v58, %v3887_v8  ;;  %v6503_v23 = vpop.f32.mrf.mxu1 }
 0x1a7   :  { %v2492_v33 = vmax.f32 %v1784_v37, 0.0  ;;  %v1805_v10 = vadd.f32 %v6378_v20, %v4723_v31  ;;  %2751 = vst.msk [vmem:[%s8542_s3 + $0x358] sm:$0xff] %vm2643_vm1, %v2494_v21  ;;  %8559 = vst [vmem:[#allocation10_spill] sm:$0xff] %v6503_v23  ;;  %v3892_v24 = vsel %vm2643_vm1, %v3533_v4, 0.0  ;;  %v3536_v23 = vmul.f32 %v2494_v21, %v2494_v21 }
 0x1a8   :  { %v1796_v47 = vpop.f32.mrf.mxu0  ;;  %v3891_v45 = vadd.f32 %v3890_v62, %v3889_v19  ;;  %v3116_v29 = vadd.f32 %v3115_v42, %v3114_v11  ;;  %v1909_v19 = vadd.f32 %v6378_v20, %v6037_v44  ;;  %v6511_v56 = vpop.f32.mrf.mxu1 }
 0x1a9   :  { %2749 = vst.msk [vmem:[%s8542_s3 + $0x348] sm:$0xff] %vm2643_vm1, %v2492_v33  ;;  %v3117_v60 = vsel %vm2643_vm1, %v2492_v33, 0.0  ;;  %v3534_v8 = vmul.f32 %v2492_v33, %v2492_v33  ;;  %v2497_v37 = vmax.f32 %v1805_v10, 0.0  ;;  %v1797_v58 = vadd.f32 %v6378_v20, %v1796_v47  ;;  %8560 = vst [vmem:[#allocation11_spill] sm:$0xff] %v6511_v56 }
 0x1aa   :  { %v4724_v7 = vpop.f32.mrf.mxu0  ;;  %v3893_v11 = vadd.f32 %v3892_v24, %v3891_v45  ;;  %v3118_v31 = vadd.f32 %v3117_v60, %v3116_v29  ;;  %v3119_v33 = vsel %vm2643_vm1, %v2493_v28, 0.0  ;;  %v6518_v47 = vmax.f32 %v1909_v19, 0.0 }
 0x1ab   :  { %v3894_v62 = vsel %vm2643_vm1, %v3534_v8, 0.0  ;;  %v1808_v42 = vadd.f32 %v6378_v20, %v4724_v7  ;;  %2754 = vst.msk [vmem:[%s8542_s3 + $0x370] sm:$0xff] %vm2643_vm1, %v2497_v37  ;;  %v2495_v4 = vmax.f32 %v1797_v58, 0.0  ;;  %v6521_v8 = vpop.f32.mrf.mxu1  ;;  %v3896_v24 = vsel %vm2643_vm1, %v3535_v5, 0.0 }
 0x1ac   :  { %v1799_v10 = vpop.f32.mrf.mxu0  ;;  %v3120_v44 = vadd.f32 %v3119_v33, %v3118_v31  ;;  %v3895_v29 = vadd.f32 %v3894_v62, %v3893_v11  ;;  %8561 = vst [vmem:[#allocation12_spill] sm:$0xff] %v6521_v8  ;;  %v3121_v28 = vsel %vm2643_vm1, %v2494_v21, 0.0  ;;  %2780 = vst.msk [vmem:[%s8542_s3 + $0x440] sm:$0xff] %vm2643_vm1, %v6518_v47  ;;  %v3898_v5 = vsel %vm2643_vm1, %v3536_v23, 0.0 }
 0x1ad   :  { %v2498_v45 = vmax.f32 %v1808_v42, 0.0  ;;  %v1800_v60 = vadd.f32 %v6378_v20, %v1799_v10  ;;  %2752 = vst.msk [vmem:[%s8542_s3 + $0x360] sm:$0xff] %vm2643_vm1, %v2495_v4  ;;  %v3537_v58 = vmul.f32 %v2495_v4, %v2495_v4  ;;  %v6538_v21 = vpop.f32.mrf.mxu1  ;;  %v3123_v31 = vsel %vm2643_vm1, %v2495_v4, 0.0 }
 0x1ae   :  { %v4727_v7 = vpop.f32.mrf.mxu0  ;;  %v3122_v19 = vadd.f32 %v3121_v28, %v3120_v44  ;;  %v3897_v11 = vadd.f32 %v3896_v24, %v3895_v29  ;;  %8562 = vst [vmem:[#allocation13_spill] sm:$0xff] %v6538_v21  ;;  %v3539_v8 = vmul.f32 %v2497_v37, %v2497_v37 }
 0x1af   :  { %2755 = vst.msk [vmem:[%s8542_s3 + $0x378] sm:$0xff] %vm2643_vm1, %v2498_v45  ;;  %v2496_v62 = vmax.f32 %v1800_v60, 0.0  ;;  %v1821_v42 = vadd.f32 %v6378_v20, %v4727_v7  ;;  %v6544_v29 = vpop.f32.mrf.mxu1  ;;  %v3900_v24 = vsel %vm2643_vm1, %v3537_v58, 0.0  ;;  %v3540_v58 = vmul.f32 %v2498_v45, %v2498_v45 }
 0x1b0   :  { %v1812_v33 = vpop.f32.mrf.mxu0  ;;  %v3899_v10 = vadd.f32 %v3898_v5, %v3897_v11  ;;  %v3124_v56 = vadd.f32 %v3123_v31, %v3122_v19  ;;  %8563 = vst [vmem:[#allocation14_spill] sm:$0xff] %v6544_v29 }
 0x1b1   :  { %v1813_v44 = vadd.f32 %v6378_v20, %v1812_v33  ;;  %2753 = vst.msk [vmem:[%s8542_s3 + $0x368] sm:$0xff] %vm2643_vm1, %v2496_v62  ;;  %v3125_v23 = vsel %vm2643_vm1, %v2496_v62, 0.0  ;;  %v3538_v4 = vmul.f32 %v2496_v62, %v2496_v62  ;;  %v2501_v60 = vmax.f32 %v1821_v42, 0.0  ;;  %v6553_v31 = vpop.f32.mrf.mxu1 }
 0x1b2   :  { %v4728_v28 = vpop.f32.mrf.mxu0  ;;  %v3901_v7 = vadd.f32 %v3900_v24, %v3899_v10  ;;  %v3126_v11 = vadd.f32 %v3125_v23, %v3124_v56  ;;  %8564 = vst [vmem:[#allocation15_spill] sm:$0xff] %v6553_v31  ;;  %v3127_v33 = vsel %vm2643_vm1, %v2497_v37, 0.0  ;;  %v1920_v42 = vadd.f32 %v6378_v20, %v6044_v53 }
 0x1b3   :  { %v2499_v5 = vmax.f32 %v1813_v44, 0.0  ;;  %v1824_v19 = vadd.f32 %v6378_v20, %v4728_v28  ;;  %v3902_v29 = vsel %vm2643_vm1, %v3538_v4, 0.0  ;;  %2758 = vst.msk [vmem:[%s8542_s3 + $0x390] sm:$0xff] %vm2643_vm1, %v2501_v60  ;;  %v3904_v56 = vsel %vm2643_vm1, %v3539_v8, 0.0  ;;  %v6569_v37 = vpop.f32.mrf.mxu1 }
 0x1b4   :  { %v1815_v62 = vpop.f32.mrf.mxu0  ;;  %v3129_v10 = vsel %vm2643_vm1, %v2498_v45, 0.0  ;;  %v3128_v44 = vadd.f32 %v3127_v33, %v3126_v11  ;;  %v3903_v24 = vadd.f32 %v3902_v29, %v3901_v7  ;;  %8565 = vst [vmem:[#allocation16_spill] sm:$0xff] %v6569_v37  ;;  %v6572_v21 = vmax.f32 %v1920_v42, 0.0 }
 0x1b5   :  { %2756 = vst.msk [vmem:[%s8542_s3 + $0x380] sm:$0xff] %vm2643_vm1, %v2499_v5  ;;  %v3541_v23 = vmul.f32 %v2499_v5, %v2499_v5  ;;  %v2502_v4 = vmax.f32 %v1824_v19, 0.0  ;;  %v1816_v28 = vadd.f32 %v6378_v20, %v1815_v62  ;;  %v6575_v11 = vpop.f32.mrf.mxu1  ;;  %v3906_v29 = vsel %vm2643_vm1, %v3540_v58, 0.0 }
 0x1b6   :  { %v4731_v31 = vpop.f32.mrf.mxu0  ;;  %v3130_v53 = vadd.f32 %v3129_v10, %v3128_v44  ;;  %v3905_v8 = vadd.f32 %v3904_v56, %v3903_v24  ;;  %8566 = vst [vmem:[#allocation17_spill] sm:$0xff] %v6575_v11  ;;  %v3543_v7 = vmul.f32 %v2501_v60, %v2501_v60  ;;  %v3131_v33 = vsel %vm2643_vm1, %v2499_v5, 0.0  ;;  %2783 = vst.msk [vmem:[%s8542_s3 + $0x458] sm:$0xff] %vm2643_vm1, %v6572_v21 }
 0x1b7   :  { %v1837_v45 = vadd.f32 %v6378_v20, %v4731_v31  ;;  %2759 = vst.msk [vmem:[%s8542_s3 + $0x398] sm:$0xff] %vm2643_vm1, %v2502_v4  ;;  %v2500_v19 = vmax.f32 %v1816_v28, 0.0  ;;  %v6589_v10 = vpop.f32.mrf.mxu1  ;;  %v3908_v5 = vsel %vm2643_vm1, %v3541_v23, 0.0  ;;  %v3135_v11 = vsel %vm2643_vm1, %v2501_v60, 0.0 }
 0x1b8   :  { %v1828_v62 = vpop.f32.mrf.mxu0  ;;  %v3907_v31 = vadd.f32 %v3906_v29, %v3905_v8  ;;  %v3132_v42 = vadd.f32 %v3131_v33, %v3130_v53  ;;  %8567 = vst [vmem:[#allocation18_spill] sm:$0xff] %v6589_v10  ;;  %v3544_v23 = vmul.f32 %v2502_v4, %v2502_v4 }
 0x1b9   :  { %v2505_v56 = vmax.f32 %v1837_v45, 0.0  ;;  %v1829_v58 = vadd.f32 %v6378_v20, %v1828_v62  ;;  %2757 = vst.msk [vmem:[%s8542_s3 + $0x388] sm:$0xff] %vm2643_vm1, %v2500_v19  ;;  %v3133_v44 = vsel %vm2643_vm1, %v2500_v19, 0.0  ;;  %v3542_v24 = vmul.f32 %v2500_v19, %v2500_v19  ;;  %v6602_v45 = vpop.f32.mrf.mxu1 }
 0x1ba   :  { %v4732_v28 = vpop.f32.mrf.mxu0  ;;  %v3909_v8 = vadd.f32 %v3908_v5, %v3907_v31  ;;  %v3134_v53 = vadd.f32 %v3133_v44, %v3132_v42  ;;  %8568 = vst [vmem:[#allocation19_spill] sm:$0xff] %v6602_v45  ;;  %v3912_v19 = vsel %vm2643_vm1, %v3543_v7, 0.0  ;;  %v3137_v5 = vsel %vm2643_vm1, %v2502_v4, 0.0 }
 0x1bb   :  { %2762 = vst.msk [vmem:[%s8542_s3 + $0x3b0] sm:$0xff] %vm2643_vm1, %v2505_v56  ;;  %v3910_v29 = vsel %vm2643_vm1, %v3542_v24, 0.0  ;;  %v2503_v33 = vmax.f32 %v1829_v58, 0.0  ;;  %v1840_v62 = vadd.f32 %v6378_v20, %v4732_v28  ;;  %v6608_v42 = vpop.f32.mrf.mxu1  ;;  %v1912_v28 = vadd.f32 %v6378_v20, %v6061_v3 }
 0x1bc   :  { %v1831_v10 = vpop.f32.mrf.mxu0  ;;  %v3136_v37 = vadd.f32 %v3135_v11, %v3134_v53  ;;  %v3911_v60 = vadd.f32 %v3910_v29, %v3909_v8  ;;  %8569 = vst [vmem:[#allocation20_spill] sm:$0xff] %v6608_v42  ;;  %v3914_v4 = vsel %vm2643_vm1, %v3544_v23, 0.0  ;;  %v3547_v29 = vmul.f32 %v2505_v56, %v2505_v56 }
 0x1bd   :  { %v1832_v31 = vadd.f32 %v6378_v20, %v1831_v10  ;;  %2760 = vst.msk [vmem:[%s8542_s3 + $0x3a0] sm:$0xff] %vm2643_vm1, %v2503_v33  ;;  %v3545_v44 = vmul.f32 %v2503_v33, %v2503_v33  ;;  %v2506_v58 = vmax.f32 %v1840_v62, 0.0  ;;  %v6618_v53 = vpop.f32.mrf.mxu1  ;;  %v3139_v42 = vsel %vm2643_vm1, %v2503_v33, 0.0 }
 0x1be   :  { %v4735_v24 = vpop.f32.mrf.mxu0  ;;  %v3138_v7 = vadd.f32 %v3137_v5, %v3136_v37  ;;  %v3913_v11 = vadd.f32 %v3912_v19, %v3911_v60  ;;  %8570 = vst [vmem:[#allocation21_spill] sm:$0xff] %v6618_v53  ;;  %v6626_v45 = vmax.f32 %v1912_v28, 0.0 }
 0x1bf   :  { %v2504_v8 = vmax.f32 %v1832_v31, 0.0  ;;  %v1853_v10 = vadd.f32 %v6378_v20, %v4735_v24  ;;  %2763 = vst.msk [vmem:[%s8542_s3 + $0x3b8] sm:$0xff] %vm2643_vm1, %v2506_v58  ;;  %v6633_v60 = vpop.f32.mrf.mxu1  ;;  %v3916_v33 = vsel %vm2643_vm1, %v3545_v44, 0.0  ;;  %v3548_v31 = vmul.f32 %v2506_v58, %v2506_v58 }
 0x1c0   :  { %v1844_v62 = vpop.f32.mrf.mxu0  ;;  %v3915_v3 = vadd.f32 %v3914_v4, %v3913_v11  ;;  %v3140_v37 = vadd.f32 %v3139_v42, %v3138_v7  ;;  %8571 = vst [vmem:[#allocation22_spill] sm:$0xff] %v6633_v60  ;;  %2781 = vst.msk [vmem:[%s8542_s3 + $0x448] sm:$0xff] %vm2643_vm1, %v6626_v45  ;;  %v3143_v44 = vsel %vm2643_vm1, %v2505_v56, 0.0 }
 0x1c1   :  { %2761 = vst.msk [vmem:[%s8542_s3 + $0x3a8] sm:$0xff] %vm2643_vm1, %v2504_v8  ;;  %v3141_v23 = vsel %vm2643_vm1, %v2504_v8, 0.0  ;;  %v3546_v19 = vmul.f32 %v2504_v8, %v2504_v8  ;;  %v2509_v5 = vmax.f32 %v1853_v10, 0.0  ;;  %v1845_v24 = vadd.f32 %v6378_v20, %v1844_v62  ;;  %v6644_v4 = vpop.f32.mrf.mxu1 }
 0x1c2   :  { %v4736_v28 = vpop.f32.mrf.mxu0  ;;  %v3917_v42 = vadd.f32 %v3916_v33, %v3915_v3  ;;  %v3142_v7 = vadd.f32 %v3141_v23, %v3140_v37  ;;  %v3920_v23 = vsel %vm2643_vm1, %v3547_v29, 0.0 }
 0x1c3   :  { %v3918_v11 = vsel %vm2643_vm1, %v3546_v19, 0.0  ;;  %v1856_v8 = vadd.f32 %v6378_v20, %v4736_v28  ;;  %2766 = vst.msk [vmem:[%s8542_s3 + $0x3d0] sm:$0xff] %vm2643_vm1, %v2509_v5  ;;  %v2507_v10 = vmax.f32 %v1845_v24, 0.0  ;;  %v6652_v37 = vpop.f32.mrf.mxu1  ;;  %v3145_v19 = vsel %vm2643_vm1, %v2506_v58, 0.0 }
 0x1c4   :  { %v1847_v62 = vpop.f32.mrf.mxu0  ;;  %v3144_v60 = vadd.f32 %v3143_v44, %v3142_v7  ;;  %v3919_v53 = vadd.f32 %v3918_v11, %v3917_v42  ;;  %8572 = vst [vmem:[#allocation23_spill] sm:$0xff] %v6652_v37  ;;  %v3922_v24 = vsel %vm2643_vm1, %v3548_v31, 0.0  ;;  %v3551_v7 = vmul.f32 %v2509_v5, %v2509_v5 }
 0x1c5   :  { %v2510_v12 = vmax.f32 %v1856_v8, 0.0  ;;  %v1848_v3 = vadd.f32 %v6378_v20, %v1847_v62  ;;  %2764 = vst.msk [vmem:[%s8542_s3 + $0x3c0] sm:$0xff] %vm2643_vm1, %v2507_v10  ;;  %v3549_v56 = vmul.f32 %v2507_v10, %v2507_v10  ;;  %v6665_v29 = vpop.f32.mrf.mxu1  ;;  %v3147_v58 = vsel %vm2643_vm1, %v2507_v10, 0.0 }
 0x1c6   :  { %v4739_v33 = vpop.f32.mrf.mxu0  ;;  %v3146_v28 = vadd.f32 %v3145_v19, %v3144_v60  ;;  %v3921_v42 = vadd.f32 %v3920_v23, %v3919_v53  ;;  %8573 = vst [vmem:[#allocation24_spill] sm:$0xff] %v6665_v29  ;;  %v1933_v62 = vadd.f32 %v6378_v20, %v6078_v15 }
 0x1c7   :  { %2767 = vst.msk [vmem:[%s8542_s3 + $0x3d8] sm:$0xff] %vm2643_vm1, %v2510_v12  ;;  %v2508_v11 = vmax.f32 %v1848_v3, 0.0  ;;  %v1869_v8 = vadd.f32 %v6378_v20, %v4739_v33  ;;  %v3924_v53 = vsel %vm2643_vm1, %v3549_v56, 0.0  ;;  %v6673_v19 = vpop.f32.mrf.mxu1 }
 0x1c8   :  { %v1860_v44 = vpop.f32.mrf.mxu0  ;;  %v3923_v31 = vadd.f32 %v3922_v24, %v3921_v42  ;;  %v3148_v60 = vadd.f32 %v3147_v58, %v3146_v28  ;;  %8574 = vst [vmem:[#allocation25_spill] sm:$0xff] %v6673_v19  ;;  %v6680_v37 = vmax.f32 %v1933_v62, 0.0  ;;  %v3151_v58 = vsel %vm2643_vm1, %v2509_v5, 0.0 }
 0x1c9   :  { %v1861_v23 = vadd.f32 %v6378_v20, %v1860_v44  ;;  %2765 = vst.msk [vmem:[%s8542_s3 + $0x3c8] sm:$0xff] %vm2643_vm1, %v2508_v11  ;;  %v3149_v10 = vsel %vm2643_vm1, %v2508_v11, 0.0  ;;  %v3550_v3 = vmul.f32 %v2508_v11, %v2508_v11  ;;  %v2513_v33 = vmax.f32 %v1869_v8, 0.0  ;;  %v6683_v42 = vpop.f32.mrf.mxu1 }
 0x1ca   :  { %v4740_v29 = vpop.f32.mrf.mxu0  ;;  %v3925_v15 = vadd.f32 %v3924_v53, %v3923_v31  ;;  %v3150_v24 = vadd.f32 %v3149_v10, %v3148_v60  ;;  %v3552_v44 = vmul.f32 %v2510_v12, %v2510_v12  ;;  %2786 = vst.msk [vmem:[%s8542_s3 + $0x470] sm:$0xff] %vm2643_vm1, %v6680_v37  ;;  %v3153_v31 = vsel %vm2643_vm1, %v2510_v12, 0.0 }
 0x1cb   :  { %v2511_v28 = vmax.f32 %v1861_v23, 0.0  ;;  %v1872_v56 = vadd.f32 %v6378_v20, %v4740_v29  ;;  %v3926_v19 = vsel %vm2643_vm1, %v3550_v3, 0.0  ;;  %2770 = vst.msk [vmem:[%s8542_s3 + $0x3f0] sm:$0xff] %vm2643_vm1, %v2513_v33  ;;  %v3928_v29 = vsel %vm2643_vm1, %v3551_v7, 0.0  ;;  %v6701_v5 = vpop.f32.mrf.mxu1 }
 0x1cc   :  { %v1863_v11 = vpop.f32.mrf.mxu0  ;;  %v3152_v8 = vadd.f32 %v3151_v58, %v3150_v24  ;;  %v3927_v62 = vadd.f32 %v3926_v19, %v3925_v15  ;;  %v1925_v7 = vadd.f32 %v6378_v20, %v6085_v26  ;;  %v3930_v19 = vsel %vm2643_vm1, %v3552_v44, 0.0 }
 0x1cd   :  { %2768 = vst.msk [vmem:[%s8542_s3 + $0x3e0] sm:$0xff] %vm2643_vm1, %v2511_v28  ;;  %v3553_v60 = vmul.f32 %v2511_v28, %v2511_v28  ;;  %v2514_v53 = vmax.f32 %v1872_v56, 0.0  ;;  %v1864_v23 = vadd.f32 %v6378_v20, %v1863_v11  ;;  %v6707_v24 = vpop.f32.mrf.mxu1  ;;  %v3555_v15 = vmul.f32 %v2513_v33, %v2513_v33 }
 0x1ce   :  { %v3154_v10 = vadd.f32 %v3153_v31, %v3152_v8  ;;  %v3929_v3 = vadd.f32 %v3928_v29, %v3927_v62  ;;  %v3155_v58 = vsel %vm2643_vm1, %v2511_v28, 0.0  ;;  %v6715_v8 = vmax.f32 %v1925_v7, 0.0 }
 0x1cf   :  { %2771 = vst.msk [vmem:[%s8542_s3 + $0x3f8] sm:$0xff] %vm2643_vm1, %v2514_v53  ;;  %v2512_v12 = vmax.f32 %v1864_v23, 0.0  ;;  %v1936_v26 = vadd.f32 %v6378_v20, %v6095_v39  ;;  %v6719_v29 = vpop.f32.mrf.mxu1  ;;  %v3932_v44 = vsel %vm2643_vm1, %v3553_v60, 0.0  ;;  %v1928_v31 = vadd.f32 %v6378_v20, %v6113_v49 }
 0x1d0   :  { %v3931_v56 = vadd.f32 %v3930_v19, %v3929_v3  ;;  %v3156_v11 = vadd.f32 %v3155_v58, %v3154_v10  ;;  %v3159_v23 = vsel %vm2643_vm1, %v2513_v33, 0.0  ;;  %v3556_v3 = vmul.f32 %v2514_v53, %v2514_v53  ;;  %2784 = vst.msk [vmem:[%s8542_s3 + $0x460] sm:$0xff] %vm2643_vm1, %v6715_v8 }
 0x1d1   :  { %2769 = vst.msk [vmem:[%s8542_s3 + $0x3e8] sm:$0xff] %vm2643_vm1, %v2512_v12  ;;  %v3157_v28 = vsel %vm2643_vm1, %v2512_v12, 0.0  ;;  %v3554_v62 = vmul.f32 %v2512_v12, %v2512_v12  ;;  %v6735_v60 = vpop.f32.mrf.mxu1  ;;  %v6738_v19 = vmax.f32 %v1936_v26, 0.0  ;;  %v6740_v58 = vmax.f32 %v1928_v31, 0.0 }
 0x1d2   :  { %v3933_v10 = vadd.f32 %v3932_v44, %v3931_v56  ;;  %v3158_v39 = vadd.f32 %v3157_v28, %v3156_v11  ;;  %v1949_v49 = vadd.f32 %v6378_v20, %v6127_v63  ;;  %v3559_v33 = vmul.f32 %v5979_v61, %v5979_v61 }
 0x1d3   :  { %v3934_v7 = vsel %vm2643_vm1, %v3554_v62, 0.0  ;;  %v1941_v11 = vadd.f32 %v6378_v20, %v6137_v13  ;;  %v6748_v44 = vpop.f32.mrf.mxu1  ;;  %v3936_v28 = vsel %vm2643_vm1, %v3555_v15, 0.0  ;;  %v3161_v26 = vsel %vm2643_vm1, %v2514_v53, 0.0  ;;  %2787 = vst.msk [vmem:[%s8542_s3 + $0x478] sm:$0xff] %vm2643_vm1, %v6738_v19  ;;  %2785 = vst.msk [vmem:[%s8542_s3 + $0x468] sm:$0xff] %vm2643_vm1, %v6740_v58 }
 0x1d4   :  { %v3160_v12 = vadd.f32 %v3159_v23, %v3158_v39  ;;  %v3935_v56 = vadd.f32 %v3934_v7, %v3933_v10  ;;  %8575 = vst [vmem:[#allocation26_spill] sm:$0xff] %v6748_v44  ;;  %v3163_v62 = vsel %vm2643_vm1, %v6041_v50, 0.0  ;;  %v3557_v63 = vmul.f32 %v6041_v50, %v6041_v50 }
 0x1d5   :  { %v6766_v15 = vmax.f32 %v1949_v49, 0.0  ;;  %v6768_v31 = vmax.f32 %v1941_v11, 0.0  ;;  %v6770_v23 = vpop.f32.mrf.mxu1  ;;  %v3938_v50 = vsel %vm2643_vm1, %v3556_v3, 0.0  ;;  %v3558_v10 = vmul.f32 %v6171_v46, %v6171_v46 }
 0x1d6   :  { %v3162_v13 = vadd.f32 %v3161_v26, %v3160_v12  ;;  %v3937_v53 = vadd.f32 %v3936_v28, %v3935_v56  ;;  %v1952_v39 = vadd.f32 %v6378_v20, %v6151_v18  ;;  %v1944_v7 = vadd.f32 %v6378_v20, %v6161_v40 }
 0x1d7   :  { %2790 = vst.msk [vmem:[%s8542_s3 + $0x490] sm:$0xff] %vm2643_vm1, %v6766_v15  ;;  %2788 = vst.msk [vmem:[%s8542_s3 + $0x480] sm:$0xff] %vm2643_vm1, %v6768_v31  ;;  %v6789_v3 = vpop.f32.mrf.mxu1  ;;  %v3940_v18 = vsel %vm2643_vm1, %v3557_v63, 0.0  ;;  %v3165_v40 = vsel %vm2643_vm1, %v6171_v46, 0.0  ;;  %v3560_v28 = vmul.f32 %v6103_v43, %v6103_v43  ;;  %v3167_v63 = vsel %vm2643_vm1, %v5979_v61, 0.0 }
 0x1d8   :  { %v3164_v44 = vadd.f32 %v3163_v62, %v3162_v13  ;;  %v3939_v12 = vadd.f32 %v3938_v50, %v3937_v53  ;;  %v6794_v49 = vmax.f32 %v1952_v39, 0.0  ;;  %v6796_v56 = vmax.f32 %v1944_v7, 0.0 }
 0x1d9   :  { %v1965_v62 = vadd.f32 %v6378_v20, %v6175_v52  ;;  %v6802_v13 = vpop.f32.mrf.mxu1  ;;  %v3944_v53 = vsel %vm2643_vm1, %v3559_v33, 0.0  ;;  %v3942_v46 = vsel %vm2643_vm1, %v3558_v10, 0.0  ;;  %v3169_v52 = vsel %vm2643_vm1, %v6103_v43, 0.0 }
 0x1da   :  { %v3941_v11 = vadd.f32 %v3940_v18, %v3939_v12  ;;  %v3166_v26 = vadd.f32 %v3165_v40, %v3164_v44  ;;  %2791 = vst.msk [vmem:[%s8542_s3 + $0x498] sm:$0xff] %vm2643_vm1, %v6794_v49  ;;  %2789 = vst.msk [vmem:[%s8542_s3 + $0x488] sm:$0xff] %vm2643_vm1, %v6796_v56  ;;  %v3561_v10 = vmul.f32 %v6297_v27, %v6297_v27  ;;  %v3946_v43 = vsel %vm2643_vm1, %v3560_v28, 0.0 }
 0x1db   :  { %v6820_v33 = vmax.f32 %v1965_v62, 0.0  ;;  %v6822_v50 = vpop.f32.mrf.mxu1  ;;  %v1957_v39 = vadd.f32 %v6378_v20, %v6193_v0  ;;  %v1968_v7 = vadd.f32 %v6378_v20, %v6200_v17  ;;  %v1960_v12 = vadd.f32 %v6378_v20, %v6212_v25 }
 0x1dc   :  { %v3168_v61 = vadd.f32 %v3167_v63, %v3166_v26  ;;  %v3943_v44 = vadd.f32 %v3942_v46, %v3941_v11  ;;  %v3171_v11 = vsel %vm2643_vm1, %v6297_v27, 0.0  ;;  %v3562_v17 = vmul.f32 %v6410_v30, %v6410_v30 }
 0x1dd   :  { %2794 = vst.msk [vmem:[%s8542_s3 + $0x4b0] sm:$0xff] %vm2643_vm1, %v6820_v33  ;;  %v6840_v0 = vpop.f32.mrf.mxu1  ;;  %v6844_v26 = vmax.f32 %v1957_v39, 0.0  ;;  %v6846_v25 = vmax.f32 %v1968_v7, 0.0  ;;  %v6848_v28 = vmax.f32 %v1960_v12, 0.0  ;;  %v1981_v27 = vadd.f32 %v6378_v20, %v6231_v48 }
 0x1de   :  { %v3170_v18 = vadd.f32 %v3169_v52, %v3168_v61  ;;  %v3945_v40 = vadd.f32 %v3944_v53, %v3943_v44  ;;  %v1973_v53 = vadd.f32 %v6378_v20, %v6239_v1  ;;  %v3563_v52 = vmul.f32 %v6235_v57, %v6235_v57 }
 0x1df   :  { %v6854_v46 = vpop.f32.mrf.mxu1  ;;  %v3948_v61 = vsel %vm2643_vm1, %v3561_v10, 0.0  ;;  %v3564_v44 = vmul.f32 %v6351_v41, %v6351_v41  ;;  %v3173_v39 = vsel %vm2643_vm1, %v6410_v30, 0.0  ;;  %2792 = vst.msk [vmem:[%s8542_s3 + $0x4a0] sm:$0xff] %vm2643_vm1, %v6844_v26  ;;  %2795 = vst.msk [vmem:[%s8542_s3 + $0x4b8] sm:$0xff] %vm2643_vm1, %v6846_v25  ;;  %v3175_v10 = vsel %vm2643_vm1, %v6235_v57, 0.0 }
 0x1e0   :  { %v3947_v62 = vadd.f32 %v3946_v43, %v3945_v40  ;;  %v3172_v63 = vadd.f32 %v3171_v11, %v3170_v18  ;;  %2793 = vst.msk [vmem:[%s8542_s3 + $0x4a8] sm:$0xff] %vm2643_vm1, %v6848_v28  ;;  %v3950_v7 = vsel %vm2643_vm1, %v3562_v17, 0.0  ;;  %v6883_v12 = vmax.f32 %v1981_v27, 0.0 }
 0x1e1   :  { %v6878_v30 = vpop.f32.mrf.mxu1  ;;  %v6885_v43 = vmax.f32 %v1973_v53, 0.0  ;;  %v3565_v11 = vmul.f32 %v6518_v47, %v6518_v47  ;;  %v3177_v57 = vsel %vm2643_vm1, %v6351_v41, 0.0  ;;  %v3954_v17 = vsel %vm2643_vm1, %v3564_v44, 0.0 }
 0x1e2   :  { %v3949_v48 = vadd.f32 %v3948_v61, %v3947_v62  ;;  %v3174_v1 = vadd.f32 %v3173_v39, %v3172_v63  ;;  %v1984_v62 = vadd.f32 %v6378_v20, %v6252_v16  ;;  %v3952_v61 = vsel %vm2643_vm1, %v3563_v52, 0.0  ;;  %2798 = vst.msk [vmem:[%s8542_s3 + $0x4d0] sm:$0xff] %vm2643_vm1, %v6883_v12 }
 0x1e3   :  { %v6891_v63 = vpop.f32.mrf.mxu1  ;;  %2796 = vst.msk [vmem:[%s8542_s3 + $0x4c0] sm:$0xff] %vm2643_vm1, %v6885_v43  ;;  %v3179_v53 = vsel %vm2643_vm1, %v6518_v47, 0.0  ;;  %v3566_v44 = vmul.f32 %v6626_v45, %v6626_v45  ;;  %v1976_v39 = vadd.f32 %v6378_v20, %v6268_v22  ;;  %v3567_v47 = vmul.f32 %v6464_v2, %v6464_v2 }
 0x1e4   :  { %v3176_v18 = vadd.f32 %v3175_v10, %v3174_v1  ;;  %v3951_v40 = vadd.f32 %v3950_v7, %v3949_v48  ;;  %v6909_v41 = vmax.f32 %v1984_v62, 0.0  ;;  %v1997_v48 = vadd.f32 %v6378_v20, %v6278_v35 }
 0x1e5   :  { %v6911_v52 = vpop.f32.mrf.mxu1  ;;  %v1989_v1 = vadd.f32 %v6378_v20, %v6289_v6  ;;  %v3181_v35 = vsel %vm2643_vm1, %v6626_v45, 0.0  ;;  %v3568_v45 = vmul.f32 %v6572_v21, %v6572_v21 }
 0x1e6   :  { %v3178_v16 = vadd.f32 %v3177_v57, %v3176_v18  ;;  %v3953_v27 = vadd.f32 %v3952_v61, %v3951_v40  ;;  %v3956_v18 = vsel %vm2643_vm1, %v3565_v11, 0.0  ;;  %2799 = vst.msk [vmem:[%s8542_s3 + $0x4d8] sm:$0xff] %vm2643_vm1, %v6909_v41  ;;  %v6933_v40 = vmax.f32 %v1976_v39, 0.0 }
 0x1e7   :  { %v6929_v22 = vpop.f32.mrf.mxu1  ;;  %v6935_v6 = vmax.f32 %v1997_v48, 0.0  ;;  %v6937_v62 = vmax.f32 %v1989_v1, 0.0  ;;  %v2000_v11 = vadd.f32 %v6378_v20, %v6304_v54  ;;  %v3960_v39 = vsel %vm2643_vm1, %v3567_v47, 0.0 }
 0x1e8   :  { %v3955_v10 = vadd.f32 %v3954_v17, %v3953_v27  ;;  %v3180_v7 = vadd.f32 %v3179_v53, %v3178_v16  ;;  %v1992_v17 = vadd.f32 %v6378_v20, %v6314_v36  ;;  %v3183_v27 = vsel %vm2643_vm1, %v6464_v2, 0.0  ;;  %2797 = vst.msk [vmem:[%s8542_s3 + $0x4c8] sm:$0xff] %vm2643_vm1, %v6933_v40 }
 0x1e9   :  { %v6943_v16 = vpop.f32.mrf.mxu1  ;;  %v3958_v53 = vsel %vm2643_vm1, %v3566_v44, 0.0  ;;  %2802 = vst.msk [vmem:[%s8542_s3 + $0x4f0] sm:$0xff] %vm2643_vm1, %v6935_v6  ;;  %2800 = vst.msk [vmem:[%s8542_s3 + $0x4e0] sm:$0xff] %vm2643_vm1, %v6937_v62  ;;  %v3569_v2 = vmul.f32 %v6715_v8, %v6715_v8  ;;  %v3185_v48 = vsel %vm2643_vm1, %v6572_v21, 0.0  ;;  %v6972_v1 = vmax.f32 %v2000_v11, 0.0 }
 0x1ea   :  { %v3957_v61 = vadd.f32 %v3956_v18, %v3955_v10  ;;  %v3182_v57 = vadd.f32 %v3181_v35, %v3180_v7  ;;  %v6974_v10 = vmax.f32 %v1992_v17, 0.0  ;;  %v2013_v35 = vadd.f32 %v6378_v20, %v6323_v55 }
 0x1eb   :  { %v6967_v44 = vpop.f32.mrf.mxu1  ;;  %v3187_v47 = vsel %vm2643_vm1, %v6715_v8, 0.0  ;;  %v3570_v21 = vmul.f32 %v6740_v58, %v6740_v58  ;;  %2803 = vst.msk [vmem:[%s8542_s3 + $0x4f8] sm:$0xff] %vm2643_vm1, %v6972_v1  ;;  %v3964_v17 = vsel %vm2643_vm1, %v3569_v2, 0.0 }
 0x1ec   :  { %v3184_v54 = vadd.f32 %v3183_v27, %v3182_v57  ;;  %v3959_v36 = vadd.f32 %v3958_v53, %v3957_v61  ;;  %v3962_v57 = vsel %vm2643_vm1, %v3568_v45, 0.0  ;;  %v3571_v27 = vmul.f32 %v6680_v37, %v6680_v37  ;;  %2801 = vst.msk [vmem:[%s8542_s3 + $0x4e8] sm:$0xff] %vm2643_vm1, %v6974_v10 }
 0x1ed   :  { %v6978_v61 = vpop.f32.mrf.mxu1  ;;  %v6998_v8 = vmax.f32 %v2013_v35, 0.0  ;;  %v3189_v53 = vsel %vm2643_vm1, %v6740_v58, 0.0 }
 0x1ee   :  { %v3186_v7 = vadd.f32 %v3185_v48, %v3184_v54  ;;  %v3961_v18 = vadd.f32 %v3960_v39, %v3959_v36  ;;  %v2005_v54 = vadd.f32 %v6378_v20, %v6336_v14  ;;  %v2016_v36 = vadd.f32 %v6378_v20, %v6344_v32 }
 0x1ef   :  { %v7000_v45 = vpop.f32.mrf.mxu1  ;;  %v2008_v39 = vadd.f32 %v6378_v20, %v6354_v51  ;;  %v3191_v48 = vsel %vm2643_vm1, %v6680_v37, 0.0  ;;  %2806 = vst.msk [vmem:[%s8542_s3 + $0x510] sm:$0xff] %vm2643_vm1, %v6998_v8  ;;  %v3966_v32 = vsel %vm2643_vm1, %v3570_v21, 0.0  ;;  %v3193_v21 = vsel %vm2643_vm1, %v6738_v19, 0.0 }
 0x1f0   :  { %v3963_v55 = vadd.f32 %v3962_v57, %v3961_v18  ;;  %v3188_v11 = vadd.f32 %v3187_v47, %v3186_v7  ;;  %v3572_v7 = vmul.f32 %v6738_v19, %v6738_v19  ;;  %v7022_v58 = vmax.f32 %v2005_v54, 0.0 }
 0x1f1   :  { %v7019_v14 = vpop.f32.mrf.mxu1  ;;  %v7024_v51 = vmax.f32 %v2016_v36, 0.0  ;;  %v7026_v37 = vmax.f32 %v2008_v39, 0.0  ;;  %v2029_v47 = vadd.f32 %v6378_v20, %v6372_v9  ;;  %v3574_v54 = vmul.f32 %v6796_v56, %v6796_v56 }
 0x1f2   :  { %v3965_v2 = vadd.f32 %v3964_v17, %v3963_v55  ;;  %v3190_v18 = vadd.f32 %v3189_v53, %v3188_v11  ;;  %8576 = vst [vmem:[#allocation27_spill] sm:$0xff] %v7019_v14  ;;  %v2021_v55 = vadd.f32 %v6378_v20, %v6383_v34  ;;  %v3968_v17 = vsel %vm2643_vm1, %v3571_v27, 0.0  ;;  %2804 = vst.msk [vmem:[%s8542_s3 + $0x500] sm:$0xff] %vm2643_vm1, %v7022_v58 }
 0x1f3   :  { %v7032_v11 = vpop.f32.mrf.mxu1  ;;  %v3573_v53 = vmul.f32 %v6768_v31, %v6768_v31  ;;  %2807 = vst.msk [vmem:[%s8542_s3 + $0x518] sm:$0xff] %vm2643_vm1, %v7024_v51  ;;  %2805 = vst.msk [vmem:[%s8542_s3 + $0x508] sm:$0xff] %vm2643_vm1, %v7026_v37  ;;  %v3970_v9 = vsel %vm2643_vm1, %v3572_v7, 0.0  ;;  %v3195_v27 = vsel %vm2643_vm1, %v6768_v31, 0.0  ;;  %v7061_v36 = vmax.f32 %v2029_v47, 0.0 }
 0x1f4   :  { %v3192_v35 = vadd.f32 %v3191_v48, %v3190_v18  ;;  %v3967_v57 = vadd.f32 %v3966_v32, %v3965_v2  ;;  %8577 = vst [vmem:[#allocation28_spill] sm:$0xff] %v7032_v11  ;;  %v7063_v39 = vmax.f32 %v2021_v55, 0.0  ;;  %v3575_v2 = vmul.f32 %v6766_v15, %v6766_v15  ;;  %v7070_v7 = vld [vmem:[%s8541_s2] ss:$0 sm:$0xff]  ;;  %v8598_v11 = vld [vmem:[#allocation12_spill] sm:$0xff] }
 0x1f5   :  { %v7055_v19 = vpop.f32.mrf.mxu1  ;;  %v2032_v31 = vadd.f32 %v7070_v7, %v6391_v59  ;;  %v3197_v47 = vsel %vm2643_vm1, %v6796_v56, 0.0  ;;  %2810 = vst.msk [vmem:[%s8542_s3 + $0x530] sm:$0xff] %vm2643_vm1, %v7061_v36 }
 0x1f6   :  { %v3194_v20 = vadd.f32 %v3193_v21, %v3192_v35  ;;  %v3969_v34 = vadd.f32 %v3968_v17, %v3967_v57  ;;  %8578 = vst [vmem:[#allocation29_spill] sm:$0xff] %v7055_v19  ;;  %v3199_v35 = vsel %vm2643_vm1, %v6766_v15, 0.0  ;;  %v3972_v57 = vsel %vm2643_vm1, %v3573_v53, 0.0  ;;  %2808 = vst.msk [vmem:[%s8542_s3 + $0x520] sm:$0xff] %vm2643_vm1, %v7063_v39  ;;  %v8588_v19 = vld [vmem:[#allocation6_spill] sm:$0xff] }
 0x1f7   :  { %v7074_v32 = vpop.f32.mrf.mxu1  ;;  %v3576_v15 = vmul.f32 %v6794_v49, %v6794_v49  ;;  %v7093_v17 = vmax.f32 %v2032_v31, 0.0  ;;  %v3974_v21 = vsel %vm2643_vm1, %v3574_v54, 0.0  ;;  %v2024_v53 = vadd.f32 %v7070_v7, %v6406_v38 }
 0x1f8   :  { %v3971_v48 = vadd.f32 %v3970_v9, %v3969_v34  ;;  %v3196_v18 = vadd.f32 %v3195_v27, %v3194_v20  ;;  %8579 = vst [vmem:[#allocation30_spill] sm:$0xff] %v7074_v32  ;;  %v8581_v9 = vld [vmem:[#allocation2_spill] sm:$0xff]  ;;  %v8582_v34 = vld [vmem:[#allocation3_spill] sm:$0xff]  ;;  %v3577_v54 = vmul.f32 %v6844_v26, %v6844_v26 }
 0x1f9   :  { %v7095_v56 = vpop.f32.mrf.mxu1  ;;  %v2045_v20 = vadd.f32 %v7070_v7, %v8581_v9  ;;  %v2037_v27 = vadd.f32 %v7070_v7, %v8582_v34  ;;  %2811 = vst.msk [vmem:[%s8542_s3 + $0x538] sm:$0xff] %vm2643_vm1, %v7093_v17 }
 0x1fa   :  { %v3973_v59 = vadd.f32 %v3972_v57, %v3971_v48  ;;  %v3198_v55 = vadd.f32 %v3197_v47, %v3196_v18  ;;  %8580 = vst [vmem:[#allocation31_spill] sm:$0xff] %v7095_v56  ;;  %v3976_v48 = vsel %vm2643_vm1, %v3575_v2, 0.0  ;;  %v3201_v18 = vsel %vm2643_vm1, %v6794_v49, 0.0 }
 0x1fb   :  { %v7112_v38 = vpop.f32.mrf.mxu1  ;;  %v7116_v47 = vmax.f32 %v2024_v53, 0.0  ;;  %v7118_v9 = vmax.f32 %v2045_v20, 0.0  ;;  %v7120_v2 = vmax.f32 %v2037_v27, 0.0  ;;  %v3579_v53 = vmul.f32 %v6820_v33, %v6820_v33 }
 0x1fc   :  { %v3200_v31 = vadd.f32 %v3199_v35, %v3198_v55  ;;  %v3975_v57 = vadd.f32 %v3974_v21, %v3973_v59  ;;  %8583 = vst [vmem:[#allocation2_spill] sm:$0xff] %v7112_v38  ;;  %v8584_v59 = vld [vmem:[#allocation4_spill] sm:$0xff]  ;;  %v8585_v21 = vld [vmem:[#allocation5_spill] sm:$0xff]  ;;  %v3978_v38 = vsel %vm2643_vm1, %v3576_v15, 0.0  ;;  %v3203_v20 = vsel %vm2643_vm1, %v6844_v26, 0.0 }
 0x1fd   :  { %v2048_v55 = vadd.f32 %v7070_v7, %v8584_v59  ;;  %v2040_v34 = vadd.f32 %v7070_v7, %v8585_v21  ;;  %v7126_v56 = vpop.f32.mrf.mxu1  ;;  %v3578_v27 = vmul.f32 %v6848_v28, %v6848_v28  ;;  %2809 = vst.msk [vmem:[%s8542_s3 + $0x528] sm:$0xff] %vm2643_vm1, %v7116_v47  ;;  %2814 = vst.msk [vmem:[%s8542_s3 + $0x550] sm:$0xff] %vm2643_vm1, %v7118_v9 }
 0x1fe   :  { %v3202_v49 = vadd.f32 %v3201_v18, %v3200_v31  ;;  %v3977_v35 = vadd.f32 %v3976_v48, %v3975_v57  ;;  %8586 = vst [vmem:[#allocation3_spill] sm:$0xff] %v7126_v56  ;;  %2812 = vst.msk [vmem:[%s8542_s3 + $0x540] sm:$0xff] %vm2643_vm1, %v7120_v2  ;;  %v3980_v18 = vsel %vm2643_vm1, %v3577_v54, 0.0  ;;  %v3205_v31 = vsel %vm2643_vm1, %v6848_v28, 0.0 }
 0x1ff   :  { %v7150_v48 = vpop.f32.mrf.mxu1  ;;  %v7155_v57 = vmax.f32 %v2048_v55, 0.0  ;;  %v7157_v59 = vmax.f32 %v2040_v34, 0.0  ;;  %v3580_v56 = vmul.f32 %v6846_v25, %v6846_v25  ;;  %v3207_v54 = vsel %vm2643_vm1, %v6820_v33, 0.0 }
 0x200   :  { %v3979_v26 = vadd.f32 %v3978_v38, %v3977_v35  ;;  %v3204_v15 = vadd.f32 %v3203_v20, %v3202_v49  ;;  %8587 = vst [vmem:[#allocation4_spill] sm:$0xff] %v7150_v48  ;;  %v2061_v38 = vadd.f32 %v7070_v7, %v8588_v19  ;;  %v3984_v35 = vsel %vm2643_vm1, %v3579_v53, 0.0 }
 0x201   :  { %v7163_v49 = vpop.f32.mrf.mxu1  ;;  %v3982_v28 = vsel %vm2643_vm1, %v3578_v27, 0.0  ;;  %2815 = vst.msk [vmem:[%s8542_s3 + $0x558] sm:$0xff] %vm2643_vm1, %v7155_v57  ;;  %2813 = vst.msk [vmem:[%s8542_s3 + $0x548] sm:$0xff] %vm2643_vm1, %v7157_v59  ;;  %v3209_v19 = vsel %vm2643_vm1, %v6846_v25, 0.0  ;;  %v3581_v20 = vmul.f32 %v6885_v43, %v6885_v43  ;;  %v8591_v27 = vld [vmem:[#allocation7_spill] sm:$0xff]  ;;  %v3986_v25 = vsel %vm2643_vm1, %v3580_v56, 0.0 }
 0x202   :  { %v3981_v21 = vadd.f32 %v3980_v18, %v3979_v26  ;;  %v3206_v32 = vadd.f32 %v3205_v31, %v3204_v15  ;;  %8589 = vst [vmem:[#allocation5_spill] sm:$0xff] %v7163_v49  ;;  %v7181_v34 = vmax.f32 %v2061_v38, 0.0  ;;  %v2053_v26 = vadd.f32 %v7070_v7, %v8591_v27  ;;  %v8592_v15 = vld [vmem:[#allocation8_spill] sm:$0xff]  ;;  %v8593_v31 = vld [vmem:[#allocation9_spill] sm:$0xff] }
 0x203   :  { %v7183_v53 = vpop.f32.mrf.mxu1  ;;  %v2064_v18 = vadd.f32 %v7070_v7, %v8592_v15  ;;  %v2056_v49 = vadd.f32 %v7070_v7, %v8593_v31  ;;  %v3211_v38 = vsel %vm2643_vm1, %v6885_v43, 0.0  ;;  %v8595_v43 = vld [vmem:[#allocation10_spill] sm:$0xff]  ;;  %v3585_v48 = vmul.f32 %v6937_v62, %v6937_v62 }
 0x204   :  { %v3208_v33 = vadd.f32 %v3207_v54, %v3206_v32  ;;  %v3983_v55 = vadd.f32 %v3982_v28, %v3981_v21  ;;  %8590 = vst [vmem:[#allocation6_spill] sm:$0xff] %v7183_v53  ;;  %2818 = vst.msk [vmem:[%s8542_s3 + $0x570] sm:$0xff] %vm2643_vm1, %v7181_v34  ;;  %v3582_v54 = vmul.f32 %v6933_v40, %v6933_v40  ;;  %v7203_v28 = vmax.f32 %v2053_v26, 0.0 }
 0x205   :  { %v7205_v27 = vmax.f32 %v2064_v18, 0.0  ;;  %v7207_v15 = vmax.f32 %v2056_v49, 0.0  ;;  %v7209_v56 = vpop.f32.mrf.mxu1  ;;  %v3583_v53 = vmul.f32 %v6883_v12, %v6883_v12  ;;  %v3988_v26 = vsel %vm2643_vm1, %v3581_v20, 0.0 }
 0x206   :  { %v3210_v32 = vadd.f32 %v3209_v19, %v3208_v33  ;;  %v3985_v21 = vadd.f32 %v3984_v35, %v3983_v55  ;;  %8594 = vst [vmem:[#allocation7_spill] sm:$0xff] %v7209_v56  ;;  %v2077_v33 = vadd.f32 %v7070_v7, %v8595_v43  ;;  %v8596_v55 = vld [vmem:[#allocation11_spill] sm:$0xff]  ;;  %v3584_v18 = vmul.f32 %v6909_v41, %v6909_v41 }
 0x207   :  { %v2069_v31 = vadd.f32 %v7070_v7, %v8596_v55  ;;  %v3213_v49 = vsel %vm2643_vm1, %v6933_v40, 0.0  ;;  %2816 = vst.msk [vmem:[%s8542_s3 + $0x560] sm:$0xff] %vm2643_vm1, %v7203_v28  ;;  %2819 = vst.msk [vmem:[%s8542_s3 + $0x578] sm:$0xff] %vm2643_vm1, %v7205_v27  ;;  %v7244_v43 = vpop.f32.mrf.mxu1 }
 0x208   :  { %v3987_v35 = vadd.f32 %v3986_v25, %v3985_v21  ;;  %v3212_v19 = vadd.f32 %v3211_v38, %v3210_v32  ;;  %2817 = vst.msk [vmem:[%s8542_s3 + $0x568] sm:$0xff] %vm2643_vm1, %v7207_v15  ;;  %v3215_v25 = vsel %vm2643_vm1, %v6883_v12, 0.0  ;;  %v3990_v32 = vsel %vm2643_vm1, %v3582_v54, 0.0  ;;  %8597 = vst [vmem:[#allocation8_spill] sm:$0xff] %v7244_v43  ;;  %v8606_v43 = vld [vmem:[#allocation18_spill] sm:$0xff] }
 0x209   :  { %v7240_v21 = vmax.f32 %v2077_v33, 0.0  ;;  %v7242_v38 = vmax.f32 %v2069_v31, 0.0  ;;  %v3217_v12 = vsel %vm2643_vm1, %v6909_v41, 0.0  ;;  %v3994_v54 = vsel %vm2643_vm1, %v3584_v18, 0.0 }
 0x20a   :  { %v3989_v20 = vadd.f32 %v3988_v26, %v3987_v35  ;;  %v3214_v40 = vadd.f32 %v3213_v49, %v3212_v19  ;;  %v2080_v35 = vadd.f32 %v7070_v7, %v8598_v11  ;;  %v3992_v19 = vsel %vm2643_vm1, %v3583_v53, 0.0  ;;  %v8599_v26 = vld [vmem:[#allocation13_spill] sm:$0xff]  ;;  %v8600_v49 = vld [vmem:[#allocation14_spill] sm:$0xff] }
 0x20b   :  { %2822 = vst.msk [vmem:[%s8542_s3 + $0x590] sm:$0xff] %vm2643_vm1, %v7240_v21  ;;  %2820 = vst.msk [vmem:[%s8542_s3 + $0x580] sm:$0xff] %vm2643_vm1, %v7242_v38  ;;  %v3219_v53 = vsel %vm2643_vm1, %v6937_v62, 0.0  ;;  %v3586_v31 = vmul.f32 %v6974_v10, %v6974_v10  ;;  %v2072_v18 = vadd.f32 %v7070_v7, %v8599_v26  ;;  %v3587_v62 = vmul.f32 %v6935_v6, %v6935_v6 }
 0x20c   :  { %v3216_v55 = vadd.f32 %v3215_v25, %v3214_v40  ;;  %v3991_v56 = vadd.f32 %v3990_v32, %v3989_v20  ;;  %v7266_v41 = vmax.f32 %v2080_v35, 0.0  ;;  %v2093_v20 = vadd.f32 %v7070_v7, %v8600_v49  ;;  %v8601_v40 = vld [vmem:[#allocation15_spill] sm:$0xff]  ;;  %v7276_v32 = vpop.f32.mrf.mxu1 }
 0x20d   :  { %v2085_v25 = vadd.f32 %v7070_v7, %v8601_v40  ;;  %8602 = vst [vmem:[#allocation9_spill] sm:$0xff] %v7276_v32  ;;  %v3996_v35 = vsel %vm2643_vm1, %v3585_v48, 0.0  ;;  %v3223_v32 = vsel %vm2643_vm1, %v6935_v6, 0.0  ;;  %v2109_v14 = vadd.f32 %v7070_v7, %v8606_v43 }
 0x20e   :  { %v3218_v11 = vadd.f32 %v3217_v12, %v3216_v55  ;;  %v3993_v33 = vadd.f32 %v3992_v19, %v3991_v56  ;;  %2823 = vst.msk [vmem:[%s8542_s3 + $0x598] sm:$0xff] %vm2643_vm1, %v7266_v41  ;;  %v3221_v19 = vsel %vm2643_vm1, %v6974_v10, 0.0  ;;  %v7288_v12 = vmax.f32 %v2072_v18, 0.0  ;;  %v7318_v6 = vpop.f32.mrf.mxu1 }
 0x20f   :  { %v7290_v26 = vmax.f32 %v2093_v20, 0.0  ;;  %v3588_v10 = vmul.f32 %v6972_v1, %v6972_v1  ;;  %v3998_v18 = vsel %vm2643_vm1, %v3586_v31, 0.0  ;;  %8605 = vst [vmem:[#allocation10_spill] sm:$0xff] %v7318_v6  ;;  %v4000_v31 = vsel %vm2643_vm1, %v3587_v62, 0.0 }
 0x210   :  { %v3995_v56 = vadd.f32 %v3994_v54, %v3993_v33  ;;  %v3220_v55 = vadd.f32 %v3219_v53, %v3218_v11  ;;  %v7292_v54 = vmax.f32 %v2085_v25, 0.0  ;;  %v8603_v11 = vld [vmem:[#allocation16_spill] sm:$0xff]  ;;  %v8604_v53 = vld [vmem:[#allocation17_spill] sm:$0xff]  ;;  %2821 = vst.msk [vmem:[%s8542_s3 + $0x588] sm:$0xff] %vm2643_vm1, %v7288_v12  ;;  %v3590_v62 = vmul.f32 %v7026_v37, %v7026_v37  ;;  %v7348_v43 = vpop.f32.mrf.mxu1 }
 0x211   :  { %v2096_v48 = vadd.f32 %v7070_v7, %v8603_v11  ;;  %v2088_v40 = vadd.f32 %v7070_v7, %v8604_v53  ;;  %2826 = vst.msk [vmem:[%s8542_s3 + $0x5b0] sm:$0xff] %vm2643_vm1, %v7290_v26  ;;  %v4002_v6 = vsel %vm2643_vm1, %v3588_v10, 0.0  ;;  %v8607_v10 = vld [vmem:[#allocation19_spill] sm:$0xff] }
 0x212   :  { %v3997_v33 = vadd.f32 %v3996_v35, %v3995_v56  ;;  %v3222_v49 = vadd.f32 %v3221_v19, %v3220_v55  ;;  %2824 = vst.msk [vmem:[%s8542_s3 + $0x5a0] sm:$0xff] %vm2643_vm1, %v7292_v54  ;;  %v3225_v56 = vsel %vm2643_vm1, %v6972_v1, 0.0  ;;  %v3589_v55 = vmul.f32 %v7022_v58, %v7022_v58 }
 0x213   :  { %v7325_v35 = vmax.f32 %v2096_v48, 0.0  ;;  %v7327_v19 = vmax.f32 %v2088_v40, 0.0  ;;  %v3227_v1 = vsel %vm2643_vm1, %v7022_v58, 0.0  ;;  %v3229_v58 = vsel %vm2643_vm1, %v7026_v37, 0.0 }
 0x214   :  { %v3224_v20 = vadd.f32 %v3223_v32, %v3222_v49  ;;  %v3999_v25 = vadd.f32 %v3998_v18, %v3997_v33  ;;  %v3591_v32 = vmul.f32 %v6998_v8, %v6998_v8  ;;  %v7352_v48 = vmax.f32 %v2109_v14, 0.0 }
 0x215   :  { %2827 = vst.msk [vmem:[%s8542_s3 + $0x5b8] sm:$0xff] %vm2643_vm1, %v7325_v35  ;;  %2825 = vst.msk [vmem:[%s8542_s3 + $0x5a8] sm:$0xff] %vm2643_vm1, %v7327_v19  ;;  %v4004_v40 = vsel %vm2643_vm1, %v3589_v55, 0.0  ;;  %v2101_v18 = vadd.f32 %v7070_v7, %v8607_v10  ;;  %v3592_v37 = vmul.f32 %v7024_v51, %v7024_v51  ;;  %v4006_v55 = vsel %vm2643_vm1, %v3590_v62, 0.0 }
 0x216   :  { %v3226_v11 = vadd.f32 %v3225_v56, %v3224_v20  ;;  %v4001_v53 = vadd.f32 %v4000_v31, %v3999_v25  ;;  %v8608_v31 = vld [vmem:[#allocation20_spill] sm:$0xff]  ;;  %v8609_v25 = vld [vmem:[#allocation21_spill] sm:$0xff]  ;;  %2830 = vst.msk [vmem:[%s8542_s3 + $0x5d0] sm:$0xff] %vm2643_vm1, %v7352_v48  ;;  %v3233_v62 = vsel %vm2643_vm1, %v7024_v51, 0.0 }
 0x217   :  { %v2112_v20 = vadd.f32 %v7070_v7, %v8608_v31  ;;  %v2104_v56 = vadd.f32 %v7070_v7, %v8609_v25  ;;  %v8611_v31 = vld [vmem:[#allocation22_spill] sm:$0xff]  ;;  %v4008_v25 = vsel %vm2643_vm1, %v3591_v32, 0.0 }
 0x218   :  { %v4003_v33 = vadd.f32 %v4002_v6, %v4001_v53  ;;  %v3228_v49 = vadd.f32 %v3227_v1, %v3226_v11  ;;  %v3231_v6 = vsel %vm2643_vm1, %v6998_v8, 0.0  ;;  %v7371_v53 = vmax.f32 %v2101_v18, 0.0  ;;  %v7377_v8 = vpop.f32.mrf.mxu1 }
 0x219   :  { %v7373_v1 = vmax.f32 %v2112_v20, 0.0  ;;  %v7375_v10 = vmax.f32 %v2104_v56, 0.0  ;;  %8610 = vst [vmem:[#allocation11_spill] sm:$0xff] %v7377_v8  ;;  %v3593_v18 = vmul.f32 %v7063_v39, %v7063_v39  ;;  %v3235_v20 = vsel %vm2643_vm1, %v7063_v39, 0.0 }
 0x21a   :  { %v4005_v11 = vadd.f32 %v4004_v40, %v4003_v33  ;;  %v3230_v14 = vadd.f32 %v3229_v58, %v3228_v49  ;;  %v2125_v49 = vadd.f32 %v7070_v7, %v8611_v31  ;;  %v2117_v58 = vadd.f32 %v7070_v7, %v6644_v4  ;;  %2828 = vst.msk [vmem:[%s8542_s3 + $0x5c0] sm:$0xff] %vm2643_vm1, %v7371_v53 }
 0x21b   :  { %2831 = vst.msk [vmem:[%s8542_s3 + $0x5d8] sm:$0xff] %vm2643_vm1, %v7373_v1  ;;  %2829 = vst.msk [vmem:[%s8542_s3 + $0x5c8] sm:$0xff] %vm2643_vm1, %v7375_v10  ;;  %v4010_v4 = vsel %vm2643_vm1, %v3592_v37, 0.0  ;;  %v3594_v56 = vmul.f32 %v7116_v47, %v7116_v47  ;;  %v3595_v31 = vmul.f32 %v7061_v36, %v7061_v36  ;;  %v8612_v37 = vld [vmem:[#allocation23_spill] sm:$0xff]  ;;  %v3239_v39 = vsel %vm2643_vm1, %v7061_v36, 0.0 }
 0x21c   :  { %v3232_v33 = vadd.f32 %v3231_v6, %v3230_v14  ;;  %v4007_v40 = vadd.f32 %v4006_v55, %v4005_v11  ;;  %v7408_v6 = vmax.f32 %v2125_v49, 0.0  ;;  %v7410_v11 = vmax.f32 %v2117_v58, 0.0  ;;  %v7412_v14 = vpop.f32.mrf.mxu1 }
 0x21d   :  { %v3237_v49 = vsel %vm2643_vm1, %v7116_v47, 0.0  ;;  %v3596_v36 = vmul.f32 %v7093_v17, %v7093_v17  ;;  %v4014_v47 = vsel %vm2643_vm1, %v3594_v56, 0.0  ;;  %v3597_v56 = vmul.f32 %v7120_v2, %v7120_v2 }
 0x21e   :  { %v3234_v51 = vadd.f32 %v3233_v62, %v3232_v33  ;;  %v4009_v32 = vadd.f32 %v4008_v25, %v4007_v40  ;;  %v2128_v33 = vadd.f32 %v7070_v7, %v8612_v37  ;;  %v4012_v40 = vsel %vm2643_vm1, %v3593_v18, 0.0  ;;  %2834 = vst.msk [vmem:[%s8542_s3 + $0x5f0] sm:$0xff] %vm2643_vm1, %v7408_v6  ;;  %2832 = vst.msk [vmem:[%s8542_s3 + $0x5e0] sm:$0xff] %vm2643_vm1, %v7410_v11  ;;  %v8613_v18 = vld [vmem:[#allocation24_spill] sm:$0xff]  ;;  %v7444_v37 = vpop.f32.mrf.mxu1 }
 0x21f   :  { %8615 = vst [vmem:[#allocation12_spill] sm:$0xff] %v7444_v37  ;;  %v2157_v37 = vadd.f32 %v7070_v7, %v6719_v29 }
 0x220   :  { %v4011_v55 = vadd.f32 %v4010_v4, %v4009_v32  ;;  %v3236_v8 = vadd.f32 %v3235_v20, %v3234_v51  ;;  %v7435_v62 = vmax.f32 %v2128_v33, 0.0  ;;  %v2120_v4 = vadd.f32 %v7070_v7, %v8613_v18  ;;  %v8614_v51 = vld [vmem:[#allocation25_spill] sm:$0xff] }
 0x221   :  { %v2141_v32 = vadd.f32 %v7070_v7, %v8614_v51  ;;  %v2133_v20 = vadd.f32 %v7070_v7, %v6683_v42 }
 0x222   :  { %v4013_v58 = vadd.f32 %v4012_v40, %v4011_v55  ;;  %v3238_v25 = vadd.f32 %v3237_v49, %v3236_v8  ;;  %v4016_v55 = vsel %vm2643_vm1, %v3595_v31, 0.0  ;;  %v3241_v8 = vsel %vm2643_vm1, %v7093_v17, 0.0  ;;  %2835 = vst.msk [vmem:[%s8542_s3 + $0x5f8] sm:$0xff] %vm2643_vm1, %v7435_v62 }
 0x223   :  { %v7456_v49 = vmax.f32 %v2120_v4, 0.0  ;;  %v7458_v42 = vmax.f32 %v2141_v32, 0.0  ;;  %v7460_v18 = vmax.f32 %v2133_v20, 0.0  ;;  %v2144_v17 = vadd.f32 %v7070_v7, %v6701_v5  ;;  %v7488_v5 = vpop.f32.mrf.mxu1 }
 0x224   :  { %v3240_v33 = vadd.f32 %v3239_v39, %v3238_v25  ;;  %v4015_v40 = vadd.f32 %v4014_v47, %v4013_v58  ;;  %v2136_v39 = vadd.f32 %v7070_v7, %v6707_v24  ;;  %v4018_v58 = vsel %vm2643_vm1, %v3596_v36, 0.0 }
 0x225   :  { %v3599_v25 = vmul.f32 %v7118_v9, %v7118_v9  ;;  %v3243_v47 = vsel %vm2643_vm1, %v7120_v2, 0.0  ;;  %v3598_v4 = vmul.f32 %v7157_v59, %v7157_v59  ;;  %2833 = vst.msk [vmem:[%s8542_s3 + $0x5e8] sm:$0xff] %vm2643_vm1, %v7456_v49  ;;  %2838 = vst.msk [vmem:[%s8542_s3 + $0x610] sm:$0xff] %vm2643_vm1, %v7458_v42  ;;  %v4020_v36 = vsel %vm2643_vm1, %v3597_v56, 0.0  ;;  %v7515_v29 = vpop.f32.mrf.mxu1 }
 0x226   :  { %v3242_v31 = vadd.f32 %v3241_v8, %v3240_v33  ;;  %v4017_v51 = vadd.f32 %v4016_v55, %v4015_v40  ;;  %2836 = vst.msk [vmem:[%s8542_s3 + $0x600] sm:$0xff] %vm2643_vm1, %v7460_v18  ;;  %v3245_v32 = vsel %vm2643_vm1, %v7157_v59, 0.0  ;;  %v7493_v20 = vmax.f32 %v2144_v17, 0.0 }
 0x227   :  { %v7495_v55 = vmax.f32 %v2136_v39, 0.0  ;;  %v3600_v33 = vmul.f32 %v7155_v57, %v7155_v57  ;;  %v4024_v56 = vsel %vm2643_vm1, %v3599_v25, 0.0  ;;  %v7519_v39 = vmax.f32 %v2157_v37, 0.0 }
 0x228   :  { %v4019_v24 = vadd.f32 %v4018_v58, %v4017_v51  ;;  %v3244_v2 = vadd.f32 %v3243_v47, %v3242_v31  ;;  %v3247_v31 = vsel %vm2643_vm1, %v7118_v9, 0.0  ;;  %v4022_v51 = vsel %vm2643_vm1, %v3598_v4, 0.0  ;;  %2839 = vst.msk [vmem:[%s8542_s3 + $0x618] sm:$0xff] %vm2643_vm1, %v7493_v20  ;;  %v8616_v47 = vld [vmem:[#allocation26_spill] sm:$0xff] }
 0x229   :  { %2837 = vst.msk [vmem:[%s8542_s3 + $0x608] sm:$0xff] %vm2643_vm1, %v7495_v55  ;;  %v3249_v9 = vsel %vm2643_vm1, %v7155_v57, 0.0  ;;  %v3601_v58 = vmul.f32 %v7203_v28, %v7203_v28  ;;  %v2149_v25 = vadd.f32 %v7070_v7, %v6735_v60  ;;  %v2160_v4 = vadd.f32 %v7070_v7, %v8616_v47  ;;  %2842 = vst.msk [vmem:[%s8542_s3 + $0x630] sm:$0xff] %vm2643_vm1, %v7519_v39 }
 0x22a   :  { %v4021_v8 = vadd.f32 %v4020_v36, %v4019_v24  ;;  %v3246_v40 = vadd.f32 %v3245_v32, %v3244_v2  ;;  %v2152_v24 = vadd.f32 %v7070_v7, %v6770_v23  ;;  %v4026_v2 = vsel %vm2643_vm1, %v3600_v33, 0.0  ;;  %v7545_v33 = vpop.f32.mrf.mxu1 }
 0x22b   :  { %v3251_v37 = vsel %vm2643_vm1, %v7203_v28, 0.0  ;;  %v3602_v60 = vmul.f32 %v7207_v15, %v7207_v15  ;;  %v7539_v32 = vmax.f32 %v2149_v25, 0.0  ;;  %v2173_v28 = vadd.f32 %v7070_v7, %v6789_v3 }
 0x22c   :  { %v3248_v59 = vadd.f32 %v3247_v31, %v3246_v40  ;;  %v4023_v17 = vadd.f32 %v4022_v51, %v4021_v8  ;;  %v7541_v8 = vmax.f32 %v2160_v4, 0.0  ;;  %v7543_v23 = vmax.f32 %v2152_v24, 0.0  ;;  %v7580_v4 = vpop.f32.mrf.mxu1 }
 0x22d   :  { %v3603_v51 = vmul.f32 %v7181_v34, %v7181_v34  ;;  %2840 = vst.msk [vmem:[%s8542_s3 + $0x620] sm:$0xff] %vm2643_vm1, %v7539_v32  ;;  %v7576_v25 = vmax.f32 %v2173_v28, 0.0  ;;  %v3606_v28 = vmul.f32 %v7288_v12, %v7288_v12 }
 0x22e   :  { %v3250_v36 = vadd.f32 %v3249_v9, %v3248_v59  ;;  %v4025_v57 = vadd.f32 %v4024_v56, %v4023_v17  ;;  %v2165_v56 = vadd.f32 %v7070_v7, %v6802_v13  ;;  %v4028_v9 = vsel %vm2643_vm1, %v3601_v58, 0.0  ;;  %2843 = vst.msk [vmem:[%s8542_s3 + $0x638] sm:$0xff] %vm2643_vm1, %v7541_v8  ;;  %2841 = vst.msk [vmem:[%s8542_s3 + $0x628] sm:$0xff] %vm2643_vm1, %v7543_v23 }
 0x22f   :  { %v3604_v59 = vmul.f32 %v7205_v27, %v7205_v27  ;;  %v3253_v17 = vsel %vm2643_vm1, %v7207_v15, 0.0  ;;  %v3255_v15 = vsel %vm2643_vm1, %v7181_v34, 0.0  ;;  %v4030_v58 = vsel %vm2643_vm1, %v3602_v60, 0.0  ;;  %2846 = vst.msk [vmem:[%s8542_s3 + $0x650] sm:$0xff] %vm2643_vm1, %v7576_v25 }
 0x230   :  { %v4027_v40 = vadd.f32 %v4026_v2, %v4025_v57  ;;  %v3252_v31 = vadd.f32 %v3251_v37, %v3250_v36  ;;  %v7578_v47 = vmax.f32 %v2165_v56, 0.0  ;;  %v3605_v36 = vmul.f32 %v7242_v38, %v7242_v38 }
 0x231   :  { %v2176_v57 = vadd.f32 %v7070_v7, %v6822_v50  ;;  %v4032_v37 = vsel %vm2643_vm1, %v3603_v51, 0.0  ;;  %v3257_v34 = vsel %vm2643_vm1, %v7205_v27, 0.0  ;;  %v4034_v60 = vsel %vm2643_vm1, %v3604_v59, 0.0  ;;  %v7612_v59 = vpop.f32.mrf.mxu1 }
 0x232   :  { %v4029_v3 = vadd.f32 %v4028_v9, %v4027_v40  ;;  %v3254_v13 = vadd.f32 %v3253_v17, %v3252_v31  ;;  %2844 = vst.msk [vmem:[%s8542_s3 + $0x640] sm:$0xff] %vm2643_vm1, %v7578_v47  ;;  %v3259_v31 = vsel %vm2643_vm1, %v7242_v38, 0.0  ;;  %v2168_v56 = vadd.f32 %v7070_v7, %v6840_v0 }
 0x233   :  { %v7602_v27 = vmax.f32 %v2176_v57, 0.0  ;;  %v2189_v51 = vadd.f32 %v7070_v7, %v6854_v46  ;;  %v2181_v9 = vadd.f32 %v7070_v7, %v6878_v30  ;;  %v3607_v38 = vmul.f32 %v7240_v21, %v7240_v21 }
 0x234   :  { %v3256_v24 = vadd.f32 %v3255_v15, %v3254_v13  ;;  %v4031_v2 = vadd.f32 %v4030_v58, %v4029_v3  ;;  %v4036_v13 = vsel %vm2643_vm1, %v3605_v36, 0.0  ;;  %v3261_v0 = vsel %vm2643_vm1, %v7288_v12, 0.0 }
 0x235   :  { %2847 = vst.msk [vmem:[%s8542_s3 + $0x658] sm:$0xff] %vm2643_vm1, %v7602_v27  ;;  %v7624_v46 = vmax.f32 %v2168_v56, 0.0  ;;  %v7626_v30 = vmax.f32 %v2189_v51, 0.0  ;;  %v7628_v15 = vmax.f32 %v2181_v9, 0.0  ;;  %v2184_v36 = vadd.f32 %v7070_v7, %v6911_v52 }
 0x236   :  { %v3258_v50 = vadd.f32 %v3257_v34, %v3256_v24  ;;  %v4033_v40 = vadd.f32 %v4032_v37, %v4031_v2  ;;  %v2192_v2 = vadd.f32 %v7070_v7, %v6891_v63  ;;  %v3263_v57 = vsel %vm2643_vm1, %v7240_v21, 0.0  ;;  %v7654_v63 = vpop.f32.mrf.mxu1 }
 0x237   :  { %v3608_v12 = vmul.f32 %v7266_v41, %v7266_v41  ;;  %v4038_v37 = vsel %vm2643_vm1, %v3606_v28, 0.0  ;;  %2845 = vst.msk [vmem:[%s8542_s3 + $0x648] sm:$0xff] %vm2643_vm1, %v7624_v46  ;;  %2850 = vst.msk [vmem:[%s8542_s3 + $0x670] sm:$0xff] %vm2643_vm1, %v7626_v30  ;;  %v3609_v34 = vmul.f32 %v7292_v54, %v7292_v54  ;;  %v2205_v51 = vadd.f32 %v7070_v7, %v6929_v22 }
 0x238   :  { %v4035_v17 = vadd.f32 %v4034_v60, %v4033_v40  ;;  %v3260_v3 = vadd.f32 %v3259_v31, %v3258_v50  ;;  %2848 = vst.msk [vmem:[%s8542_s3 + $0x660] sm:$0xff] %vm2643_vm1, %v7628_v15  ;;  %v4040_v60 = vsel %vm2643_vm1, %v3607_v38, 0.0  ;;  %v3265_v50 = vsel %vm2643_vm1, %v7266_v41, 0.0  ;;  %v7684_v22 = vpop.f32.mrf.mxu1 }
 0x239   :  { %v7661_v40 = vmax.f32 %v2192_v2, 0.0  ;;  %v7663_v31 = vmax.f32 %v2184_v36, 0.0  ;;  %v4042_v9 = vsel %vm2643_vm1, %v3608_v12, 0.0  ;;  %v3267_v38 = vsel %vm2643_vm1, %v7292_v54, 0.0 }
 0x23a   :  { %v4037_v58 = vadd.f32 %v4036_v13, %v4035_v17  ;;  %v3262_v24 = vadd.f32 %v3261_v0, %v3260_v3  ;;  %v3611_v17 = vmul.f32 %v7290_v26, %v7290_v26  ;;  %v3610_v41 = vmul.f32 %v7327_v19, %v7327_v19 }
 0x23b   :  { %2851 = vst.msk [vmem:[%s8542_s3 + $0x678] sm:$0xff] %vm2643_vm1, %v7661_v40  ;;  %2849 = vst.msk [vmem:[%s8542_s3 + $0x668] sm:$0xff] %vm2643_vm1, %v7663_v31  ;;  %v4044_v54 = vsel %vm2643_vm1, %v3609_v34, 0.0  ;;  %v7687_v0 = vmax.f32 %v2205_v51, 0.0  ;;  %v2208_v2 = vadd.f32 %v7070_v7, %v6967_v44  ;;  %v2200_v36 = vadd.f32 %v7070_v7, %v6978_v61 }
 0x23c   :  { %v3264_v52 = vadd.f32 %v3263_v57, %v3262_v24  ;;  %v4039_v21 = vadd.f32 %v4038_v37, %v4037_v58  ;;  %v3269_v58 = vsel %vm2643_vm1, %v7327_v19, 0.0  ;;  %v2197_v24 = vadd.f32 %v7070_v7, %v6943_v16 }
 0x23d   :  { %v3271_v57 = vsel %vm2643_vm1, %v7290_v26, 0.0  ;;  %v3612_v37 = vmul.f32 %v7325_v35, %v7325_v35  ;;  %2854 = vst.msk [vmem:[%s8542_s3 + $0x690] sm:$0xff] %vm2643_vm1, %v7687_v0  ;;  %v4046_v16 = vsel %vm2643_vm1, %v3610_v41, 0.0  ;;  %v7709_v19 = vmax.f32 %v2208_v2, 0.0  ;;  %v7713_v26 = vpop.f32.mrf.mxu1 }
 0x23e   :  { %v3266_v28 = vadd.f32 %v3265_v50, %v3264_v52  ;;  %v4041_v56 = vadd.f32 %v4040_v60, %v4039_v21  ;;  %v7707_v44 = vmax.f32 %v2197_v24, 0.0  ;;  %v7711_v61 = vmax.f32 %v2200_v36, 0.0  ;;  %v8617_v50 = vld [vmem:[#allocation27_spill] sm:$0xff]  ;;  %v8618_v36 = vld [vmem:[#allocation28_spill] sm:$0xff] }
 0x23f   :  { %v2221_v60 = vadd.f32 %v7070_v7, %v7000_v45  ;;  %v3273_v51 = vsel %vm2643_vm1, %v7325_v35, 0.0  ;;  %2855 = vst.msk [vmem:[%s8542_s3 + $0x698] sm:$0xff] %vm2643_vm1, %v7709_v19  ;;  %v4050_v45 = vsel %vm2643_vm1, %v3612_v37, 0.0  ;;  %v3614_v41 = vmul.f32 %v7375_v10, %v7375_v10 }
 0x240   :  { %v4043_v3 = vadd.f32 %v4042_v9, %v4041_v56  ;;  %v3268_v13 = vadd.f32 %v3267_v38, %v3266_v28  ;;  %v2213_v28 = vadd.f32 %v7070_v7, %v8617_v50  ;;  %v4048_v56 = vsel %vm2643_vm1, %v3611_v17, 0.0  ;;  %2852 = vst.msk [vmem:[%s8542_s3 + $0x680] sm:$0xff] %vm2643_vm1, %v7707_v44  ;;  %2853 = vst.msk [vmem:[%s8542_s3 + $0x688] sm:$0xff] %vm2643_vm1, %v7711_v61  ;;  %v8620_v50 = vld [vmem:[#allocation30_spill] sm:$0xff] }
 0x241   :  { %v3613_v9 = vmul.f32 %v7371_v53, %v7371_v53  ;;  %v3275_v38 = vsel %vm2643_vm1, %v7371_v53, 0.0  ;;  %v3615_v24 = vmul.f32 %v7352_v48, %v7352_v48  ;;  %v3279_v53 = vsel %vm2643_vm1, %v7352_v48, 0.0 }
 0x242   :  { %v4045_v12 = vadd.f32 %v4044_v54, %v4043_v3  ;;  %v3270_v52 = vadd.f32 %v3269_v58, %v3268_v13  ;;  %v7744_v3 = vmax.f32 %v2221_v60, 0.0  ;;  %v7746_v13 = vmax.f32 %v2213_v28, 0.0  ;;  %v7748_v54 = vpop.f32.mrf.mxu1 }
 0x243   :  { %v3277_v37 = vsel %vm2643_vm1, %v7375_v10, 0.0  ;;  %v3616_v48 = vmul.f32 %v7373_v1, %v7373_v1  ;;  %v4054_v10 = vsel %vm2643_vm1, %v3614_v41, 0.0  ;;  %v2237_v28 = vadd.f32 %v7070_v7, %v8620_v50 }
 0x244   :  { %v3272_v21 = vadd.f32 %v3271_v57, %v3270_v52  ;;  %v4047_v34 = vadd.f32 %v4046_v16, %v4045_v12  ;;  %v2224_v57 = vadd.f32 %v7070_v7, %v8618_v36  ;;  %v4052_v12 = vsel %vm2643_vm1, %v3613_v9, 0.0  ;;  %2858 = vst.msk [vmem:[%s8542_s3 + $0x6b0] sm:$0xff] %vm2643_vm1, %v7744_v3  ;;  %2856 = vst.msk [vmem:[%s8542_s3 + $0x6a0] sm:$0xff] %vm2643_vm1, %v7746_v13  ;;  %v7780_v9 = vpop.f32.mrf.mxu1 }
 0x245   :  { %v3617_v41 = vmul.f32 %v7410_v11, %v7410_v11 }
 0x246   :  { %v3274_v35 = vadd.f32 %v3273_v51, %v3272_v21  ;;  %v4049_v17 = vadd.f32 %v4048_v56, %v4047_v34  ;;  %v7771_v21 = vmax.f32 %v2224_v57, 0.0  ;;  %v8619_v34 = vld [vmem:[#allocation29_spill] sm:$0xff]  ;;  %v8621_v56 = vld [vmem:[#allocation31_spill] sm:$0xff] }
 0x247   :  { %v2216_v60 = vadd.f32 %v7070_v7, %v8619_v34  ;;  %v2229_v51 = vadd.f32 %v7070_v7, %v8621_v56  ;;  %v3618_v34 = vmul.f32 %v7456_v49, %v7456_v49  ;;  %v4060_v50 = vsel %vm2643_vm1, %v3617_v41, 0.0 }
 0x248   :  { %v4051_v58 = vadd.f32 %v4050_v45, %v4049_v17  ;;  %v3276_v2 = vadd.f32 %v3275_v38, %v3274_v35  ;;  %v4056_v45 = vsel %vm2643_vm1, %v3615_v24, 0.0  ;;  %v3281_v35 = vsel %vm2643_vm1, %v7373_v1, 0.0  ;;  %2859 = vst.msk [vmem:[%s8542_s3 + $0x6b8] sm:$0xff] %vm2643_vm1, %v7771_v21  ;;  %v8622_v1 = vld [vmem:[#allocation2_spill] sm:$0xff] }
 0x249   :  { %v7796_v36 = vmax.f32 %v2229_v51, 0.0 }
 0x24a   :  { %v4053_v52 = vadd.f32 %v4052_v12, %v4051_v58  ;;  %v3278_v16 = vadd.f32 %v3277_v37, %v3276_v2  ;;  %v7792_v58 = vmax.f32 %v2216_v60, 0.0  ;;  %v7794_v2 = vmax.f32 %v2237_v28, 0.0  ;;  %v8623_v12 = vld [vmem:[#allocation3_spill] sm:$0xff] }
 0x24b   :  { %v2232_v37 = vadd.f32 %v7070_v7, %v8623_v12  ;;  %2860 = vst.msk [vmem:[%s8542_s3 + $0x6c0] sm:$0xff] %vm2643_vm1, %v7796_v36  ;;  %v3285_v28 = vsel %vm2643_vm1, %v7456_v49, 0.0 }
 0x24c   :  { %v3280_v17 = vadd.f32 %v3279_v53, %v3278_v16  ;;  %v4055_v38 = vadd.f32 %v4054_v10, %v4053_v52  ;;  %v2240_v53 = vadd.f32 %v7070_v7, %v8622_v1  ;;  %v4058_v52 = vsel %vm2643_vm1, %v3616_v48, 0.0  ;;  %2857 = vst.msk [vmem:[%s8542_s3 + $0x6a8] sm:$0xff] %vm2643_vm1, %v7792_v58  ;;  %2862 = vst.msk [vmem:[%s8542_s3 + $0x6d0] sm:$0xff] %vm2643_vm1, %v7794_v2 }
 0x24d   :  { %v3619_v16 = vmul.f32 %v7408_v6, %v7408_v6  ;;  %v3283_v10 = vsel %vm2643_vm1, %v7410_v11, 0.0  ;;  %v7824_v11 = vpop.f32.mrf.mxu1  ;;  %v7831_v51 = vmax.f32 %v2232_v37, 0.0 }
 0x24e   :  { %v3282_v24 = vadd.f32 %v3281_v35, %v3280_v17  ;;  %v4057_v57 = vadd.f32 %v4056_v45, %v4055_v38  ;;  %v7829_v56 = vmax.f32 %v2240_v53, 0.0  ;;  %v3620_v35 = vmul.f32 %v7435_v62, %v7435_v62  ;;  %v8624_v38 = vld [vmem:[#allocation4_spill] sm:$0xff] }
 0x24f   :  { %v2253_v1 = vadd.f32 %v7070_v7, %v8624_v38  ;;  %v4064_v41 = vsel %vm2643_vm1, %v3619_v16, 0.0  ;;  %2861 = vst.msk [vmem:[%s8542_s3 + $0x6c8] sm:$0xff] %vm2643_vm1, %v7831_v51  ;;  %v7851_v49 = vpop.f32.mrf.mxu1  ;;  %v8626_v16 = vld [vmem:[#allocation5_spill] sm:$0xff] }
 0x250   :  { %v4059_v48 = vadd.f32 %v4058_v52, %v4057_v57  ;;  %v3284_v60 = vadd.f32 %v3283_v10, %v3282_v24  ;;  %v3287_v24 = vsel %vm2643_vm1, %v7408_v6, 0.0  ;;  %v4062_v57 = vsel %vm2643_vm1, %v3618_v34, 0.0  ;;  %2863 = vst.msk [vmem:[%s8542_s3 + $0x6d8] sm:$0xff] %vm2643_vm1, %v7829_v56  ;;  %v8627_v34 = vld [vmem:[#allocation6_spill] sm:$0xff] }
 0x251   :  { %v3289_v6 = vsel %vm2643_vm1, %v7435_v62, 0.0  ;;  %v7855_v37 = vmax.f32 %v2253_v1, 0.0  ;;  %v3621_v52 = vmul.f32 %v7460_v18, %v7460_v18  ;;  %v2245_v10 = vadd.f32 %v7070_v7, %v8626_v16 }
 0x252   :  { %v4061_v45 = vadd.f32 %v4060_v50, %v4059_v48  ;;  %v3286_v17 = vadd.f32 %v3285_v28, %v3284_v60  ;;  %v2256_v48 = vadd.f32 %v7070_v7, %v8627_v34  ;;  %v8628_v60 = vld [vmem:[#allocation7_spill] sm:$0xff]  ;;  %v4066_v28 = vsel %vm2643_vm1, %v3620_v35, 0.0  ;;  %v7881_v35 = vpop.f32.mrf.mxu1 }
 0x253   :  { %8625 = vst [vmem:[#allocation13_spill] sm:$0xff] %v7855_v37  ;;  %v2248_v50 = vadd.f32 %v7070_v7, %v8628_v60  ;;  %2866 = vst.msk [vmem:[%s8542_s3 + $0x6f0] sm:$0xff] %vm2643_vm1, %v7855_v37  ;;  %v7875_v1 = vmax.f32 %v2245_v10, 0.0  ;;  %v3623_v34 = vmul.f32 %v7458_v42, %v7458_v42  ;;  %v4068_v10 = vsel %vm2643_vm1, %v3621_v52, 0.0 }
 0x254   :  { %v3288_v53 = vadd.f32 %v3287_v24, %v3286_v17  ;;  %v4063_v12 = vadd.f32 %v4062_v57, %v4061_v45  ;;  %v3291_v45 = vsel %vm2643_vm1, %v7460_v18, 0.0  ;;  %v3622_v17 = vmul.f32 %v7495_v55, %v7495_v55  ;;  %v8631_v18 = vld [vmem:[#allocation8_spill] sm:$0xff] }
 0x255   :  { %v7877_v24 = vmax.f32 %v2256_v48, 0.0  ;;  %v7879_v57 = vmax.f32 %v2248_v50, 0.0  ;;  %v3624_v48 = vmul.f32 %v7493_v20, %v7493_v20  ;;  %v3293_v60 = vsel %vm2643_vm1, %v7495_v55, 0.0  ;;  %2864 = vst.msk [vmem:[%s8542_s3 + $0x6e0] sm:$0xff] %vm2643_vm1, %v7875_v1 }
 0x256   :  { %v3290_v38 = vadd.f32 %v3289_v6, %v3288_v53  ;;  %v4065_v62 = vadd.f32 %v4064_v41, %v4063_v12  ;;  %v2269_v53 = vadd.f32 %v7070_v7, %v8631_v18  ;;  %v8632_v12 = vld [vmem:[#allocation9_spill] sm:$0xff]  ;;  %v3295_v50 = vsel %vm2643_vm1, %v7458_v42, 0.0 }
 0x257   :  { %8629 = vst [vmem:[#allocation14_spill] sm:$0xff] %v7877_v24  ;;  %8630 = vst [vmem:[#allocation15_spill] sm:$0xff] %v7879_v57  ;;  %v2261_v16 = vadd.f32 %v7070_v7, %v8632_v12  ;;  %v4074_v42 = vsel %vm2643_vm1, %v3624_v48, 0.0 }
 0x258   :  { %v4067_v41 = vadd.f32 %v4066_v28, %v4065_v62  ;;  %v3292_v6 = vadd.f32 %v3291_v45, %v3290_v38  ;;  %2867 = vst.msk [vmem:[%s8542_s3 + $0x6f8] sm:$0xff] %vm2643_vm1, %v7877_v24  ;;  %2865 = vst.msk [vmem:[%s8542_s3 + $0x6e8] sm:$0xff] %vm2643_vm1, %v7879_v57  ;;  %v4070_v28 = vsel %vm2643_vm1, %v3622_v17, 0.0  ;;  %v7912_v38 = vmax.f32 %v2269_v53, 0.0  ;;  %v7916_v45 = vpop.f32.mrf.mxu1  ;;  %v8633_v24 = vld [vmem:[#allocation10_spill] sm:$0xff] }
 0x259   :  { %v7914_v62 = vmax.f32 %v2261_v16, 0.0  ;;  %v2272_v37 = vadd.f32 %v7070_v7, %v8633_v24  ;;  %v4072_v57 = vsel %vm2643_vm1, %v3623_v34, 0.0  ;;  %v3625_v17 = vmul.f32 %v7539_v32, %v7539_v32 }
 0x25a   :  { %v4069_v52 = vadd.f32 %v4068_v10, %v4067_v41  ;;  %v3294_v55 = vadd.f32 %v3293_v60, %v3292_v6  ;;  %v3297_v41 = vsel %vm2643_vm1, %v7493_v20, 0.0  ;;  %2870 = vst.msk [vmem:[%s8542_s3 + $0x710] sm:$0xff] %vm2643_vm1, %v7912_v38  ;;  %v3299_v20 = vsel %vm2643_vm1, %v7539_v32, 0.0  ;;  %v8634_v10 = vld [vmem:[#allocation11_spill] sm:$0xff] }
 0x25b   :  { %2868 = vst.msk [vmem:[%s8542_s3 + $0x700] sm:$0xff] %vm2643_vm1, %v7914_v62  ;;  %v7938_v53 = vmax.f32 %v2272_v37, 0.0  ;;  %v3626_v16 = vmul.f32 %v7543_v23, %v7543_v23  ;;  %v2264_v34 = vadd.f32 %v7070_v7, %v7348_v43  ;;  %v2285_v48 = vadd.f32 %v7070_v7, %v8634_v10 }
 0x25c   :  { %v3296_v18 = vadd.f32 %v3295_v50, %v3294_v55  ;;  %v4071_v12 = vadd.f32 %v4070_v28, %v4069_v52  ;;  %v2277_v60 = vadd.f32 %v7070_v7, %v7412_v14  ;;  %v7948_v52 = vpop.f32.mrf.mxu1  ;;  %v3301_v55 = vsel %vm2643_vm1, %v7543_v23, 0.0 }
 0x25d   :  { %2871 = vst.msk [vmem:[%s8542_s3 + $0x718] sm:$0xff] %vm2643_vm1, %v7938_v53  ;;  %v4076_v43 = vsel %vm2643_vm1, %v3625_v17, 0.0  ;;  %v7960_v50 = vmax.f32 %v2264_v34, 0.0  ;;  %v7962_v14 = vmax.f32 %v2285_v48, 0.0  ;;  %v2280_v23 = vadd.f32 %v7070_v7, %v7488_v5 }
 0x25e   :  { %v4073_v24 = vadd.f32 %v4072_v57, %v4071_v12  ;;  %v3298_v6 = vadd.f32 %v3297_v41, %v3296_v18  ;;  %v3627_v57 = vmul.f32 %v7519_v39, %v7519_v39  ;;  %v7964_v28 = vmax.f32 %v2277_v60, 0.0  ;;  %v8635_v41 = vld [vmem:[#allocation12_spill] sm:$0xff]  ;;  %v7990_v5 = vpop.f32.mrf.mxu1 }
 0x25f   :  { %v3628_v17 = vmul.f32 %v7541_v8, %v7541_v8  ;;  %2869 = vst.msk [vmem:[%s8542_s3 + $0x708] sm:$0xff] %vm2643_vm1, %v7960_v50  ;;  %2874 = vst.msk [vmem:[%s8542_s3 + $0x730] sm:$0xff] %vm2643_vm1, %v7962_v14  ;;  %v3305_v10 = vsel %vm2643_vm1, %v7541_v8, 0.0  ;;  %v7999_v60 = vmax.f32 %v2280_v23, 0.0  ;;  %v3630_v8 = vmul.f32 %v7624_v46, %v7624_v46  ;;  %v8030_v23 = vld [vmem:[%s8541_s2] ss:$0 sm:$0xff] }
 0x260   :  { %v3300_v32 = vadd.f32 %v3299_v20, %v3298_v6  ;;  %v4075_v37 = vadd.f32 %v4074_v42, %v4073_v24  ;;  %v2288_v42 = vadd.f32 %v7070_v7, %v8635_v41  ;;  %v3303_v24 = vsel %vm2643_vm1, %v7519_v39, 0.0  ;;  %2872 = vst.msk [vmem:[%s8542_s3 + $0x720] sm:$0xff] %vm2643_vm1, %v7964_v28 }
 0x261   :  { %v4078_v6 = vsel %vm2643_vm1, %v3626_v16, 0.0  ;;  %v3629_v16 = vmul.f32 %v7578_v47, %v7578_v47  ;;  %v4080_v34 = vsel %vm2643_vm1, %v3627_v57, 0.0  ;;  %v3307_v57 = vsel %vm2643_vm1, %v7578_v47, 0.0  ;;  %2873 = vst.msk [vmem:[%s8542_s3 + $0x728] sm:$0xff] %vm2643_vm1, %v7999_v60 }
 0x262   :  { %v4077_v18 = vadd.f32 %v4076_v43, %v4075_v37  ;;  %v3302_v12 = vadd.f32 %v3301_v55, %v3300_v32  ;;  %v7997_v48 = vmax.f32 %v2288_v42, 0.0  ;;  %v2301_v55 = vadd.f32 %v7070_v7, %v7515_v29  ;;  %v8020_v7 = vpop.f32.mrf.mxu1 }
 0x263   :  { %v4082_v43 = vsel %vm2643_vm1, %v3628_v17, 0.0  ;;  %v4084_v47 = vsel %vm2643_vm1, %v3629_v16, 0.0  ;;  %v3309_v42 = vsel %vm2643_vm1, %v7624_v46, 0.0  ;;  %v2304_v17 = vadd.f32 %v8030_v23, %v7580_v4 }
 0x264   :  { %v3304_v39 = vadd.f32 %v3303_v24, %v3302_v12  ;;  %v4079_v20 = vadd.f32 %v4078_v6, %v4077_v18  ;;  %v3631_v18 = vmul.f32 %v7576_v25, %v7576_v25  ;;  %2875 = vst.msk [vmem:[%s8542_s3 + $0x738] sm:$0xff] %vm2643_vm1, %v7997_v48  ;;  %v8023_v41 = vmax.f32 %v2301_v55, 0.0 }
 0x265   :  { %v2293_v24 = vadd.f32 %v8030_v23, %v7545_v33  ;;  %v2296_v6 = vadd.f32 %v8030_v23, %v7612_v59  ;;  %v3632_v46 = vmul.f32 %v7602_v27, %v7602_v27  ;;  %v4086_v33 = vsel %vm2643_vm1, %v3630_v8, 0.0 }
 0x266   :  { %v4081_v32 = vadd.f32 %v4080_v34, %v4079_v20  ;;  %v3306_v37 = vadd.f32 %v3305_v10, %v3304_v39  ;;  %v3311_v39 = vsel %vm2643_vm1, %v7576_v25, 0.0  ;;  %2878 = vst.msk [vmem:[%s8542_s3 + $0x750] sm:$0xff] %vm2643_vm1, %v8023_v41  ;;  %v8050_v34 = vmax.f32 %v2304_v17, 0.0  ;;  %v8054_v25 = vpop.f32.mrf.mxu1 }
 0x267   :  { %v8048_v4 = vmax.f32 %v2293_v24, 0.0  ;;  %v8052_v59 = vmax.f32 %v2296_v6, 0.0  ;;  %v2309_v55 = vadd.f32 %v8030_v23, %v7684_v22  ;;  %v3633_v8 = vmul.f32 %v7628_v15, %v7628_v15 }
 0x268   :  { %v3308_v29 = vadd.f32 %v3307_v57, %v3306_v37  ;;  %v4083_v12 = vadd.f32 %v4082_v43, %v4081_v32  ;;  %v2317_v37 = vadd.f32 %v8030_v23, %v7654_v63  ;;  %v4088_v43 = vsel %vm2643_vm1, %v3631_v18, 0.0  ;;  %2879 = vst.msk [vmem:[%s8542_s3 + $0x758] sm:$0xff] %vm2643_vm1, %v8050_v34 }
 0x269   :  { %v3313_v57 = vsel %vm2643_vm1, %v7602_v27, 0.0  ;;  %2876 = vst.msk [vmem:[%s8542_s3 + $0x740] sm:$0xff] %vm2643_vm1, %v8048_v4  ;;  %2877 = vst.msk [vmem:[%s8542_s3 + $0x748] sm:$0xff] %vm2643_vm1, %v8052_v59  ;;  %v4090_v27 = vsel %vm2643_vm1, %v3632_v46, 0.0  ;;  %v3315_v18 = vsel %vm2643_vm1, %v7628_v15, 0.0  ;;  %v3635_v24 = vmul.f32 %v7626_v30, %v7626_v30 }
 0x26a   :  { %v4085_v20 = vadd.f32 %v4084_v47, %v4083_v12  ;;  %v3310_v16 = vadd.f32 %v3309_v42, %v3308_v29  ;;  %v3634_v29 = vmul.f32 %v7663_v31, %v7663_v31  ;;  %v8085_v12 = vmax.f32 %v2317_v37, 0.0  ;;  %v8089_v42 = vpop.f32.mrf.mxu1 }
 0x26b   :  { %v8087_v47 = vmax.f32 %v2309_v55, 0.0  ;;  %v3319_v15 = vsel %vm2643_vm1, %v7626_v30, 0.0  ;;  %v3317_v46 = vsel %vm2643_vm1, %v7663_v31, 0.0  ;;  %v3636_v30 = vmul.f32 %v7661_v40, %v7661_v40 }
 0x26c   :  { %v3312_v10 = vadd.f32 %v3311_v39, %v3310_v16  ;;  %v4087_v32 = vadd.f32 %v4086_v33, %v4085_v20  ;;  %v2320_v39 = vadd.f32 %v8030_v23, %v7713_v26  ;;  %v4092_v20 = vsel %vm2643_vm1, %v3633_v8, 0.0  ;;  %2882 = vst.msk [vmem:[%s8542_s3 + $0x770] sm:$0xff] %vm2643_vm1, %v8085_v12  ;;  %v8121_v55 = vpop.f32.mrf.mxu1 }
 0x26d   :  { %2880 = vst.msk [vmem:[%s8542_s3 + $0x760] sm:$0xff] %vm2643_vm1, %v8087_v47  ;;  %v4094_v31 = vsel %vm2643_vm1, %v3634_v29, 0.0  ;;  %v2325_v37 = vadd.f32 %v8030_v23, %v7824_v11  ;;  %v2328_v29 = vadd.f32 %v8030_v23, %v7881_v35 }
 0x26e   :  { %v4089_v63 = vadd.f32 %v4088_v43, %v4087_v32  ;;  %v3314_v22 = vadd.f32 %v3313_v57, %v3312_v10  ;;  %v8112_v33 = vmax.f32 %v2320_v39, 0.0  ;;  %v2312_v10 = vadd.f32 %v8030_v23, %v7748_v54 }
 0x26f   :  { %v2333_v32 = vadd.f32 %v8030_v23, %v7780_v9  ;;  %v4096_v43 = vsel %vm2643_vm1, %v3635_v24, 0.0  ;;  %v3321_v57 = vsel %vm2643_vm1, %v7661_v40, 0.0  ;;  %v3637_v54 = vmul.f32 %v7707_v44, %v7707_v44 }
 0x270   :  { %v3316_v17 = vadd.f32 %v3315_v18, %v3314_v22  ;;  %v4091_v6 = vadd.f32 %v4090_v27, %v4089_v63  ;;  %2883 = vst.msk [vmem:[%s8542_s3 + $0x778] sm:$0xff] %vm2643_vm1, %v8112_v33  ;;  %v8133_v9 = vmax.f32 %v2312_v10, 0.0  ;;  %v8137_v63 = vmax.f32 %v2325_v37, 0.0 }
 0x271   :  { %v8135_v11 = vmax.f32 %v2333_v32, 0.0  ;;  %v2336_v40 = vadd.f32 %v8030_v23, %v7851_v49  ;;  %v4098_v24 = vsel %vm2643_vm1, %v3636_v30, 0.0  ;;  %v3638_v39 = vmul.f32 %v7711_v61, %v7711_v61 }
 0x272   :  { %v4093_v26 = vadd.f32 %v4092_v20, %v4091_v6  ;;  %v3318_v16 = vadd.f32 %v3317_v46, %v3316_v17  ;;  %v3639_v17 = vmul.f32 %v7687_v0, %v7687_v0  ;;  %v3323_v6 = vsel %vm2643_vm1, %v7707_v44, 0.0  ;;  %2881 = vst.msk [vmem:[%s8542_s3 + $0x768] sm:$0xff] %vm2643_vm1, %v8133_v9  ;;  %2884 = vst.msk [vmem:[%s8542_s3 + $0x780] sm:$0xff] %vm2643_vm1, %v8137_v63  ;;  %v8165_v44 = vpop.f32.mrf.mxu1 }
 0x273   :  { %2886 = vst.msk [vmem:[%s8542_s3 + $0x790] sm:$0xff] %vm2643_vm1, %v8135_v11  ;;  %v3325_v20 = vsel %vm2643_vm1, %v7711_v61, 0.0  ;;  %v8170_v46 = vmax.f32 %v2336_v40, 0.0  ;;  %v2349_v10 = vadd.f32 %v8030_v23, %v7916_v45  ;;  %v3327_v32 = vsel %vm2643_vm1, %v7687_v0, 0.0 }
 0x274   :  { %v3320_v8 = vadd.f32 %v3319_v15, %v3318_v16  ;;  %v4095_v27 = vadd.f32 %v4094_v31, %v4093_v26  ;;  %v4100_v15 = vsel %vm2643_vm1, %v3637_v54, 0.0  ;;  %v8172_v26 = vmax.f32 %v2328_v29, 0.0  ;;  %v4867_v61 = vpop.f32.mrf.mxu1 }
 0x275   :  { %v3640_v16 = vmul.f32 %v7709_v19, %v7709_v19  ;;  %v4104_v37 = vsel %vm2643_vm1, %v3639_v17, 0.0  ;;  %2887 = vst.msk [vmem:[%s8542_s3 + $0x798] sm:$0xff] %vm2643_vm1, %v8170_v46  ;;  %v3329_v0 = vsel %vm2643_vm1, %v7709_v19, 0.0  ;;  %v2341_v54 = vadd.f32 %v8030_v23, %v7948_v52 }
 0x276   :  { %v4097_v22 = vadd.f32 %v4096_v43, %v4095_v27  ;;  %v3322_v18 = vadd.f32 %v3321_v57, %v3320_v8  ;;  %v4102_v43 = vsel %vm2643_vm1, %v3638_v39, 0.0  ;;  %2885 = vst.msk [vmem:[%s8542_s3 + $0x788] sm:$0xff] %vm2643_vm1, %v8172_v26  ;;  %v8194_v8 = vmax.f32 %v2349_v10, 0.0 }
 0x277   :  { %v3641_v27 = vmul.f32 %v7746_v13, %v7746_v13  ;;  %v4106_v40 = vsel %vm2643_vm1, %v3640_v16, 0.0  ;;  %v3642_v52 = vmul.f32 %v7792_v58, %v7792_v58  ;;  %v3333_v16 = vsel %vm2643_vm1, %v7792_v58, 0.0 }
 0x278   :  { %v3324_v49 = vadd.f32 %v3323_v6, %v3322_v18  ;;  %v4099_v35 = vadd.f32 %v4098_v24, %v4097_v22  ;;  %v2352_v22 = vadd.f32 %v8030_v23, %v7990_v5  ;;  %v2344_v18 = vadd.f32 %v8030_v23, %v8020_v7  ;;  %2890 = vst.msk [vmem:[%s8542_s3 + $0x7b0] sm:$0xff] %vm2643_vm1, %v8194_v8  ;;  %v2372_v6 = vpop.f32.mrf.mxu1 }
 0x279   :  { %v3331_v24 = vsel %vm2643_vm1, %v7746_v13, 0.0  ;;  %v8214_v5 = vmax.f32 %v2341_v54, 0.0  ;;  %v2365_v13 = vadd.f32 %v8030_v23, %v8054_v25 }
 0x27a   :  { %v4101_v30 = vadd.f32 %v4100_v15, %v4099_v35  ;;  %v3326_v31 = vadd.f32 %v3325_v20, %v3324_v49  ;;  %v8216_v17 = vmax.f32 %v2352_v22, 0.0  ;;  %v8218_v7 = vmax.f32 %v2344_v18, 0.0 }
 0x27b   :  { %v2357_v35 = vadd.f32 %v8030_v23, %v8089_v42  ;;  %v3643_v15 = vmul.f32 %v7744_v3, %v7744_v3  ;;  %v4108_v20 = vsel %vm2643_vm1, %v3641_v27, 0.0  ;;  %2888 = vst.msk [vmem:[%s8542_s3 + $0x7a0] sm:$0xff] %vm2643_vm1, %v8214_v5  ;;  %v3335_v42 = vsel %vm2643_vm1, %v7744_v3, 0.0 }
 0x27c   :  { %v3328_v45 = vadd.f32 %v3327_v32, %v3326_v31  ;;  %v4103_v57 = vadd.f32 %v4102_v43, %v4101_v30  ;;  %v3644_v30 = vmul.f32 %v7771_v21, %v7771_v21  ;;  %2891 = vst.msk [vmem:[%s8542_s3 + $0x7b8] sm:$0xff] %vm2643_vm1, %v8216_v17  ;;  %2889 = vst.msk [vmem:[%s8542_s3 + $0x7a8] sm:$0xff] %vm2643_vm1, %v8218_v7  ;;  %v4110_v31 = vsel %vm2643_vm1, %v3642_v52, 0.0 }
 0x27d   :  { %v8249_v10 = vmax.f32 %v2365_v13, 0.0  ;;  %v8251_v32 = vmax.f32 %v2357_v35, 0.0  ;;  %v4112_v27 = vsel %vm2643_vm1, %v3643_v15, 0.0  ;;  %v3337_v3 = vsel %vm2643_vm1, %v7771_v21, 0.0 }
 0x27e   :  { %v4105_v29 = vadd.f32 %v4104_v37, %v4103_v57  ;;  %v3330_v19 = vadd.f32 %v3329_v0, %v3328_v45  ;;  %v4868_v37 = vpop.f32.mrf.mxu1  ;;  %v3645_v45 = vmul.f32 %v7796_v36, %v7796_v36  ;;  %v2368_v57 = vadd.f32 %v8030_v23, %v8121_v55 }
 0x27f   :  { %v4114_v54 = vsel %vm2643_vm1, %v3644_v30, 0.0  ;;  %2894 = vst.msk [vmem:[%s8542_s3 + $0x7d0] sm:$0xff] %vm2643_vm1, %v8249_v10  ;;  %2892 = vst.msk [vmem:[%s8542_s3 + $0x7c0] sm:$0xff] %vm2643_vm1, %v8251_v32  ;;  %v3339_v18 = vsel %vm2643_vm1, %v7796_v36, 0.0  ;;  %v2384_v30 = vadd.f32 %v8030_v23, %v4868_v37  ;;  %v3649_v37 = vmul.f32 %v7875_v1, %v7875_v1 }
 0x280   :  { %v3332_v39 = vadd.f32 %v3331_v24, %v3330_v19  ;;  %v4107_v49 = vadd.f32 %v4106_v40, %v4105_v29  ;;  %v8273_v21 = vmax.f32 %v2368_v57, 0.0  ;;  %v3646_v40 = vmul.f32 %v7831_v51, %v7831_v51  ;;  %v2375_v52 = vpop.f32.mrf.mxu1 }
 0x281   :  { %v2360_v29 = vadd.f32 %v8030_v23, %v8165_v44  ;;  %v2381_v19 = vadd.f32 %v8030_v23, %v4867_v61  ;;  %v2373_v24 = vadd.f32 %v8030_v23, %v2372_v6  ;;  %v4116_v36 = vsel %vm2643_vm1, %v3645_v45, 0.0 }
 0x282   :  { %v4109_v25 = vadd.f32 %v4108_v20, %v4107_v49  ;;  %v3334_v58 = vadd.f32 %v3333_v16, %v3332_v39  ;;  %v3647_v39 = vmul.f32 %v7794_v2, %v7794_v2  ;;  %2895 = vst.msk [vmem:[%s8542_s3 + $0x7d8] sm:$0xff] %vm2643_vm1, %v8273_v21  ;;  %v3341_v44 = vsel %vm2643_vm1, %v7831_v51, 0.0 }
 0x283   :  { %v8291_v61 = vmax.f32 %v2360_v29, 0.0  ;;  %v8293_v6 = vmax.f32 %v2381_v19, 0.0  ;;  %v8295_v35 = vmax.f32 %v2373_v24, 0.0  ;;  %v2376_v16 = vadd.f32 %v8030_v23, %v2375_v52 }
 0x284   :  { %v3336_v43 = vadd.f32 %v3335_v42, %v3334_v58  ;;  %v4111_v0 = vadd.f32 %v4110_v31, %v4109_v25  ;;  %v3343_v25 = vsel %vm2643_vm1, %v7794_v2, 0.0  ;;  %v3648_v58 = vmul.f32 %v7829_v56, %v7829_v56 }
 0x285   :  { %v4118_v51 = vsel %vm2643_vm1, %v3646_v40, 0.0  ;;  %2893 = vst.msk [vmem:[%s8542_s3 + $0x7c8] sm:$0xff] %vm2643_vm1, %v8291_v61  ;;  %2898 = vst.msk [vmem:[%s8542_s3 + $0x7f0] sm:$0xff] %vm2643_vm1, %v8293_v6  ;;  %v4120_v2 = vsel %vm2643_vm1, %v3647_v39, 0.0  ;;  %v3345_v31 = vsel %vm2643_vm1, %v7829_v56, 0.0  ;;  %v4124_v29 = vsel %vm2643_vm1, %v3649_v37, 0.0 }
 0x286   :  { %v4113_v55 = vadd.f32 %v4112_v27, %v4111_v0  ;;  %v3338_v22 = vadd.f32 %v3337_v3, %v3336_v43  ;;  %2896 = vst.msk [vmem:[%s8542_s3 + $0x7e0] sm:$0xff] %vm2643_vm1, %v8295_v35  ;;  %v8324_v43 = vmax.f32 %v2384_v30, 0.0  ;;  %v8326_v0 = vmax.f32 %v2376_v16, 0.0 }
 0x287   :  { %v4122_v27 = vsel %vm2643_vm1, %v3648_v58, 0.0  ;;  %v3347_v3 = vsel %vm2643_vm1, %v7875_v1, 0.0  ;;  %v8637_v1 = vld [vmem:[#allocation13_spill] sm:$0xff]  ;;  %v3653_v16 = vmul.f32 %v7914_v62, %v7914_v62  ;;  %v3655_v37 = vmul.f32 %v7912_v38, %v7912_v38 }
 0x288   :  { %v3340_v49 = vadd.f32 %v3339_v18, %v3338_v22  ;;  %v4115_v13 = vadd.f32 %v4114_v54, %v4113_v55  ;;  %v8636_v54 = vld [vmem:[#allocation15_spill] sm:$0xff]  ;;  %2899 = vst.msk [vmem:[%s8542_s3 + $0x7f8] sm:$0xff] %vm2643_vm1, %v8324_v43  ;;  %2897 = vst.msk [vmem:[%s8542_s3 + $0x7e8] sm:$0xff] %vm2643_vm1, %v8326_v0  ;;  %v5011_v18 = vmov 0.0   ;;  %v3651_v40 = vmul.f32 %v8637_v1, %v8637_v1 }
 0x289   :  { %v3650_v55 = vmul.f32 %v8636_v54, %v8636_v54  ;;  %2905 = vst.msk [vmem:[%s8543_s4] sm:$0x1] %vm2904_vm2, %v5011_v18  ;;  %2906 = vst.msk [vmem:[%s8544_s5] sm:$0x1] %vm2904_vm2, %v5011_v18  ;;  %v3349_v19 = vsel %vm2643_vm1, %v8636_v54, 0.0  ;;  %v3351_v39 = vsel %vm2643_vm1, %v8637_v1, 0.0 }
 0x28a   :  { %v4117_v15 = vadd.f32 %v4116_v36, %v4115_v13  ;;  %v3342_v20 = vadd.f32 %v3341_v44, %v3340_v49  ;;  %v8638_v49 = vld [vmem:[#allocation14_spill] sm:$0xff]  ;;  %v3359_v54 = vsel %vm2643_vm1, %v7912_v38, 0.0  ;;  %v4136_v18 = vsel %vm2643_vm1, %v3655_v37, 0.0 }
 0x28b   :  { %v3652_v13 = vmul.f32 %v8638_v49, %v8638_v49  ;;  %v4126_v36 = vsel %vm2643_vm1, %v3650_v55, 0.0  ;;  %v3353_v30 = vsel %vm2643_vm1, %v8638_v49, 0.0  ;;  %v3361_v1 = vsel %vm2643_vm1, %v7938_v53, 0.0 }
 0x28c   :  { %v3344_v23 = vadd.f32 %v3343_v25, %v3342_v20  ;;  %v4119_v42 = vadd.f32 %v4118_v51, %v4117_v15  ;;  %v4128_v20 = vsel %vm2643_vm1, %v3651_v40, 0.0  ;;  %v3363_v38 = vsel %vm2643_vm1, %v7964_v28, 0.0 }
 0x28d   :  { %v4130_v51 = vsel %vm2643_vm1, %v3652_v13, 0.0  ;;  %v3659_v49 = vmul.f32 %v7962_v14, %v7962_v14  ;;  %v3365_v13 = vsel %vm2643_vm1, %v7999_v60, 0.0 }
 0x28e   :  { %v4121_v45 = vadd.f32 %v4120_v2, %v4119_v42  ;;  %v3346_v57 = vadd.f32 %v3345_v31, %v3344_v23  ;;  %v3355_v2 = vsel %vm2643_vm1, %v7914_v62, 0.0  ;;  %v3654_v23 = vmul.f32 %v7960_v50, %v7960_v50 }
 0x28f   :  { %v3656_v62 = vmul.f32 %v7938_v53, %v7938_v53 }
 0x290   :  { %v3348_v56 = vadd.f32 %v3347_v3, %v3346_v57  ;;  %v4123_v22 = vadd.f32 %v4122_v27, %v4121_v45  ;;  %v4132_v45 = vsel %vm2643_vm1, %v3653_v16, 0.0  ;;  %v3357_v57 = vsel %vm2643_vm1, %v7960_v50, 0.0 }
 0x291   :  { %v4134_v55 = vsel %vm2643_vm1, %v3654_v23, 0.0  ;;  %v3657_v50 = vmul.f32 %v7964_v28, %v7964_v28  ;;  %v3660_v28 = vmul.f32 %v7997_v48, %v7997_v48 }
 0x292   :  { %v4125_v24 = vadd.f32 %v4124_v29, %v4123_v22  ;;  %v3350_v52 = vadd.f32 %v3349_v19, %v3348_v56  ;;  %v4138_v19 = vsel %vm2643_vm1, %v3656_v62, 0.0 }
 0x293   :  { %v4140_v53 = vsel %vm2643_vm1, %v3657_v50, 0.0  ;;  %v4146_v23 = vsel %vm2643_vm1, %v3660_v28, 0.0  ;;  %v3385_v28 = vsel %vm2643_vm1, %v8112_v33, 0.0 }
 0x294   :  { %v3352_v44 = vadd.f32 %v3351_v39, %v3350_v52  ;;  %v4127_v15 = vadd.f32 %v4126_v36, %v4125_v24  ;;  %v3658_v24 = vmul.f32 %v7999_v60, %v7999_v60  ;;  %v3661_v60 = vmul.f32 %v8048_v4, %v8048_v4 }
 0x296   :  { %v4129_v25 = vadd.f32 %v4128_v20, %v4127_v15  ;;  %v3354_v58 = vadd.f32 %v3353_v30, %v3352_v44  ;;  %v3367_v15 = vsel %vm2643_vm1, %v7962_v14, 0.0  ;;  %v4142_v20 = vsel %vm2643_vm1, %v3658_v24, 0.0 }
 0x297   :  { %v3371_v14 = vsel %vm2643_vm1, %v8048_v4, 0.0  ;;  %v3664_v4 = vmul.f32 %v8050_v34, %v8050_v34  ;;  %v3667_v24 = vmul.f32 %v8085_v12, %v8085_v12 }
 0x298   :  { %v3356_v42 = vadd.f32 %v3355_v2, %v3354_v58  ;;  %v4131_v31 = vadd.f32 %v4130_v51, %v4129_v25  ;;  %v4144_v25 = vsel %vm2643_vm1, %v3659_v49, 0.0  ;;  %v3369_v58 = vsel %vm2643_vm1, %v7997_v48, 0.0 }
 0x299   :  { %v4148_v48 = vsel %vm2643_vm1, %v3661_v60, 0.0 }
 0x29a   :  { %v4133_v27 = vadd.f32 %v4132_v45, %v4131_v31  ;;  %v3358_v3 = vadd.f32 %v3357_v57, %v3356_v42  ;;  %v3662_v42 = vmul.f32 %v8052_v59, %v8052_v59  ;;  %v3663_v45 = vmul.f32 %v8023_v41, %v8023_v41 }
 0x29b   :  { %v3373_v57 = vsel %vm2643_vm1, %v8052_v59, 0.0  ;;  %v3665_v59 = vmul.f32 %v8087_v47, %v8087_v47 }
 0x29c   :  { %v3360_v56 = vadd.f32 %v3359_v54, %v3358_v3  ;;  %v4135_v22 = vadd.f32 %v4134_v55, %v4133_v27  ;;  %v3375_v54 = vsel %vm2643_vm1, %v8023_v41, 0.0  ;;  %v4150_v62 = vsel %vm2643_vm1, %v3662_v42, 0.0 }
 0x29d   :  { %v3379_v41 = vsel %vm2643_vm1, %v8087_v47, 0.0  ;;  %v3668_v47 = vmul.f32 %v8112_v33, %v8112_v33  ;;  %v3391_v42 = vsel %vm2643_vm1, %v8135_v11, 0.0 }
 0x29e   :  { %v4137_v40 = vadd.f32 %v4136_v18, %v4135_v22  ;;  %v3362_v29 = vadd.f32 %v3361_v1, %v3360_v56  ;;  %v4152_v22 = vsel %vm2643_vm1, %v3663_v45, 0.0  ;;  %v3377_v18 = vsel %vm2643_vm1, %v8050_v34, 0.0 }
 0x29f   :  { %v4156_v34 = vsel %vm2643_vm1, %v3665_v59, 0.0 }
 0x2a0   :  { %v3364_v52 = vadd.f32 %v3363_v38, %v3362_v29  ;;  %v4139_v39 = vadd.f32 %v4138_v19, %v4137_v40  ;;  %v4154_v40 = vsel %vm2643_vm1, %v3664_v4, 0.0  ;;  %v3666_v29 = vmul.f32 %v8133_v9, %v8133_v9 }
 0x2a1   :  { %v3674_v4 = vmul.f32 %v8218_v7, %v8218_v7 }
 0x2a2   :  { %v4141_v36 = vadd.f32 %v4140_v53, %v4139_v39  ;;  %v3366_v44 = vadd.f32 %v3365_v13, %v3364_v52  ;;  %v3381_v52 = vsel %vm2643_vm1, %v8133_v9, 0.0  ;;  %v3383_v53 = vsel %vm2643_vm1, %v8085_v12, 0.0 }
 0x2a3   :  { %v4158_v13 = vsel %vm2643_vm1, %v3666_v29, 0.0  ;;  %v3669_v9 = vmul.f32 %v8137_v63, %v8137_v63  ;;  %v3387_v12 = vsel %vm2643_vm1, %v8137_v63, 0.0  ;;  %v3672_v63 = vmul.f32 %v8170_v46, %v8170_v46 }
 0x2a4   :  { %v3368_v30 = vadd.f32 %v3367_v15, %v3366_v44  ;;  %v4143_v16 = vadd.f32 %v4142_v20, %v4141_v36  ;;  %v4160_v15 = vsel %vm2643_vm1, %v3667_v24, 0.0 }
 0x2a5   :  { %v4164_v33 = vsel %vm2643_vm1, %v3669_v9, 0.0 }
 0x2a6   :  { %v4145_v51 = vadd.f32 %v4144_v25, %v4143_v16  ;;  %v3370_v2 = vadd.f32 %v3369_v58, %v3368_v30  ;;  %v4162_v16 = vsel %vm2643_vm1, %v3668_v47, 0.0  ;;  %v3670_v25 = vmul.f32 %v8172_v26, %v8172_v26 }
 0x2a7   :  { %v3405_v47 = vsel %vm2643_vm1, %v8291_v61, 0.0 }
 0x2a8   :  { %v3372_v31 = vadd.f32 %v3371_v14, %v3370_v2  ;;  %v4147_v37 = vadd.f32 %v4146_v23, %v4145_v51  ;;  %v3671_v51 = vmul.f32 %v8135_v11, %v8135_v11  ;;  %v3389_v2 = vsel %vm2643_vm1, %v8172_v26, 0.0 }
 0x2a9   :  { %v3673_v26 = vmul.f32 %v8214_v5, %v8214_v5  ;;  %v3395_v11 = vsel %vm2643_vm1, %v8214_v5, 0.0  ;;  %v3676_v5 = vmul.f32 %v8216_v17, %v8216_v17 }
 0x2aa   :  { %v4149_v27 = vadd.f32 %v4148_v48, %v4147_v37  ;;  %v3374_v3 = vadd.f32 %v3373_v57, %v3372_v31  ;;  %v4166_v31 = vsel %vm2643_vm1, %v3670_v25, 0.0  ;;  %v4168_v48 = vsel %vm2643_vm1, %v3671_v51, 0.0 }
 0x2ab   :  { %v3393_v57 = vsel %vm2643_vm1, %v8170_v46, 0.0  ;;  %v4172_v46 = vsel %vm2643_vm1, %v3673_v26, 0.0 }
 0x2ac   :  { %v3376_v55 = vadd.f32 %v3375_v54, %v3374_v3  ;;  %v4151_v56 = vadd.f32 %v4150_v62, %v4149_v27  ;;  %v4170_v54 = vsel %vm2643_vm1, %v3672_v63, 0.0 }
 0x2ae   :  { %v4153_v1 = vadd.f32 %v4152_v22, %v4151_v56  ;;  %v3378_v50 = vadd.f32 %v3377_v18, %v3376_v55  ;;  %v3675_v56 = vmul.f32 %v8194_v8, %v8194_v8  ;;  %v3397_v22 = vsel %vm2643_vm1, %v8218_v7, 0.0 }
 0x2af   :  { %v3677_v7 = vmul.f32 %v8251_v32, %v8251_v32 }
 0x2b0   :  { %v3380_v19 = vadd.f32 %v3379_v41, %v3378_v50  ;;  %v4155_v38 = vadd.f32 %v4154_v40, %v4153_v1  ;;  %v3399_v1 = vsel %vm2643_vm1, %v8194_v8, 0.0  ;;  %v4174_v50 = vsel %vm2643_vm1, %v3674_v4, 0.0 }
 0x2b1   :  { %v4176_v29 = vsel %vm2643_vm1, %v3675_v56, 0.0  ;;  %v3403_v8 = vsel %vm2643_vm1, %v8251_v32, 0.0  ;;  %v3680_v32 = vmul.f32 %v8273_v21, %v8273_v21 }
 0x2b2   :  { %v4157_v39 = vadd.f32 %v4156_v34, %v4155_v38  ;;  %v3382_v49 = vadd.f32 %v3381_v52, %v3380_v19  ;;  %v3401_v19 = vsel %vm2643_vm1, %v8216_v17, 0.0  ;;  %v4178_v34 = vsel %vm2643_vm1, %v3676_v5, 0.0 }
 0x2b3   :  { %v3678_v52 = vmul.f32 %v8291_v61, %v8291_v61  ;;  %v4180_v17 = vsel %vm2643_vm1, %v3677_v7, 0.0  ;;  %v3681_v61 = vmul.f32 %v8295_v35, %v8295_v35  ;;  %v4186_v25 = vsel %vm2643_vm1, %v3680_v32, 0.0 }
 0x2b4   :  { %v3384_v36 = vadd.f32 %v3383_v53, %v3382_v49  ;;  %v4159_v44 = vadd.f32 %v4158_v13, %v4157_v39  ;;  %v3679_v53 = vmul.f32 %v8249_v10, %v8249_v10 }
 0x2b6   :  { %v4161_v20 = vadd.f32 %v4160_v15, %v4159_v44  ;;  %v3386_v30 = vadd.f32 %v3385_v28, %v3384_v36  ;;  %v3407_v44 = vsel %vm2643_vm1, %v8249_v10, 0.0  ;;  %v4182_v15 = vsel %vm2643_vm1, %v3678_v52, 0.0 }
 0x2b7   :  { %v3411_v10 = vsel %vm2643_vm1, %v8295_v35, 0.0  ;;  %v3684_v35 = vmul.f32 %v8324_v43, %v8324_v43 }
 0x2b8   :  { %v3388_v58 = vadd.f32 %v3387_v12, %v3386_v30  ;;  %v4163_v60 = vadd.f32 %v4162_v16, %v4161_v20  ;;  %v4184_v20 = vsel %vm2643_vm1, %v3679_v53, 0.0  ;;  %v3409_v30 = vsel %vm2643_vm1, %v8273_v21, 0.0 }
 0x2b9   :  { %v4188_v21 = vsel %vm2643_vm1, %v3681_v61, 0.0 }
 0x2ba   :  { %v4165_v23 = vadd.f32 %v4164_v33, %v4163_v60  ;;  %v3390_v14 = vadd.f32 %v3389_v2, %v3388_v58  ;;  %v3682_v58 = vmul.f32 %v8326_v0, %v8326_v0  ;;  %v3683_v33 = vmul.f32 %v8293_v6, %v8293_v6 }
 0x2bb   :  { %v3413_v2 = vsel %vm2643_vm1, %v8326_v0, 0.0  ;;  %v4194_v0 = vsel %vm2643_vm1, %v3684_v35, 0.0 }
 0x2bc   :  { %v3392_v37 = vadd.f32 %v3391_v42, %v3390_v14  ;;  %v4167_v45 = vadd.f32 %v4166_v31, %v4165_v23  ;;  %v3415_v42 = vsel %vm2643_vm1, %v8293_v6, 0.0  ;;  %v4190_v63 = vsel %vm2643_vm1, %v3682_v58, 0.0 }
 0x2be   :  { %v4169_v27 = vadd.f32 %v4168_v48, %v4167_v45  ;;  %v3394_v3 = vadd.f32 %v3393_v57, %v3392_v37  ;;  %v4192_v45 = vsel %vm2643_vm1, %v3683_v33, 0.0  ;;  %v3417_v48 = vsel %vm2643_vm1, %v8324_v43, 0.0 }
 0x2c0   :  { %v3396_v62 = vadd.f32 %v3395_v11, %v3394_v3  ;;  %v4171_v55 = vadd.f32 %v4170_v54, %v4169_v27 }
 0x2c2   :  { %v4173_v18 = vadd.f32 %v4172_v46, %v4171_v55  ;;  %v3398_v59 = vadd.f32 %v3397_v22, %v3396_v62  ;;  %v2907_v22 = vld [vmem:[%s8543_s4] sm:$0x1] }
 0x2c4   :  { %v3400_v40 = vadd.f32 %v3399_v1, %v3398_v59  ;;  %v4175_v41 = vadd.f32 %v4174_v50, %v4173_v18  ;;  %v3428_v59 = vld [vmem:[%s8544_s5] sm:$0x1] }
 0x2c6   :  { %v4177_v38 = vadd.f32 %v4176_v29, %v4175_v41  ;;  %v3402_v24 = vadd.f32 %v3401_v19, %v3400_v40 }
 0x2c8   :  { %v3404_v39 = vadd.f32 %v3403_v8, %v3402_v24  ;;  %v4179_v49 = vadd.f32 %v4178_v34, %v4177_v38 }
 0x2ca   :  { %v4181_v13 = vadd.f32 %v4180_v17, %v4179_v49  ;;  %v3406_v36 = vadd.f32 %v3405_v47, %v3404_v39 }
 0x2cc   :  { %v3408_v28 = vadd.f32 %v3407_v44, %v3406_v36  ;;  %v4183_v9 = vadd.f32 %v4182_v15, %v4181_v13 }
 0x2ce   :  { %v4185_v16 = vadd.f32 %v4184_v20, %v4183_v9  ;;  %v3410_v12 = vadd.f32 %v3409_v30, %v3408_v28 }
 0x2d0   :  { %v3412_v60 = vadd.f32 %v3411_v10, %v3410_v12  ;;  %v4187_v51 = vadd.f32 %v4186_v25, %v4185_v16 }
 0x2d2   :  { %v4189_v23 = vadd.f32 %v4188_v21, %v4187_v51  ;;  %v3414_v14 = vadd.f32 %v3413_v2, %v3412_v60 }
 0x2d4   :  { %v3416_v31 = vadd.f32 %v3415_v42, %v3414_v14  ;;  %v4191_v37 = vadd.f32 %v4190_v63, %v4189_v23 }
 0x2d6   :  { %v3418_v57 = vadd.f32 %v3417_v48, %v3416_v31  ;;  %v4193_v26 = vadd.f32 %v4192_v45, %v4191_v37 }
 0x2d8   :  { %v3419_v27 = vrot.slane %v3418_v57, 4  ;;  %v4195_v3 = vadd.f32 %v4194_v0, %v4193_v26 }
 0x2da   :  { %v3420_v54 = vadd.f32 %v3419_v27, %v3418_v57  ;;  %v4196_v6 = vrot.slane %v4195_v3, 4 }
 0x2dc   :  { %v3421_v11 = vrot.slane %v3420_v54, 2  ;;  %v4197_v4 = vadd.f32 %v4196_v6, %v4195_v3 }
 0x2de   :  { %v3422_v62 = vadd.f32 %v3421_v11, %v3420_v54  ;;  %v4198_v55 = vrot.slane %v4197_v4, 2 }
 0x2e0   :  { %v3423_v56 = vrot.slane %v3422_v62, 1  ;;  %v4199_v46 = vadd.f32 %v4198_v55, %v4197_v4 }
 0x2e2   :  { %v3424_v18 = vadd.f32 %v3423_v56, %v3422_v62  ;;  %v4200_v43 = vrot.slane %v4199_v46, 1 }
 0x2e4   :  { %v3425_v1 = vadd.f32 %v3424_v18, %v2907_v22  ;;  %v4201_v5 = vadd.f32 %v4200_v43, %v4199_v46 }
 0x2e6   :  { %3427 = vst.msk [vmem:[%s8543_s4] sm:$0x1] %vm2904_vm2, %v3425_v1  ;;  %v4202_v50 = vadd.f32 %v4201_v5, %v3428_v59 }
 0x2e8   :  { %4203 = vst.msk [vmem:[%s8544_s5] sm:$0x1] %vm2904_vm2, %v4202_v50 }

// kernel: tile.32
= control target key start
LH: loop header
LB: loop body
LE: loop exit
PB: predicated region body
PF: predicated region fallthrough
CT: control target
= control target key end

     0   :  { %s28_s0 = inlined_call_operand.vmem [shape: f32[32], index: 0, kind: input, shape index: {}]   ;;  %s29_s1 = inlined_call_operand.vmem [shape: f32[16,32], index: 1, kind: output, shape index: {}]  }
   0x1   :  { %v4_v0 = vld [vmem:[%s28_s0] ss:$0 sm:$0xff] }
   0x2   :  { %5 = vst [vmem:[%s29_s1] sm:$0xff] %v4_v0  ;;  %8 = vst [vmem:[%s29_s1 + $0x8] sm:$0xff] %v4_v0 }

// kernel: mul.23
= control target key start
LH: loop header
LB: loop body
LE: loop exit
PB: predicated region body
PF: predicated region fallthrough
CT: control target
= control target key end

     0   :  { %s37_s8 = smov 96   ;;  %vm3_vm0 = vcmask 261120   ;;  %s39_s15 = smov 64   ;;  %vm9_vm1 = vcmask 1048320   ;;  %vm15_vm2 = vcmask 785920   ;;  %vm21_vm3 = vcmask 523520   ;;  %s65_s0 = inlined_call_operand.vmem [shape: f32[16,32], index: 0, kind: input, shape index: {}]   ;;  %s66_s1 = inlined_call_operand.vmem [shape: f32[512], index: 1, kind: output, shape index: {}]  }
   0x1   :  { %v31_v0 = vld [vmem:[%s65_s0 + $0x3] ss:$4 sm:$0xf]   ;;  %v32_v1 = vld [vmem:[%s65_s0 + $0x2] ss:$4 sm:$0xf]  }
   0x2   :  { %7 = vrot.lane.b32.xlu0 %v31_v0, %s37_s8  ;;  %v33_v2 = vld [vmem:[%s65_s0 + $0x1] ss:$4 sm:$0xf]   ;;  %v2_v3 = vld [vmem:[%s65_s0] ss:$4 sm:$0xf]  }
   0x3   :  { %s38_s0 = smov 32   ;;  %4 = vst.msk [vmem:[#allocation0] sm:$0xf] %vm3_vm0, %v2_v3  }
   0x4   :  { %19 = vrot.lane.b32.xlu1 %v33_v2, %s38_s0 }
   0x6   :  { %13 = vrot.lane.b32.xlu0 %v32_v1, %s39_s15 }
  0x74   :  { %v8_v4 = vpop.permute.xlu0 %7  }
  0x75   :  { %10 = vst.msk [vmem:[#allocation0] sm:$0xf] %vm9_vm1, %v8_v4  }
  0x76   :  { %v20_v5 = vpop.permute.xlu1 %19  }
  0x78   :  { %v14_v6 = vpop.permute.xlu0 %13  }
  0x79   :  { %16 = vst.msk [vmem:[#allocation0] sm:$0xf] %vm15_vm2, %v14_v6  }
  0x7a   :  { %22 = vst.msk [vmem:[#allocation0] sm:$0xf] %vm21_vm3, %v20_v5  }
  0x81   :  { %v27_v7 = vld [vmem:[#allocation0] sm:$0xf] }
  0x82   :  { %30 = vst [vmem:[%s66_s1] sm:$0xf] %v27_v7 }

// kernel: face_rec_celeba_forward.5
= control target key start
LH: loop header
LB: loop body
LE: loop exit
PB: predicated region body
PF: predicated region fallthrough
CT: control target
= control target key end

     0   :  { %v2195_v0 = vmov 0   ;;  %vm1745_vm0 = vcmask 523264   ;;  %s3188_s1 = inlined_call_operand.vmem [shape: bf16[512,64], index: 1, kind: input, shape index: {}]   ;;  %s3189_s0 = inlined_call_operand.vmem [shape: bf16[512,512], index: 0, kind: input, shape index: {}]   ;;  %s3190_s2 = inlined_call_operand.vmem [shape: f32[512,64], index: 2, kind: input, shape index: {}]   ;;  %s3191_s3 = inlined_call_operand.vmem [shape: f32[512,64], index: 3, kind: output, shape index: {}]  }
   0x1   :  { %1103 = vmatprep.subr.bf16.mxu0 %v2195_v0  ;;  %1392 = vmatprep.subr.bf16.mxu1 %v2195_v0  ;;  %v1975_v1 = vld [vmem:[%s3188_s1 + $0x38] sm:$0xff]   ;;  %v1977_v3 = vld [vmem:[%s3188_s1 + $0x30] sm:$0xff]   ;;  %v1979_v5 = vld [vmem:[%s3188_s1 + $0x28] sm:$0xff]  }
   0x2   :  { %v1976_v2 = vld [vmem:[%s3188_s1 + $0xb8] sm:$0xff]   ;;  %1104 = vmatpush1.bf16.msra.mxu0 %v1975_v1  ;;  %v1978_v4 = vld [vmem:[%s3188_s1 + $0xb0] sm:$0xff]   ;;  %v1980_v6 = vld [vmem:[%s3188_s1 + $0xa8] sm:$0xff]  }
   0x3   :  { %1393 = vmatpush1.bf16.msra.mxu1 %v1976_v2  ;;  %1105 = vmatprep.subr.bf16.mxu0 %v2195_v0  ;;  %v1981_v7 = vld [vmem:[%s3188_s1 + $0x20] sm:$0xff]   ;;  %v1983_v9 = vld [vmem:[%s3188_s1 + $0x18] sm:$0xff]   ;;  %v1985_v11 = vld [vmem:[%s3188_s1 + $0x10] sm:$0xff]  }
   0x4   :  { %1394 = vmatprep.subr.bf16.mxu1 %v2195_v0  ;;  %v1982_v8 = vld [vmem:[%s3188_s1 + $0xa0] sm:$0xff]   ;;  %v1984_v10 = vld [vmem:[%s3188_s1 + $0x98] sm:$0xff]   ;;  %v1986_v12 = vld [vmem:[%s3188_s1 + $0x90] sm:$0xff]  }
   0x5   :  { %v1987_v13 = vld [vmem:[%s3188_s1 + $0x8] sm:$0xff]   ;;  %v1989_v15 = vld [vmem:[%s3188_s1] sm:$0xff]   ;;  %v1991_v17 = vld [vmem:[%s3188_s1 + $0x78] sm:$0xff]  }
   0x6   :  { %1106 = vmatpush1.bf16.msra.mxu0 %v1977_v3  ;;  %v1988_v14 = vld [vmem:[%s3188_s1 + $0x88] sm:$0xff]   ;;  %v1990_v16 = vld [vmem:[%s3188_s1 + $0x80] sm:$0xff]   ;;  %v1992_v18 = vld [vmem:[%s3188_s1 + $0xf8] sm:$0xff]  }
   0x7   :  { %1395 = vmatpush1.bf16.msra.mxu1 %v1978_v4  ;;  %1107 = vmatprep.subr.bf16.mxu0 %v2195_v0  ;;  %v2009_v19 = vld [vmem:[%s3189_s0 + $0x4] ss:$16 sps:$4 sm:$0xff]   ;;  %v2012_v21 = vld [vmem:[%s3189_s0 + $0xc] ss:$16 sps:$4 sm:$0xff]   ;;  %v2007_v35 = vld [vmem:[%s3189_s0] ss:$16 sps:$4 sm:$0xff]  }
   0x8   :  { %1396 = vmatprep.subr.bf16.mxu1 %v2195_v0  ;;  %v1993_v20 = vld [vmem:[%s3188_s1 + $0x70] sm:$0xff]   ;;  %1135 = vmatprep.mubr.bf16.mxu0 %v2009_v19  ;;  %v1995_v23 = vld [vmem:[%s3188_s1 + $0x68] sm:$0xff]   ;;  %v1997_v25 = vld [vmem:[%s3188_s1 + $0x60] sm:$0xff]  }
   0x9   :  { %v1994_v22 = vld [vmem:[%s3188_s1 + $0xf0] sm:$0xff]   ;;  %1424 = vmatprep.mubr.bf16.mxu1 %v2012_v21  ;;  %v1996_v24 = vld [vmem:[%s3188_s1 + $0xe8] sm:$0xff]   ;;  %v1998_v26 = vld [vmem:[%s3188_s1 + $0xe0] sm:$0xff]  }
   0xa   :  { %1108 = vmatpush1.bf16.msra.mxu0 %v1979_v5  ;;  %v1999_v27 = vld [vmem:[%s3188_s1 + $0x58] sm:$0xff]   ;;  %v2001_v29 = vld [vmem:[%s3188_s1 + $0x50] sm:$0xff]   ;;  %v2003_v31 = vld [vmem:[%s3188_s1 + $0x48] sm:$0xff]  }
   0xb   :  { %1397 = vmatpush1.bf16.msra.mxu1 %v1980_v6  ;;  %1109 = vmatprep.subr.bf16.mxu0 %v2195_v0  ;;  %v2000_v28 = vld [vmem:[%s3188_s1 + $0xd8] sm:$0xff]   ;;  %v2002_v30 = vld [vmem:[%s3188_s1 + $0xd0] sm:$0xff]   ;;  %v2004_v32 = vld [vmem:[%s3188_s1 + $0xc8] sm:$0xff]  }
   0xc   :  { %1398 = vmatprep.subr.bf16.mxu1 %v2195_v0  ;;  %v2005_v33 = vld [vmem:[%s3188_s1 + $0x40] sm:$0xff]   ;;  %v2010_v36 = vld [vmem:[%s3189_s0 + $0x8] ss:$16 sps:$4 sm:$0xff]   ;;  %v2015_v38 = vld [vmem:[%s3189_s0 + $0x2c] ss:$16 sps:$4 sm:$0xff]  }
   0xd   :  { %v2006_v34 = vld [vmem:[%s3188_s1 + $0xc0] sm:$0xff]   ;;  %v2018_v40 = vld [vmem:[%s3189_s0 + $0x28] ss:$16 sps:$4 sm:$0xff]   ;;  %v2021_v42 = vld [vmem:[%s3189_s0 + $0x4c] ss:$16 sps:$4 sm:$0xff]  }
   0xe   :  { %1110 = vmatpush1.bf16.msra.mxu0 %v1981_v7  ;;  %v2013_v37 = vld [vmem:[%s3189_s0 + $0x24] ss:$16 sps:$4 sm:$0xff]   ;;  %v2017_v39 = vld [vmem:[%s3189_s0 + $0x20] ss:$16 sps:$4 sm:$0xff]   ;;  %v2024_v44 = vld [vmem:[%s3189_s0 + $0x48] ss:$16 sps:$4 sm:$0xff]  }
   0xf   :  { %1399 = vmatpush1.bf16.msra.mxu1 %v1982_v8  ;;  %1111 = vmatprep.subr.bf16.mxu0 %v2195_v0  ;;  %v2019_v41 = vld [vmem:[%s3189_s0 + $0x44] ss:$16 sps:$4 sm:$0xff]   ;;  %v2023_v43 = vld [vmem:[%s3189_s0 + $0x40] ss:$16 sps:$4 sm:$0xff]   ;;  %v2027_v46 = vld [vmem:[%s3189_s0 + $0x6c] ss:$16 sps:$4 sm:$0xff]  }
  0x10   :  { %1400 = vmatprep.subr.bf16.mxu1 %v2195_v0  ;;  %v2025_v45 = vld [vmem:[%s3189_s0 + $0x64] ss:$16 sps:$4 sm:$0xff]   ;;  %v2029_v47 = vld [vmem:[%s3189_s0 + $0x60] ss:$16 sps:$4 sm:$0xff]   ;;  %v2030_v48 = vld [vmem:[%s3189_s0 + $0x68] ss:$16 sps:$4 sm:$0xff]  }
  0x11   :  { %v2031_v49 = vld [vmem:[%s3189_s0 + $0x84] ss:$16 sps:$4 sm:$0xff]   ;;  %v2033_v50 = vld [vmem:[%s3189_s0 + $0x8c] ss:$16 sps:$4 sm:$0xff]   ;;  %v2035_v51 = vld [vmem:[%s3189_s0 + $0x80] ss:$16 sps:$4 sm:$0xff]  }
  0x12   :  { %1112 = vmatpush1.bf16.msra.mxu0 %v1983_v9  ;;  %v2036_v52 = vld [vmem:[%s3189_s0 + $0x88] ss:$16 sps:$4 sm:$0xff]   ;;  %v2037_v53 = vld [vmem:[%s3189_s0 + $0xa4] ss:$16 sps:$4 sm:$0xff]   ;;  %v2039_v54 = vld [vmem:[%s3189_s0 + $0xac] ss:$16 sps:$4 sm:$0xff]  }
  0x13   :  { %1401 = vmatpush1.bf16.msra.mxu1 %v1984_v10  ;;  %1113 = vmatprep.subr.bf16.mxu0 %v2195_v0  ;;  %v2041_v55 = vld [vmem:[%s3189_s0 + $0xa0] ss:$16 sps:$4 sm:$0xff]   ;;  %v2042_v56 = vld [vmem:[%s3189_s0 + $0xa8] ss:$16 sps:$4 sm:$0xff]   ;;  %v2043_v57 = vld [vmem:[%s3189_s0 + $0xc4] ss:$16 sps:$4 sm:$0xff]  }
  0x14   :  { %1402 = vmatprep.subr.bf16.mxu1 %v2195_v0  ;;  %v2045_v58 = vld [vmem:[%s3189_s0 + $0xcc] ss:$16 sps:$4 sm:$0xff]   ;;  %v2047_v59 = vld [vmem:[%s3189_s0 + $0xc0] ss:$16 sps:$4 sm:$0xff]   ;;  %v2048_v60 = vld [vmem:[%s3189_s0 + $0xc8] ss:$16 sps:$4 sm:$0xff]  }
  0x15   :  { %v2049_v61 = vld [vmem:[%s3189_s0 + $0xe4] ss:$16 sps:$4 sm:$0xff]   ;;  %v2051_v62 = vld [vmem:[%s3189_s0 + $0xec] ss:$16 sps:$4 sm:$0xff]   ;;  %v2053_v63 = vld [vmem:[%s3189_s0 + $0xe0] ss:$16 sps:$4 sm:$0xff]  }
  0x16   :  { %1114 = vmatpush1.bf16.msra.mxu0 %v1985_v11  ;;  %v2055_v1 = vld [vmem:[%s3189_s0 + $0x104] ss:$16 sps:$4 sm:$0xff]   ;;  %v2057_v2 = vld [vmem:[%s3189_s0 + $0x10c] ss:$16 sps:$4 sm:$0xff]   ;;  %v2059_v3 = vld [vmem:[%s3189_s0 + $0x100] ss:$16 sps:$4 sm:$0xff]  }
  0x17   :  { %1403 = vmatpush1.bf16.msra.mxu1 %v1986_v12  ;;  %1115 = vmatprep.subr.bf16.mxu0 %v2195_v0  ;;  %v2060_v4 = vld [vmem:[%s3189_s0 + $0x108] ss:$16 sps:$4 sm:$0xff]   ;;  %v2061_v5 = vld [vmem:[%s3189_s0 + $0x124] ss:$16 sps:$4 sm:$0xff]   ;;  %v2063_v6 = vld [vmem:[%s3189_s0 + $0x12c] ss:$16 sps:$4 sm:$0xff]  }
  0x18   :  { %1404 = vmatprep.subr.bf16.mxu1 %v2195_v0  ;;  %v2065_v7 = vld [vmem:[%s3189_s0 + $0x120] ss:$16 sps:$4 sm:$0xff]   ;;  %v2066_v8 = vld [vmem:[%s3189_s0 + $0x128] ss:$16 sps:$4 sm:$0xff]   ;;  %v2067_v9 = vld [vmem:[%s3189_s0 + $0x144] ss:$16 sps:$4 sm:$0xff]  }
  0x19   :  { %v2069_v10 = vld [vmem:[%s3189_s0 + $0x14c] ss:$16 sps:$4 sm:$0xff]   ;;  %v2071_v11 = vld [vmem:[%s3189_s0 + $0x140] ss:$16 sps:$4 sm:$0xff]   ;;  %v2072_v12 = vld [vmem:[%s3189_s0 + $0x148] ss:$16 sps:$4 sm:$0xff]  }
  0x1a   :  { %1116 = vmatpush1.bf16.msra.mxu0 %v1987_v13  ;;  %v2073_v13 = vld [vmem:[%s3189_s0 + $0x164] ss:$16 sps:$4 sm:$0xff]   ;;  %v2083_v19 = vld [vmem:[%s3189_s0 + $0x180] ss:$16 sps:$4 sm:$0xff]  }
  0x1b   :  { %1405 = vmatpush1.bf16.msra.mxu1 %v1988_v14  ;;  %1117 = vmatprep.subr.bf16.mxu0 %v2195_v0  ;;  %v2075_v14 = vld [vmem:[%s3189_s0 + $0x16c] ss:$16 sps:$4 sm:$0xff]   ;;  %v2085_v21 = vld [vmem:[%s3189_s0 + $0x1a4] ss:$16 sps:$4 sm:$0xff]  }
  0x1c   :  { %1406 = vmatprep.subr.bf16.mxu1 %v2195_v0 }
  0x1e   :  { %1118 = vmatpush1.bf16.msra.mxu0 %v1989_v15  ;;  %v2077_v15 = vld [vmem:[%s3189_s0 + $0x160] ss:$16 sps:$4 sm:$0xff]  }
  0x1f   :  { %1407 = vmatpush1.bf16.msra.mxu1 %v1990_v16  ;;  %1119 = vmatprep.subr.bf16.mxu0 %v2195_v0  ;;  %v2078_v16 = vld [vmem:[%s3189_s0 + $0x168] ss:$16 sps:$4 sm:$0xff]  }
  0x20   :  { %1408 = vmatprep.subr.bf16.mxu1 %v2195_v0 }
  0x22   :  { %1120 = vmatpush2.bf16.msra.mxu0 %v1991_v17  ;;  %v2079_v17 = vld [vmem:[%s3189_s0 + $0x184] ss:$16 sps:$4 sm:$0xff]  }
  0x23   :  { %1409 = vmatpush2.bf16.msra.mxu1 %v1992_v18  ;;  %1121 = vmatprep.subr.bf16.mxu0 %v2195_v0  ;;  %v2081_v18 = vld [vmem:[%s3189_s0 + $0x18c] ss:$16 sps:$4 sm:$0xff]  }
  0x24   :  { %1410 = vmatprep.subr.bf16.mxu1 %v2195_v0 }
  0x26   :  { %1122 = vmatpush2.bf16.msra.mxu0 %v1993_v20  ;;  %v2084_v20 = vld [vmem:[%s3189_s0 + $0x188] ss:$16 sps:$4 sm:$0xff]  }
  0x27   :  { %1411 = vmatpush2.bf16.msra.mxu1 %v1994_v22  ;;  %1123 = vmatprep.subr.bf16.mxu0 %v2195_v0  ;;  %v2087_v22 = vld [vmem:[%s3189_s0 + $0x1ac] ss:$16 sps:$4 sm:$0xff]  }
  0x28   :  { %1412 = vmatprep.subr.bf16.mxu1 %v2195_v0 }
  0x2a   :  { %1124 = vmatpush2.bf16.msra.mxu0 %v1995_v23  ;;  %v2089_v23 = vld [vmem:[%s3189_s0 + $0x1a0] ss:$16 sps:$4 sm:$0xff]  }
  0x2b   :  { %1413 = vmatpush2.bf16.msra.mxu1 %v1996_v24  ;;  %1125 = vmatprep.subr.bf16.mxu0 %v2195_v0  ;;  %v2090_v24 = vld [vmem:[%s3189_s0 + $0x1a8] ss:$16 sps:$4 sm:$0xff]  }
  0x2c   :  { %1414 = vmatprep.subr.bf16.mxu1 %v2195_v0 }
  0x2e   :  { %1126 = vmatpush2.bf16.msra.mxu0 %v1997_v25  ;;  %v2091_v25 = vld [vmem:[%s3189_s0 + $0x1c4] ss:$16 sps:$4 sm:$0xff]  }
  0x2f   :  { %1415 = vmatpush2.bf16.msra.mxu1 %v1998_v26  ;;  %1127 = vmatprep.subr.bf16.mxu0 %v2195_v0  ;;  %v2093_v26 = vld [vmem:[%s3189_s0 + $0x1cc] ss:$16 sps:$4 sm:$0xff]  }
  0x30   :  { %1416 = vmatprep.subr.bf16.mxu1 %v2195_v0 }
  0x32   :  { %1128 = vmatpush2.bf16.msra.mxu0 %v1999_v27  ;;  %v2095_v27 = vld [vmem:[%s3189_s0 + $0x1c0] ss:$16 sps:$4 sm:$0xff]  }
  0x33   :  { %1417 = vmatpush2.bf16.msra.mxu1 %v2000_v28  ;;  %1129 = vmatprep.subr.bf16.mxu0 %v2195_v0  ;;  %v2096_v28 = vld [vmem:[%s3189_s0 + $0x1c8] ss:$16 sps:$4 sm:$0xff]  }
  0x34   :  { %1418 = vmatprep.subr.bf16.mxu1 %v2195_v0 }
  0x36   :  { %1130 = vmatpush2.bf16.msra.mxu0 %v2001_v29  ;;  %v2097_v29 = vld [vmem:[%s3189_s0 + $0x1e4] ss:$16 sps:$4 sm:$0xff]  }
  0x37   :  { %1419 = vmatpush2.bf16.msra.mxu1 %v2002_v30  ;;  %1131 = vmatprep.subr.bf16.mxu0 %v2195_v0  ;;  %v2099_v30 = vld [vmem:[%s3189_s0 + $0x1ec] ss:$16 sps:$4 sm:$0xff]  }
  0x38   :  { %1420 = vmatprep.subr.bf16.mxu1 %v2195_v0 }
  0x3a   :  { %1132 = vmatpush2.bf16.msra.mxu0 %v2003_v31  ;;  %v2101_v31 = vld [vmem:[%s3189_s0 + $0x1e0] ss:$16 sps:$4 sm:$0xff]  }
  0x3b   :  { %1421 = vmatpush2.bf16.msra.mxu1 %v2004_v32  ;;  %1133 = vmatprep.subr.bf16.mxu0 %v2195_v0  ;;  %v2102_v32 = vld [vmem:[%s3189_s0 + $0x1e8] ss:$16 sps:$4 sm:$0xff]  }
  0x3c   :  { %1422 = vmatprep.subr.bf16.mxu1 %v2195_v0  ;;  %v2054_v0 = vld [vmem:[%s3189_s0 + $0xe8] ss:$16 sps:$4 sm:$0xff]  }
  0x3e   :  { %1134 = vmatpush2.bf16.msra.mxu0 %v2005_v33  ;;  %v2103_v33 = vld [vmem:[%s3189_s0 + $0x204] ss:$16 sps:$4 sm:$0xff]  }
  0x3f   :  { %1423 = vmatpush2.bf16.msra.mxu1 %v2006_v34  ;;  %v2105_v34 = vld [vmem:[%s3189_s0 + $0x20c] ss:$16 sps:$4 sm:$0xff]  }
  0x41   :  { %1136 = vmatmul.mubr.bf16.vlgmr.msra.gmra.mxu0 %v2007_v35  ;;  %v2107_v35 = vld [vmem:[%s3189_s0 + $0x200] ss:$16 sps:$4 sm:$0xff]  }
  0x42   :  { %1425 = vmatmul.mubr.bf16.vlgmr.msra.gmra.mxu1 %v2010_v36  ;;  %1143 = vmatprep.mubr.bf16.mxu0 %v2013_v37  ;;  %v2108_v36 = vld [vmem:[%s3189_s0 + $0x208] ss:$16 sps:$4 sm:$0xff]   ;;  %v2109_v37 = vld [vmem:[%s3189_s0 + $0x224] ss:$16 sps:$4 sm:$0xff]  }
  0x43   :  { %1432 = vmatprep.mubr.bf16.mxu1 %v2015_v38  ;;  %v2111_v38 = vld [vmem:[%s3189_s0 + $0x22c] ss:$16 sps:$4 sm:$0xff]  }
  0x49   :  { %1144 = vmatmul.mubr.bf16.gmra.mxu0 %v2017_v39  ;;  %v2113_v39 = vld [vmem:[%s3189_s0 + $0x220] ss:$16 sps:$4 sm:$0xff]  }
  0x4a   :  { %1433 = vmatmul.mubr.bf16.gmra.mxu1 %v2018_v40  ;;  %1151 = vmatprep.mubr.bf16.mxu0 %v2019_v41  ;;  %v2114_v40 = vld [vmem:[%s3189_s0 + $0x228] ss:$16 sps:$4 sm:$0xff]   ;;  %v2115_v41 = vld [vmem:[%s3189_s0 + $0x244] ss:$16 sps:$4 sm:$0xff]  }
  0x4b   :  { %1440 = vmatprep.mubr.bf16.mxu1 %v2021_v42  ;;  %v2117_v42 = vld [vmem:[%s3189_s0 + $0x24c] ss:$16 sps:$4 sm:$0xff]  }
  0x51   :  { %1152 = vmatmul.mubr.bf16.gmra.mxu0 %v2023_v43  ;;  %v2119_v43 = vld [vmem:[%s3189_s0 + $0x240] ss:$16 sps:$4 sm:$0xff]  }
  0x52   :  { %1441 = vmatmul.mubr.bf16.gmra.mxu1 %v2024_v44  ;;  %1159 = vmatprep.mubr.bf16.mxu0 %v2025_v45  ;;  %v2120_v44 = vld [vmem:[%s3189_s0 + $0x248] ss:$16 sps:$4 sm:$0xff]   ;;  %v2121_v45 = vld [vmem:[%s3189_s0 + $0x264] ss:$16 sps:$4 sm:$0xff]  }
  0x53   :  { %1448 = vmatprep.mubr.bf16.mxu1 %v2027_v46  ;;  %v2123_v46 = vld [vmem:[%s3189_s0 + $0x26c] ss:$16 sps:$4 sm:$0xff]  }
  0x59   :  { %1160 = vmatmul.mubr.bf16.gmra.mxu0 %v2029_v47  ;;  %v2125_v47 = vld [vmem:[%s3189_s0 + $0x260] ss:$16 sps:$4 sm:$0xff]  }
  0x5a   :  { %1449 = vmatmul.mubr.bf16.gmra.mxu1 %v2030_v48  ;;  %1167 = vmatprep.mubr.bf16.mxu0 %v2031_v49  ;;  %v2126_v48 = vld [vmem:[%s3189_s0 + $0x268] ss:$16 sps:$4 sm:$0xff]   ;;  %v2127_v49 = vld [vmem:[%s3189_s0 + $0x284] ss:$16 sps:$4 sm:$0xff]  }
  0x5b   :  { %1456 = vmatprep.mubr.bf16.mxu1 %v2033_v50  ;;  %v2129_v50 = vld [vmem:[%s3189_s0 + $0x28c] ss:$16 sps:$4 sm:$0xff]  }
  0x61   :  { %1168 = vmatmul.mubr.bf16.gmra.mxu0 %v2035_v51  ;;  %v2131_v51 = vld [vmem:[%s3189_s0 + $0x280] ss:$16 sps:$4 sm:$0xff]  }
  0x62   :  { %1457 = vmatmul.mubr.bf16.gmra.mxu1 %v2036_v52  ;;  %1175 = vmatprep.mubr.bf16.mxu0 %v2037_v53  ;;  %v2132_v52 = vld [vmem:[%s3189_s0 + $0x288] ss:$16 sps:$4 sm:$0xff]   ;;  %v2133_v53 = vld [vmem:[%s3189_s0 + $0x2a4] ss:$16 sps:$4 sm:$0xff]  }
  0x63   :  { %1464 = vmatprep.mubr.bf16.mxu1 %v2039_v54  ;;  %v2135_v54 = vld [vmem:[%s3189_s0 + $0x2ac] ss:$16 sps:$4 sm:$0xff]  }
  0x69   :  { %1176 = vmatmul.mubr.bf16.gmra.mxu0 %v2041_v55  ;;  %v2137_v55 = vld [vmem:[%s3189_s0 + $0x2a0] ss:$16 sps:$4 sm:$0xff]  }
  0x6a   :  { %1465 = vmatmul.mubr.bf16.gmra.mxu1 %v2042_v56  ;;  %1183 = vmatprep.mubr.bf16.mxu0 %v2043_v57  ;;  %v2138_v56 = vld [vmem:[%s3189_s0 + $0x2a8] ss:$16 sps:$4 sm:$0xff]   ;;  %v2139_v57 = vld [vmem:[%s3189_s0 + $0x2c4] ss:$16 sps:$4 sm:$0xff]  }
  0x6b   :  { %1472 = vmatprep.mubr.bf16.mxu1 %v2045_v58  ;;  %v2141_v58 = vld [vmem:[%s3189_s0 + $0x2cc] ss:$16 sps:$4 sm:$0xff]  }
  0x71   :  { %1184 = vmatmul.mubr.bf16.gmra.mxu0 %v2047_v59  ;;  %v2143_v59 = vld [vmem:[%s3189_s0 + $0x2c0] ss:$16 sps:$4 sm:$0xff]  }
  0x72   :  { %1473 = vmatmul.mubr.bf16.gmra.mxu1 %v2048_v60  ;;  %1191 = vmatprep.mubr.bf16.mxu0 %v2049_v61  ;;  %v2144_v60 = vld [vmem:[%s3189_s0 + $0x2c8] ss:$16 sps:$4 sm:$0xff]   ;;  %v2145_v61 = vld [vmem:[%s3189_s0 + $0x2e4] ss:$16 sps:$4 sm:$0xff]  }
  0x73   :  { %1480 = vmatprep.mubr.bf16.mxu1 %v2051_v62  ;;  %v2147_v62 = vld [vmem:[%s3189_s0 + $0x2ec] ss:$16 sps:$4 sm:$0xff]  }
  0x79   :  { %1192 = vmatmul.mubr.bf16.gmra.mxu0 %v2053_v63  ;;  %v2149_v63 = vld [vmem:[%s3189_s0 + $0x2e0] ss:$16 sps:$4 sm:$0xff]  }
  0x7a   :  { %1481 = vmatmul.mubr.bf16.gmra.mxu1 %v2054_v0  ;;  %1199 = vmatprep.mubr.bf16.mxu0 %v2055_v1  ;;  %v2150_v0 = vld [vmem:[%s3189_s0 + $0x2e8] ss:$16 sps:$4 sm:$0xff]   ;;  %v2151_v1 = vld [vmem:[%s3189_s0 + $0x304] ss:$16 sps:$4 sm:$0xff]  }
  0x7b   :  { %1488 = vmatprep.mubr.bf16.mxu1 %v2057_v2  ;;  %v2153_v2 = vld [vmem:[%s3189_s0 + $0x30c] ss:$16 sps:$4 sm:$0xff]  }
  0x81   :  { %1200 = vmatmul.mubr.bf16.gmra.mxu0 %v2059_v3  ;;  %v112_v3 = vld [vmem:[%s3189_s0 + $0x308] sm:$0xff] }
  0x82   :  { %1489 = vmatmul.mubr.bf16.gmra.mxu1 %v2060_v4  ;;  %1207 = vmatprep.mubr.bf16.mxu0 %v2061_v5  ;;  %v114_v4 = vld [vmem:[%s3189_s0 + $0x318] sm:$0xff]  ;;  %v2155_v5 = vld [vmem:[%s3189_s0 + $0x300] ss:$16 sps:$4 sm:$0xff]  }
  0x83   :  { %1496 = vmatprep.mubr.bf16.mxu1 %v2063_v6  ;;  %v1912_v6 = vcombine.low %v112_v3, %v114_v4 }
  0x89   :  { %1208 = vmatmul.mubr.bf16.gmra.mxu0 %v2065_v7  ;;  %v2156_v7 = vld [vmem:[%s3189_s0 + $0x324] ss:$16 sps:$4 sm:$0xff]  }
  0x8a   :  { %1497 = vmatmul.mubr.bf16.gmra.mxu1 %v2066_v8  ;;  %1215 = vmatprep.mubr.bf16.mxu0 %v2067_v9  ;;  %v207_v8 = vld [vmem:[%s3190_s2] sm:$0xff]  ;;  %v2158_v9 = vld [vmem:[%s3189_s0 + $0x32c] ss:$16 sps:$4 sm:$0xff]  }
  0x8b   :  { %1504 = vmatprep.mubr.bf16.mxu1 %v2069_v10 }
  0x91   :  { %1216 = vmatmul.mubr.bf16.gmra.mxu0 %v2071_v11 }
  0x92   :  { %1505 = vmatmul.mubr.bf16.gmra.mxu1 %v2072_v12  ;;  %1223 = vmatprep.mubr.bf16.mxu0 %v2073_v13 }
  0x93   :  { %1512 = vmatprep.mubr.bf16.mxu1 %v2075_v14  ;;  %v208_v14 = vld [vmem:[%s3190_s2 + $0x8] sm:$0xff] }
  0x99   :  { %1224 = vmatmul.mubr.bf16.gmra.mxu0 %v2077_v15  ;;  %v116_v15 = vld [vmem:[%s3189_s0 + $0x328] sm:$0xff] }
  0x9a   :  { %1513 = vmatmul.mubr.bf16.gmra.mxu1 %v2078_v16  ;;  %1231 = vmatprep.mubr.bf16.mxu0 %v2079_v17  ;;  %v118_v16 = vld [vmem:[%s3189_s0 + $0x338] sm:$0xff] }
  0x9b   :  { %1520 = vmatprep.mubr.bf16.mxu1 %v2081_v18 }
  0xa1   :  { %1232 = vmatmul.mubr.bf16.gmra.mxu0 %v2083_v19 }
  0xa2   :  { %1521 = vmatmul.mubr.bf16.gmra.mxu1 %v2084_v20  ;;  %1239 = vmatprep.mubr.bf16.mxu0 %v2085_v21  ;;  %v2160_v20 = vld [vmem:[%s3189_s0 + $0x320] ss:$16 sps:$4 sm:$0xff]  }
  0xa3   :  { %1528 = vmatprep.mubr.bf16.mxu1 %v2087_v22 }
  0xa9   :  { %1240 = vmatmul.mubr.bf16.gmra.mxu0 %v2089_v23 }
  0xaa   :  { %1529 = vmatmul.mubr.bf16.gmra.mxu1 %v2090_v24  ;;  %1247 = vmatprep.mubr.bf16.mxu0 %v2091_v25  ;;  %v1916_v24 = vcombine.low %v116_v15, %v118_v16  ;;  %v2161_v25 = vld [vmem:[%s3189_s0 + $0x344] ss:$16 sps:$4 sm:$0xff]   ;;  %v214_v16 = vld [vmem:[%s3190_s2 + $0x38] sm:$0xff] }
  0xab   :  { %1536 = vmatprep.mubr.bf16.mxu1 %v2093_v26 }
  0xb1   :  { %1248 = vmatmul.mubr.bf16.gmra.mxu0 %v2095_v27  ;;  %v209_v27 = vld [vmem:[%s3190_s2 + $0x10] sm:$0xff] }
  0xb2   :  { %1537 = vmatmul.mubr.bf16.gmra.mxu1 %v2096_v28  ;;  %1255 = vmatprep.mubr.bf16.mxu0 %v2097_v29  ;;  %v2163_v28 = vld [vmem:[%s3189_s0 + $0x34c] ss:$16 sps:$4 sm:$0xff]  }
  0xb3   :  { %1544 = vmatprep.mubr.bf16.mxu1 %v2099_v30 }
  0xb9   :  { %1256 = vmatmul.mubr.bf16.gmra.mxu0 %v2101_v31 }
  0xba   :  { %1545 = vmatmul.mubr.bf16.gmra.mxu1 %v2102_v32  ;;  %1263 = vmatprep.mubr.bf16.mxu0 %v2103_v33 }
  0xbb   :  { %1552 = vmatprep.mubr.bf16.mxu1 %v2105_v34 }
  0xc1   :  { %1264 = vmatmul.mubr.bf16.gmra.mxu0 %v2107_v35 }
  0xc2   :  { %1553 = vmatmul.mubr.bf16.gmra.mxu1 %v2108_v36  ;;  %1271 = vmatprep.mubr.bf16.mxu0 %v2109_v37  ;;  %v210_v36 = vld [vmem:[%s3190_s2 + $0x18] sm:$0xff]  ;;  %v120_v37 = vld [vmem:[%s3189_s0 + $0x348] sm:$0xff] }
  0xc3   :  { %1560 = vmatprep.mubr.bf16.mxu1 %v2111_v38  ;;  %v122_v38 = vld [vmem:[%s3189_s0 + $0x358] sm:$0xff] }
  0xc9   :  { %1272 = vmatmul.mubr.bf16.gmra.mxu0 %v2113_v39 }
  0xca   :  { %1561 = vmatmul.mubr.bf16.gmra.mxu1 %v2114_v40  ;;  %1279 = vmatprep.mubr.bf16.mxu0 %v2115_v41 }
  0xcb   :  { %1568 = vmatprep.mubr.bf16.mxu1 %v2117_v42  ;;  %v2165_v42 = vld [vmem:[%s3189_s0 + $0x340] ss:$16 sps:$4 sm:$0xff]  }
  0xd1   :  { %1280 = vmatmul.mubr.bf16.gmra.mxu0 %v2119_v43 }
  0xd2   :  { %1569 = vmatmul.mubr.bf16.gmra.mxu1 %v2120_v44  ;;  %1287 = vmatprep.mubr.bf16.mxu0 %v2121_v45 }
  0xd3   :  { %1576 = vmatprep.mubr.bf16.mxu1 %v2123_v46  ;;  %v1920_v46 = vcombine.low %v120_v37, %v122_v38 }
  0xd9   :  { %1288 = vmatmul.mubr.bf16.gmra.mxu0 %v2125_v47  ;;  %v2166_v47 = vld [vmem:[%s3189_s0 + $0x364] ss:$16 sps:$4 sm:$0xff]  }
  0xda   :  { %1577 = vmatmul.mubr.bf16.gmra.mxu1 %v2126_v48  ;;  %1295 = vmatprep.mubr.bf16.mxu0 %v2127_v49  ;;  %v211_v49 = vld [vmem:[%s3190_s2 + $0x20] sm:$0xff] }
  0xdb   :  { %1584 = vmatprep.mubr.bf16.mxu1 %v2129_v50  ;;  %v2168_v50 = vld [vmem:[%s3189_s0 + $0x36c] ss:$16 sps:$4 sm:$0xff]  }
  0xe1   :  { %1296 = vmatmul.mubr.bf16.gmra.mxu0 %v2131_v51 }
  0xe2   :  { %1585 = vmatmul.mubr.bf16.gmra.mxu1 %v2132_v52  ;;  %1303 = vmatprep.mubr.bf16.mxu0 %v2133_v53 }
  0xe3   :  { %1592 = vmatprep.mubr.bf16.mxu1 %v2135_v54 }
  0xe9   :  { %1304 = vmatmul.mubr.bf16.gmra.mxu0 %v2137_v55 }
  0xea   :  { %1593 = vmatmul.mubr.bf16.gmra.mxu1 %v2138_v56  ;;  %1311 = vmatprep.mubr.bf16.mxu0 %v2139_v57 }
  0xeb   :  { %1600 = vmatprep.mubr.bf16.mxu1 %v2141_v58  ;;  %v212_v58 = vld [vmem:[%s3190_s2 + $0x28] sm:$0xff] }
  0xf1   :  { %1312 = vmatmul.mubr.bf16.gmra.mxu0 %v2143_v59  ;;  %v124_v59 = vld [vmem:[%s3189_s0 + $0x368] sm:$0xff] }
  0xf2   :  { %1601 = vmatmul.mubr.bf16.gmra.mxu1 %v2144_v60  ;;  %1319 = vmatprep.mubr.bf16.mxu0 %v2145_v61  ;;  %v126_v60 = vld [vmem:[%s3189_s0 + $0x378] sm:$0xff] }
  0xf3   :  { %1608 = vmatprep.mubr.bf16.mxu1 %v2147_v62  ;;  %v1924_v4 = vcombine.low %v124_v59, %v126_v60  ;;  %v2183_v60 = vld [vmem:[%s3189_s0 + $0x3c0] ss:$16 sps:$4 sm:$0xff]  }
  0xf9   :  { %1320 = vmatmul.mubr.bf16.gmra.mxu0 %v2149_v63 }
  0xfa   :  { %1609 = vmatmul.mubr.bf16.gmra.mxu1 %v2150_v0  ;;  %1327 = vmatprep.mubr.bf16.mxu0 %v2151_v1  ;;  %v2170_v0 = vld [vmem:[%s3189_s0 + $0x360] ss:$16 sps:$4 sm:$0xff]  }
  0xfb   :  { %1616 = vmatprep.mubr.bf16.mxu1 %v2153_v2 }
 0x101   :  { %v1137_v10 = vpop.f32.mrf.mxu0  ;;  %1328 = vmatmul.mubr.bf16.gmra.mxu0 %v2155_v5  ;;  %v2173_v5 = vld [vmem:[%s3189_s0 + $0x384] ss:$16 sps:$4 sm:$0xff]  }
 0x102   :  { %v1138_v11 = vadd.f32 %v1137_v10, %v207_v8  ;;  %v1426_v12 = vpop.f32.mrf.mxu1  ;;  %1617 = vmatmul.mubr.bf16.gmra.mxu1 %v1912_v6  ;;  %1335 = vmatprep.mubr.bf16.mxu0 %v2156_v7  ;;  %v213_v7 = vld [vmem:[%s3190_s2 + $0x30] sm:$0xff]  ;;  %v2176_v8 = vld [vmem:[%s3189_s0 + $0x38c] ss:$16 sps:$4 sm:$0xff]  }
 0x103   :  { %v1139_v13 = vpop.f32.mrf.mxu0  ;;  %1624 = vmatprep.mubr.bf16.mxu1 %v2158_v9 }
 0x104   :  { %v1427_v17 = vadd.f32 %v1426_v12, %v1138_v11  ;;  %v1428_v18 = vpop.f32.mrf.mxu1 }
 0x105   :  { %v1140_v19 = vpop.f32.mrf.mxu0 }
 0x106   :  { %v1681_v21 = vmax.f32 %v1427_v17, 0.0  ;;  %v1141_v22 = vadd.f32 %v1140_v19, %v208_v14  ;;  %v1429_v23 = vpop.f32.mrf.mxu1 }
 0x107   :  { %v1142_v26 = vpop.f32.mrf.mxu0 }
 0x108   :  { %1746 = vst.msk [vmem:[%s3191_s3] sm:$0xff] %vm1745_vm0, %v1681_v21  ;;  %v1430_v29 = vadd.f32 %v1429_v23, %v1141_v22  ;;  %v1431_v30 = vpop.f32.mrf.mxu1 }
 0x109   :  { %v1145_v31 = vpop.f32.mrf.mxu0  ;;  %1336 = vmatmul.mubr.bf16.gmra.mxu0 %v2160_v20  ;;  %v2171_v20 = vld [vmem:[%s3189_s0 + $0x380] ss:$16 sps:$4 sm:$0xff]  }
 0x10a   :  { %v1682_v32 = vmax.f32 %v1430_v29, 0.0  ;;  %v1146_v33 = vadd.f32 %v1145_v31, %v209_v27  ;;  %v1434_v34 = vpop.f32.mrf.mxu1  ;;  %1625 = vmatmul.mubr.bf16.gmra.mxu1 %v1916_v24  ;;  %1343 = vmatprep.mubr.bf16.mxu0 %v2161_v25  ;;  %v2174_v24 = vld [vmem:[%s3189_s0 + $0x388] ss:$16 sps:$4 sm:$0xff]   ;;  %v2179_v25 = vld [vmem:[%s3189_s0 + $0x3a4] ss:$16 sps:$4 sm:$0xff]  }
 0x10b   :  { %v1147_v35 = vpop.f32.mrf.mxu0  ;;  %1632 = vmatprep.mubr.bf16.mxu1 %v2163_v28  ;;  %v215_v27 = vld [vmem:[%s3190_s2 + $0x40] sm:$0xff]  ;;  %v2182_v28 = vld [vmem:[%s3189_s0 + $0x3ac] ss:$16 sps:$4 sm:$0xff]  }
 0x10c   :  { %1747 = vst.msk [vmem:[%s3191_s3 + $0x8] sm:$0xff] %vm1745_vm0, %v1682_v32  ;;  %v1435_v39 = vadd.f32 %v1434_v34, %v1146_v33  ;;  %v1436_v40 = vpop.f32.mrf.mxu1 }
 0x10d   :  { %v1148_v41 = vpop.f32.mrf.mxu0  ;;  %v2177_v40 = vld [vmem:[%s3189_s0 + $0x3a0] ss:$16 sps:$4 sm:$0xff]  }
 0x10e   :  { %v1683_v43 = vmax.f32 %v1435_v39, 0.0  ;;  %v1149_v44 = vadd.f32 %v1148_v41, %v210_v36  ;;  %v1437_v45 = vpop.f32.mrf.mxu1  ;;  %v216_v36 = vld [vmem:[%s3190_s2 + $0x48] sm:$0xff] }
 0x10f   :  { %v1150_v48 = vpop.f32.mrf.mxu0 }
 0x110   :  { %1748 = vst.msk [vmem:[%s3191_s3 + $0x10] sm:$0xff] %vm1745_vm0, %v1683_v43  ;;  %v1438_v51 = vadd.f32 %v1437_v45, %v1149_v44  ;;  %v1439_v52 = vpop.f32.mrf.mxu1  ;;  %v2180_v44 = vld [vmem:[%s3189_s0 + $0x3a8] ss:$16 sps:$4 sm:$0xff]   ;;  %v2185_v45 = vld [vmem:[%s3189_s0 + $0x3c4] ss:$16 sps:$4 sm:$0xff]  }
 0x111   :  { %v1153_v53 = vpop.f32.mrf.mxu0  ;;  %1344 = vmatmul.mubr.bf16.gmra.mxu0 %v2165_v42  ;;  %v2188_v48 = vld [vmem:[%s3189_s0 + $0x3cc] ss:$16 sps:$4 sm:$0xff]  }
 0x112   :  { %v1684_v54 = vmax.f32 %v1438_v51, 0.0  ;;  %v1154_v55 = vadd.f32 %v1153_v53, %v211_v49  ;;  %v1442_v56 = vpop.f32.mrf.mxu1  ;;  %1633 = vmatmul.mubr.bf16.gmra.mxu1 %v1920_v46  ;;  %1351 = vmatprep.mubr.bf16.mxu0 %v2166_v47  ;;  %v217_v47 = vld [vmem:[%s3190_s2 + $0x50] sm:$0xff] }
 0x113   :  { %v1155_v57 = vpop.f32.mrf.mxu0  ;;  %1640 = vmatprep.mubr.bf16.mxu1 %v2168_v50 }
 0x114   :  { %1749 = vst.msk [vmem:[%s3191_s3 + $0x18] sm:$0xff] %vm1745_vm0, %v1684_v54  ;;  %v1443_v61 = vadd.f32 %v1442_v56, %v1154_v55  ;;  %v1444_v62 = vpop.f32.mrf.mxu1  ;;  %v218_v56 = vld [vmem:[%s3190_s2 + $0x58] sm:$0xff] }
 0x115   :  { %v1156_v63 = vpop.f32.mrf.mxu0 }
 0x116   :  { %v1685_v1 = vmax.f32 %v1443_v61, 0.0  ;;  %v1157_v2 = vadd.f32 %v1156_v63, %v212_v58  ;;  %v1445_v3 = vpop.f32.mrf.mxu1 }
 0x117   :  { %v1158_v6 = vpop.f32.mrf.mxu0 }
 0x118   :  { %1750 = vst.msk [vmem:[%s3191_s3 + $0x20] sm:$0xff] %vm1745_vm0, %v1685_v1  ;;  %v1446_v9 = vadd.f32 %v1445_v3, %v1157_v2  ;;  %v1447_v10 = vpop.f32.mrf.mxu1  ;;  %v2191_v1 = vld [vmem:[%s3189_s0 + $0x3e4] ss:$16 sps:$4 sm:$0xff]  }
 0x119   :  { %v1161_v11 = vpop.f32.mrf.mxu0  ;;  %1352 = vmatmul.mubr.bf16.gmra.mxu0 %v2170_v0  ;;  %v2186_v0 = vld [vmem:[%s3189_s0 + $0x3c8] ss:$16 sps:$4 sm:$0xff]   ;;  %v219_v3 = vld [vmem:[%s3190_s2 + $0x60] sm:$0xff] }
 0x11a   :  { %v1686_v12 = vmax.f32 %v1446_v9, 0.0  ;;  %v1162_v13 = vadd.f32 %v1161_v11, %v213_v7  ;;  %v1450_v14 = vpop.f32.mrf.mxu1  ;;  %1641 = vmatmul.mubr.bf16.gmra.mxu1 %v1924_v4  ;;  %1359 = vmatprep.mubr.bf16.mxu0 %v2173_v5  ;;  %v2194_v4 = vld [vmem:[%s3189_s0 + $0x3ec] ss:$16 sps:$4 sm:$0xff]  }
 0x11b   :  { %v1163_v15 = vpop.f32.mrf.mxu0  ;;  %1648 = vmatprep.mubr.bf16.mxu1 %v2176_v8 }
 0x11c   :  { %1751 = vst.msk [vmem:[%s3191_s3 + $0x28] sm:$0xff] %vm1745_vm0, %v1686_v12  ;;  %v1451_v17 = vadd.f32 %v1450_v14, %v1162_v13  ;;  %v1452_v18 = vpop.f32.mrf.mxu1  ;;  %v220_v12 = vld [vmem:[%s3190_s2 + $0x68] sm:$0xff] }
 0x11d   :  { %v1164_v19 = vpop.f32.mrf.mxu0 }
 0x11e   :  { %v1687_v21 = vmax.f32 %v1451_v17, 0.0  ;;  %v1165_v22 = vadd.f32 %v1164_v19, %v214_v16  ;;  %v1453_v23 = vpop.f32.mrf.mxu1  ;;  %v2189_v16 = vld [vmem:[%s3189_s0 + $0x3e0] ss:$16 sps:$4 sm:$0xff]  }
 0x11f   :  { %v1166_v26 = vpop.f32.mrf.mxu0 }
 0x120   :  { %1752 = vst.msk [vmem:[%s3191_s3 + $0x30] sm:$0xff] %vm1745_vm0, %v1687_v21  ;;  %v1454_v29 = vadd.f32 %v1453_v23, %v1165_v22  ;;  %v1455_v30 = vpop.f32.mrf.mxu1  ;;  %v221_v22 = vld [vmem:[%s3190_s2 + $0x70] sm:$0xff] }
 0x121   :  { %v1169_v31 = vpop.f32.mrf.mxu0  ;;  %1360 = vmatmul.mubr.bf16.gmra.mxu0 %v2171_v20  ;;  %v2192_v20 = vld [vmem:[%s3189_s0 + $0x3e8] ss:$16 sps:$4 sm:$0xff]  }
 0x122   :  { %v1688_v32 = vmax.f32 %v1454_v29, 0.0  ;;  %v1170_v33 = vadd.f32 %v1169_v31, %v215_v27  ;;  %v1458_v34 = vpop.f32.mrf.mxu1  ;;  %1649 = vmatmul.mubr.bf16.gmra.mxu1 %v2174_v24  ;;  %1367 = vmatprep.mubr.bf16.mxu0 %v2179_v25  ;;  %v222_v30 = vld [vmem:[%s3190_s2 + $0x78] sm:$0xff] }
 0x123   :  { %v1171_v35 = vpop.f32.mrf.mxu0  ;;  %1656 = vmatprep.mubr.bf16.mxu1 %v2182_v28 }
 0x124   :  { %1753 = vst.msk [vmem:[%s3191_s3 + $0x38] sm:$0xff] %vm1745_vm0, %v1688_v32  ;;  %v1459_v37 = vadd.f32 %v1458_v34, %v1170_v33  ;;  %v1460_v38 = vpop.f32.mrf.mxu1 }
 0x125   :  { %v1172_v39 = vpop.f32.mrf.mxu0  ;;  %v223_v38 = vld [vmem:[%s3190_s2 + $0x80] sm:$0xff] }
 0x126   :  { %v1689_v41 = vmax.f32 %v1459_v37, 0.0  ;;  %v1173_v42 = vadd.f32 %v1172_v39, %v216_v36  ;;  %v1461_v43 = vpop.f32.mrf.mxu1 }
 0x127   :  { %v1174_v46 = vpop.f32.mrf.mxu0 }
 0x128   :  { %1754 = vst.msk [vmem:[%s3191_s3 + $0x40] sm:$0xff] %vm1745_vm0, %v1689_v41  ;;  %v1462_v49 = vadd.f32 %v1461_v43, %v1173_v42  ;;  %v1463_v50 = vpop.f32.mrf.mxu1  ;;  %v224_v46 = vld [vmem:[%s3190_s2 + $0x88] sm:$0xff] }
 0x129   :  { %v1177_v51 = vpop.f32.mrf.mxu0  ;;  %1368 = vmatmul.mubr.bf16.gmra.mxu0 %v2177_v40 }
 0x12a   :  { %v1690_v52 = vmax.f32 %v1462_v49, 0.0  ;;  %v1178_v53 = vadd.f32 %v1177_v51, %v217_v47  ;;  %v1466_v54 = vpop.f32.mrf.mxu1  ;;  %1657 = vmatmul.mubr.bf16.gmra.mxu1 %v2180_v44  ;;  %1375 = vmatprep.mubr.bf16.mxu0 %v2185_v45 }
 0x12b   :  { %v1179_v55 = vpop.f32.mrf.mxu0  ;;  %1664 = vmatprep.mubr.bf16.mxu1 %v2188_v48 }
 0x12c   :  { %1755 = vst.msk [vmem:[%s3191_s3 + $0x48] sm:$0xff] %vm1745_vm0, %v1690_v52  ;;  %v1467_v57 = vadd.f32 %v1466_v54, %v1178_v53  ;;  %v1468_v58 = vpop.f32.mrf.mxu1  ;;  %v225_v54 = vld [vmem:[%s3190_s2 + $0x90] sm:$0xff] }
 0x12d   :  { %v1180_v59 = vpop.f32.mrf.mxu0 }
 0x12e   :  { %v1691_v61 = vmax.f32 %v1467_v57, 0.0  ;;  %v1181_v62 = vadd.f32 %v1180_v59, %v218_v56  ;;  %v1469_v63 = vpop.f32.mrf.mxu1 }
 0x12f   :  { %v1182_v2 = vpop.f32.mrf.mxu0 }
 0x130   :  { %1756 = vst.msk [vmem:[%s3191_s3 + $0x50] sm:$0xff] %vm1745_vm0, %v1691_v61  ;;  %v1470_v5 = vadd.f32 %v1469_v63, %v1181_v62  ;;  %v1471_v6 = vpop.f32.mrf.mxu1  ;;  %v226_v62 = vld [vmem:[%s3190_s2 + $0x98] sm:$0xff] }
 0x131   :  { %v1185_v7 = vpop.f32.mrf.mxu0  ;;  %1376 = vmatmul.mubr.bf16.gmra.mxu0 %v2183_v60  ;;  %v227_v6 = vld [vmem:[%s3190_s2 + $0xa0] sm:$0xff] }
 0x132   :  { %v1692_v8 = vmax.f32 %v1470_v5, 0.0  ;;  %v1186_v9 = vadd.f32 %v1185_v7, %v219_v3  ;;  %v1474_v10 = vpop.f32.mrf.mxu1  ;;  %1665 = vmatmul.mubr.bf16.gmra.mxu1 %v2186_v0  ;;  %1383 = vmatprep.mubr.bf16.mxu0 %v2191_v1 }
 0x133   :  { %v1187_v11 = vpop.f32.mrf.mxu0  ;;  %1672 = vmatprep.mubr.bf16.mxu1 %v2194_v4 }
 0x134   :  { %1757 = vst.msk [vmem:[%s3191_s3 + $0x58] sm:$0xff] %vm1745_vm0, %v1692_v8  ;;  %v1475_v13 = vadd.f32 %v1474_v10, %v1186_v9  ;;  %v1476_v14 = vpop.f32.mrf.mxu1 }
 0x135   :  { %v1188_v15 = vpop.f32.mrf.mxu0  ;;  %v228_v14 = vld [vmem:[%s3190_s2 + $0xa8] sm:$0xff] }
 0x136   :  { %v1693_v17 = vmax.f32 %v1475_v13, 0.0  ;;  %v1189_v18 = vadd.f32 %v1188_v15, %v220_v12  ;;  %v1477_v19 = vpop.f32.mrf.mxu1 }
 0x137   :  { %v1190_v21 = vpop.f32.mrf.mxu0 }
 0x138   :  { %1758 = vst.msk [vmem:[%s3191_s3 + $0x60] sm:$0xff] %vm1745_vm0, %v1693_v17  ;;  %v1478_v23 = vadd.f32 %v1477_v19, %v1189_v18  ;;  %v1479_v24 = vpop.f32.mrf.mxu1 }
 0x139   :  { %v1193_v25 = vpop.f32.mrf.mxu0  ;;  %1384 = vmatmul.mubr.bf16.gmra.mxu0 %v2189_v16 }
 0x13a   :  { %v1694_v26 = vmax.f32 %v1478_v23, 0.0  ;;  %v1194_v27 = vadd.f32 %v1193_v25, %v221_v22  ;;  %v1482_v28 = vpop.f32.mrf.mxu1  ;;  %1673 = vmatmul.mubr.bf16.gmra.mxu1 %v2192_v20  ;;  %v229_v22 = vld [vmem:[%s3190_s2 + $0xb0] sm:$0xff] }
 0x13b   :  { %v1195_v29 = vpop.f32.mrf.mxu0 }
 0x13c   :  { %1759 = vst.msk [vmem:[%s3191_s3 + $0x68] sm:$0xff] %vm1745_vm0, %v1694_v26  ;;  %v1483_v31 = vadd.f32 %v1482_v28, %v1194_v27  ;;  %v1484_v32 = vpop.f32.mrf.mxu1 }
 0x13d   :  { %v1196_v33 = vpop.f32.mrf.mxu0 }
 0x13e   :  { %v1695_v34 = vmax.f32 %v1483_v31, 0.0  ;;  %v1197_v35 = vadd.f32 %v1196_v33, %v222_v30  ;;  %v1485_v36 = vpop.f32.mrf.mxu1  ;;  %v230_v30 = vld [vmem:[%s3190_s2 + $0xb8] sm:$0xff] }
 0x13f   :  { %v1198_v37 = vpop.f32.mrf.mxu0 }
 0x140   :  { %1760 = vst.msk [vmem:[%s3191_s3 + $0x70] sm:$0xff] %vm1745_vm0, %v1695_v34  ;;  %v1486_v39 = vadd.f32 %v1485_v36, %v1197_v35  ;;  %v1487_v40 = vpop.f32.mrf.mxu1 }
 0x141   :  { %v1201_v41 = vpop.f32.mrf.mxu0 }
 0x142   :  { %v1696_v42 = vmax.f32 %v1486_v39, 0.0  ;;  %v1202_v43 = vadd.f32 %v1201_v41, %v223_v38  ;;  %v1490_v44 = vpop.f32.mrf.mxu1  ;;  %v231_v38 = vld [vmem:[%s3190_s2 + $0xc0] sm:$0xff] }
 0x143   :  { %v1203_v45 = vpop.f32.mrf.mxu0 }
 0x144   :  { %1761 = vst.msk [vmem:[%s3191_s3 + $0x78] sm:$0xff] %vm1745_vm0, %v1696_v42  ;;  %v1491_v47 = vadd.f32 %v1490_v44, %v1202_v43  ;;  %v1492_v48 = vpop.f32.mrf.mxu1 }
 0x145   :  { %v1204_v49 = vpop.f32.mrf.mxu0 }
 0x146   :  { %v1697_v50 = vmax.f32 %v1491_v47, 0.0  ;;  %v1205_v51 = vadd.f32 %v1204_v49, %v224_v46  ;;  %v1493_v52 = vpop.f32.mrf.mxu1  ;;  %v232_v46 = vld [vmem:[%s3190_s2 + $0xc8] sm:$0xff] }
 0x147   :  { %v1206_v53 = vpop.f32.mrf.mxu0 }
 0x148   :  { %1762 = vst.msk [vmem:[%s3191_s3 + $0x80] sm:$0xff] %vm1745_vm0, %v1697_v50  ;;  %v1494_v55 = vadd.f32 %v1493_v52, %v1205_v51  ;;  %v1495_v56 = vpop.f32.mrf.mxu1 }
 0x149   :  { %v1209_v57 = vpop.f32.mrf.mxu0 }
 0x14a   :  { %v1698_v58 = vmax.f32 %v1494_v55, 0.0  ;;  %v1210_v59 = vadd.f32 %v1209_v57, %v225_v54  ;;  %v1498_v60 = vpop.f32.mrf.mxu1  ;;  %v233_v54 = vld [vmem:[%s3190_s2 + $0xd0] sm:$0xff] }
 0x14b   :  { %v1211_v61 = vpop.f32.mrf.mxu0 }
 0x14c   :  { %1763 = vst.msk [vmem:[%s3191_s3 + $0x88] sm:$0xff] %vm1745_vm0, %v1698_v58  ;;  %v1499_v63 = vadd.f32 %v1498_v60, %v1210_v59  ;;  %v1500_v0 = vpop.f32.mrf.mxu1 }
 0x14d   :  { %v1212_v1 = vpop.f32.mrf.mxu0 }
 0x14e   :  { %v1699_v2 = vmax.f32 %v1499_v63, 0.0  ;;  %v1213_v3 = vadd.f32 %v1212_v1, %v226_v62  ;;  %v1501_v4 = vpop.f32.mrf.mxu1  ;;  %v234_v62 = vld [vmem:[%s3190_s2 + $0xd8] sm:$0xff] }
 0x14f   :  { %v1214_v5 = vpop.f32.mrf.mxu0 }
 0x150   :  { %1764 = vst.msk [vmem:[%s3191_s3 + $0x90] sm:$0xff] %vm1745_vm0, %v1699_v2  ;;  %v1502_v7 = vadd.f32 %v1501_v4, %v1213_v3  ;;  %v1503_v8 = vpop.f32.mrf.mxu1 }
 0x151   :  { %v1217_v9 = vpop.f32.mrf.mxu0 }
 0x152   :  { %v1700_v10 = vmax.f32 %v1502_v7, 0.0  ;;  %v1218_v11 = vadd.f32 %v1217_v9, %v227_v6  ;;  %v1506_v12 = vpop.f32.mrf.mxu1  ;;  %v235_v6 = vld [vmem:[%s3190_s2 + $0xe0] sm:$0xff] }
 0x153   :  { %v1219_v13 = vpop.f32.mrf.mxu0 }
 0x154   :  { %1765 = vst.msk [vmem:[%s3191_s3 + $0x98] sm:$0xff] %vm1745_vm0, %v1700_v10  ;;  %v1507_v15 = vadd.f32 %v1506_v12, %v1218_v11  ;;  %v1508_v16 = vpop.f32.mrf.mxu1 }
 0x155   :  { %v1220_v17 = vpop.f32.mrf.mxu0 }
 0x156   :  { %v1701_v18 = vmax.f32 %v1507_v15, 0.0  ;;  %v1221_v19 = vadd.f32 %v1220_v17, %v228_v14  ;;  %v1509_v20 = vpop.f32.mrf.mxu1  ;;  %v236_v14 = vld [vmem:[%s3190_s2 + $0xe8] sm:$0xff] }
 0x157   :  { %v1222_v21 = vpop.f32.mrf.mxu0 }
 0x158   :  { %1766 = vst.msk [vmem:[%s3191_s3 + $0xa0] sm:$0xff] %vm1745_vm0, %v1701_v18  ;;  %v1510_v23 = vadd.f32 %v1509_v20, %v1221_v19  ;;  %v1511_v24 = vpop.f32.mrf.mxu1 }
 0x159   :  { %v1225_v25 = vpop.f32.mrf.mxu0 }
 0x15a   :  { %v1702_v26 = vmax.f32 %v1510_v23, 0.0  ;;  %v1226_v27 = vadd.f32 %v1225_v25, %v229_v22  ;;  %v1514_v28 = vpop.f32.mrf.mxu1  ;;  %v237_v22 = vld [vmem:[%s3190_s2 + $0xf0] sm:$0xff] }
 0x15b   :  { %v1227_v29 = vpop.f32.mrf.mxu0 }
 0x15c   :  { %1767 = vst.msk [vmem:[%s3191_s3 + $0xa8] sm:$0xff] %vm1745_vm0, %v1702_v26  ;;  %v1515_v31 = vadd.f32 %v1514_v28, %v1226_v27  ;;  %v1516_v32 = vpop.f32.mrf.mxu1 }
 0x15d   :  { %v1228_v33 = vpop.f32.mrf.mxu0 }
 0x15e   :  { %v1703_v34 = vmax.f32 %v1515_v31, 0.0  ;;  %v1229_v35 = vadd.f32 %v1228_v33, %v230_v30  ;;  %v1517_v36 = vpop.f32.mrf.mxu1  ;;  %v238_v30 = vld [vmem:[%s3190_s2 + $0xf8] sm:$0xff] }
 0x15f   :  { %v1230_v37 = vpop.f32.mrf.mxu0 }
 0x160   :  { %1768 = vst.msk [vmem:[%s3191_s3 + $0xb0] sm:$0xff] %vm1745_vm0, %v1703_v34  ;;  %v1518_v39 = vadd.f32 %v1517_v36, %v1229_v35  ;;  %v1519_v40 = vpop.f32.mrf.mxu1 }
 0x161   :  { %v1233_v41 = vpop.f32.mrf.mxu0 }
 0x162   :  { %v1704_v42 = vmax.f32 %v1518_v39, 0.0  ;;  %v1234_v43 = vadd.f32 %v1233_v41, %v231_v38  ;;  %v1522_v44 = vpop.f32.mrf.mxu1  ;;  %v239_v38 = vld [vmem:[%s3190_s2 + $0x100] sm:$0xff] }
 0x163   :  { %v1235_v45 = vpop.f32.mrf.mxu0 }
 0x164   :  { %1769 = vst.msk [vmem:[%s3191_s3 + $0xb8] sm:$0xff] %vm1745_vm0, %v1704_v42  ;;  %v1523_v47 = vadd.f32 %v1522_v44, %v1234_v43  ;;  %v1524_v48 = vpop.f32.mrf.mxu1 }
 0x165   :  { %v1236_v49 = vpop.f32.mrf.mxu0 }
 0x166   :  { %v1705_v50 = vmax.f32 %v1523_v47, 0.0  ;;  %v1237_v51 = vadd.f32 %v1236_v49, %v232_v46  ;;  %v1525_v52 = vpop.f32.mrf.mxu1  ;;  %v240_v46 = vld [vmem:[%s3190_s2 + $0x108] sm:$0xff] }
 0x167   :  { %v1238_v53 = vpop.f32.mrf.mxu0 }
 0x168   :  { %1770 = vst.msk [vmem:[%s3191_s3 + $0xc0] sm:$0xff] %vm1745_vm0, %v1705_v50  ;;  %v1526_v55 = vadd.f32 %v1525_v52, %v1237_v51  ;;  %v1527_v56 = vpop.f32.mrf.mxu1 }
 0x169   :  { %v1241_v57 = vpop.f32.mrf.mxu0 }
 0x16a   :  { %v1706_v58 = vmax.f32 %v1526_v55, 0.0  ;;  %v1242_v59 = vadd.f32 %v1241_v57, %v233_v54  ;;  %v1530_v60 = vpop.f32.mrf.mxu1  ;;  %v241_v54 = vld [vmem:[%s3190_s2 + $0x110] sm:$0xff] }
 0x16b   :  { %v1243_v61 = vpop.f32.mrf.mxu0 }
 0x16c   :  { %1771 = vst.msk [vmem:[%s3191_s3 + $0xc8] sm:$0xff] %vm1745_vm0, %v1706_v58  ;;  %v1531_v63 = vadd.f32 %v1530_v60, %v1242_v59  ;;  %v1532_v0 = vpop.f32.mrf.mxu1 }
 0x16d   :  { %v1244_v1 = vpop.f32.mrf.mxu0 }
 0x16e   :  { %v1707_v2 = vmax.f32 %v1531_v63, 0.0  ;;  %v1245_v3 = vadd.f32 %v1244_v1, %v234_v62  ;;  %v1533_v4 = vpop.f32.mrf.mxu1  ;;  %v242_v62 = vld [vmem:[%s3190_s2 + $0x118] sm:$0xff] }
 0x16f   :  { %v1246_v5 = vpop.f32.mrf.mxu0 }
 0x170   :  { %1772 = vst.msk [vmem:[%s3191_s3 + $0xd0] sm:$0xff] %vm1745_vm0, %v1707_v2  ;;  %v1534_v7 = vadd.f32 %v1533_v4, %v1245_v3  ;;  %v1535_v8 = vpop.f32.mrf.mxu1 }
 0x171   :  { %v1249_v9 = vpop.f32.mrf.mxu0 }
 0x172   :  { %v1708_v10 = vmax.f32 %v1534_v7, 0.0  ;;  %v1250_v11 = vadd.f32 %v1249_v9, %v235_v6  ;;  %v1538_v12 = vpop.f32.mrf.mxu1  ;;  %v243_v6 = vld [vmem:[%s3190_s2 + $0x120] sm:$0xff] }
 0x173   :  { %v1251_v13 = vpop.f32.mrf.mxu0 }
 0x174   :  { %1773 = vst.msk [vmem:[%s3191_s3 + $0xd8] sm:$0xff] %vm1745_vm0, %v1708_v10  ;;  %v1539_v15 = vadd.f32 %v1538_v12, %v1250_v11  ;;  %v1540_v16 = vpop.f32.mrf.mxu1 }
 0x175   :  { %v1252_v17 = vpop.f32.mrf.mxu0 }
 0x176   :  { %v1709_v18 = vmax.f32 %v1539_v15, 0.0  ;;  %v1253_v19 = vadd.f32 %v1252_v17, %v236_v14  ;;  %v1541_v20 = vpop.f32.mrf.mxu1  ;;  %v244_v14 = vld [vmem:[%s3190_s2 + $0x128] sm:$0xff] }
 0x177   :  { %v1254_v21 = vpop.f32.mrf.mxu0 }
 0x178   :  { %1774 = vst.msk [vmem:[%s3191_s3 + $0xe0] sm:$0xff] %vm1745_vm0, %v1709_v18  ;;  %v1542_v23 = vadd.f32 %v1541_v20, %v1253_v19  ;;  %v1543_v24 = vpop.f32.mrf.mxu1 }
 0x179   :  { %v1257_v25 = vpop.f32.mrf.mxu0 }
 0x17a   :  { %v1710_v26 = vmax.f32 %v1542_v23, 0.0  ;;  %v1258_v27 = vadd.f32 %v1257_v25, %v237_v22  ;;  %v1546_v28 = vpop.f32.mrf.mxu1  ;;  %v245_v22 = vld [vmem:[%s3190_s2 + $0x130] sm:$0xff] }
 0x17b   :  { %v1259_v29 = vpop.f32.mrf.mxu0 }
 0x17c   :  { %1775 = vst.msk [vmem:[%s3191_s3 + $0xe8] sm:$0xff] %vm1745_vm0, %v1710_v26  ;;  %v1547_v31 = vadd.f32 %v1546_v28, %v1258_v27  ;;  %v1548_v32 = vpop.f32.mrf.mxu1 }
 0x17d   :  { %v1260_v33 = vpop.f32.mrf.mxu0 }
 0x17e   :  { %v1711_v34 = vmax.f32 %v1547_v31, 0.0  ;;  %v1261_v35 = vadd.f32 %v1260_v33, %v238_v30  ;;  %v1549_v36 = vpop.f32.mrf.mxu1  ;;  %v246_v30 = vld [vmem:[%s3190_s2 + $0x138] sm:$0xff] }
 0x17f   :  { %v1262_v37 = vpop.f32.mrf.mxu0 }
 0x180   :  { %1776 = vst.msk [vmem:[%s3191_s3 + $0xf0] sm:$0xff] %vm1745_vm0, %v1711_v34  ;;  %v1550_v39 = vadd.f32 %v1549_v36, %v1261_v35  ;;  %v1551_v40 = vpop.f32.mrf.mxu1 }
 0x181   :  { %v1265_v41 = vpop.f32.mrf.mxu0 }
 0x182   :  { %v1712_v42 = vmax.f32 %v1550_v39, 0.0  ;;  %v1266_v43 = vadd.f32 %v1265_v41, %v239_v38  ;;  %v1554_v44 = vpop.f32.mrf.mxu1  ;;  %v247_v38 = vld [vmem:[%s3190_s2 + $0x140] sm:$0xff] }
 0x183   :  { %v1267_v45 = vpop.f32.mrf.mxu0 }
 0x184   :  { %1777 = vst.msk [vmem:[%s3191_s3 + $0xf8] sm:$0xff] %vm1745_vm0, %v1712_v42  ;;  %v1555_v47 = vadd.f32 %v1554_v44, %v1266_v43  ;;  %v1556_v48 = vpop.f32.mrf.mxu1 }
 0x185   :  { %v1268_v49 = vpop.f32.mrf.mxu0 }
 0x186   :  { %v1713_v50 = vmax.f32 %v1555_v47, 0.0  ;;  %v1269_v51 = vadd.f32 %v1268_v49, %v240_v46  ;;  %v1557_v52 = vpop.f32.mrf.mxu1  ;;  %v248_v46 = vld [vmem:[%s3190_s2 + $0x148] sm:$0xff] }
 0x187   :  { %v1270_v53 = vpop.f32.mrf.mxu0 }
 0x188   :  { %1778 = vst.msk [vmem:[%s3191_s3 + $0x100] sm:$0xff] %vm1745_vm0, %v1713_v50  ;;  %v1558_v55 = vadd.f32 %v1557_v52, %v1269_v51  ;;  %v1559_v56 = vpop.f32.mrf.mxu1 }
 0x189   :  { %v1273_v57 = vpop.f32.mrf.mxu0 }
 0x18a   :  { %v1714_v58 = vmax.f32 %v1558_v55, 0.0  ;;  %v1274_v59 = vadd.f32 %v1273_v57, %v241_v54  ;;  %v1562_v60 = vpop.f32.mrf.mxu1  ;;  %v249_v54 = vld [vmem:[%s3190_s2 + $0x150] sm:$0xff] }
 0x18b   :  { %v1275_v61 = vpop.f32.mrf.mxu0 }
 0x18c   :  { %1779 = vst.msk [vmem:[%s3191_s3 + $0x108] sm:$0xff] %vm1745_vm0, %v1714_v58  ;;  %v1563_v63 = vadd.f32 %v1562_v60, %v1274_v59  ;;  %v1564_v0 = vpop.f32.mrf.mxu1 }
 0x18d   :  { %v1276_v1 = vpop.f32.mrf.mxu0 }
 0x18e   :  { %v1715_v2 = vmax.f32 %v1563_v63, 0.0  ;;  %v1277_v3 = vadd.f32 %v1276_v1, %v242_v62  ;;  %v1565_v4 = vpop.f32.mrf.mxu1  ;;  %v250_v62 = vld [vmem:[%s3190_s2 + $0x158] sm:$0xff] }
 0x18f   :  { %v1278_v5 = vpop.f32.mrf.mxu0 }
 0x190   :  { %1780 = vst.msk [vmem:[%s3191_s3 + $0x110] sm:$0xff] %vm1745_vm0, %v1715_v2  ;;  %v1566_v7 = vadd.f32 %v1565_v4, %v1277_v3  ;;  %v1567_v8 = vpop.f32.mrf.mxu1 }
 0x191   :  { %v1281_v9 = vpop.f32.mrf.mxu0 }
 0x192   :  { %v1716_v10 = vmax.f32 %v1566_v7, 0.0  ;;  %v1282_v11 = vadd.f32 %v1281_v9, %v243_v6  ;;  %v1570_v12 = vpop.f32.mrf.mxu1  ;;  %v251_v6 = vld [vmem:[%s3190_s2 + $0x160] sm:$0xff] }
 0x193   :  { %v1283_v13 = vpop.f32.mrf.mxu0 }
 0x194   :  { %1781 = vst.msk [vmem:[%s3191_s3 + $0x118] sm:$0xff] %vm1745_vm0, %v1716_v10  ;;  %v1571_v15 = vadd.f32 %v1570_v12, %v1282_v11  ;;  %v1572_v16 = vpop.f32.mrf.mxu1 }
 0x195   :  { %v1284_v17 = vpop.f32.mrf.mxu0 }
 0x196   :  { %v1717_v18 = vmax.f32 %v1571_v15, 0.0  ;;  %v1285_v19 = vadd.f32 %v1284_v17, %v244_v14  ;;  %v1573_v20 = vpop.f32.mrf.mxu1  ;;  %v252_v14 = vld [vmem:[%s3190_s2 + $0x168] sm:$0xff] }
 0x197   :  { %v1286_v21 = vpop.f32.mrf.mxu0 }
 0x198   :  { %1782 = vst.msk [vmem:[%s3191_s3 + $0x120] sm:$0xff] %vm1745_vm0, %v1717_v18  ;;  %v1574_v23 = vadd.f32 %v1573_v20, %v1285_v19  ;;  %v1575_v24 = vpop.f32.mrf.mxu1 }
 0x199   :  { %v1289_v25 = vpop.f32.mrf.mxu0 }
 0x19a   :  { %v1718_v26 = vmax.f32 %v1574_v23, 0.0  ;;  %v1290_v27 = vadd.f32 %v1289_v25, %v245_v22  ;;  %v1578_v28 = vpop.f32.mrf.mxu1  ;;  %v253_v22 = vld [vmem:[%s3190_s2 + $0x170] sm:$0xff] }
 0x19b   :  { %v1291_v29 = vpop.f32.mrf.mxu0 }
 0x19c   :  { %1783 = vst.msk [vmem:[%s3191_s3 + $0x128] sm:$0xff] %vm1745_vm0, %v1718_v26  ;;  %v1579_v31 = vadd.f32 %v1578_v28, %v1290_v27  ;;  %v1580_v32 = vpop.f32.mrf.mxu1 }
 0x19d   :  { %v1292_v33 = vpop.f32.mrf.mxu0 }
 0x19e   :  { %v1719_v34 = vmax.f32 %v1579_v31, 0.0  ;;  %v1293_v35 = vadd.f32 %v1292_v33, %v246_v30  ;;  %v1581_v36 = vpop.f32.mrf.mxu1  ;;  %v254_v30 = vld [vmem:[%s3190_s2 + $0x178] sm:$0xff] }
 0x19f   :  { %v1294_v37 = vpop.f32.mrf.mxu0 }
 0x1a0   :  { %1784 = vst.msk [vmem:[%s3191_s3 + $0x130] sm:$0xff] %vm1745_vm0, %v1719_v34  ;;  %v1582_v39 = vadd.f32 %v1581_v36, %v1293_v35  ;;  %v1583_v40 = vpop.f32.mrf.mxu1 }
 0x1a1   :  { %v1297_v41 = vpop.f32.mrf.mxu0 }
 0x1a2   :  { %v1720_v42 = vmax.f32 %v1582_v39, 0.0  ;;  %v1298_v43 = vadd.f32 %v1297_v41, %v247_v38  ;;  %v1586_v44 = vpop.f32.mrf.mxu1  ;;  %v255_v38 = vld [vmem:[%s3190_s2 + $0x180] sm:$0xff] }
 0x1a3   :  { %v1299_v45 = vpop.f32.mrf.mxu0 }
 0x1a4   :  { %1785 = vst.msk [vmem:[%s3191_s3 + $0x138] sm:$0xff] %vm1745_vm0, %v1720_v42  ;;  %v1587_v47 = vadd.f32 %v1586_v44, %v1298_v43  ;;  %v1588_v48 = vpop.f32.mrf.mxu1 }
 0x1a5   :  { %v1300_v49 = vpop.f32.mrf.mxu0 }
 0x1a6   :  { %v1721_v50 = vmax.f32 %v1587_v47, 0.0  ;;  %v1301_v51 = vadd.f32 %v1300_v49, %v248_v46  ;;  %v1589_v52 = vpop.f32.mrf.mxu1  ;;  %v256_v46 = vld [vmem:[%s3190_s2 + $0x188] sm:$0xff] }
 0x1a7   :  { %v1302_v53 = vpop.f32.mrf.mxu0 }
 0x1a8   :  { %1786 = vst.msk [vmem:[%s3191_s3 + $0x140] sm:$0xff] %vm1745_vm0, %v1721_v50  ;;  %v1590_v55 = vadd.f32 %v1589_v52, %v1301_v51  ;;  %v1591_v56 = vpop.f32.mrf.mxu1 }
 0x1a9   :  { %v1305_v57 = vpop.f32.mrf.mxu0 }
 0x1aa   :  { %v1722_v58 = vmax.f32 %v1590_v55, 0.0  ;;  %v1306_v59 = vadd.f32 %v1305_v57, %v249_v54  ;;  %v1594_v60 = vpop.f32.mrf.mxu1  ;;  %v257_v54 = vld [vmem:[%s3190_s2 + $0x190] sm:$0xff] }
 0x1ab   :  { %v1307_v61 = vpop.f32.mrf.mxu0 }
 0x1ac   :  { %1787 = vst.msk [vmem:[%s3191_s3 + $0x148] sm:$0xff] %vm1745_vm0, %v1722_v58  ;;  %v1595_v63 = vadd.f32 %v1594_v60, %v1306_v59  ;;  %v1596_v0 = vpop.f32.mrf.mxu1 }
 0x1ad   :  { %v1308_v1 = vpop.f32.mrf.mxu0 }
 0x1ae   :  { %v1723_v2 = vmax.f32 %v1595_v63, 0.0  ;;  %v1309_v3 = vadd.f32 %v1308_v1, %v250_v62  ;;  %v1597_v4 = vpop.f32.mrf.mxu1  ;;  %v258_v62 = vld [vmem:[%s3190_s2 + $0x198] sm:$0xff] }
 0x1af   :  { %v1310_v5 = vpop.f32.mrf.mxu0 }
 0x1b0   :  { %1788 = vst.msk [vmem:[%s3191_s3 + $0x150] sm:$0xff] %vm1745_vm0, %v1723_v2  ;;  %v1598_v7 = vadd.f32 %v1597_v4, %v1309_v3  ;;  %v1599_v8 = vpop.f32.mrf.mxu1 }
 0x1b1   :  { %v1313_v9 = vpop.f32.mrf.mxu0 }
 0x1b2   :  { %v1724_v10 = vmax.f32 %v1598_v7, 0.0  ;;  %v1314_v11 = vadd.f32 %v1313_v9, %v251_v6  ;;  %v1602_v12 = vpop.f32.mrf.mxu1  ;;  %v259_v6 = vld [vmem:[%s3190_s2 + $0x1a0] sm:$0xff] }
 0x1b3   :  { %v1315_v13 = vpop.f32.mrf.mxu0 }
 0x1b4   :  { %1789 = vst.msk [vmem:[%s3191_s3 + $0x158] sm:$0xff] %vm1745_vm0, %v1724_v10  ;;  %v1603_v15 = vadd.f32 %v1602_v12, %v1314_v11  ;;  %v1604_v16 = vpop.f32.mrf.mxu1 }
 0x1b5   :  { %v1316_v17 = vpop.f32.mrf.mxu0 }
 0x1b6   :  { %v1725_v18 = vmax.f32 %v1603_v15, 0.0  ;;  %v1317_v19 = vadd.f32 %v1316_v17, %v252_v14  ;;  %v1605_v20 = vpop.f32.mrf.mxu1  ;;  %v260_v14 = vld [vmem:[%s3190_s2 + $0x1a8] sm:$0xff] }
 0x1b7   :  { %v1318_v21 = vpop.f32.mrf.mxu0 }
 0x1b8   :  { %1790 = vst.msk [vmem:[%s3191_s3 + $0x160] sm:$0xff] %vm1745_vm0, %v1725_v18  ;;  %v1606_v23 = vadd.f32 %v1605_v20, %v1317_v19  ;;  %v1607_v24 = vpop.f32.mrf.mxu1 }
 0x1b9   :  { %v1321_v25 = vpop.f32.mrf.mxu0 }
 0x1ba   :  { %v1726_v26 = vmax.f32 %v1606_v23, 0.0  ;;  %v1322_v27 = vadd.f32 %v1321_v25, %v253_v22  ;;  %v1610_v28 = vpop.f32.mrf.mxu1  ;;  %v261_v22 = vld [vmem:[%s3190_s2 + $0x1b0] sm:$0xff] }
 0x1bb   :  { %v1323_v29 = vpop.f32.mrf.mxu0 }
 0x1bc   :  { %1791 = vst.msk [vmem:[%s3191_s3 + $0x168] sm:$0xff] %vm1745_vm0, %v1726_v26  ;;  %v1611_v31 = vadd.f32 %v1610_v28, %v1322_v27  ;;  %v1612_v32 = vpop.f32.mrf.mxu1 }
 0x1bd   :  { %v1324_v33 = vpop.f32.mrf.mxu0 }
 0x1be   :  { %v1727_v34 = vmax.f32 %v1611_v31, 0.0  ;;  %v1325_v35 = vadd.f32 %v1324_v33, %v254_v30  ;;  %v1613_v36 = vpop.f32.mrf.mxu1  ;;  %v262_v30 = vld [vmem:[%s3190_s2 + $0x1b8] sm:$0xff] }
 0x1bf   :  { %v1326_v37 = vpop.f32.mrf.mxu0 }
 0x1c0   :  { %1792 = vst.msk [vmem:[%s3191_s3 + $0x170] sm:$0xff] %vm1745_vm0, %v1727_v34  ;;  %v1614_v39 = vadd.f32 %v1613_v36, %v1325_v35  ;;  %v1615_v40 = vpop.f32.mrf.mxu1 }
 0x1c1   :  { %v1329_v41 = vpop.f32.mrf.mxu0 }
 0x1c2   :  { %v1728_v42 = vmax.f32 %v1614_v39, 0.0  ;;  %v1330_v43 = vadd.f32 %v1329_v41, %v255_v38  ;;  %v1618_v44 = vpop.f32.mrf.mxu1  ;;  %v263_v38 = vld [vmem:[%s3190_s2 + $0x1c0] sm:$0xff] }
 0x1c3   :  { %v1331_v45 = vpop.f32.mrf.mxu0 }
 0x1c4   :  { %1793 = vst.msk [vmem:[%s3191_s3 + $0x178] sm:$0xff] %vm1745_vm0, %v1728_v42  ;;  %v1619_v47 = vadd.f32 %v1618_v44, %v1330_v43  ;;  %v1620_v48 = vpop.f32.mrf.mxu1 }
 0x1c5   :  { %v1332_v49 = vpop.f32.mrf.mxu0 }
 0x1c6   :  { %v1729_v50 = vmax.f32 %v1619_v47, 0.0  ;;  %v1333_v51 = vadd.f32 %v1332_v49, %v256_v46  ;;  %v1621_v52 = vpop.f32.mrf.mxu1  ;;  %v264_v46 = vld [vmem:[%s3190_s2 + $0x1c8] sm:$0xff] }
 0x1c7   :  { %v1334_v53 = vpop.f32.mrf.mxu0 }
 0x1c8   :  { %1794 = vst.msk [vmem:[%s3191_s3 + $0x180] sm:$0xff] %vm1745_vm0, %v1729_v50  ;;  %v1622_v55 = vadd.f32 %v1621_v52, %v1333_v51  ;;  %v1623_v56 = vpop.f32.mrf.mxu1 }
 0x1c9   :  { %v1337_v57 = vpop.f32.mrf.mxu0 }
 0x1ca   :  { %v1730_v58 = vmax.f32 %v1622_v55, 0.0  ;;  %v1338_v59 = vadd.f32 %v1337_v57, %v257_v54  ;;  %v1626_v60 = vpop.f32.mrf.mxu1  ;;  %v265_v54 = vld [vmem:[%s3190_s2 + $0x1d0] sm:$0xff] }
 0x1cb   :  { %v1339_v61 = vpop.f32.mrf.mxu0 }
 0x1cc   :  { %1795 = vst.msk [vmem:[%s3191_s3 + $0x188] sm:$0xff] %vm1745_vm0, %v1730_v58  ;;  %v1627_v63 = vadd.f32 %v1626_v60, %v1338_v59  ;;  %v1628_v0 = vpop.f32.mrf.mxu1 }
 0x1cd   :  { %v1340_v1 = vpop.f32.mrf.mxu0 }
 0x1ce   :  { %v1731_v2 = vmax.f32 %v1627_v63, 0.0  ;;  %v1341_v3 = vadd.f32 %v1340_v1, %v258_v62  ;;  %v1629_v4 = vpop.f32.mrf.mxu1  ;;  %v266_v62 = vld [vmem:[%s3190_s2 + $0x1d8] sm:$0xff] }
 0x1cf   :  { %v1342_v5 = vpop.f32.mrf.mxu0 }
 0x1d0   :  { %1796 = vst.msk [vmem:[%s3191_s3 + $0x190] sm:$0xff] %vm1745_vm0, %v1731_v2  ;;  %v1630_v7 = vadd.f32 %v1629_v4, %v1341_v3  ;;  %v1631_v8 = vpop.f32.mrf.mxu1 }
 0x1d1   :  { %v1345_v9 = vpop.f32.mrf.mxu0 }
 0x1d2   :  { %v1732_v10 = vmax.f32 %v1630_v7, 0.0  ;;  %v1346_v11 = vadd.f32 %v1345_v9, %v259_v6  ;;  %v1634_v12 = vpop.f32.mrf.mxu1  ;;  %v267_v6 = vld [vmem:[%s3190_s2 + $0x1e0] sm:$0xff] }
 0x1d3   :  { %v1347_v13 = vpop.f32.mrf.mxu0 }
 0x1d4   :  { %1797 = vst.msk [vmem:[%s3191_s3 + $0x198] sm:$0xff] %vm1745_vm0, %v1732_v10  ;;  %v1635_v15 = vadd.f32 %v1634_v12, %v1346_v11  ;;  %v1636_v16 = vpop.f32.mrf.mxu1 }
 0x1d5   :  { %v1348_v17 = vpop.f32.mrf.mxu0 }
 0x1d6   :  { %v1733_v18 = vmax.f32 %v1635_v15, 0.0  ;;  %v1349_v19 = vadd.f32 %v1348_v17, %v260_v14  ;;  %v1637_v20 = vpop.f32.mrf.mxu1  ;;  %v268_v14 = vld [vmem:[%s3190_s2 + $0x1e8] sm:$0xff] }
 0x1d7   :  { %v1350_v21 = vpop.f32.mrf.mxu0 }
 0x1d8   :  { %1798 = vst.msk [vmem:[%s3191_s3 + $0x1a0] sm:$0xff] %vm1745_vm0, %v1733_v18  ;;  %v1638_v23 = vadd.f32 %v1637_v20, %v1349_v19  ;;  %v1639_v24 = vpop.f32.mrf.mxu1 }
 0x1d9   :  { %v1353_v25 = vpop.f32.mrf.mxu0 }
 0x1da   :  { %v1734_v26 = vmax.f32 %v1638_v23, 0.0  ;;  %v1354_v27 = vadd.f32 %v1353_v25, %v261_v22  ;;  %v1642_v28 = vpop.f32.mrf.mxu1  ;;  %v269_v22 = vld [vmem:[%s3190_s2 + $0x1f0] sm:$0xff] }
 0x1db   :  { %v1355_v29 = vpop.f32.mrf.mxu0 }
 0x1dc   :  { %1799 = vst.msk [vmem:[%s3191_s3 + $0x1a8] sm:$0xff] %vm1745_vm0, %v1734_v26  ;;  %v1643_v31 = vadd.f32 %v1642_v28, %v1354_v27  ;;  %v1644_v32 = vpop.f32.mrf.mxu1 }
 0x1dd   :  { %v1356_v33 = vpop.f32.mrf.mxu0 }
 0x1de   :  { %v1735_v34 = vmax.f32 %v1643_v31, 0.0  ;;  %v1357_v35 = vadd.f32 %v1356_v33, %v262_v30  ;;  %v1645_v36 = vpop.f32.mrf.mxu1  ;;  %v270_v30 = vld [vmem:[%s3190_s2 + $0x1f8] sm:$0xff] }
 0x1df   :  { %v1358_v37 = vpop.f32.mrf.mxu0 }
 0x1e0   :  { %1800 = vst.msk [vmem:[%s3191_s3 + $0x1b0] sm:$0xff] %vm1745_vm0, %v1735_v34  ;;  %v1646_v39 = vadd.f32 %v1645_v36, %v1357_v35  ;;  %v1647_v40 = vpop.f32.mrf.mxu1 }
 0x1e1   :  { %v1361_v41 = vpop.f32.mrf.mxu0 }
 0x1e2   :  { %v1736_v42 = vmax.f32 %v1646_v39, 0.0  ;;  %v1362_v43 = vadd.f32 %v1361_v41, %v263_v38  ;;  %v1650_v44 = vpop.f32.mrf.mxu1 }
 0x1e3   :  { %v1363_v45 = vpop.f32.mrf.mxu0 }
 0x1e4   :  { %1801 = vst.msk [vmem:[%s3191_s3 + $0x1b8] sm:$0xff] %vm1745_vm0, %v1736_v42  ;;  %v1651_v47 = vadd.f32 %v1650_v44, %v1362_v43  ;;  %v1652_v48 = vpop.f32.mrf.mxu1 }
 0x1e5   :  { %v1364_v49 = vpop.f32.mrf.mxu0 }
 0x1e6   :  { %v1737_v50 = vmax.f32 %v1651_v47, 0.0  ;;  %v1365_v51 = vadd.f32 %v1364_v49, %v264_v46  ;;  %v1653_v52 = vpop.f32.mrf.mxu1 }
 0x1e7   :  { %v1366_v53 = vpop.f32.mrf.mxu0 }
 0x1e8   :  { %1802 = vst.msk [vmem:[%s3191_s3 + $0x1c0] sm:$0xff] %vm1745_vm0, %v1737_v50  ;;  %v1654_v55 = vadd.f32 %v1653_v52, %v1365_v51  ;;  %v1655_v56 = vpop.f32.mrf.mxu1 }
 0x1e9   :  { %v1369_v57 = vpop.f32.mrf.mxu0 }
 0x1ea   :  { %v1738_v58 = vmax.f32 %v1654_v55, 0.0  ;;  %v1370_v59 = vadd.f32 %v1369_v57, %v265_v54  ;;  %v1658_v60 = vpop.f32.mrf.mxu1 }
 0x1eb   :  { %v1371_v61 = vpop.f32.mrf.mxu0 }
 0x1ec   :  { %1803 = vst.msk [vmem:[%s3191_s3 + $0x1c8] sm:$0xff] %vm1745_vm0, %v1738_v58  ;;  %v1659_v63 = vadd.f32 %v1658_v60, %v1370_v59  ;;  %v1660_v0 = vpop.f32.mrf.mxu1 }
 0x1ed   :  { %v1372_v1 = vpop.f32.mrf.mxu0 }
 0x1ee   :  { %v1739_v2 = vmax.f32 %v1659_v63, 0.0  ;;  %v1373_v3 = vadd.f32 %v1372_v1, %v266_v62  ;;  %v1661_v4 = vpop.f32.mrf.mxu1 }
 0x1ef   :  { %v1374_v5 = vpop.f32.mrf.mxu0 }
 0x1f0   :  { %1804 = vst.msk [vmem:[%s3191_s3 + $0x1d0] sm:$0xff] %vm1745_vm0, %v1739_v2  ;;  %v1662_v7 = vadd.f32 %v1661_v4, %v1373_v3  ;;  %v1663_v8 = vpop.f32.mrf.mxu1 }
 0x1f1   :  { %v1377_v9 = vpop.f32.mrf.mxu0 }
 0x1f2   :  { %v1740_v10 = vmax.f32 %v1662_v7, 0.0  ;;  %v1378_v11 = vadd.f32 %v1377_v9, %v267_v6  ;;  %v1666_v12 = vpop.f32.mrf.mxu1 }
 0x1f3   :  { %v1379_v13 = vpop.f32.mrf.mxu0 }
 0x1f4   :  { %1805 = vst.msk [vmem:[%s3191_s3 + $0x1d8] sm:$0xff] %vm1745_vm0, %v1740_v10  ;;  %v1667_v15 = vadd.f32 %v1666_v12, %v1378_v11  ;;  %v1668_v16 = vpop.f32.mrf.mxu1 }
 0x1f5   :  { %v1380_v17 = vpop.f32.mrf.mxu0 }
 0x1f6   :  { %v1741_v18 = vmax.f32 %v1667_v15, 0.0  ;;  %v1381_v19 = vadd.f32 %v1380_v17, %v268_v14  ;;  %v1669_v20 = vpop.f32.mrf.mxu1 }
 0x1f7   :  { %v1382_v21 = vpop.f32.mrf.mxu0 }
 0x1f8   :  { %1806 = vst.msk [vmem:[%s3191_s3 + $0x1e0] sm:$0xff] %vm1745_vm0, %v1741_v18  ;;  %v1670_v23 = vadd.f32 %v1669_v20, %v1381_v19  ;;  %v1671_v24 = vpop.f32.mrf.mxu1 }
 0x1f9   :  { %v1385_v25 = vpop.f32.mrf.mxu0 }
 0x1fa   :  { %v1742_v26 = vmax.f32 %v1670_v23, 0.0  ;;  %v1386_v27 = vadd.f32 %v1385_v25, %v269_v22  ;;  %v1674_v28 = vpop.f32.mrf.mxu1 }
 0x1fb   :  { %v1387_v29 = vpop.f32.mrf.mxu0 }
 0x1fc   :  { %1807 = vst.msk [vmem:[%s3191_s3 + $0x1e8] sm:$0xff] %vm1745_vm0, %v1742_v26  ;;  %v1675_v31 = vadd.f32 %v1674_v28, %v1386_v27  ;;  %v1676_v32 = vpop.f32.mrf.mxu1 }
 0x1fd   :  { %v1388_v33 = vpop.f32.mrf.mxu0 }
 0x1fe   :  { %v1743_v34 = vmax.f32 %v1675_v31, 0.0  ;;  %v1389_v35 = vadd.f32 %v1388_v33, %v270_v30  ;;  %v1677_v36 = vpop.f32.mrf.mxu1 }
 0x1ff   :  { %v1390_v37 = vpop.f32.mrf.mxu0 }
 0x200   :  { %1808 = vst.msk [vmem:[%s3191_s3 + $0x1f0] sm:$0xff] %vm1745_vm0, %v1743_v34  ;;  %v1678_v38 = vadd.f32 %v1677_v36, %v1389_v35  ;;  %v1679_v39 = vpop.f32.mrf.mxu1 }
 0x202   :  { %v1744_v40 = vmax.f32 %v1678_v38, 0.0 }
 0x204   :  { %1809 = vst.msk [vmem:[%s3191_s3 + $0x1f8] sm:$0xff] %vm1745_vm0, %v1744_v40 }

// kernel: face_rec_celeba_forward.6
= control target key start
LH: loop header
LB: loop body
LE: loop exit
PB: predicated region body
PF: predicated region fallthrough
CT: control target
= control target key end

     0   :  { %s2624_s1 = inlined_call_operand.vmem [shape: bf16[1024,128], index: 1, kind: input, shape index: {}]   ;;  %s2625_s0 = inlined_call_operand.vmem [shape: bf16[128,1024], index: 0, kind: input, shape index: {}]   ;;  %s2626_s4 = inlined_call_operand.vmem [shape: f32[1,128], index: 4, kind: output, shape index: {1}]   ;;  %s2627_s5 = inlined_call_operand.vmem [shape: f32[1,128], index: 5, kind: output, shape index: {2}]   ;;  %s2628_s2 = inlined_call_operand.vmem [shape: f32[1,128], index: 2, kind: input, shape index: {}]   ;;  %s2629_s3 = inlined_call_operand.vmem [shape: f32[128,128], index: 3, kind: output, shape index: {0}]  }
   0x1   :  { %v1809_v0 = vld [vmem:[%s2624_s1 + $0x78] sm:$0xff]   ;;  %v1813_v4 = vld [vmem:[%s2624_s1 + $0x70] sm:$0xff]   ;;  %v1817_v8 = vld [vmem:[%s2624_s1 + $0x68] sm:$0xff]  }
   0x2   :  { %v1810_v1 = vld [vmem:[%s2624_s1 + $0xf8] sm:$0xff]   ;;  %1552 = vmatprep.subr.bf16.mxu0 %v1809_v0  ;;  %v1814_v5 = vld [vmem:[%s2624_s1 + $0xf0] sm:$0xff]   ;;  %v1818_v9 = vld [vmem:[%s2624_s1 + $0xe8] sm:$0xff]  }
   0x3   :  { %v1811_v2 = vld [vmem:[%s2624_s1 + $0x38] sm:$0xff]   ;;  %1616 = vmatprep.subr.bf16.mxu1 %v1810_v1  ;;  %v1815_v6 = vld [vmem:[%s2624_s1 + $0x30] sm:$0xff]   ;;  %v1819_v10 = vld [vmem:[%s2624_s1 + $0x28] sm:$0xff]  }
   0x4   :  { %v1812_v3 = vld [vmem:[%s2624_s1 + $0xb8] sm:$0xff]   ;;  %1553 = vmatpush3.bf16.msra.mxu0 %v1811_v2  ;;  %v1816_v7 = vld [vmem:[%s2624_s1 + $0xb0] sm:$0xff]   ;;  %v1820_v11 = vld [vmem:[%s2624_s1 + $0xa8] sm:$0xff]  }
   0x5   :  { %1617 = vmatpush3.bf16.msra.mxu1 %v1812_v3  ;;  %1554 = vmatprep.subr.bf16.mxu0 %v1813_v4  ;;  %v1821_v12 = vld [vmem:[%s2624_s1 + $0x60] sm:$0xff]   ;;  %v1825_v16 = vld [vmem:[%s2624_s1 + $0x58] sm:$0xff]   ;;  %v1829_v20 = vld [vmem:[%s2624_s1 + $0x50] sm:$0xff]  }
   0x6   :  { %1618 = vmatprep.subr.bf16.mxu1 %v1814_v5  ;;  %v1822_v13 = vld [vmem:[%s2624_s1 + $0xe0] sm:$0xff]   ;;  %v1826_v17 = vld [vmem:[%s2624_s1 + $0xd8] sm:$0xff]   ;;  %v1830_v21 = vld [vmem:[%s2624_s1 + $0xd0] sm:$0xff]  }
   0x7   :  { %v1823_v14 = vld [vmem:[%s2624_s1 + $0x20] sm:$0xff]   ;;  %v1827_v18 = vld [vmem:[%s2624_s1 + $0x18] sm:$0xff]   ;;  %v1831_v22 = vld [vmem:[%s2624_s1 + $0x10] sm:$0xff]  }
   0x8   :  { %1555 = vmatpush3.bf16.msra.mxu0 %v1815_v6  ;;  %v1824_v15 = vld [vmem:[%s2624_s1 + $0xa0] sm:$0xff]   ;;  %v1828_v19 = vld [vmem:[%s2624_s1 + $0x98] sm:$0xff]   ;;  %v1832_v23 = vld [vmem:[%s2624_s1 + $0x90] sm:$0xff]  }
   0x9   :  { %1619 = vmatpush3.bf16.msra.mxu1 %v1816_v7  ;;  %1556 = vmatprep.subr.bf16.mxu0 %v1817_v8  ;;  %v1833_v24 = vld [vmem:[%s2624_s1 + $0x48] sm:$0xff]   ;;  %v1837_v28 = vld [vmem:[%s2624_s1 + $0x40] sm:$0xff]   ;;  %v1841_v40 = vld [vmem:[%s2624_s1 + $0x178] sm:$0xff]  }
   0xa   :  { %1620 = vmatprep.subr.bf16.mxu1 %v1818_v9  ;;  %v1834_v25 = vld [vmem:[%s2624_s1 + $0xc8] sm:$0xff]   ;;  %v1838_v29 = vld [vmem:[%s2624_s1 + $0xc0] sm:$0xff]   ;;  %v1842_v41 = vld [vmem:[%s2624_s1 + $0x138] sm:$0xff]  }
   0xb   :  { %v1835_v26 = vld [vmem:[%s2624_s1 + $0x8] sm:$0xff]   ;;  %v1839_v30 = vld [vmem:[%s2624_s1] sm:$0xff]   ;;  %v1843_v42 = vld [vmem:[%s2624_s1 + $0x1f8] sm:$0xff]  }
   0xc   :  { %1557 = vmatpush3.bf16.msra.mxu0 %v1819_v10  ;;  %v1836_v27 = vld [vmem:[%s2624_s1 + $0x88] sm:$0xff]   ;;  %v1840_v31 = vld [vmem:[%s2624_s1 + $0x80] sm:$0xff]   ;;  %v1844_v43 = vld [vmem:[%s2624_s1 + $0x1b8] sm:$0xff]  }
   0xd   :  { %1621 = vmatpush3.bf16.msra.mxu1 %v1820_v11  ;;  %1558 = vmatprep.subr.bf16.mxu0 %v1821_v12  ;;  %v18_v32 = vld [vmem:[%s2625_s0] sm:$0xff]  ;;  %v19_v34 = vld [vmem:[%s2625_s0 + $0x8] sm:$0xff]  ;;  %v1845_v50 = vld [vmem:[%s2624_s1 + $0x170] sm:$0xff]  }
   0xe   :  { %1622 = vmatprep.subr.bf16.mxu1 %v1822_v13  ;;  %v22_v33 = vld [vmem:[%s2625_s0 + $0x20] sm:$0xff]  ;;  %v23_v37 = vld [vmem:[%s2625_s0 + $0x28] sm:$0xff]  ;;  %v1846_v52 = vld [vmem:[%s2624_s1 + $0x130] sm:$0xff]  }
   0xf   :  { %v1424_v35 = vcombine.low %v18_v32, %v22_v33  ;;  %v1425_v36 = vcombine.high %v18_v32, %v22_v33  ;;  %v1426_v38 = vcombine.low %v19_v34, %v23_v37  ;;  %v1427_v39 = vcombine.high %v19_v34, %v23_v37  ;;  %v26_v44 = vld [vmem:[%s2625_s0 + $0x40] sm:$0xff]  ;;  %v27_v47 = vld [vmem:[%s2625_s0 + $0x48] sm:$0xff]  ;;  %v1847_v54 = vld [vmem:[%s2624_s1 + $0x1f0] sm:$0xff]  }
  0x10   :  { %1559 = vmatpush3.bf16.msra.mxu0 %v1823_v14  ;;  %v30_v45 = vld [vmem:[%s2625_s0 + $0x60] sm:$0xff]  ;;  %v31_v48 = vld [vmem:[%s2625_s0 + $0x68] sm:$0xff]  ;;  %v1848_v55 = vld [vmem:[%s2624_s1 + $0x1b0] sm:$0xff]  }
  0x11   :  { %1623 = vmatpush3.bf16.msra.mxu1 %v1824_v15  ;;  %1560 = vmatprep.subr.bf16.mxu0 %v1825_v16  ;;  %v1433_v46 = vcombine.high %v26_v44, %v30_v45  ;;  %v1435_v49 = vcombine.high %v27_v47, %v31_v48  ;;  %v1432_v51 = vcombine.low %v26_v44, %v30_v45  ;;  %v34_v56 = vld [vmem:[%s2625_s0 + $0x80] sm:$0xff]  ;;  %v35_v58 = vld [vmem:[%s2625_s0 + $0x88] sm:$0xff]  ;;  %v1863_v32 = vld [vmem:[%s2624_s1 + $0x1d0] sm:$0xff]  }
  0x12   :  { %1624 = vmatprep.subr.bf16.mxu1 %v1826_v17  ;;  %953 = vmatprep.mubr.bf16.mxu0 %v1425_v36  ;;  %v1434_v53 = vcombine.low %v27_v47, %v31_v48  ;;  %v38_v57 = vld [vmem:[%s2625_s0 + $0xa0] sm:$0xff]  ;;  %v39_v59 = vld [vmem:[%s2625_s0 + $0xa8] sm:$0xff]  ;;  %v1864_v33 = vld [vmem:[%s2624_s1 + $0x190] sm:$0xff]  }
  0x13   :  { %1050 = vmatprep.mubr.bf16.mxu1 %v1427_v39  ;;  %v1441_v60 = vcombine.high %v34_v56, %v38_v57  ;;  %v1443_v61 = vcombine.high %v35_v58, %v39_v59  ;;  %v1849_v62 = vld [vmem:[%s2624_s1 + $0x168] sm:$0xff]   ;;  %v1440_v2 = vcombine.low %v34_v56, %v38_v57  ;;  %v42_v3 = vld [vmem:[%s2625_s0 + $0xc0] sm:$0xff]  ;;  %v1442_v6 = vcombine.low %v35_v58, %v39_v59 }
  0x14   :  { %1561 = vmatpush3.bf16.msra.mxu0 %v1827_v18  ;;  %v1850_v63 = vld [vmem:[%s2624_s1 + $0x128] sm:$0xff]   ;;  %v46_v4 = vld [vmem:[%s2625_s0 + $0xe0] sm:$0xff]  ;;  %v1857_v18 = vld [vmem:[%s2624_s1 + $0x158] sm:$0xff]  }
  0x15   :  { %1625 = vmatpush3.bf16.msra.mxu1 %v1828_v19  ;;  %1562 = vmatprep.subr.bf16.mxu0 %v1829_v20  ;;  %v1851_v0 = vld [vmem:[%s2624_s1 + $0x1e8] sm:$0xff]   ;;  %v1449_v7 = vcombine.high %v42_v3, %v46_v4  ;;  %v1853_v10 = vld [vmem:[%s2624_s1 + $0x160] sm:$0xff]   ;;  %v1448_v19 = vcombine.low %v42_v3, %v46_v4  ;;  %v1858_v20 = vld [vmem:[%s2624_s1 + $0x118] sm:$0xff]  }
  0x16   :  { %1626 = vmatprep.subr.bf16.mxu1 %v1830_v21  ;;  %v1852_v1 = vld [vmem:[%s2624_s1 + $0x1a8] sm:$0xff]   ;;  %v1854_v11 = vld [vmem:[%s2624_s1 + $0x120] sm:$0xff]  }
  0x17   :  { %v43_v5 = vld [vmem:[%s2625_s0 + $0xc8] sm:$0xff]  ;;  %v1855_v12 = vld [vmem:[%s2624_s1 + $0x1e0] sm:$0xff]  }
  0x18   :  { %1563 = vmatpush3.bf16.msra.mxu0 %v1831_v22  ;;  %v47_v8 = vld [vmem:[%s2625_s0 + $0xe8] sm:$0xff]  ;;  %v1856_v13 = vld [vmem:[%s2624_s1 + $0x1a0] sm:$0xff]  }
  0x19   :  { %1627 = vmatpush3.bf16.msra.mxu1 %v1832_v23  ;;  %1564 = vmatprep.subr.bf16.mxu0 %v1833_v24  ;;  %v1451_v9 = vcombine.high %v43_v5, %v47_v8  ;;  %v50_v14 = vld [vmem:[%s2625_s0 + $0x100] sm:$0xff]  ;;  %v51_v16 = vld [vmem:[%s2625_s0 + $0x108] sm:$0xff]  ;;  %v1450_v21 = vcombine.low %v43_v5, %v47_v8  ;;  %v1859_v23 = vld [vmem:[%s2624_s1 + $0x1d8] sm:$0xff]  }
  0x1a   :  { %1628 = vmatprep.subr.bf16.mxu1 %v1834_v25  ;;  %v54_v15 = vld [vmem:[%s2625_s0 + $0x120] sm:$0xff]  ;;  %v55_v17 = vld [vmem:[%s2625_s0 + $0x128] sm:$0xff]  ;;  %v1860_v25 = vld [vmem:[%s2624_s1 + $0x198] sm:$0xff]  }
  0x1b   :  { %v1457_v22 = vcombine.high %v50_v14, %v54_v15  ;;  %v1459_v24 = vcombine.high %v51_v16, %v55_v17  ;;  %v1456_v34 = vcombine.low %v50_v14, %v54_v15  ;;  %v1866_v39 = vld [vmem:[%s2624_s1 + $0x108] sm:$0xff]   ;;  %v1870_v48 = vld [vmem:[%s2624_s1 + $0x100] sm:$0xff]   ;;  %v29_v8 = vld [vmem:[%s2625_s0 + $0x58] sm:$0xff] }
  0x1c   :  { %1565 = vmatpush3.bf16.msra.mxu0 %v1835_v26  ;;  %v58_v26 = vld [vmem:[%s2625_s0 + $0x140] sm:$0xff]  ;;  %v67_v44 = vld [vmem:[%s2625_s0 + $0x188] sm:$0xff]  ;;  %v36_v14 = vld [vmem:[%s2625_s0 + $0x90] sm:$0xff] }
  0x1d   :  { %1629 = vmatpush3.bf16.msra.mxu1 %v1836_v27  ;;  %1566 = vmatprep.subr.bf16.mxu0 %v1837_v28  ;;  %v62_v27 = vld [vmem:[%s2625_s0 + $0x160] sm:$0xff]  ;;  %v1861_v28 = vld [vmem:[%s2624_s1 + $0x150] sm:$0xff]   ;;  %v71_v45 = vld [vmem:[%s2625_s0 + $0x1a8] sm:$0xff] }
  0x1e   :  { %1630 = vmatprep.subr.bf16.mxu1 %v1838_v29  ;;  %v59_v29 = vld [vmem:[%s2625_s0 + $0x148] sm:$0xff]  ;;  %v1465_v36 = vcombine.high %v58_v26, %v62_v27  ;;  %v1464_v47 = vcombine.low %v58_v26, %v62_v27  ;;  %v1474_v59 = vcombine.low %v67_v44, %v71_v45  ;;  %v40_v15 = vld [vmem:[%s2625_s0 + $0xb0] sm:$0xff] }
  0x1f   :  { %v75_v56 = vld [vmem:[%s2625_s0 + $0x1c8] sm:$0xff]  ;;  %v1444_v26 = vcombine.low %v36_v14, %v40_v15 }
  0x20   :  { %1567 = vmatpush3.bf16.msra.mxu0 %v1839_v30  ;;  %v63_v30 = vld [vmem:[%s2625_s0 + $0x168] sm:$0xff] }
  0x21   :  { %1631 = vmatpush3.bf16.msra.mxu1 %v1840_v31  ;;  %1680 = vmatprep.subr.bf16.mxu0 %v1841_v40  ;;  %v1862_v31 = vld [vmem:[%s2624_s1 + $0x110] sm:$0xff]   ;;  %v1467_v37 = vcombine.high %v59_v29, %v63_v30  ;;  %v1867_v40 = vld [vmem:[%s2624_s1 + $0x1c8] sm:$0xff]  }
  0x22   :  { %1744 = vmatprep.subr.bf16.mxu1 %v1843_v42  ;;  %v70_v42 = vld [vmem:[%s2625_s0 + $0x1a0] sm:$0xff]  ;;  %v79_v57 = vld [vmem:[%s2625_s0 + $0x1e8] sm:$0xff] }
  0x23   :  { %954 = vmatmul.mubr.bf16.vlgmr.msra.gmra.mxu0 %v1424_v35  ;;  %v1458_v35 = vcombine.low %v51_v16, %v55_v17  ;;  %v1482_v3 = vcombine.low %v75_v56, %v79_v57  ;;  %v37_v16 = vld [vmem:[%s2625_s0 + $0x98] sm:$0xff] }
  0x24   :  { %1051 = vmatmul.mubr.bf16.vlgmr.msra.gmra.mxu1 %v1426_v38  ;;  %1681 = vmatpush3.bf16.msra.mxu0 %v1842_v41  ;;  %v1865_v38 = vld [vmem:[%s2624_s1 + $0x148] sm:$0xff]   ;;  %v66_v41 = vld [vmem:[%s2625_s0 + $0x180] sm:$0xff]  ;;  %v41_v17 = vld [vmem:[%s2625_s0 + $0xb8] sm:$0xff] }
  0x25   :  { %1745 = vmatpush3.bf16.msra.mxu1 %v1844_v43  ;;  %961 = vmatprep.mubr.bf16.mxu0 %v1433_v46  ;;  %v1868_v43 = vld [vmem:[%s2624_s1 + $0x188] sm:$0xff]   ;;  %v1869_v46 = vld [vmem:[%s2624_s1 + $0x140] sm:$0xff]   ;;  %v1472_v58 = vcombine.low %v66_v41, %v70_v42  ;;  %v1446_v27 = vcombine.low %v37_v16, %v41_v17 }
  0x26   :  { %1058 = vmatprep.mubr.bf16.mxu1 %v1435_v49  ;;  %1682 = vmatprep.subr.bf16.mxu0 %v1845_v50  ;;  %v1466_v49 = vcombine.low %v59_v29, %v63_v30  ;;  %v1473_v50 = vcombine.high %v66_v41, %v70_v42  ;;  %v52_v30 = vld [vmem:[%s2625_s0 + $0x110] sm:$0xff]  ;;  %v65_v41 = vld [vmem:[%s2625_s0 + $0x178] sm:$0xff] }
  0x27   :  { %1746 = vmatprep.subr.bf16.mxu1 %v1847_v54  ;;  %v74_v54 = vld [vmem:[%s2625_s0 + $0x1c0] sm:$0xff] }
  0x28   :  { %1683 = vmatpush3.bf16.msra.mxu0 %v1846_v52  ;;  %v1475_v52 = vcombine.high %v67_v44, %v71_v45 }
  0x29   :  { %1747 = vmatpush3.bf16.msra.mxu1 %v1848_v55  ;;  %1684 = vmatprep.subr.bf16.mxu0 %v1849_v62  ;;  %v78_v55 = vld [vmem:[%s2625_s0 + $0x1e0] sm:$0xff]  ;;  %v20_v62 = vld [vmem:[%s2625_s0 + $0x10] sm:$0xff] }
  0x2a   :  { %1748 = vmatprep.subr.bf16.mxu1 %v1851_v0  ;;  %v21_v0 = vld [vmem:[%s2625_s0 + $0x18] sm:$0xff] }
  0x2b   :  { %962 = vmatmul.mubr.bf16.gmra.mxu0 %v1432_v51  ;;  %v1871_v51 = vld [vmem:[%s2624_s1 + $0x1c0] sm:$0xff]  }
  0x2c   :  { %1059 = vmatmul.mubr.bf16.gmra.mxu1 %v1434_v53  ;;  %969 = vmatprep.mubr.bf16.mxu0 %v1441_v60  ;;  %v1872_v53 = vld [vmem:[%s2624_s1 + $0x180] sm:$0xff]   ;;  %v1481_v60 = vcombine.high %v74_v54, %v78_v55 }
  0x2d   :  { %1066 = vmatprep.mubr.bf16.mxu1 %v1443_v61  ;;  %1685 = vmatpush3.bf16.msra.mxu0 %v1850_v63  ;;  %v1483_v61 = vcombine.high %v75_v56, %v79_v57  ;;  %v24_v63 = vld [vmem:[%s2625_s0 + $0x30] sm:$0xff]  ;;  %v77_v56 = vld [vmem:[%s2625_s0 + $0x1d8] sm:$0xff] }
  0x2e   :  { %1749 = vmatpush3.bf16.msra.mxu1 %v1852_v1  ;;  %1686 = vmatprep.subr.bf16.mxu0 %v1853_v10  ;;  %v25_v1 = vld [vmem:[%s2625_s0 + $0x38] sm:$0xff]  ;;  %v1429_v4 = vcombine.high %v20_v62, %v24_v63  ;;  %v1428_v10 = vcombine.low %v20_v62, %v24_v63 }
  0x2f   :  { %1750 = vmatprep.subr.bf16.mxu1 %v1855_v12  ;;  %v1431_v5 = vcombine.high %v21_v0, %v25_v1  ;;  %v81_v57 = vld [vmem:[%s2625_s0 + $0x1f8] sm:$0xff] }
  0x30   :  { %v1486_v63 = vcombine.low %v77_v56, %v81_v57 }
  0x31   :  { %1687 = vmatpush3.bf16.msra.mxu0 %v1854_v11  ;;  %v1430_v11 = vcombine.low %v21_v0, %v25_v1 }
  0x32   :  { %1751 = vmatpush3.bf16.msra.mxu1 %v1856_v13  ;;  %1688 = vmatprep.subr.bf16.mxu0 %v1857_v18 }
  0x33   :  { %970 = vmatmul.mubr.bf16.gmra.mxu0 %v1440_v2  ;;  %1752 = vmatprep.subr.bf16.mxu1 %v1859_v23  ;;  %v1480_v2 = vcombine.low %v74_v54, %v78_v55  ;;  %v48_v23 = vld [vmem:[%s2625_s0 + $0xf0] sm:$0xff] }
  0x34   :  { %1067 = vmatmul.mubr.bf16.gmra.mxu1 %v1442_v6  ;;  %977 = vmatprep.mubr.bf16.mxu0 %v1449_v7  ;;  %v28_v6 = vld [vmem:[%s2625_s0 + $0x50] sm:$0xff] }
  0x35   :  { %1074 = vmatprep.mubr.bf16.mxu1 %v1451_v9  ;;  %1689 = vmatpush3.bf16.msra.mxu0 %v1858_v20  ;;  %v32_v7 = vld [vmem:[%s2625_s0 + $0x70] sm:$0xff]  ;;  %v33_v9 = vld [vmem:[%s2625_s0 + $0x78] sm:$0xff]  ;;  %v1445_v20 = vcombine.high %v36_v14, %v40_v15 }
  0x36   :  { %1753 = vmatpush3.bf16.msra.mxu1 %v1860_v25  ;;  %1690 = vmatprep.subr.bf16.mxu0 %v1861_v28  ;;  %v1437_v12 = vcombine.high %v28_v6, %v32_v7  ;;  %v1439_v13 = vcombine.high %v29_v8, %v33_v9  ;;  %v1436_v18 = vcombine.low %v28_v6, %v32_v7  ;;  %v49_v25 = vld [vmem:[%s2625_s0 + $0xf8] sm:$0xff]  ;;  %v76_v54 = vld [vmem:[%s2625_s0 + $0x1d0] sm:$0xff] }
  0x37   :  { %1754 = vmatprep.subr.bf16.mxu1 %v1863_v32  ;;  %v53_v32 = vld [vmem:[%s2625_s0 + $0x118] sm:$0xff]  ;;  %v80_v55 = vld [vmem:[%s2625_s0 + $0x1f0] sm:$0xff] }
  0x38   :  { %v1484_v62 = vcombine.low %v76_v54, %v80_v55 }
  0x39   :  { %1691 = vmatpush3.bf16.msra.mxu0 %v1862_v31  ;;  %v56_v31 = vld [vmem:[%s2625_s0 + $0x130] sm:$0xff] }
  0x3a   :  { %1755 = vmatpush3.bf16.msra.mxu1 %v1864_v33  ;;  %1692 = vmatprep.subr.bf16.mxu0 %v1865_v38  ;;  %v57_v33 = vld [vmem:[%s2625_s0 + $0x138] sm:$0xff]  ;;  %v60_v38 = vld [vmem:[%s2625_s0 + $0x150] sm:$0xff]  ;;  %v1460_v42 = vcombine.low %v52_v30, %v56_v31 }
  0x3b   :  { %978 = vmatmul.mubr.bf16.gmra.mxu0 %v1448_v19  ;;  %1756 = vmatprep.subr.bf16.mxu1 %v1867_v40  ;;  %v1438_v19 = vcombine.low %v29_v8, %v33_v9  ;;  %v61_v40 = vld [vmem:[%s2625_s0 + $0x158] sm:$0xff]  ;;  %v1873_v9 = vmov 0.0  }
  0x3c   :  { %1075 = vmatmul.mubr.bf16.gmra.mxu1 %v1450_v21  ;;  %985 = vmatprep.mubr.bf16.mxu0 %v1457_v22  ;;  %v1447_v21 = vcombine.high %v37_v16, %v41_v17  ;;  %v44_v22 = vld [vmem:[%s2625_s0 + $0xd0] sm:$0xff]  ;;  %v1471_v45 = vcombine.high %v61_v40, %v65_v41  ;;  %1345 = vst [vmem:[%s2626_s4] sm:$0x1] %v1873_v9  ;;  %1346 = vst [vmem:[%s2627_s5] sm:$0x1] %v1873_v9 }
  0x3d   :  { %1082 = vmatprep.mubr.bf16.mxu1 %v1459_v24  ;;  %1693 = vmatpush3.bf16.msra.mxu0 %v1866_v39  ;;  %v45_v24 = vld [vmem:[%s2625_s0 + $0xd8] sm:$0xff]  ;;  %v1453_v28 = vcombine.high %v44_v22, %v48_v23  ;;  %v64_v39 = vld [vmem:[%s2625_s0 + $0x170] sm:$0xff] }
  0x3e   :  { %1757 = vmatpush3.bf16.msra.mxu1 %v1868_v43  ;;  %1694 = vmatprep.subr.bf16.mxu0 %v1869_v46  ;;  %v1455_v29 = vcombine.high %v45_v24, %v49_v25  ;;  %v1462_v43 = vcombine.low %v53_v32, %v57_v33  ;;  %v1469_v44 = vcombine.high %v60_v38, %v64_v39  ;;  %v68_v46 = vld [vmem:[%s2625_s0 + $0x190] sm:$0xff] }
  0x3f   :  { %1758 = vmatprep.subr.bf16.mxu1 %v1871_v51  ;;  %v1470_v51 = vcombine.low %v61_v40, %v65_v41 }
  0x41   :  { %1695 = vmatpush3.bf16.msra.mxu0 %v1870_v48  ;;  %v69_v48 = vld [vmem:[%s2625_s0 + $0x198] sm:$0xff] }
  0x42   :  { %1759 = vmatpush3.bf16.msra.mxu1 %v1872_v53 }
  0x43   :  { %986 = vmatmul.mubr.bf16.gmra.mxu0 %v1456_v34  ;;  %v1452_v34 = vcombine.low %v44_v22, %v48_v23 }
  0x44   :  { %1083 = vmatmul.mubr.bf16.gmra.mxu1 %v1458_v35  ;;  %993 = vmatprep.mubr.bf16.mxu0 %v1465_v36  ;;  %v1454_v35 = vcombine.low %v45_v24, %v49_v25  ;;  %v1461_v36 = vcombine.high %v52_v30, %v56_v31 }
  0x45   :  { %1090 = vmatprep.mubr.bf16.mxu1 %v1467_v37  ;;  %v1463_v37 = vcombine.high %v53_v32, %v57_v33 }
  0x4b   :  { %994 = vmatmul.mubr.bf16.gmra.mxu0 %v1464_v47  ;;  %v72_v47 = vld [vmem:[%s2625_s0 + $0x1b0] sm:$0xff] }
  0x4c   :  { %1091 = vmatmul.mubr.bf16.gmra.mxu1 %v1466_v49  ;;  %1001 = vmatprep.mubr.bf16.mxu0 %v1473_v50  ;;  %v73_v49 = vld [vmem:[%s2625_s0 + $0x1b8] sm:$0xff]  ;;  %v1468_v50 = vcombine.low %v60_v38, %v64_v39 }
  0x4d   :  { %1098 = vmatprep.mubr.bf16.mxu1 %v1475_v52  ;;  %v1477_v52 = vcombine.high %v68_v46, %v72_v47  ;;  %v1479_v53 = vcombine.high %v69_v48, %v73_v49 }
  0x53   :  { %1002 = vmatmul.mubr.bf16.gmra.mxu0 %v1472_v58  ;;  %v1476_v58 = vcombine.low %v68_v46, %v72_v47 }
  0x54   :  { %1099 = vmatmul.mubr.bf16.gmra.mxu1 %v1474_v59  ;;  %1009 = vmatprep.mubr.bf16.mxu0 %v1481_v60  ;;  %v1478_v59 = vcombine.low %v69_v48, %v73_v49  ;;  %v1485_v60 = vcombine.high %v76_v54, %v80_v55 }
  0x55   :  { %1106 = vmatprep.mubr.bf16.mxu1 %v1483_v61  ;;  %v1487_v61 = vcombine.high %v77_v56, %v81_v57 }
  0x5b   :  { %1010 = vmatmul.mubr.bf16.gmra.mxu0 %v1480_v2 }
  0x5c   :  { %1107 = vmatmul.mubr.bf16.gmra.mxu1 %v1482_v3  ;;  %1147 = vmatprep.mubr.bf16.mxu0 %v1429_v4 }
  0x5d   :  { %1244 = vmatprep.mubr.bf16.mxu1 %v1431_v5 }
  0x63   :  { %1148 = vmatmul.mubr.bf16.vlgmr.msra.gmra.mxu0 %v1428_v10 }
  0x64   :  { %1245 = vmatmul.mubr.bf16.vlgmr.msra.gmra.mxu1 %v1430_v11  ;;  %1155 = vmatprep.mubr.bf16.mxu0 %v1437_v12 }
  0x65   :  { %1252 = vmatprep.mubr.bf16.mxu1 %v1439_v13 }
  0x6b   :  { %1156 = vmatmul.mubr.bf16.gmra.mxu0 %v1436_v18 }
  0x6c   :  { %1253 = vmatmul.mubr.bf16.gmra.mxu1 %v1438_v19  ;;  %1163 = vmatprep.mubr.bf16.mxu0 %v1445_v20 }
  0x6d   :  { %1260 = vmatprep.mubr.bf16.mxu1 %v1447_v21 }
  0x73   :  { %1164 = vmatmul.mubr.bf16.gmra.mxu0 %v1444_v26 }
  0x74   :  { %1261 = vmatmul.mubr.bf16.gmra.mxu1 %v1446_v27  ;;  %1171 = vmatprep.mubr.bf16.mxu0 %v1453_v28 }
  0x75   :  { %1268 = vmatprep.mubr.bf16.mxu1 %v1455_v29 }
  0x7b   :  { %1172 = vmatmul.mubr.bf16.gmra.mxu0 %v1452_v34 }
  0x7c   :  { %1269 = vmatmul.mubr.bf16.gmra.mxu1 %v1454_v35  ;;  %1179 = vmatprep.mubr.bf16.mxu0 %v1461_v36 }
  0x7d   :  { %1276 = vmatprep.mubr.bf16.mxu1 %v1463_v37 }
  0x83   :  { %1180 = vmatmul.mubr.bf16.gmra.mxu0 %v1460_v42 }
  0x84   :  { %1277 = vmatmul.mubr.bf16.gmra.mxu1 %v1462_v43  ;;  %1187 = vmatprep.mubr.bf16.mxu0 %v1469_v44 }
  0x85   :  { %1284 = vmatprep.mubr.bf16.mxu1 %v1471_v45 }
  0x8b   :  { %1188 = vmatmul.mubr.bf16.gmra.mxu0 %v1468_v50 }
  0x8c   :  { %1285 = vmatmul.mubr.bf16.gmra.mxu1 %v1470_v51  ;;  %1195 = vmatprep.mubr.bf16.mxu0 %v1477_v52 }
  0x8d   :  { %1292 = vmatprep.mubr.bf16.mxu1 %v1479_v53 }
  0x93   :  { %1196 = vmatmul.mubr.bf16.gmra.mxu0 %v1476_v58 }
  0x94   :  { %1293 = vmatmul.mubr.bf16.gmra.mxu1 %v1478_v59  ;;  %1203 = vmatprep.mubr.bf16.mxu0 %v1485_v60 }
  0x95   :  { %1300 = vmatprep.mubr.bf16.mxu1 %v1487_v61 }
  0x9b   :  { %1204 = vmatmul.mubr.bf16.gmra.mxu0 %v1484_v62  ;;  %v2417_v62 = vld [vmem:[%s2628_s2] ss:$0 sm:$0xff] }
  0x9c   :  { %1301 = vmatmul.mubr.bf16.gmra.mxu1 %v1486_v63 }
  0xe3   :  { %v2288_v0 = vpop.f32.mrf.mxu0 }
  0xe4   :  { %v2290_v1 = vpop.f32.mrf.mxu1 }
  0xe5   :  { %v2292_v2 = vpop.f32.mrf.mxu0 }
  0xe6   :  { %v2294_v3 = vpop.f32.mrf.mxu1  ;;  %v1570_v60 = vadd.f32 %v2292_v2, %v2288_v0 }
  0xe7   :  { %v2296_v4 = vpop.f32.mrf.mxu0  ;;  %v1634_v2 = vadd.f32 %v2294_v3, %v2290_v1 }
  0xe8   :  { %v2298_v5 = vpop.f32.mrf.mxu1 }
  0xe9   :  { %v1572_v6 = vpop.f32.mrf.mxu0 }
  0xea   :  { %v2300_v7 = vpop.f32.mrf.mxu1 }
  0xeb   :  { %v2302_v8 = vpop.f32.mrf.mxu0 }
  0xec   :  { %v2310_v10 = vpop.f32.mrf.mxu1 }
  0xed   :  { %v2312_v11 = vpop.f32.mrf.mxu0 }
  0xee   :  { %v2314_v12 = vpop.f32.mrf.mxu1 }
  0xef   :  { %v2316_v13 = vpop.f32.mrf.mxu0 }
  0xf0   :  { %v2318_v14 = vpop.f32.mrf.mxu1 }
  0xf1   :  { %v2320_v15 = vpop.f32.mrf.mxu0 }
  0xf2   :  { %v2322_v16 = vpop.f32.mrf.mxu1  ;;  %v1579_v3 = vadd.f32 %v2320_v15, %v2316_v13 }
  0xf3   :  { %v2324_v17 = vpop.f32.mrf.mxu0 }
  0xf4   :  { %v2326_v18 = vpop.f32.mrf.mxu1 }
  0xf5   :  { %v2328_v19 = vpop.f32.mrf.mxu0 }
  0xf6   :  { %v2330_v20 = vpop.f32.mrf.mxu1 }
  0xf7   :  { %v2332_v21 = vpop.f32.mrf.mxu0 }
  0xf8   :  { %v2334_v22 = vpop.f32.mrf.mxu1 }
  0xf9   :  { %v2336_v23 = vpop.f32.mrf.mxu0 }
  0xfa   :  { %v2338_v24 = vpop.f32.mrf.mxu1 }
  0xfb   :  { %v2340_v25 = vpop.f32.mrf.mxu0 }
  0xfc   :  { %v2342_v26 = vpop.f32.mrf.mxu1 }
  0xfd   :  { %v2344_v27 = vpop.f32.mrf.mxu0 }
  0xfe   :  { %v2346_v28 = vpop.f32.mrf.mxu1 }
  0xff   :  { %v2348_v29 = vpop.f32.mrf.mxu0 }
 0x100   :  { %v2350_v30 = vpop.f32.mrf.mxu1 }
 0x101   :  { %v2352_v31 = vpop.f32.mrf.mxu0 }
 0x102   :  { %v2354_v32 = vpop.f32.mrf.mxu1 }
 0x103   :  { %v2356_v33 = vpop.f32.mrf.mxu0 }
 0x104   :  { %v2358_v34 = vpop.f32.mrf.mxu1 }
 0x105   :  { %v2360_v35 = vpop.f32.mrf.mxu0 }
 0x106   :  { %v2362_v36 = vpop.f32.mrf.mxu1 }
 0x107   :  { %v2364_v37 = vpop.f32.mrf.mxu0 }
 0x108   :  { %v2366_v38 = vpop.f32.mrf.mxu1 }
 0x109   :  { %v2368_v39 = vpop.f32.mrf.mxu0 }
 0x10a   :  { %v2370_v40 = vpop.f32.mrf.mxu1 }
 0x10b   :  { %v2372_v41 = vpop.f32.mrf.mxu0 }
 0x10c   :  { %v2374_v42 = vpop.f32.mrf.mxu1 }
 0x10d   :  { %v2376_v43 = vpop.f32.mrf.mxu0 }
 0x10e   :  { %v2378_v44 = vpop.f32.mrf.mxu1 }
 0x10f   :  { %v2380_v45 = vpop.f32.mrf.mxu0 }
 0x110   :  { %v2382_v46 = vpop.f32.mrf.mxu1 }
 0x111   :  { %v2384_v47 = vpop.f32.mrf.mxu0 }
 0x112   :  { %v2386_v48 = vpop.f32.mrf.mxu1 }
 0x113   :  { %2630 = vst [vmem:[#allocation2_spill] sm:$0xff] %v2386_v48  ;;  %v2388_v49 = vpop.f32.mrf.mxu0 }
 0x114   :  { %v2390_v50 = vpop.f32.mrf.mxu1 }
 0x115   :  { %2631 = vst [vmem:[#allocation3_spill] sm:$0xff] %v2390_v50  ;;  %v2392_v51 = vpop.f32.mrf.mxu0 }
 0x116   :  { %v2394_v52 = vpop.f32.mrf.mxu1 }
 0x117   :  { %2632 = vst [vmem:[#allocation4_spill] sm:$0xff] %v2394_v52  ;;  %v2396_v53 = vpop.f32.mrf.mxu0 }
 0x118   :  { %2633 = vst [vmem:[#allocation5_spill] sm:$0xff] %v2396_v53  ;;  %v2398_v54 = vpop.f32.mrf.mxu1 }
 0x119   :  { %2634 = vst [vmem:[#allocation6_spill] sm:$0xff] %v2398_v54  ;;  %v2400_v55 = vpop.f32.mrf.mxu0 }
 0x11a   :  { %2635 = vst [vmem:[#allocation7_spill] sm:$0xff] %v2400_v55  ;;  %v2402_v56 = vpop.f32.mrf.mxu1 }
 0x11b   :  { %2636 = vst [vmem:[#allocation8_spill] sm:$0xff] %v2402_v56  ;;  %v2404_v57 = vpop.f32.mrf.mxu0  ;;  %v1573_v56 = vadd.f32 %v1572_v6, %v2296_v4  ;;  %v1637_v6 = vadd.f32 %v2300_v7, %v2298_v5 }
 0x11c   :  { %2637 = vst [vmem:[#allocation9_spill] sm:$0xff] %v2404_v57  ;;  %v2406_v58 = vpop.f32.mrf.mxu1 }
 0x11d   :  { %2638 = vst [vmem:[#allocation10_spill] sm:$0xff] %v2406_v58  ;;  %v2408_v59 = vpop.f32.mrf.mxu0  ;;  %v956_v58 = vadd.f32 %v1570_v60, %v2417_v62  ;;  %v959_v57 = vadd.f32 %v1573_v56, %v2417_v62 }
 0x11e   :  { %2639 = vst [vmem:[#allocation11_spill] sm:$0xff] %v2408_v59  ;;  %v2412_v61 = vpop.f32.mrf.mxu1 }
 0x11f   :  { %2640 = vst [vmem:[#allocation12_spill] sm:$0xff] %v2412_v61  ;;  %v2419_v63 = vpop.f32.mrf.mxu0  ;;  %v1053_v50 = vadd.f32 %v1634_v2, %v956_v58  ;;  %v1056_v53 = vadd.f32 %v1637_v6, %v959_v57  ;;  %v1582_v57 = vadd.f32 %v2328_v19, %v2324_v17 }
 0x120   :  { %2641 = vst [vmem:[#allocation13_spill] sm:$0xff] %v2419_v63  ;;  %v2421_v9 = vpop.f32.mrf.mxu1 }
 0x121   :  { %2642 = vst [vmem:[#allocation14_spill] sm:$0xff] %v2421_v9  ;;  %v2424_v54 = vpop.f32.mrf.mxu0  ;;  %v1576_v9 = vadd.f32 %v2312_v11, %v2302_v8  ;;  %v1640_v11 = vadd.f32 %v2314_v12, %v2310_v10 }
 0x122   :  { %2643 = vst [vmem:[#allocation15_spill] sm:$0xff] %v2424_v54  ;;  %v2427_v59 = vpop.f32.mrf.mxu1 }
 0x123   :  { %2644 = vst [vmem:[#allocation16_spill] sm:$0xff] %v2427_v59  ;;  %v1696_v0 = vpop.f32.mrf.mxu0  ;;  %v964_v1 = vadd.f32 %v1576_v9, %v2417_v62  ;;  %v967_v9 = vadd.f32 %v1579_v3, %v2417_v62 }
 0x124   :  { %v1760_v61 = vpop.f32.mrf.mxu1 }
 0x125   :  { %v1697_v52 = vpop.f32.mrf.mxu0 }
 0x126   :  { %v1698_v63 = vadd.f32 %v1697_v52, %v1696_v0  ;;  %v1761_v4 = vpop.f32.mrf.mxu1 }
 0x127   :  { %v1699_v60 = vpop.f32.mrf.mxu0  ;;  %v1762_v59 = vadd.f32 %v1761_v4, %v1760_v61  ;;  %v1585_v4 = vadd.f32 %v2336_v23, %v2332_v21  ;;  %v1588_v23 = vadd.f32 %v2344_v27, %v2340_v25  ;;  %v1591_v25 = vadd.f32 %v2352_v31, %v2348_v29 }
 0x128   :  { %v1150_v54 = vadd.f32 %v1698_v63, %v1053_v50  ;;  %v1763_v55 = vpop.f32.mrf.mxu1  ;;  %v1061_v63 = vadd.f32 %v1640_v11, %v964_v1 }
 0x129   :  { %v1700_v48 = vpop.f32.mrf.mxu0  ;;  %v975_v21 = vadd.f32 %v1585_v4, %v2417_v62 }
 0x12a   :  { %v1247_v56 = vadd.f32 %v1762_v59, %v1150_v54  ;;  %v1701_v58 = vadd.f32 %v1700_v48, %v1699_v60  ;;  %v1764_v2 = vpop.f32.mrf.mxu1  ;;  %v1643_v48 = vadd.f32 %v2322_v16, %v2318_v14  ;;  %v1646_v16 = vadd.f32 %v2330_v20, %v2326_v18 }
 0x12b   :  { %v1702_v8 = vpop.f32.mrf.mxu0  ;;  %v1765_v7 = vadd.f32 %v1764_v2, %v1763_v55  ;;  %v972_v55 = vadd.f32 %v1582_v57, %v2417_v62 }
 0x12c   :  { %v2441_v52 = vmax.f32 %v1247_v56, 0.0  ;;  %v1153_v5 = vadd.f32 %v1701_v58, %v1056_v53  ;;  %v1766_v50 = vpop.f32.mrf.mxu1  ;;  %v1064_v0 = vadd.f32 %v1643_v48, %v967_v9  ;;  %v1652_v48 = vadd.f32 %v2346_v28, %v2342_v26 }
 0x12d   :  { %v1703_v61 = vpop.f32.mrf.mxu0  ;;  %v1655_v28 = vadd.f32 %v2354_v32, %v2350_v30 }
 0x12e   :  { %1325 = vst [vmem:[%s2629_s3] sm:$0xff] %v2441_v52  ;;  %v1250_v13 = vadd.f32 %v1765_v7, %v1153_v5  ;;  %v1704_v15 = vadd.f32 %v1703_v61, %v1702_v8  ;;  %v1767_v10 = vpop.f32.mrf.mxu1  ;;  %v1069_v8 = vadd.f32 %v1646_v16, %v972_v55 }
 0x12f   :  { %v1705_v12 = vpop.f32.mrf.mxu0  ;;  %v1768_v17 = vadd.f32 %v1767_v10, %v1766_v50  ;;  %v1649_v50 = vadd.f32 %v2338_v24, %v2334_v22 }
 0x130   :  { %v2452_v53 = vmax.f32 %v1250_v13, 0.0  ;;  %v1158_v54 = vadd.f32 %v1704_v15, %v1061_v63  ;;  %v1769_v19 = vpop.f32.mrf.mxu1  ;;  %v980_v15 = vadd.f32 %v1588_v23, %v2417_v62 }
 0x131   :  { %v1706_v59 = vpop.f32.mrf.mxu0  ;;  %v1072_v13 = vadd.f32 %v1649_v50, %v975_v21  ;;  %v1658_v21 = vadd.f32 %v2362_v36, %v2358_v34 }
 0x132   :  { %1326 = vst [vmem:[%s2629_s3 + $0x8] sm:$0xff] %v2452_v53  ;;  %v1255_v6 = vadd.f32 %v1768_v17, %v1158_v54  ;;  %v1707_v60 = vadd.f32 %v1706_v59, %v1705_v12  ;;  %v1770_v14 = vpop.f32.mrf.mxu1  ;;  %v1077_v59 = vadd.f32 %v1652_v48, %v980_v15  ;;  %v1373_v48 = vmul.f32 %v2452_v53, %v2452_v53 }
 0x133   :  { %v1708_v1 = vpop.f32.mrf.mxu0  ;;  %v1771_v58 = vadd.f32 %v1770_v14, %v1769_v19  ;;  %v983_v19 = vadd.f32 %v1591_v25, %v2417_v62 }
 0x134   :  { %v2463_v3 = vmax.f32 %v1255_v6, 0.0  ;;  %v1161_v56 = vadd.f32 %v1707_v60, %v1064_v0  ;;  %v1772_v2 = vpop.f32.mrf.mxu1  ;;  %v1594_v0 = vadd.f32 %v2360_v35, %v2356_v33  ;;  %v1597_v35 = vadd.f32 %v2368_v39, %v2364_v37 }
 0x135   :  { %v1709_v11 = vpop.f32.mrf.mxu0  ;;  %v1600_v37 = vadd.f32 %v2376_v43, %v2372_v41 }
 0x136   :  { %1327 = vst [vmem:[%s2629_s3 + $0x10] sm:$0xff] %v2463_v3  ;;  %v1258_v5 = vadd.f32 %v1771_v58, %v1161_v56  ;;  %v1710_v18 = vadd.f32 %v1709_v11, %v1708_v1  ;;  %v1773_v20 = vpop.f32.mrf.mxu1  ;;  %v1080_v58 = vadd.f32 %v1655_v28, %v983_v19  ;;  %v988_v33 = vadd.f32 %v1594_v0, %v2417_v62 }
 0x137   :  { %v1711_v7 = vpop.f32.mrf.mxu0  ;;  %v1774_v63 = vadd.f32 %v1773_v20, %v1772_v2  ;;  %v991_v50 = vadd.f32 %v1597_v35, %v2417_v62  ;;  %v1374_v0 = vmul.f32 %v2463_v3, %v2463_v3  ;;  %v2647_v35 = vld [vmem:[#allocation7_spill] sm:$0xff] }
 0x138   :  { %v2474_v57 = vmax.f32 %v1258_v5, 0.0  ;;  %v1166_v61 = vadd.f32 %v1710_v18, %v1069_v8  ;;  %v1775_v9 = vpop.f32.mrf.mxu1 }
 0x139   :  { %v1712_v27 = vpop.f32.mrf.mxu0 }
 0x13a   :  { %1328 = vst [vmem:[%s2629_s3 + $0x18] sm:$0xff] %v2474_v57  ;;  %v1263_v10 = vadd.f32 %v1774_v63, %v1166_v61  ;;  %v1713_v12 = vadd.f32 %v1712_v27, %v1711_v7  ;;  %v1776_v22 = vpop.f32.mrf.mxu1  ;;  %v1085_v7 = vadd.f32 %v1658_v21, %v988_v33  ;;  %v2646_v33 = vld [vmem:[#allocation5_spill] sm:$0xff] }
 0x13b   :  { %v1714_v24 = vpop.f32.mrf.mxu0  ;;  %v1777_v29 = vadd.f32 %v1776_v22, %v1775_v9  ;;  %v1661_v9 = vadd.f32 %v2370_v40, %v2366_v38  ;;  %v1664_v40 = vadd.f32 %v2378_v44, %v2374_v42 }
 0x13c   :  { %v2485_v54 = vmax.f32 %v1263_v10, 0.0  ;;  %v1169_v17 = vadd.f32 %v1713_v12, %v1072_v13  ;;  %v1778_v31 = vpop.f32.mrf.mxu1  ;;  %v996_v13 = vadd.f32 %v1600_v37, %v2417_v62  ;;  %v1603_v12 = vadd.f32 %v2384_v47, %v2380_v45 }
 0x13d   :  { %v1715_v55 = vpop.f32.mrf.mxu0  ;;  %v1088_v10 = vadd.f32 %v1661_v9, %v991_v50  ;;  %v2648_v50 = vld [vmem:[#allocation3_spill] sm:$0xff] }
 0x13e   :  { %1329 = vst [vmem:[%s2629_s3 + $0x20] sm:$0xff] %v2485_v54  ;;  %v1266_v4 = vadd.f32 %v1777_v29, %v1169_v17  ;;  %v1716_v6 = vadd.f32 %v1715_v55, %v1714_v24  ;;  %v1779_v26 = vpop.f32.mrf.mxu1  ;;  %v1093_v47 = vadd.f32 %v1664_v40, %v996_v13  ;;  %v1372_v55 = vmul.f32 %v2441_v52, %v2441_v52 }
 0x13f   :  { %v1717_v60 = vpop.f32.mrf.mxu0  ;;  %v1780_v1 = vadd.f32 %v1779_v26, %v1778_v31  ;;  %v999_v44 = vadd.f32 %v1603_v12, %v2417_v62  ;;  %v2650_v12 = vld [vmem:[#allocation9_spill] sm:$0xff] }
 0x140   :  { %v2496_v14 = vmax.f32 %v1266_v4, 0.0  ;;  %v1174_v16 = vadd.f32 %v1716_v6, %v1077_v59  ;;  %v1781_v56 = vpop.f32.mrf.mxu1  ;;  %v1348_v59 = vadd.f32 %v2452_v53, %v2441_v52  ;;  %v1606_v4 = vadd.f32 %v2392_v51, %v2388_v49 }
 0x141   :  { %v1718_v2 = vpop.f32.mrf.mxu0  ;;  %v1375_v53 = vmul.f32 %v2474_v57, %v2474_v57 }
 0x142   :  { %1330 = vst [vmem:[%s2629_s3 + $0x28] sm:$0xff] %v2496_v14  ;;  %v1271_v8 = vadd.f32 %v1780_v1, %v1174_v16  ;;  %v1719_v30 = vadd.f32 %v1718_v2, %v1717_v60  ;;  %v1782_v32 = vpop.f32.mrf.mxu1  ;;  %v1388_v60 = vadd.f32 %v1373_v48, %v1372_v55  ;;  %v1349_v52 = vadd.f32 %v1348_v59, %v2463_v3  ;;  %v2645_v1 = vld [vmem:[#allocation2_spill] sm:$0xff] }
 0x143   :  { %v1720_v11 = vpop.f32.mrf.mxu0  ;;  %v1783_v18 = vadd.f32 %v1782_v32, %v1781_v56  ;;  %v1667_v56 = vadd.f32 %v2645_v1, %v2382_v46  ;;  %v1376_v3 = vmul.f32 %v2485_v54, %v2485_v54 }
 0x144   :  { %v2507_v23 = vmax.f32 %v1271_v8, 0.0  ;;  %v1177_v5 = vadd.f32 %v1719_v30, %v1080_v58  ;;  %v1784_v20 = vpop.f32.mrf.mxu1  ;;  %v1609_v8 = vadd.f32 %v2647_v35, %v2646_v33  ;;  %v1389_v30 = vadd.f32 %v1388_v60, %v1374_v0  ;;  %v2656_v35 = vld [vmem:[#allocation10_spill] sm:$0xff] }
 0x145   :  { %v1721_v39 = vpop.f32.mrf.mxu0  ;;  %v1350_v32 = vadd.f32 %v1349_v52, %v2474_v57  ;;  %v1096_v21 = vadd.f32 %v1667_v56, %v999_v44  ;;  %v1377_v57 = vmul.f32 %v2496_v14, %v2496_v14 }
 0x146   :  { %1331 = vst [vmem:[%s2629_s3 + $0x30] sm:$0xff] %v2507_v23  ;;  %v1274_v61 = vadd.f32 %v1783_v18, %v1177_v5  ;;  %v1722_v63 = vadd.f32 %v1721_v39, %v1720_v11  ;;  %v1785_v34 = vpop.f32.mrf.mxu1  ;;  %v1004_v5 = vadd.f32 %v1606_v4, %v2417_v62  ;;  %v1390_v37 = vadd.f32 %v1389_v30, %v1375_v53  ;;  %v2654_v53 = vld [vmem:[#allocation13_spill] sm:$0xff] }
 0x147   :  { %v1723_v36 = vpop.f32.mrf.mxu0  ;;  %v1786_v41 = vadd.f32 %v1785_v34, %v1784_v20  ;;  %v1351_v39 = vadd.f32 %v1350_v32, %v2485_v54 }
 0x148   :  { %v2518_v25 = vmax.f32 %v1274_v61, 0.0  ;;  %v1182_v27 = vadd.f32 %v1722_v63, %v1085_v7  ;;  %v1787_v43 = vpop.f32.mrf.mxu1  ;;  %v2649_v61 = vld [vmem:[#allocation4_spill] sm:$0xff] }
 0x149   :  { %v1724_v15 = vpop.f32.mrf.mxu0  ;;  %v1670_v63 = vadd.f32 %v2649_v61, %v2648_v50  ;;  %v1352_v13 = vadd.f32 %v1351_v39, %v2496_v14 }
 0x14a   :  { %1332 = vst [vmem:[%s2629_s3 + $0x38] sm:$0xff] %v2518_v25  ;;  %v1279_v22 = vadd.f32 %v1786_v41, %v1182_v27  ;;  %v1725_v24 = vadd.f32 %v1724_v15, %v1723_v36  ;;  %v1788_v38 = vpop.f32.mrf.mxu1  ;;  %v1007_v41 = vadd.f32 %v1609_v8, %v2417_v62  ;;  %v1378_v15 = vmul.f32 %v2507_v23, %v2507_v23  ;;  %v2657_v8 = vld [vmem:[#allocation12_spill] sm:$0xff] }
 0x14b   :  { %v1726_v17 = vpop.f32.mrf.mxu0  ;;  %v1789_v19 = vadd.f32 %v1788_v38, %v1787_v43  ;;  %v1391_v43 = vadd.f32 %v1390_v37, %v1376_v3  ;;  %v1353_v14 = vadd.f32 %v1352_v13, %v2507_v23  ;;  %v2655_v23 = vld [vmem:[#allocation15_spill] sm:$0xff]  ;;  %v1676_v30 = vadd.f32 %v2657_v8, %v2656_v35  ;;  %v1371_v35 = vld [vmem:[%s2627_s5] sm:$0x1] }
 0x14c   :  { %v2531_v29 = vmax.f32 %v1279_v22, 0.0  ;;  %v1185_v31 = vadd.f32 %v1725_v24, %v1088_v10  ;;  %v1790_v45 = vpop.f32.mrf.mxu1  ;;  %v1101_v10 = vadd.f32 %v1670_v63, %v1004_v5  ;;  %v2651_v22 = vld [vmem:[#allocation11_spill] sm:$0xff] }
 0x14d   :  { %v1727_v42 = vpop.f32.mrf.mxu0  ;;  %v1612_v24 = vadd.f32 %v2651_v22, %v2650_v12 }
 0x14e   :  { %1333 = vst [vmem:[%s2629_s3 + $0x40] sm:$0xff] %v2531_v29  ;;  %v1282_v6 = vadd.f32 %v1789_v19, %v1185_v31  ;;  %v1728_v26 = vadd.f32 %v1727_v42, %v1726_v17  ;;  %v1791_v28 = vpop.f32.mrf.mxu1  ;;  %v2652_v17 = vld [vmem:[#allocation6_spill] sm:$0xff]  ;;  %v2653_v31 = vld [vmem:[#allocation8_spill] sm:$0xff] }
 0x14f   :  { %v1729_v16 = vpop.f32.mrf.mxu0  ;;  %v1792_v51 = vadd.f32 %v1791_v28, %v1790_v45  ;;  %v1673_v19 = vadd.f32 %v2653_v31, %v2652_v17  ;;  %v1392_v45 = vadd.f32 %v1391_v43, %v1377_v57  ;;  %v1380_v28 = vmul.f32 %v2531_v29, %v2531_v29 }
 0x150   :  { %v2551_v58 = vmax.f32 %v1282_v6, 0.0  ;;  %v1190_v49 = vadd.f32 %v1728_v26, %v1093_v47  ;;  %v1793_v2 = vpop.f32.mrf.mxu1  ;;  %v1379_v47 = vmul.f32 %v2518_v25, %v2518_v25  ;;  %v1354_v26 = vadd.f32 %v1353_v14, %v2518_v25 }
 0x151   :  { %v1730_v11 = vpop.f32.mrf.mxu0  ;;  %v1104_v4 = vadd.f32 %v1673_v19, %v1007_v41  ;;  %v1393_v6 = vadd.f32 %v1392_v45, %v1378_v15  ;;  %v1012_v52 = vadd.f32 %v1612_v24, %v2417_v62 }
 0x152   :  { %1334 = vst [vmem:[%s2629_s3 + $0x48] sm:$0xff] %v2551_v58  ;;  %v1287_v46 = vadd.f32 %v1792_v51, %v1190_v49  ;;  %v1731_v18 = vadd.f32 %v1730_v11, %v1729_v16  ;;  %v1794_v20 = vpop.f32.mrf.mxu1  ;;  %v1615_v16 = vadd.f32 %v2655_v23, %v2654_v53  ;;  %v1381_v25 = vmul.f32 %v2551_v58, %v2551_v58 }
 0x153   :  { %v1732_v7 = vpop.f32.mrf.mxu0  ;;  %v1795_v9 = vadd.f32 %v1794_v20, %v1793_v2  ;;  %v1394_v51 = vadd.f32 %v1393_v6, %v1379_v47  ;;  %v1355_v2 = vadd.f32 %v1354_v26, %v2531_v29  ;;  %v1109_v37 = vadd.f32 %v1676_v30, %v1012_v52 }
 0x154   :  { %v1319_v34 = vmax.f32 %v1287_v46, 0.0  ;;  %v1193_v36 = vadd.f32 %v1731_v18, %v1096_v21  ;;  %v1796_v27 = vpop.f32.mrf.mxu1  ;;  %v1015_v39 = vadd.f32 %v1615_v16, %v2417_v62 }
 0x155   :  { %v1733_v54 = vpop.f32.mrf.mxu0  ;;  %v1395_v5 = vadd.f32 %v1394_v51, %v1380_v28  ;;  %v1356_v46 = vadd.f32 %v1355_v2, %v2551_v58  ;;  %v1347_v2 = vld [vmem:[%s2626_s4] sm:$0x1] }
 0x156   :  { %1335 = vst [vmem:[%s2629_s3 + $0x50] sm:$0xff] %v1319_v34  ;;  %v1290_v38 = vadd.f32 %v1795_v9, %v1193_v36  ;;  %v1734_v40 = vadd.f32 %v1733_v54, %v1732_v7  ;;  %v1797_v48 = vpop.f32.mrf.mxu1  ;;  %v1382_v18 = vmul.f32 %v1319_v34, %v1319_v34  ;;  %v2658_v9 = vld [vmem:[#allocation14_spill] sm:$0xff] }
 0x157   :  { %v1735_v55 = vpop.f32.mrf.mxu0  ;;  %v1798_v42 = vadd.f32 %v1797_v48, %v1796_v27  ;;  %v1396_v50 = vadd.f32 %v1395_v5, %v1381_v25  ;;  %v1357_v61 = vadd.f32 %v1356_v46, %v1319_v34  ;;  %v2659_v27 = vld [vmem:[#allocation16_spill] sm:$0xff] }
 0x158   :  { %v1320_v59 = vmax.f32 %v1290_v38, 0.0  ;;  %v1198_v0 = vadd.f32 %v1734_v40, %v1101_v10  ;;  %v1799_v44 = vpop.f32.mrf.mxu1  ;;  %v1679_v41 = vadd.f32 %v2659_v27, %v2658_v9 }
 0x159   :  { %v1736_v60 = vpop.f32.mrf.mxu0  ;;  %v1397_v54 = vadd.f32 %v1396_v50, %v1382_v18 }
 0x15a   :  { %1336 = vst [vmem:[%s2629_s3 + $0x58] sm:$0xff] %v1320_v59  ;;  %v1295_v1 = vadd.f32 %v1798_v42, %v1198_v0  ;;  %v1737_v56 = vadd.f32 %v1736_v60, %v1735_v55  ;;  %v1800_v49 = vpop.f32.mrf.mxu1  ;;  %v1383_v63 = vmul.f32 %v1320_v59, %v1320_v59  ;;  %v1358_v62 = vadd.f32 %v1357_v61, %v1320_v59 }
 0x15b   :  { %v1738_v33 = vpop.f32.mrf.mxu0  ;;  %v1801_v11 = vadd.f32 %v1800_v49, %v1799_v44  ;;  %v1112_v12 = vadd.f32 %v1679_v41, %v1015_v39 }
 0x15c   :  { %v1321_v32 = vmax.f32 %v1295_v1, 0.0  ;;  %v1201_v3 = vadd.f32 %v1737_v56, %v1104_v4  ;;  %v1802_v21 = vpop.f32.mrf.mxu1  ;;  %v1398_v40 = vadd.f32 %v1397_v54, %v1383_v63 }
 0x15d   :  { %v1739_v20 = vpop.f32.mrf.mxu0 }
 0x15e   :  { %1337 = vst [vmem:[%s2629_s3 + $0x60] sm:$0xff] %v1321_v32  ;;  %v1298_v29 = vadd.f32 %v1801_v11, %v1201_v3  ;;  %v1740_v57 = vadd.f32 %v1739_v20, %v1738_v33  ;;  %v1803_v7 = vpop.f32.mrf.mxu1  ;;  %v1384_v22 = vmul.f32 %v1321_v32, %v1321_v32  ;;  %v1359_v48 = vadd.f32 %v1358_v62, %v1321_v32 }
 0x15f   :  { %v1741_v36 = vpop.f32.mrf.mxu0  ;;  %v1804_v13 = vadd.f32 %v1803_v7, %v1802_v21 }
 0x160   :  { %v1322_v58 = vmax.f32 %v1298_v29, 0.0  ;;  %v1206_v43 = vadd.f32 %v1740_v57, %v1109_v37  ;;  %v1805_v15 = vpop.f32.mrf.mxu1  ;;  %v1399_v14 = vadd.f32 %v1398_v40, %v1384_v22 }
 0x161   :  { %v1742_v10 = vpop.f32.mrf.mxu0 }
 0x162   :  { %1338 = vst [vmem:[%s2629_s3 + $0x68] sm:$0xff] %v1322_v58  ;;  %v1303_v24 = vadd.f32 %v1804_v13, %v1206_v43  ;;  %v1743_v34 = vadd.f32 %v1742_v10, %v1741_v36  ;;  %v1806_v38 = vpop.f32.mrf.mxu1  ;;  %v1385_v17 = vmul.f32 %v1322_v58, %v1322_v58  ;;  %v1360_v47 = vadd.f32 %v1359_v48, %v1322_v58 }
 0x163   :  { %v1807_v45 = vadd.f32 %v1806_v38, %v1805_v15 }
 0x164   :  { %v1323_v31 = vmax.f32 %v1303_v24, 0.0  ;;  %v1209_v19 = vadd.f32 %v1743_v34, %v1112_v12  ;;  %v1400_v0 = vadd.f32 %v1399_v14, %v1385_v17 }
 0x166   :  { %1339 = vst [vmem:[%s2629_s3 + $0x70] sm:$0xff] %v1323_v31  ;;  %v1386_v55 = vmul.f32 %v1323_v31, %v1323_v31  ;;  %v1306_v59 = vadd.f32 %v1807_v45, %v1209_v19  ;;  %v1361_v42 = vadd.f32 %v1360_v47, %v1323_v31 }
 0x168   :  { %v1324_v44 = vmax.f32 %v1306_v59, 0.0  ;;  %v1401_v4 = vadd.f32 %v1400_v0, %v1386_v55 }
 0x16a   :  { %1340 = vst [vmem:[%s2629_s3 + $0x78] sm:$0xff] %v1324_v44  ;;  %v1362_v6 = vadd.f32 %v1361_v42, %v1324_v44  ;;  %v1387_v26 = vmul.f32 %v1324_v44, %v1324_v44 }
 0x16c   :  { %v1363_v28 = vrot.slane %v1362_v6, 4  ;;  %v1402_v60 = vadd.f32 %v1401_v4, %v1387_v26 }
 0x16e   :  { %v1364_v52 = vadd.f32 %v1363_v28, %v1362_v6  ;;  %v1403_v53 = vrot.slane %v1402_v60, 4 }
 0x170   :  { %v1365_v23 = vrot.slane %v1364_v52, 2  ;;  %v1404_v16 = vadd.f32 %v1403_v53, %v1402_v60 }
 0x172   :  { %v1366_v1 = vadd.f32 %v1365_v23, %v1364_v52  ;;  %v1405_v56 = vrot.slane %v1404_v16, 2 }
 0x174   :  { %v1367_v49 = vrot.slane %v1366_v1, 1  ;;  %v1406_v51 = vadd.f32 %v1405_v56, %v1404_v16 }
 0x176   :  { %v1368_v25 = vadd.f32 %v1367_v49, %v1366_v1  ;;  %v1407_v33 = vrot.slane %v1406_v51, 1 }
 0x178   :  { %v1369_v8 = vadd.f32 %v1368_v25, %v1347_v2  ;;  %v1408_v30 = vadd.f32 %v1407_v33, %v1406_v51 }
 0x17a   :  { %1370 = vst [vmem:[%s2626_s4] sm:$0x1] %v1369_v8  ;;  %v1409_v32 = vadd.f32 %v1408_v30, %v1371_v35 }
 0x17c   :  { %1410 = vst [vmem:[%s2627_s5] sm:$0x1] %v1409_v32 }

// kernel: face_rec_celeba_forward.7
= control target key start
LH: loop header
LB: loop body
LE: loop exit
PB: predicated region body
PF: predicated region fallthrough
CT: control target
= control target key end

     0   :  { %v1067_v28 = vlaneseq  ;;  %v7648_v36 = vmov 1966171168   ;;  %s9350_s0 = inlined_call_operand.vmem [shape: bf16[2,8192], index: 0, kind: input, shape index: {}]   ;;  %s9351_s1 = inlined_call_operand.vmem [shape: bf16[8192,10], index: 1, kind: input, shape index: {}]   ;;  %s9352_s2 = inlined_call_operand.vmem [shape: f32[1,10], index: 2, kind: input, shape index: {}]   ;;  %s9353_s3 = inlined_call_operand.hbm [shape: f32[2,10], index: 3, kind: output, shape index: {}]  }
   0x1   :  { %v7106_v0 = vld [vmem:[%s9351_s1 + $0x78] sm:$0xff]   ;;  %v7110_v4 = vld [vmem:[%s9351_s1 + $0x70] sm:$0xff]   ;;  %v7114_v8 = vld [vmem:[%s9351_s1 + $0x68] sm:$0xff]   ;;  %v1065_v37 = vunpack.c.l.s4 %v7648_v36 }
   0x2   :  { %v7107_v1 = vld [vmem:[%s9351_s1 + $0xf8] sm:$0xff]   ;;  %6400 = vmatprep.subr.bf16.mxu0 %v7106_v0  ;;  %v7111_v5 = vld [vmem:[%s9351_s1 + $0xf0] sm:$0xff]   ;;  %v7115_v9 = vld [vmem:[%s9351_s1 + $0xe8] sm:$0xff]   ;;  %v1068_v33 = vshrl.u32 %v1067_v28, 7 }
   0x3   :  { %v7108_v2 = vld [vmem:[%s9351_s1 + $0x38] sm:$0xff]   ;;  %6422 = vmatprep.subr.bf16.mxu1 %v7107_v1  ;;  %v7112_v6 = vld [vmem:[%s9351_s1 + $0x30] sm:$0xff]   ;;  %v7116_v10 = vld [vmem:[%s9351_s1 + $0x28] sm:$0xff]   ;;  %v1066_v40 = vunpack.c.0.s8 %v1065_v37 }
   0x4   :  { %v7109_v3 = vld [vmem:[%s9351_s1 + $0xb8] sm:$0xff]   ;;  %6401 = vmatpush3.bf16.msra.mxu0 %v7108_v2  ;;  %v7113_v7 = vld [vmem:[%s9351_s1 + $0xb0] sm:$0xff]   ;;  %v7117_v11 = vld [vmem:[%s9351_s1 + $0xa8] sm:$0xff]  }
   0x5   :  { %6423 = vmatpush3.bf16.msra.mxu1 %v7109_v3  ;;  %6402 = vmatprep.subr.bf16.mxu0 %v7110_v4  ;;  %v7118_v12 = vld [vmem:[%s9351_s1 + $0x60] sm:$0xff]   ;;  %v7122_v16 = vld [vmem:[%s9351_s1 + $0x58] sm:$0xff]   ;;  %v7126_v20 = vld [vmem:[%s9351_s1 + $0x50] sm:$0xff]   ;;  %v7775_v41 = vsub.s32 %v1066_v40, %v1068_v33 }
   0x6   :  { %6424 = vmatprep.subr.bf16.mxu1 %v7111_v5  ;;  %v7119_v13 = vld [vmem:[%s9351_s1 + $0xe0] sm:$0xff]   ;;  %v7123_v17 = vld [vmem:[%s9351_s1 + $0xd8] sm:$0xff]   ;;  %v7127_v21 = vld [vmem:[%s9351_s1 + $0xd0] sm:$0xff]  }
   0x7   :  { %v7120_v14 = vld [vmem:[%s9351_s1 + $0x20] sm:$0xff]   ;;  %v7124_v18 = vld [vmem:[%s9351_s1 + $0x18] sm:$0xff]   ;;  %v7128_v22 = vld [vmem:[%s9351_s1 + $0x10] sm:$0xff]  }
   0x8   :  { %6403 = vmatpush3.bf16.msra.mxu0 %v7112_v6  ;;  %v7121_v15 = vld [vmem:[%s9351_s1 + $0xa0] sm:$0xff]   ;;  %v7125_v19 = vld [vmem:[%s9351_s1 + $0x98] sm:$0xff]   ;;  %v7129_v23 = vld [vmem:[%s9351_s1 + $0x90] sm:$0xff]  }
   0x9   :  { %6425 = vmatpush3.bf16.msra.mxu1 %v7113_v7  ;;  %6404 = vmatprep.subr.bf16.mxu0 %v7114_v8  ;;  %v7130_v24 = vld [vmem:[%s9351_s1 + $0x48] sm:$0xff]   ;;  %v7134_v29 = vld [vmem:[%s9351_s1 + $0x40] sm:$0xff]   ;;  %v7139_v35 = vld [vmem:[%s9351_s1 + $0x178] sm:$0xff]  }
   0xa   :  { %6426 = vmatprep.subr.bf16.mxu1 %v7115_v9  ;;  %v7131_v25 = vld [vmem:[%s9351_s1 + $0xc8] sm:$0xff]   ;;  %v7135_v30 = vld [vmem:[%s9351_s1 + $0xc0] sm:$0xff]   ;;  %v7140_v38 = vld [vmem:[%s9351_s1 + $0x1f8] sm:$0xff]  }
   0xb   :  { %v7132_v26 = vld [vmem:[%s9351_s1 + $0x8] sm:$0xff]   ;;  %v7136_v31 = vld [vmem:[%s9351_s1] sm:$0xff]   ;;  %v7141_v47 = vld [vmem:[%s9351_s1 + $0x138] sm:$0xff]  }
   0xc   :  { %6405 = vmatpush3.bf16.msra.mxu0 %v7116_v10  ;;  %v7133_v27 = vld [vmem:[%s9351_s1 + $0x88] sm:$0xff]   ;;  %v7137_v32 = vld [vmem:[%s9351_s1 + $0x80] sm:$0xff]   ;;  %v7142_v49 = vld [vmem:[%s9351_s1 + $0x1b8] sm:$0xff]  }
   0xd   :  { %6427 = vmatpush3.bf16.msra.mxu1 %v7117_v11  ;;  %6406 = vmatprep.subr.bf16.mxu0 %v7118_v12  ;;  %v16_v34 = vld [vmem:[%s9350_s0] sm:$0xff]  ;;  %v7143_v52 = vld [vmem:[%s9351_s1 + $0x170] sm:$0xff]   ;;  %v7147_v58 = vld [vmem:[%s9351_s1 + $0x168] sm:$0xff]  }
   0xe   :  { %6428 = vmatprep.subr.bf16.mxu1 %v7119_v13  ;;  %v1063_v39 = vcombine.high %v16_v34, %v16_v34  ;;  %v1070_v42 = vrot.slane %v16_v34, %v7775_v41  ;;  %v7144_v54 = vld [vmem:[%s9351_s1 + $0x1f0] sm:$0xff]   ;;  %v7148_v59 = vld [vmem:[%s9351_s1 + $0x1e8] sm:$0xff]   ;;  %v7151_v62 = vld [vmem:[%s9351_s1 + $0x160] sm:$0xff]  }
   0xf   :  { %v7145_v55 = vld [vmem:[%s9351_s1 + $0x130] sm:$0xff]   ;;  %v7149_v60 = vld [vmem:[%s9351_s1 + $0x128] sm:$0xff]   ;;  %v7152_v63 = vld [vmem:[%s9351_s1 + $0x1e0] sm:$0xff]  }
  0x10   :  { %6407 = vmatpush3.bf16.msra.mxu0 %v7120_v14  ;;  %v7779_v43 = vrot.slane %v1063_v39, %v7775_v41  ;;  %v1078_v44 = vcombine.high %v1070_v42, %v1070_v42  ;;  %v1086_v45 = vrot.slane %v1070_v42, %v7775_v41  ;;  %v7146_v57 = vld [vmem:[%s9351_s1 + $0x1b0] sm:$0xff]   ;;  %v7150_v61 = vld [vmem:[%s9351_s1 + $0x1a8] sm:$0xff]   ;;  %v7153_v0 = vld [vmem:[%s9351_s1 + $0x120] sm:$0xff]  }
  0x11   :  { %6429 = vmatpush3.bf16.msra.mxu1 %v7121_v15  ;;  %6408 = vmatprep.subr.bf16.mxu0 %v7122_v16  ;;  %v7154_v1 = vld [vmem:[%s9351_s1 + $0x1a0] sm:$0xff]   ;;  %v7155_v2 = vld [vmem:[%s9351_s1 + $0x158] sm:$0xff]   ;;  %v7159_v6 = vld [vmem:[%s9351_s1 + $0x150] sm:$0xff]  }
  0x12   :  { %6430 = vmatprep.subr.bf16.mxu1 %v7123_v17  ;;  %v1079_v46 = vcombine.high %v7779_v43, %v7779_v43  ;;  %v1100_v48 = vrot.slane %v1078_v44, %v7775_v41  ;;  %v1108_v51 = vcombine.high %v1086_v45, %v1086_v45  ;;  %v7156_v3 = vld [vmem:[%s9351_s1 + $0x1d8] sm:$0xff]   ;;  %v7160_v7 = vld [vmem:[%s9351_s1 + $0x1d0] sm:$0xff]   ;;  %v7163_v10 = vld [vmem:[%s9351_s1 + $0x148] sm:$0xff]  }
  0x13   :  { %v7157_v4 = vld [vmem:[%s9351_s1 + $0x118] sm:$0xff]   ;;  %v7161_v8 = vld [vmem:[%s9351_s1 + $0x110] sm:$0xff]   ;;  %v7164_v11 = vld [vmem:[%s9351_s1 + $0x1c8] sm:$0xff]  }
  0x14   :  { %6409 = vmatpush3.bf16.msra.mxu0 %v7124_v18  ;;  %v1107_v50 = vrot.slane %v1079_v46, %v7775_v41  ;;  %4623 = vmatprep.mubr.bf16.mxu0 %v1100_v48  ;;  %v1110_v53 = vcombine.high %v1100_v48, %v1100_v48  ;;  %v7158_v5 = vld [vmem:[%s9351_s1 + $0x198] sm:$0xff]   ;;  %v7162_v9 = vld [vmem:[%s9351_s1 + $0x190] sm:$0xff]   ;;  %v7165_v12 = vld [vmem:[%s9351_s1 + $0x108] sm:$0xff]   ;;  %v1093_v18 = vrot.slane %v7779_v43, %v7775_v41 }
  0x15   :  { %6431 = vmatpush3.bf16.msra.mxu1 %v7125_v19  ;;  %6410 = vmatprep.subr.bf16.mxu0 %v7126_v20  ;;  %v7166_v13 = vld [vmem:[%s9351_s1 + $0x188] sm:$0xff]   ;;  %v7167_v14 = vld [vmem:[%s9351_s1 + $0x140] sm:$0xff]   ;;  %v7171_v19 = vld [vmem:[%s9351_s1 + $0x278] sm:$0xff]  }
  0x16   :  { %6432 = vmatprep.subr.bf16.mxu1 %v7127_v21  ;;  %v1111_v56 = vcombine.high %v1107_v50, %v1107_v50  ;;  %4663 = vmatprep.mubr.bf16.mxu1 %v1110_v53  ;;  %v7168_v15 = vld [vmem:[%s9351_s1 + $0x1c0] sm:$0xff]   ;;  %v7172_v20 = vld [vmem:[%s9351_s1 + $0x2f8] sm:$0xff]   ;;  %v7179_v28 = vld [vmem:[%s9351_s1 + $0x268] sm:$0xff]  }
  0x17   :  { %v7169_v16 = vld [vmem:[%s9351_s1 + $0x100] sm:$0xff]   ;;  %v7173_v21 = vld [vmem:[%s9351_s1 + $0x238] sm:$0xff]   ;;  %v7191_v40 = vld [vmem:[%s9351_s1 + $0x250] sm:$0xff]  }
  0x18   :  { %6411 = vmatpush3.bf16.msra.mxu0 %v7128_v22  ;;  %v7170_v17 = vld [vmem:[%s9351_s1 + $0x180] sm:$0xff]   ;;  %v7174_v22 = vld [vmem:[%s9351_s1 + $0x2b8] sm:$0xff]   ;;  %v7192_v42 = vld [vmem:[%s9351_s1 + $0x2d0] sm:$0xff]  }
  0x19   :  { %6433 = vmatpush3.bf16.msra.mxu1 %v7129_v23  ;;  %6412 = vmatprep.subr.bf16.mxu0 %v7130_v24  ;;  %v1109_v23 = vcombine.high %v1093_v18, %v1093_v18  ;;  %v7175_v24 = vld [vmem:[%s9351_s1 + $0x270] sm:$0xff]   ;;  %v7184_v33 = vld [vmem:[%s9351_s1 + $0x2e0] sm:$0xff]   ;;  %v7187_v36 = vld [vmem:[%s9351_s1 + $0x258] sm:$0xff]  }
  0x1a   :  { %6434 = vmatprep.subr.bf16.mxu1 %v7131_v25  ;;  %v7176_v25 = vld [vmem:[%s9351_s1 + $0x2f0] sm:$0xff]   ;;  %v7185_v34 = vld [vmem:[%s9351_s1 + $0x220] sm:$0xff]   ;;  %v7188_v37 = vld [vmem:[%s9351_s1 + $0x2d8] sm:$0xff]  }
  0x1b   :  { %v7190_v39 = vld [vmem:[%s9351_s1 + $0x298] sm:$0xff]   ;;  %v7193_v43 = vld [vmem:[%s9351_s1 + $0x210] sm:$0xff]   ;;  %v17_v46 = vld [vmem:[%s9350_s0 + $0x8] sm:$0xff] }
  0x1c   :  { %6413 = vmatpush3.bf16.msra.mxu0 %v7132_v26  ;;  %v7177_v26 = vld [vmem:[%s9351_s1 + $0x230] sm:$0xff]   ;;  %v1119_v48 = vrot.slane %v17_v46, %v7775_v41 }
  0x1d   :  { %6435 = vmatpush3.bf16.msra.mxu1 %v7133_v27  ;;  %6414 = vmatprep.subr.bf16.mxu0 %v7134_v29  ;;  %v7178_v27 = vld [vmem:[%s9351_s1 + $0x2b0] sm:$0xff]   ;;  %v7180_v29 = vld [vmem:[%s9351_s1 + $0x2e8] sm:$0xff]  }
  0x1e   :  { %6436 = vmatprep.subr.bf16.mxu1 %v7135_v30  ;;  %v7181_v30 = vld [vmem:[%s9351_s1 + $0x228] sm:$0xff]   ;;  %v7194_v44 = vld [vmem:[%s9351_s1 + $0x290] sm:$0xff]  }
  0x20   :  { %6415 = vmatpush3.bf16.msra.mxu0 %v7136_v31  ;;  %v7182_v31 = vld [vmem:[%s9351_s1 + $0x2a8] sm:$0xff]  }
  0x21   :  { %6437 = vmatpush3.bf16.msra.mxu1 %v7137_v32  ;;  %6444 = vmatprep.subr.bf16.mxu0 %v7139_v35  ;;  %v7183_v32 = vld [vmem:[%s9351_s1 + $0x260] sm:$0xff]  }
  0x22   :  { %6466 = vmatprep.subr.bf16.mxu1 %v7140_v38  ;;  %v7186_v35 = vld [vmem:[%s9351_s1 + $0x2a0] sm:$0xff]   ;;  %v7189_v38 = vld [vmem:[%s9351_s1 + $0x218] sm:$0xff]  }
  0x23   :  { %4624 = vmatmul.mubr.bf16.vlgmr.msra.gmra.mxu0 %v1086_v45  ;;  %v7195_v45 = vld [vmem:[%s9351_s1 + $0x248] sm:$0xff]  }
  0x24   :  { %6445 = vmatpush3.bf16.msra.mxu0 %v7141_v47  ;;  %4664 = vmatmul.mubr.bf16.vlgmr.msra.gmra.mxu1 %v1108_v51  ;;  %v7196_v47 = vld [vmem:[%s9351_s1 + $0x2c8] sm:$0xff]  }
  0x25   :  { %6446 = vmatprep.subr.bf16.mxu0 %v7143_v52  ;;  %6467 = vmatpush3.bf16.msra.mxu1 %v7142_v49  ;;  %v1112_v49 = vcombine.high %v17_v46, %v17_v46  ;;  %v7198_v51 = vld [vmem:[%s9351_s1 + $0x288] sm:$0xff]   ;;  %v1127_v52 = vcombine.high %v1119_v48, %v1119_v48 }
  0x26   :  { %4703 = vmatprep.mubr.bf16.mxu0 %v1107_v50  ;;  %6468 = vmatprep.subr.bf16.mxu1 %v7144_v54  ;;  %v7197_v50 = vld [vmem:[%s9351_s1 + $0x208] sm:$0xff]   ;;  %v7199_v54 = vld [vmem:[%s9351_s1 + $0x240] sm:$0xff]  }
  0x27   :  { %4743 = vmatprep.mubr.bf16.mxu1 %v1111_v56  ;;  %v7967_v53 = vrot.slane %v1112_v49, %v7775_v41  ;;  %v1149_v56 = vrot.slane %v1127_v52, %v7775_v41  ;;  %v7246_v46 = vld [vmem:[%s9351_s1 + $0x428] sm:$0xff]   ;;  %v7249_v49 = vld [vmem:[%s9351_s1 + $0x4e0] sm:$0xff]   ;;  %v7252_v52 = vld [vmem:[%s9351_s1 + $0x458] sm:$0xff]  }
  0x28   :  { %6447 = vmatpush3.bf16.msra.mxu0 %v7145_v55  ;;  %v7200_v55 = vld [vmem:[%s9351_s1 + $0x2c0] sm:$0xff]  }
  0x29   :  { %6448 = vmatprep.subr.bf16.mxu0 %v7147_v58  ;;  %6469 = vmatpush3.bf16.msra.mxu1 %v7146_v57  ;;  %v1128_v57 = vcombine.high %v7967_v53, %v7967_v53  ;;  %v7201_v58 = vld [vmem:[%s9351_s1 + $0x200] sm:$0xff]  }
  0x2a   :  { %6470 = vmatprep.subr.bf16.mxu1 %v7148_v59  ;;  %v7202_v59 = vld [vmem:[%s9351_s1 + $0x280] sm:$0xff]  }
  0x2c   :  { %6449 = vmatpush3.bf16.msra.mxu0 %v7149_v60  ;;  %v1159_v60 = vcombine.high %v1149_v56, %v1149_v56 }
  0x2d   :  { %6450 = vmatprep.subr.bf16.mxu0 %v7151_v62  ;;  %6471 = vmatpush3.bf16.msra.mxu1 %v7150_v61  ;;  %v1135_v61 = vrot.slane %v1119_v48, %v7775_v41  ;;  %v7203_v62 = vld [vmem:[%s9351_s1 + $0x378] sm:$0xff]   ;;  %v7248_v48 = vld [vmem:[%s9351_s1 + $0x460] sm:$0xff]  }
  0x2e   :  { %6472 = vmatprep.subr.bf16.mxu1 %v7152_v63  ;;  %v7204_v63 = vld [vmem:[%s9351_s1 + $0x3f8] sm:$0xff]  }
  0x30   :  { %6451 = vmatpush3.bf16.msra.mxu0 %v7153_v0  ;;  %v1156_v0 = vrot.slane %v1128_v57, %v7775_v41  ;;  %v7257_v57 = vld [vmem:[%s9351_s1 + $0x4d0] sm:$0xff]  }
  0x31   :  { %6452 = vmatprep.subr.bf16.mxu0 %v7155_v2  ;;  %6473 = vmatpush3.bf16.msra.mxu1 %v7154_v1  ;;  %v7205_v1 = vld [vmem:[%s9351_s1 + $0x338] sm:$0xff]  }
  0x32   :  { %6474 = vmatprep.subr.bf16.mxu1 %v7156_v3  ;;  %v7206_v2 = vld [vmem:[%s9351_s1 + $0x3b8] sm:$0xff]   ;;  %v1157_v3 = vcombine.high %v1135_v61, %v1135_v61 }
  0x34   :  { %6453 = vmatpush3.bf16.msra.mxu0 %v7157_v4  ;;  %v7207_v4 = vld [vmem:[%s9351_s1 + $0x370] sm:$0xff]  }
  0x35   :  { %6454 = vmatprep.subr.bf16.mxu0 %v7159_v6  ;;  %6475 = vmatpush3.bf16.msra.mxu1 %v7158_v5  ;;  %v7208_v5 = vld [vmem:[%s9351_s1 + $0x3f0] sm:$0xff]   ;;  %v1160_v6 = vcombine.high %v1156_v0, %v1156_v0 }
  0x36   :  { %6476 = vmatprep.subr.bf16.mxu1 %v7160_v7  ;;  %v7209_v7 = vld [vmem:[%s9351_s1 + $0x330] sm:$0xff]  }
  0x38   :  { %6455 = vmatpush3.bf16.msra.mxu0 %v7161_v8  ;;  %v7210_v8 = vld [vmem:[%s9351_s1 + $0x3b0] sm:$0xff]  }
  0x39   :  { %6456 = vmatprep.subr.bf16.mxu0 %v7163_v10  ;;  %6477 = vmatpush3.bf16.msra.mxu1 %v7162_v9  ;;  %v7211_v9 = vld [vmem:[%s9351_s1 + $0x368] sm:$0xff]  }
  0x3a   :  { %6478 = vmatprep.subr.bf16.mxu1 %v7164_v11  ;;  %v7212_v10 = vld [vmem:[%s9351_s1 + $0x3e8] sm:$0xff]  }
  0x3b   :  { %v7213_v11 = vld [vmem:[%s9351_s1 + $0x328] sm:$0xff]  }
  0x3c   :  { %6457 = vmatpush3.bf16.msra.mxu0 %v7165_v12  ;;  %v7214_v12 = vld [vmem:[%s9351_s1 + $0x3a8] sm:$0xff]  }
  0x3d   :  { %6458 = vmatprep.subr.bf16.mxu0 %v7167_v14  ;;  %6479 = vmatpush3.bf16.msra.mxu1 %v7166_v13  ;;  %v7215_v13 = vld [vmem:[%s9351_s1 + $0x360] sm:$0xff]  }
  0x3e   :  { %6480 = vmatprep.subr.bf16.mxu1 %v7168_v15  ;;  %v7216_v14 = vld [vmem:[%s9351_s1 + $0x3e0] sm:$0xff]  }
  0x3f   :  { %v7217_v15 = vld [vmem:[%s9351_s1 + $0x320] sm:$0xff]  }
  0x40   :  { %6459 = vmatpush3.bf16.msra.mxu0 %v7169_v16  ;;  %v7218_v16 = vld [vmem:[%s9351_s1 + $0x3a0] sm:$0xff]  }
  0x41   :  { %6488 = vmatprep.subr.bf16.mxu0 %v7171_v19  ;;  %6481 = vmatpush3.bf16.msra.mxu1 %v7170_v17  ;;  %v7219_v17 = vld [vmem:[%s9351_s1 + $0x358] sm:$0xff]  }
  0x42   :  { %6510 = vmatprep.subr.bf16.mxu1 %v7172_v20  ;;  %v7221_v19 = vld [vmem:[%s9351_s1 + $0x318] sm:$0xff]  }
  0x43   :  { %4704 = vmatmul.mubr.bf16.vlgmr.msra.gmra.mxu0 %v1093_v18  ;;  %v7220_v18 = vld [vmem:[%s9351_s1 + $0x3d8] sm:$0xff]  }
  0x44   :  { %6489 = vmatpush3.bf16.msra.mxu0 %v7173_v21  ;;  %4744 = vmatmul.mubr.bf16.vlgmr.msra.gmra.mxu1 %v1109_v23  ;;  %v7222_v20 = vld [vmem:[%s9351_s1 + $0x398] sm:$0xff]   ;;  %v7223_v21 = vld [vmem:[%s9351_s1 + $0x350] sm:$0xff]  }
  0x45   :  { %6490 = vmatprep.subr.bf16.mxu0 %v7175_v24  ;;  %6511 = vmatpush3.bf16.msra.mxu1 %v7174_v22  ;;  %v7224_v22 = vld [vmem:[%s9351_s1 + $0x3d0] sm:$0xff]  }
  0x46   :  { %6512 = vmatprep.subr.bf16.mxu1 %v7176_v25  ;;  %4783 = vmatprep.mubr.bf16.mxu0 %v1149_v56  ;;  %v7225_v23 = vld [vmem:[%s9351_s1 + $0x310] sm:$0xff]   ;;  %v7227_v25 = vld [vmem:[%s9351_s1 + $0x348] sm:$0xff]  }
  0x47   :  { %4823 = vmatprep.mubr.bf16.mxu1 %v1159_v60  ;;  %v7226_v24 = vld [vmem:[%s9351_s1 + $0x390] sm:$0xff]   ;;  %v7260_v60 = vld [vmem:[%s9351_s1 + $0x448] sm:$0xff]  }
  0x48   :  { %6491 = vmatpush3.bf16.msra.mxu0 %v7177_v26  ;;  %v7228_v26 = vld [vmem:[%s9351_s1 + $0x3c8] sm:$0xff]   ;;  %v7256_v56 = vld [vmem:[%s9351_s1 + $0x450] sm:$0xff]  }
  0x49   :  { %6492 = vmatprep.subr.bf16.mxu0 %v7179_v28  ;;  %6513 = vmatpush3.bf16.msra.mxu1 %v7178_v27  ;;  %v7229_v27 = vld [vmem:[%s9351_s1 + $0x308] sm:$0xff]  }
  0x4a   :  { %6514 = vmatprep.subr.bf16.mxu1 %v7180_v29  ;;  %v7230_v28 = vld [vmem:[%s9351_s1 + $0x388] sm:$0xff]   ;;  %v7231_v29 = vld [vmem:[%s9351_s1 + $0x340] sm:$0xff]  }
  0x4c   :  { %6493 = vmatpush3.bf16.msra.mxu0 %v7181_v30  ;;  %v7232_v30 = vld [vmem:[%s9351_s1 + $0x3c0] sm:$0xff]  }
  0x4d   :  { %6494 = vmatprep.subr.bf16.mxu0 %v7183_v32  ;;  %6515 = vmatpush3.bf16.msra.mxu1 %v7182_v31  ;;  %v7233_v31 = vld [vmem:[%s9351_s1 + $0x300] sm:$0xff]  }
  0x4e   :  { %6516 = vmatprep.subr.bf16.mxu1 %v7184_v33  ;;  %v7234_v32 = vld [vmem:[%s9351_s1 + $0x380] sm:$0xff]   ;;  %v1142_v33 = vrot.slane %v7967_v53, %v7775_v41  ;;  %v7253_v53 = vld [vmem:[%s9351_s1 + $0x4d8] sm:$0xff]  }
  0x50   :  { %6495 = vmatpush3.bf16.msra.mxu0 %v7185_v34  ;;  %v7236_v34 = vld [vmem:[%s9351_s1 + $0x478] sm:$0xff]  }
  0x51   :  { %6496 = vmatprep.subr.bf16.mxu0 %v7187_v36  ;;  %6517 = vmatpush3.bf16.msra.mxu1 %v7186_v35  ;;  %v7237_v35 = vld [vmem:[%s9351_s1 + $0x4f8] sm:$0xff]  }
  0x52   :  { %6518 = vmatprep.subr.bf16.mxu1 %v7188_v37  ;;  %v7238_v36 = vld [vmem:[%s9351_s1 + $0x438] sm:$0xff]  }
  0x53   :  { %v7239_v37 = vld [vmem:[%s9351_s1 + $0x4b8] sm:$0xff]  }
  0x54   :  { %6497 = vmatpush3.bf16.msra.mxu0 %v7189_v38  ;;  %v1158_v38 = vcombine.high %v1142_v33, %v1142_v33 }
  0x55   :  { %6498 = vmatprep.subr.bf16.mxu0 %v7191_v40  ;;  %6519 = vmatpush3.bf16.msra.mxu1 %v7190_v39  ;;  %v7240_v39 = vld [vmem:[%s9351_s1 + $0x470] sm:$0xff]  }
  0x56   :  { %6520 = vmatprep.subr.bf16.mxu1 %v7192_v42  ;;  %v7241_v40 = vld [vmem:[%s9351_s1 + $0x4f0] sm:$0xff]  }
  0x57   :  { %v7242_v42 = vld [vmem:[%s9351_s1 + $0x430] sm:$0xff]  }
  0x58   :  { %6499 = vmatpush3.bf16.msra.mxu0 %v7193_v43  ;;  %v7243_v43 = vld [vmem:[%s9351_s1 + $0x4b0] sm:$0xff]  }
  0x59   :  { %6500 = vmatprep.subr.bf16.mxu0 %v7195_v45  ;;  %6521 = vmatpush3.bf16.msra.mxu1 %v7194_v44  ;;  %v7244_v44 = vld [vmem:[%s9351_s1 + $0x468] sm:$0xff]  }
  0x5a   :  { %6522 = vmatprep.subr.bf16.mxu1 %v7196_v47  ;;  %v7245_v45 = vld [vmem:[%s9351_s1 + $0x4e8] sm:$0xff]  }
  0x5b   :  { %v7247_v47 = vld [vmem:[%s9351_s1 + $0x4a8] sm:$0xff]  }
  0x5c   :  { %6501 = vmatpush3.bf16.msra.mxu0 %v7197_v50  ;;  %v7250_v50 = vld [vmem:[%s9351_s1 + $0x420] sm:$0xff]  }
  0x5d   :  { %6502 = vmatprep.subr.bf16.mxu0 %v7199_v54  ;;  %6523 = vmatpush3.bf16.msra.mxu1 %v7198_v51  ;;  %v7251_v51 = vld [vmem:[%s9351_s1 + $0x4a0] sm:$0xff]   ;;  %v7254_v54 = vld [vmem:[%s9351_s1 + $0x418] sm:$0xff]  }
  0x5e   :  { %6524 = vmatprep.subr.bf16.mxu1 %v7200_v55  ;;  %v7255_v55 = vld [vmem:[%s9351_s1 + $0x498] sm:$0xff]  }
  0x60   :  { %6503 = vmatpush3.bf16.msra.mxu0 %v7201_v58  ;;  %v7258_v58 = vld [vmem:[%s9351_s1 + $0x410] sm:$0xff]  }
  0x61   :  { %6532 = vmatprep.subr.bf16.mxu0 %v7203_v62  ;;  %6525 = vmatpush3.bf16.msra.mxu1 %v7202_v59  ;;  %v7259_v59 = vld [vmem:[%s9351_s1 + $0x490] sm:$0xff]   ;;  %v7261_v62 = vld [vmem:[%s9351_s1 + $0x4c8] sm:$0xff]  }
  0x62   :  { %6554 = vmatprep.subr.bf16.mxu1 %v7204_v63 }
  0x63   :  { %4784 = vmatmul.mubr.bf16.vlgmr.msra.gmra.mxu0 %v1135_v61  ;;  %v18_v61 = vld [vmem:[%s9350_s0 + $0x10] sm:$0xff] }
  0x64   :  { %6533 = vmatpush3.bf16.msra.mxu0 %v7205_v1  ;;  %4863 = vmatprep.mubr.bf16.mxu0 %v1156_v0  ;;  %v1168_v63 = vrot.slane %v18_v61, %v7775_v41  ;;  %v1161_v0 = vcombine.high %v18_v61, %v18_v61  ;;  %v7262_v1 = vld [vmem:[%s9351_s1 + $0x408] sm:$0xff]  }
  0x65   :  { %4824 = vmatmul.mubr.bf16.vlgmr.msra.gmra.mxu1 %v1157_v3  ;;  %6534 = vmatprep.subr.bf16.mxu0 %v7207_v4  ;;  %v7311_v61 = vld [vmem:[%s9351_s1 + $0x628] sm:$0xff]  }
  0x66   :  { %6555 = vmatpush3.bf16.msra.mxu1 %v7206_v2  ;;  %4903 = vmatprep.mubr.bf16.mxu1 %v1160_v6  ;;  %v7263_v2 = vld [vmem:[%s9351_s1 + $0x488] sm:$0xff]   ;;  %v1176_v3 = vcombine.high %v1168_v63, %v1168_v63  ;;  %v8173_v4 = vrot.slane %v1161_v0, %v7775_v41  ;;  %v7265_v6 = vld [vmem:[%s9351_s1 + $0x4c0] sm:$0xff]  }
  0x67   :  { %6556 = vmatprep.subr.bf16.mxu1 %v7208_v5  ;;  %v7264_v5 = vld [vmem:[%s9351_s1 + $0x440] sm:$0xff]  }
  0x68   :  { %6535 = vmatpush3.bf16.msra.mxu0 %v7209_v7  ;;  %v1198_v7 = vrot.slane %v1176_v3, %v7775_v41  ;;  %v7314_v0 = vld [vmem:[%s9351_s1 + $0x6e0] sm:$0xff]   ;;  %v7317_v3 = vld [vmem:[%s9351_s1 + $0x658] sm:$0xff]  }
  0x69   :  { %6536 = vmatprep.subr.bf16.mxu0 %v7211_v9  ;;  %v7266_v9 = vld [vmem:[%s9351_s1 + $0x400] sm:$0xff]  }
  0x6a   :  { %6557 = vmatpush3.bf16.msra.mxu1 %v7210_v8  ;;  %v1177_v8 = vcombine.high %v8173_v4, %v8173_v4 }
  0x6b   :  { %6558 = vmatprep.subr.bf16.mxu1 %v7212_v10  ;;  %v7267_v10 = vld [vmem:[%s9351_s1 + $0x480] sm:$0xff]  }
  0x6c   :  { %6537 = vmatpush3.bf16.msra.mxu0 %v7213_v11  ;;  %v1208_v11 = vcombine.high %v1198_v7, %v1198_v7 }
  0x6d   :  { %6538 = vmatprep.subr.bf16.mxu0 %v7215_v13  ;;  %v7268_v13 = vld [vmem:[%s9351_s1 + $0x578] sm:$0xff]  }
  0x6e   :  { %6559 = vmatpush3.bf16.msra.mxu1 %v7214_v12  ;;  %v1184_v12 = vrot.slane %v1168_v63, %v7775_v41  ;;  %v7313_v63 = vld [vmem:[%s9351_s1 + $0x660] sm:$0xff]  }
  0x6f   :  { %6560 = vmatprep.subr.bf16.mxu1 %v7216_v14  ;;  %v7269_v14 = vld [vmem:[%s9351_s1 + $0x5f8] sm:$0xff]  }
  0x70   :  { %6539 = vmatpush3.bf16.msra.mxu0 %v7217_v15  ;;  %v1205_v15 = vrot.slane %v1177_v8, %v7775_v41  ;;  %v7322_v8 = vld [vmem:[%s9351_s1 + $0x6d0] sm:$0xff]  }
  0x71   :  { %6540 = vmatprep.subr.bf16.mxu0 %v7219_v17  ;;  %v7271_v17 = vld [vmem:[%s9351_s1 + $0x5b8] sm:$0xff]  }
  0x72   :  { %6561 = vmatpush3.bf16.msra.mxu1 %v7218_v16  ;;  %v7270_v16 = vld [vmem:[%s9351_s1 + $0x538] sm:$0xff]  }
  0x73   :  { %6562 = vmatprep.subr.bf16.mxu1 %v7220_v18  ;;  %v1206_v18 = vcombine.high %v1184_v12, %v1184_v12 }
  0x74   :  { %6541 = vmatpush3.bf16.msra.mxu0 %v7221_v19  ;;  %v7272_v19 = vld [vmem:[%s9351_s1 + $0x570] sm:$0xff]  }
  0x75   :  { %6542 = vmatprep.subr.bf16.mxu0 %v7223_v21  ;;  %v1209_v21 = vcombine.high %v1205_v15, %v1205_v15 }
  0x76   :  { %6563 = vmatpush3.bf16.msra.mxu1 %v7222_v20  ;;  %v7273_v20 = vld [vmem:[%s9351_s1 + $0x5f0] sm:$0xff]  }
  0x77   :  { %6564 = vmatprep.subr.bf16.mxu1 %v7224_v22  ;;  %v7274_v22 = vld [vmem:[%s9351_s1 + $0x530] sm:$0xff]  }
  0x78   :  { %6543 = vmatpush3.bf16.msra.mxu0 %v7225_v23  ;;  %v7275_v23 = vld [vmem:[%s9351_s1 + $0x5b0] sm:$0xff]  }
  0x79   :  { %6544 = vmatprep.subr.bf16.mxu0 %v7227_v25  ;;  %v7277_v25 = vld [vmem:[%s9351_s1 + $0x5e8] sm:$0xff]  }
  0x7a   :  { %6565 = vmatpush3.bf16.msra.mxu1 %v7226_v24  ;;  %v7276_v24 = vld [vmem:[%s9351_s1 + $0x568] sm:$0xff]  }
  0x7b   :  { %6566 = vmatprep.subr.bf16.mxu1 %v7228_v26  ;;  %v7278_v26 = vld [vmem:[%s9351_s1 + $0x528] sm:$0xff]  }
  0x7c   :  { %6545 = vmatpush3.bf16.msra.mxu0 %v7229_v27  ;;  %v7279_v27 = vld [vmem:[%s9351_s1 + $0x5a8] sm:$0xff]  }
  0x7d   :  { %6546 = vmatprep.subr.bf16.mxu0 %v7231_v29  ;;  %v7281_v29 = vld [vmem:[%s9351_s1 + $0x5e0] sm:$0xff]  }
  0x7e   :  { %6567 = vmatpush3.bf16.msra.mxu1 %v7230_v28  ;;  %v7280_v28 = vld [vmem:[%s9351_s1 + $0x560] sm:$0xff]  }
  0x7f   :  { %6568 = vmatprep.subr.bf16.mxu1 %v7232_v30  ;;  %v7282_v30 = vld [vmem:[%s9351_s1 + $0x520] sm:$0xff]  }
  0x80   :  { %6547 = vmatpush3.bf16.msra.mxu0 %v7233_v31  ;;  %v7283_v31 = vld [vmem:[%s9351_s1 + $0x5a0] sm:$0xff]  }
  0x81   :  { %6576 = vmatprep.subr.bf16.mxu0 %v7236_v34  ;;  %v7286_v34 = vld [vmem:[%s9351_s1 + $0x518] sm:$0xff]  }
  0x82   :  { %6569 = vmatpush3.bf16.msra.mxu1 %v7234_v32  ;;  %v7284_v32 = vld [vmem:[%s9351_s1 + $0x558] sm:$0xff]  }
  0x83   :  { %4864 = vmatmul.mubr.bf16.vlgmr.msra.gmra.mxu0 %v1142_v33  ;;  %6598 = vmatprep.subr.bf16.mxu1 %v7237_v35  ;;  %v7285_v33 = vld [vmem:[%s9351_s1 + $0x5d8] sm:$0xff]  }
  0x84   :  { %6577 = vmatpush3.bf16.msra.mxu0 %v7238_v36  ;;  %4943 = vmatprep.mubr.bf16.mxu0 %v1198_v7  ;;  %v7287_v35 = vld [vmem:[%s9351_s1 + $0x598] sm:$0xff]   ;;  %v7288_v36 = vld [vmem:[%s9351_s1 + $0x550] sm:$0xff]  }
  0x85   :  { %4904 = vmatmul.mubr.bf16.vlgmr.msra.gmra.mxu1 %v1158_v38  ;;  %6578 = vmatprep.subr.bf16.mxu0 %v7240_v39  ;;  %v7290_v38 = vld [vmem:[%s9351_s1 + $0x510] sm:$0xff]  }
  0x86   :  { %6599 = vmatpush3.bf16.msra.mxu1 %v7239_v37  ;;  %4983 = vmatprep.mubr.bf16.mxu1 %v1208_v11  ;;  %v7289_v37 = vld [vmem:[%s9351_s1 + $0x5d0] sm:$0xff]   ;;  %v7325_v11 = vld [vmem:[%s9351_s1 + $0x648] sm:$0xff]  }
  0x87   :  { %6600 = vmatprep.subr.bf16.mxu1 %v7241_v40  ;;  %v7291_v39 = vld [vmem:[%s9351_s1 + $0x590] sm:$0xff]   ;;  %v7292_v40 = vld [vmem:[%s9351_s1 + $0x548] sm:$0xff]  }
  0x88   :  { %6579 = vmatpush3.bf16.msra.mxu0 %v7242_v42  ;;  %v7293_v42 = vld [vmem:[%s9351_s1 + $0x5c8] sm:$0xff]   ;;  %v7321_v7 = vld [vmem:[%s9351_s1 + $0x650] sm:$0xff]  }
  0x89   :  { %6580 = vmatprep.subr.bf16.mxu0 %v7244_v44  ;;  %v7295_v44 = vld [vmem:[%s9351_s1 + $0x588] sm:$0xff]  }
  0x8a   :  { %6601 = vmatpush3.bf16.msra.mxu1 %v7243_v43  ;;  %v7294_v43 = vld [vmem:[%s9351_s1 + $0x508] sm:$0xff]  }
  0x8b   :  { %6602 = vmatprep.subr.bf16.mxu1 %v7245_v45  ;;  %v7296_v45 = vld [vmem:[%s9351_s1 + $0x540] sm:$0xff]  }
  0x8c   :  { %6581 = vmatpush3.bf16.msra.mxu0 %v7246_v46  ;;  %v7297_v46 = vld [vmem:[%s9351_s1 + $0x5c0] sm:$0xff]  }
  0x8d   :  { %6582 = vmatprep.subr.bf16.mxu0 %v7248_v48  ;;  %v7299_v48 = vld [vmem:[%s9351_s1 + $0x580] sm:$0xff]  }
  0x8e   :  { %6603 = vmatpush3.bf16.msra.mxu1 %v7247_v47  ;;  %v7298_v47 = vld [vmem:[%s9351_s1 + $0x500] sm:$0xff]  }
  0x8f   :  { %6604 = vmatprep.subr.bf16.mxu1 %v7249_v49  ;;  %v1191_v49 = vrot.slane %v8173_v4, %v7775_v41  ;;  %v7318_v4 = vld [vmem:[%s9351_s1 + $0x6d8] sm:$0xff]  }
  0x90   :  { %6583 = vmatpush3.bf16.msra.mxu0 %v7250_v50  ;;  %v7301_v50 = vld [vmem:[%s9351_s1 + $0x678] sm:$0xff]  }
  0x91   :  { %6584 = vmatprep.subr.bf16.mxu0 %v7252_v52  ;;  %v7303_v52 = vld [vmem:[%s9351_s1 + $0x638] sm:$0xff]  }
  0x92   :  { %6605 = vmatpush3.bf16.msra.mxu1 %v7251_v51  ;;  %v7302_v51 = vld [vmem:[%s9351_s1 + $0x6f8] sm:$0xff]  }
  0x93   :  { %6606 = vmatprep.subr.bf16.mxu1 %v7253_v53  ;;  %v7304_v53 = vld [vmem:[%s9351_s1 + $0x6b8] sm:$0xff]  }
  0x94   :  { %6585 = vmatpush3.bf16.msra.mxu0 %v7254_v54  ;;  %v1207_v54 = vcombine.high %v1191_v49, %v1191_v49 }
  0x95   :  { %6586 = vmatprep.subr.bf16.mxu0 %v7256_v56  ;;  %v7306_v56 = vld [vmem:[%s9351_s1 + $0x6f0] sm:$0xff]  }
  0x96   :  { %6607 = vmatpush3.bf16.msra.mxu1 %v7255_v55  ;;  %v7305_v55 = vld [vmem:[%s9351_s1 + $0x670] sm:$0xff]  }
  0x97   :  { %6608 = vmatprep.subr.bf16.mxu1 %v7257_v57  ;;  %v7307_v57 = vld [vmem:[%s9351_s1 + $0x630] sm:$0xff]  }
  0x98   :  { %6587 = vmatpush3.bf16.msra.mxu0 %v7258_v58  ;;  %v7308_v58 = vld [vmem:[%s9351_s1 + $0x6b0] sm:$0xff]  }
  0x99   :  { %6588 = vmatprep.subr.bf16.mxu0 %v7260_v60  ;;  %v7310_v60 = vld [vmem:[%s9351_s1 + $0x6e8] sm:$0xff]  }
  0x9a   :  { %6609 = vmatpush3.bf16.msra.mxu1 %v7259_v59  ;;  %v7309_v59 = vld [vmem:[%s9351_s1 + $0x668] sm:$0xff]  }
  0x9b   :  { %6610 = vmatprep.subr.bf16.mxu1 %v7261_v62  ;;  %v7312_v62 = vld [vmem:[%s9351_s1 + $0x6a8] sm:$0xff]  }
  0x9c   :  { %6589 = vmatpush3.bf16.msra.mxu0 %v7262_v1  ;;  %v7315_v1 = vld [vmem:[%s9351_s1 + $0x620] sm:$0xff]  }
  0x9d   :  { %6590 = vmatprep.subr.bf16.mxu0 %v7264_v5  ;;  %v7319_v5 = vld [vmem:[%s9351_s1 + $0x618] sm:$0xff]  }
  0x9e   :  { %6611 = vmatpush3.bf16.msra.mxu1 %v7263_v2  ;;  %v7316_v2 = vld [vmem:[%s9351_s1 + $0x6a0] sm:$0xff]  }
  0x9f   :  { %6612 = vmatprep.subr.bf16.mxu1 %v7265_v6  ;;  %v7320_v6 = vld [vmem:[%s9351_s1 + $0x698] sm:$0xff]  }
  0xa0   :  { %6591 = vmatpush3.bf16.msra.mxu0 %v7266_v9  ;;  %v7323_v9 = vld [vmem:[%s9351_s1 + $0x610] sm:$0xff]  }
  0xa1   :  { %6620 = vmatprep.subr.bf16.mxu0 %v7268_v13  ;;  %v7326_v13 = vld [vmem:[%s9351_s1 + $0x6c8] sm:$0xff]  }
  0xa2   :  { %6613 = vmatpush3.bf16.msra.mxu1 %v7267_v10  ;;  %v7324_v10 = vld [vmem:[%s9351_s1 + $0x690] sm:$0xff]  }
  0xa3   :  { %4944 = vmatmul.mubr.bf16.vlgmr.msra.gmra.mxu0 %v1184_v12  ;;  %6642 = vmatprep.subr.bf16.mxu1 %v7269_v14  ;;  %v19_v12 = vld [vmem:[%s9350_s0 + $0x18] sm:$0xff] }
  0xa4   :  { %6621 = vmatpush3.bf16.msra.mxu0 %v7270_v16  ;;  %5023 = vmatprep.mubr.bf16.mxu0 %v1205_v15  ;;  %v1217_v14 = vrot.slane %v19_v12, %v7775_v41  ;;  %v1210_v15 = vcombine.high %v19_v12, %v19_v12  ;;  %v7327_v16 = vld [vmem:[%s9351_s1 + $0x608] sm:$0xff]   ;;  %v7364_v12 = vld [vmem:[%s9351_s1 + $0x780] sm:$0xff]  }
  0xa5   :  { %4984 = vmatmul.mubr.bf16.vlgmr.msra.gmra.mxu1 %v1206_v18  ;;  %6622 = vmatprep.subr.bf16.mxu0 %v7272_v19 }
  0xa6   :  { %6643 = vmatpush3.bf16.msra.mxu1 %v7271_v17  ;;  %5063 = vmatprep.mubr.bf16.mxu1 %v1209_v21  ;;  %v7329_v17 = vld [vmem:[%s9351_s1 + $0x640] sm:$0xff]   ;;  %v1225_v18 = vcombine.high %v1217_v14, %v1217_v14  ;;  %v8379_v19 = vrot.slane %v1210_v15, %v7775_v41  ;;  %v7367_v15 = vld [vmem:[%s9351_s1 + $0x8f8] sm:$0xff]  }
  0xa7   :  { %6644 = vmatprep.subr.bf16.mxu1 %v7273_v20  ;;  %v7328_v20 = vld [vmem:[%s9351_s1 + $0x688] sm:$0xff]   ;;  %v7330_v21 = vld [vmem:[%s9351_s1 + $0x6c0] sm:$0xff]  }
  0xa8   :  { %6623 = vmatpush3.bf16.msra.mxu0 %v7274_v22  ;;  %v7331_v22 = vld [vmem:[%s9351_s1 + $0x600] sm:$0xff]  }
  0xa9   :  { %6624 = vmatprep.subr.bf16.mxu0 %v7276_v24  ;;  %v1226_v24 = vcombine.high %v8379_v19, %v8379_v19 }
  0xaa   :  { %6645 = vmatpush3.bf16.msra.mxu1 %v7275_v23  ;;  %v1247_v23 = vrot.slane %v1225_v18, %v7775_v41 }
  0xab   :  { %6646 = vmatprep.subr.bf16.mxu1 %v7277_v25  ;;  %v7332_v25 = vld [vmem:[%s9351_s1 + $0x680] sm:$0xff]  }
  0xac   :  { %6625 = vmatpush3.bf16.msra.mxu0 %v7278_v26  ;;  %v1257_v26 = vcombine.high %v1247_v23, %v1247_v23 }
  0xad   :  { %6626 = vmatprep.subr.bf16.mxu0 %v7280_v28  ;;  %v7333_v28 = vld [vmem:[%s9351_s1 + $0x778] sm:$0xff]  }
  0xae   :  { %6647 = vmatpush3.bf16.msra.mxu1 %v7279_v27  ;;  %v1233_v27 = vrot.slane %v1217_v14, %v7775_v41  ;;  %v7366_v14 = vld [vmem:[%s9351_s1 + $0x878] sm:$0xff]  }
  0xaf   :  { %6648 = vmatprep.subr.bf16.mxu1 %v7281_v29  ;;  %v7334_v29 = vld [vmem:[%s9351_s1 + $0x7f8] sm:$0xff]  }
  0xb0   :  { %6627 = vmatpush3.bf16.msra.mxu0 %v7282_v30  ;;  %v1254_v30 = vrot.slane %v1226_v24, %v7775_v41 }
  0xb1   :  { %6628 = vmatprep.subr.bf16.mxu0 %v7284_v32  ;;  %v7336_v32 = vld [vmem:[%s9351_s1 + $0x7b8] sm:$0xff]  }
  0xb2   :  { %6649 = vmatpush3.bf16.msra.mxu1 %v7283_v31  ;;  %v7335_v31 = vld [vmem:[%s9351_s1 + $0x738] sm:$0xff]  }
  0xb3   :  { %6650 = vmatprep.subr.bf16.mxu1 %v7285_v33  ;;  %v1255_v33 = vcombine.high %v1233_v27, %v1233_v27 }
  0xb4   :  { %6629 = vmatpush3.bf16.msra.mxu0 %v7286_v34  ;;  %v7337_v34 = vld [vmem:[%s9351_s1 + $0x770] sm:$0xff]  }
  0xb5   :  { %6630 = vmatprep.subr.bf16.mxu0 %v7288_v36  ;;  %v1258_v36 = vcombine.high %v1254_v30, %v1254_v30 }
  0xb6   :  { %6651 = vmatpush3.bf16.msra.mxu1 %v7287_v35  ;;  %v7338_v35 = vld [vmem:[%s9351_s1 + $0x7f0] sm:$0xff]  }
  0xb7   :  { %6652 = vmatprep.subr.bf16.mxu1 %v7289_v37 }
  0xb8   :  { %6631 = vmatpush3.bf16.msra.mxu0 %v7290_v38  ;;  %v5887_v38 = vld [vmem:[%s9352_s2] ss:$0 sm:$0xff] }
  0xb9   :  { %6632 = vmatprep.subr.bf16.mxu0 %v7292_v40  ;;  %v7340_v40 = vld [vmem:[%s9351_s1 + $0x7b0] sm:$0xff]  }
  0xba   :  { %6653 = vmatpush3.bf16.msra.mxu1 %v7291_v39  ;;  %v7339_v39 = vld [vmem:[%s9351_s1 + $0x730] sm:$0xff]  }
  0xbb   :  { %6654 = vmatprep.subr.bf16.mxu1 %v7293_v42 }
  0xbc   :  { %6633 = vmatpush3.bf16.msra.mxu0 %v7294_v43 }
  0xbd   :  { %6634 = vmatprep.subr.bf16.mxu0 %v7296_v45 }
  0xbe   :  { %6655 = vmatpush3.bf16.msra.mxu1 %v7295_v44  ;;  %v7341_v44 = vld [vmem:[%s9351_s1 + $0x768] sm:$0xff]  }
  0xbf   :  { %6656 = vmatprep.subr.bf16.mxu1 %v7297_v46  ;;  %v7342_v46 = vld [vmem:[%s9351_s1 + $0x7e8] sm:$0xff]  }
  0xc0   :  { %6635 = vmatpush3.bf16.msra.mxu0 %v7298_v47 }
  0xc1   :  { %6664 = vmatprep.subr.bf16.mxu0 %v7301_v50 }
  0xc2   :  { %6657 = vmatpush3.bf16.msra.mxu1 %v7299_v48 }
  0xc3   :  { %5024 = vmatmul.mubr.bf16.vlgmr.msra.gmra.mxu0 %v1191_v49  ;;  %6686 = vmatprep.subr.bf16.mxu1 %v7302_v51  ;;  %v7343_v49 = vld [vmem:[%s9351_s1 + $0x728] sm:$0xff]  }
  0xc4   :  { %6665 = vmatpush3.bf16.msra.mxu0 %v7303_v52  ;;  %5103 = vmatprep.mubr.bf16.mxu0 %v1247_v23  ;;  %v7344_v52 = vld [vmem:[%s9351_s1 + $0x7a8] sm:$0xff]   ;;  %v7373_v23 = vld [vmem:[%s9351_s1 + $0x8b0] sm:$0xff]  }
  0xc5   :  { %5064 = vmatmul.mubr.bf16.vlgmr.msra.gmra.mxu1 %v1207_v54  ;;  %6666 = vmatprep.subr.bf16.mxu0 %v7305_v55  ;;  %v7345_v55 = vld [vmem:[%s9351_s1 + $0x760] sm:$0xff]  }
  0xc6   :  { %6687 = vmatpush3.bf16.msra.mxu1 %v7304_v53  ;;  %5143 = vmatprep.mubr.bf16.mxu1 %v1257_v26  ;;  %v7374_v26 = vld [vmem:[%s9351_s1 + $0x868] sm:$0xff]  }
  0xc7   :  { %6688 = vmatprep.subr.bf16.mxu1 %v7306_v56 }
  0xc8   :  { %6667 = vmatpush3.bf16.msra.mxu0 %v7307_v57  ;;  %v7346_v57 = vld [vmem:[%s9351_s1 + $0x7e0] sm:$0xff]  }
  0xc9   :  { %6668 = vmatprep.subr.bf16.mxu0 %v7309_v59  ;;  %v7347_v59 = vld [vmem:[%s9351_s1 + $0x720] sm:$0xff]  }
  0xca   :  { %6689 = vmatpush3.bf16.msra.mxu1 %v7308_v58 }
  0xcb   :  { %6690 = vmatprep.subr.bf16.mxu1 %v7310_v60  ;;  %v7348_v60 = vld [vmem:[%s9351_s1 + $0x7a0] sm:$0xff]  }
  0xcc   :  { %6669 = vmatpush3.bf16.msra.mxu0 %v7311_v61  ;;  %v7349_v61 = vld [vmem:[%s9351_s1 + $0x758] sm:$0xff]  }
  0xcd   :  { %6670 = vmatprep.subr.bf16.mxu0 %v7313_v63  ;;  %v7351_v63 = vld [vmem:[%s9351_s1 + $0x718] sm:$0xff]  }
  0xce   :  { %6691 = vmatpush3.bf16.msra.mxu1 %v7312_v62  ;;  %v7350_v62 = vld [vmem:[%s9351_s1 + $0x7d8] sm:$0xff]  }
  0xcf   :  { %6692 = vmatprep.subr.bf16.mxu1 %v7314_v0  ;;  %v7352_v0 = vld [vmem:[%s9351_s1 + $0x798] sm:$0xff]  }
  0xd0   :  { %6671 = vmatpush3.bf16.msra.mxu0 %v7315_v1  ;;  %v7353_v1 = vld [vmem:[%s9351_s1 + $0x750] sm:$0xff]  }
  0xd1   :  { %6672 = vmatprep.subr.bf16.mxu0 %v7317_v3  ;;  %v7355_v3 = vld [vmem:[%s9351_s1 + $0x710] sm:$0xff]  }
  0xd2   :  { %6693 = vmatpush3.bf16.msra.mxu1 %v7316_v2  ;;  %v7354_v2 = vld [vmem:[%s9351_s1 + $0x7d0] sm:$0xff]  }
  0xd3   :  { %6694 = vmatprep.subr.bf16.mxu1 %v7318_v4  ;;  %v7356_v4 = vld [vmem:[%s9351_s1 + $0x790] sm:$0xff]  }
  0xd4   :  { %6673 = vmatpush3.bf16.msra.mxu0 %v7319_v5  ;;  %v7357_v5 = vld [vmem:[%s9351_s1 + $0x748] sm:$0xff]  }
  0xd5   :  { %6674 = vmatprep.subr.bf16.mxu0 %v7321_v7  ;;  %v7359_v7 = vld [vmem:[%s9351_s1 + $0x708] sm:$0xff]  }
  0xd6   :  { %6695 = vmatpush3.bf16.msra.mxu1 %v7320_v6  ;;  %v7358_v6 = vld [vmem:[%s9351_s1 + $0x7c8] sm:$0xff]  }
  0xd7   :  { %6696 = vmatprep.subr.bf16.mxu1 %v7322_v8  ;;  %v7360_v8 = vld [vmem:[%s9351_s1 + $0x788] sm:$0xff]  }
  0xd8   :  { %6675 = vmatpush3.bf16.msra.mxu0 %v7323_v9  ;;  %v7361_v9 = vld [vmem:[%s9351_s1 + $0x740] sm:$0xff]  }
  0xd9   :  { %6676 = vmatprep.subr.bf16.mxu0 %v7325_v11  ;;  %v7363_v11 = vld [vmem:[%s9351_s1 + $0x700] sm:$0xff]  }
  0xda   :  { %6697 = vmatpush3.bf16.msra.mxu1 %v7324_v10  ;;  %v7362_v10 = vld [vmem:[%s9351_s1 + $0x7c0] sm:$0xff]  }
  0xdb   :  { %6698 = vmatprep.subr.bf16.mxu1 %v7326_v13  ;;  %v1240_v13 = vrot.slane %v8379_v19, %v7775_v41  ;;  %v7370_v19 = vld [vmem:[%s9351_s1 + $0x870] sm:$0xff]  }
  0xdc   :  { %6677 = vmatpush3.bf16.msra.mxu0 %v7327_v16  ;;  %v7368_v16 = vld [vmem:[%s9351_s1 + $0x838] sm:$0xff]  }
  0xdd   :  { %6678 = vmatprep.subr.bf16.mxu0 %v7329_v17  ;;  %v7369_v17 = vld [vmem:[%s9351_s1 + $0x8b8] sm:$0xff]   ;;  %v1256_v18 = vcombine.high %v1240_v13, %v1240_v13 }
  0xde   :  { %6699 = vmatpush3.bf16.msra.mxu1 %v7328_v20  ;;  %v7371_v20 = vld [vmem:[%s9351_s1 + $0x8f0] sm:$0xff]  }
  0xdf   :  { %6700 = vmatprep.subr.bf16.mxu1 %v7330_v21 }
  0xe0   :  { %6679 = vmatpush3.bf16.msra.mxu0 %v7331_v22  ;;  %v7372_v22 = vld [vmem:[%s9351_s1 + $0x830] sm:$0xff]  }
  0xe1   :  { %6708 = vmatprep.subr.bf16.mxu0 %v7333_v28  ;;  %v7375_v28 = vld [vmem:[%s9351_s1 + $0x8e8] sm:$0xff]  }
  0xe2   :  { %6701 = vmatpush3.bf16.msra.mxu1 %v7332_v25 }
  0xe3   :  { %v6416_v37 = vpop.f32.mrf.mxu0  ;;  %5104 = vmatmul.mubr.bf16.vlgmr.msra.gmra.mxu0 %v1233_v27  ;;  %6730 = vmatprep.subr.bf16.mxu1 %v7334_v29 }
  0xe4   :  { %6709 = vmatpush3.bf16.msra.mxu0 %v7335_v31  ;;  %5183 = vmatprep.mubr.bf16.mxu0 %v1254_v30  ;;  %v6438_v42 = vpop.f32.mrf.mxu1  ;;  %v7376_v31 = vld [vmem:[%s9351_s1 + $0x828] sm:$0xff]  }
  0xe5   :  { %5144 = vmatmul.mubr.bf16.vlgmr.msra.gmra.mxu1 %v1255_v33  ;;  %v6417_v43 = vpop.f32.mrf.mxu0  ;;  %6710 = vmatprep.subr.bf16.mxu0 %v7337_v34  ;;  %v7377_v34 = vld [vmem:[%s9351_s1 + $0x8a8] sm:$0xff]  }
  0xe6   :  { %6731 = vmatpush3.bf16.msra.mxu1 %v7336_v32  ;;  %v6418_v45 = vadd.f32 %v6417_v43, %v6416_v37  ;;  %5223 = vmatprep.mubr.bf16.mxu1 %v1258_v36  ;;  %v6439_v47 = vpop.f32.mrf.mxu1  ;;  %v7378_v37 = vld [vmem:[%s9351_s1 + $0x860] sm:$0xff]  }
  0xe7   :  { %v6419_v48 = vpop.f32.mrf.mxu0  ;;  %6732 = vmatprep.subr.bf16.mxu1 %v7338_v35  ;;  %v6440_v51 = vadd.f32 %v6439_v47, %v6438_v42  ;;  %v7380_v42 = vld [vmem:[%s9351_s1 + $0x820] sm:$0xff]   ;;  %v7385_v47 = vld [vmem:[%s9351_s1 + $0x898] sm:$0xff]  }
  0xe8   :  { %v4626_v50 = vadd.f32 %v6418_v45, %v5887_v38  ;;  %6711 = vmatpush3.bf16.msra.mxu0 %v7339_v39  ;;  %v6441_v53 = vpop.f32.mrf.mxu1  ;;  %v7379_v39 = vld [vmem:[%s9351_s1 + $0x8e0] sm:$0xff]   ;;  %v7383_v45 = vld [vmem:[%s9351_s1 + $0x8d8] sm:$0xff]   ;;  %v7386_v48 = vld [vmem:[%s9351_s1 + $0x850] sm:$0xff]  }
  0xe9   :  { %v6420_v54 = vpop.f32.mrf.mxu0  ;;  %6712 = vmatprep.subr.bf16.mxu0 %v7341_v44  ;;  %v7381_v43 = vld [vmem:[%s9351_s1 + $0x8a0] sm:$0xff]   ;;  %v7382_v44 = vld [vmem:[%s9351_s1 + $0x858] sm:$0xff]   ;;  %v7391_v53 = vld [vmem:[%s9351_s1 + $0x8c8] sm:$0xff]  }
  0xea   :  { %v8440_v56 = vadd.f32 %v6440_v51, %v4626_v50  ;;  %6733 = vmatpush3.bf16.msra.mxu1 %v7340_v40  ;;  %v6442_v58 = vpop.f32.mrf.mxu1  ;;  %v7388_v50 = vld [vmem:[%s9351_s1 + $0x810] sm:$0xff]   ;;  %v20_v54 = vld [vmem:[%s9350_s0 + $0x20] sm:$0xff] }
  0xeb   :  { %6734 = vmatprep.subr.bf16.mxu1 %v7342_v46  ;;  %v7384_v46 = vld [vmem:[%s9351_s1 + $0x818] sm:$0xff]   ;;  %v7389_v51 = vld [vmem:[%s9351_s1 + $0x890] sm:$0xff]   ;;  %v7393_v58 = vld [vmem:[%s9351_s1 + $0x888] sm:$0xff]  }
  0xec   :  { %6713 = vmatpush3.bf16.msra.mxu0 %v7343_v49  ;;  %v7387_v49 = vld [vmem:[%s9351_s1 + $0x8d0] sm:$0xff]  }
  0xed   :  { %6714 = vmatprep.subr.bf16.mxu0 %v7345_v55  ;;  %v7392_v55 = vld [vmem:[%s9351_s1 + $0x808] sm:$0xff]  }
  0xee   :  { %6735 = vmatpush3.bf16.msra.mxu1 %v7344_v52  ;;  %v7390_v52 = vld [vmem:[%s9351_s1 + $0x848] sm:$0xff]  }
  0xef   :  { %6736 = vmatprep.subr.bf16.mxu1 %v7346_v57  ;;  %v1259_v57 = vcombine.high %v20_v54, %v20_v54 }
  0xf0   :  { %6715 = vmatpush3.bf16.msra.mxu0 %v7347_v59  ;;  %v7394_v59 = vld [vmem:[%s9351_s1 + $0x840] sm:$0xff]  }
  0xf1   :  { %6716 = vmatprep.subr.bf16.mxu0 %v7349_v61  ;;  %v8596_v61 = vrot.slane %v1259_v57, %v7775_v41  ;;  %v7434_v57 = vld [vmem:[%s9351_s1 + $0xab8] sm:$0xff]  }
  0xf2   :  { %6737 = vmatpush3.bf16.msra.mxu1 %v7348_v60 }
  0xf3   :  { %6738 = vmatprep.subr.bf16.mxu1 %v7350_v62  ;;  %v7395_v62 = vld [vmem:[%s9351_s1 + $0x8c0] sm:$0xff]  }
  0xf4   :  { %6717 = vmatpush3.bf16.msra.mxu0 %v7351_v63  ;;  %v7396_v63 = vld [vmem:[%s9351_s1 + $0x800] sm:$0xff]  }
  0xf5   :  { %6718 = vmatprep.subr.bf16.mxu0 %v7353_v1  ;;  %v1275_v1 = vcombine.high %v8596_v61, %v8596_v61 }
  0xf6   :  { %6739 = vmatpush3.bf16.msra.mxu1 %v7352_v0 }
  0xf7   :  { %6740 = vmatprep.subr.bf16.mxu1 %v7354_v2  ;;  %v7397_v2 = vld [vmem:[%s9351_s1 + $0x880] sm:$0xff]  }
  0xf8   :  { %6719 = vmatpush3.bf16.msra.mxu0 %v7355_v3 }
  0xf9   :  { %6720 = vmatprep.subr.bf16.mxu0 %v7357_v5  ;;  %v7398_v5 = vld [vmem:[%s9351_s1 + $0x978] sm:$0xff]  }
  0xfa   :  { %6741 = vmatpush3.bf16.msra.mxu1 %v7356_v4 }
  0xfb   :  { %6742 = vmatprep.subr.bf16.mxu1 %v7358_v6  ;;  %v7399_v6 = vld [vmem:[%s9351_s1 + $0x9f8] sm:$0xff]  }
  0xfc   :  { %6721 = vmatpush3.bf16.msra.mxu0 %v7359_v7  ;;  %v1303_v7 = vrot.slane %v1275_v1, %v7775_v41 }
  0xfd   :  { %6722 = vmatprep.subr.bf16.mxu0 %v7361_v9  ;;  %v7401_v9 = vld [vmem:[%s9351_s1 + $0x9b8] sm:$0xff]  }
  0xfe   :  { %6743 = vmatpush3.bf16.msra.mxu1 %v7360_v8  ;;  %v7400_v8 = vld [vmem:[%s9351_s1 + $0x938] sm:$0xff]  }
  0xff   :  { %6744 = vmatprep.subr.bf16.mxu1 %v7362_v10 }
 0x100   :  { %6723 = vmatpush3.bf16.msra.mxu0 %v7363_v11  ;;  %v7402_v11 = vld [vmem:[%s9351_s1 + $0x970] sm:$0xff]  }
 0x101   :  { %6752 = vmatprep.subr.bf16.mxu0 %v7366_v14 }
 0x102   :  { %6745 = vmatpush3.bf16.msra.mxu1 %v7364_v12  ;;  %v7403_v12 = vld [vmem:[%s9351_s1 + $0x9f0] sm:$0xff]  }
 0x103   :  { %v6460_v21 = vpop.f32.mrf.mxu0  ;;  %5184 = vmatmul.mubr.bf16.vlgmr.msra.gmra.mxu0 %v1240_v13  ;;  %6774 = vmatprep.subr.bf16.mxu1 %v7367_v15  ;;  %v1307_v13 = vcombine.high %v1303_v7, %v1303_v7  ;;  %v7404_v15 = vld [vmem:[%s9351_s1 + $0x930] sm:$0xff]  }
 0x104   :  { %6753 = vmatpush3.bf16.msra.mxu0 %v7368_v16  ;;  %v6482_v24 = vpop.f32.mrf.mxu1  ;;  %v7405_v16 = vld [vmem:[%s9351_s1 + $0x9b0] sm:$0xff]  }
 0x105   :  { %5224 = vmatmul.mubr.bf16.vlgmr.msra.gmra.mxu1 %v1256_v18  ;;  %v6461_v25 = vpop.f32.mrf.mxu0  ;;  %6754 = vmatprep.subr.bf16.mxu0 %v7370_v19  ;;  %v7406_v19 = vld [vmem:[%s9351_s1 + $0x968] sm:$0xff]  }
 0x106   :  { %6775 = vmatpush3.bf16.msra.mxu1 %v7369_v17  ;;  %v6462_v27 = vadd.f32 %v6461_v25, %v6460_v21  ;;  %v6483_v29 = vpop.f32.mrf.mxu1  ;;  %v7407_v21 = vld [vmem:[%s9351_s1 + $0x9e8] sm:$0xff]  }
 0x107   :  { %v6463_v30 = vpop.f32.mrf.mxu0  ;;  %6776 = vmatprep.subr.bf16.mxu1 %v7371_v20  ;;  %v6484_v33 = vadd.f32 %v6483_v29, %v6482_v24  ;;  %v7408_v24 = vld [vmem:[%s9351_s1 + $0x928] sm:$0xff]  }
 0x108   :  { %v4706_v32 = vadd.f32 %v6462_v27, %v8440_v56  ;;  %6755 = vmatpush3.bf16.msra.mxu0 %v7372_v22  ;;  %v6485_v35 = vpop.f32.mrf.mxu1  ;;  %v1266_v56 = vrot.slane %v20_v54, %v7775_v41  ;;  %v7409_v27 = vld [vmem:[%s9351_s1 + $0x9a8] sm:$0xff]   ;;  %v7410_v30 = vld [vmem:[%s9351_s1 + $0x960] sm:$0xff]   ;;  %v7431_v54 = vld [vmem:[%s9351_s1 + $0xa78] sm:$0xff]  }
 0x109   :  { %v6464_v36 = vpop.f32.mrf.mxu0  ;;  %6756 = vmatprep.subr.bf16.mxu0 %v7374_v26  ;;  %v7413_v35 = vld [vmem:[%s9351_s1 + $0x9a0] sm:$0xff]  }
 0x10a   :  { %v8541_v38 = vadd.f32 %v6484_v33, %v4706_v32  ;;  %6777 = vmatpush3.bf16.msra.mxu1 %v7373_v23  ;;  %v6486_v40 = vpop.f32.mrf.mxu1  ;;  %v1274_v60 = vcombine.high %v1266_v56, %v1266_v56  ;;  %v1282_v4 = vrot.slane %v1266_v56, %v7775_v41  ;;  %v7411_v32 = vld [vmem:[%s9351_s1 + $0x9e0] sm:$0xff]   ;;  %v7414_v36 = vld [vmem:[%s9351_s1 + $0x958] sm:$0xff]  }
 0x10b   :  { %6778 = vmatprep.subr.bf16.mxu1 %v7375_v28  ;;  %v7418_v40 = vld [vmem:[%s9351_s1 + $0x950] sm:$0xff]   ;;  %v7433_v56 = vld [vmem:[%s9351_s1 + $0xa38] sm:$0xff]  }
 0x10c   :  { %6757 = vmatpush3.bf16.msra.mxu0 %v7376_v31  ;;  %v1296_v0 = vrot.slane %v1274_v60, %v7775_v41  ;;  %v1304_v10 = vcombine.high %v1282_v4, %v1282_v4  ;;  %v7436_v60 = vld [vmem:[%s9351_s1 + $0xaf0] sm:$0xff]  }
 0x10d   :  { %6758 = vmatprep.subr.bf16.mxu0 %v7378_v37  ;;  %v7415_v37 = vld [vmem:[%s9351_s1 + $0x9d8] sm:$0xff]  }
 0x10e   :  { %6779 = vmatpush3.bf16.msra.mxu1 %v7377_v34  ;;  %5263 = vmatprep.mubr.bf16.mxu0 %v1296_v0  ;;  %v1306_v3 = vcombine.high %v1296_v0, %v1296_v0  ;;  %v7412_v34 = vld [vmem:[%s9351_s1 + $0x920] sm:$0xff]  }
 0x10f   :  { %6780 = vmatprep.subr.bf16.mxu1 %v7379_v39  ;;  %v7417_v39 = vld [vmem:[%s9351_s1 + $0x998] sm:$0xff]  }
 0x110   :  { %6759 = vmatpush3.bf16.msra.mxu0 %v7380_v42  ;;  %5303 = vmatprep.mubr.bf16.mxu1 %v1306_v3  ;;  %v7419_v42 = vld [vmem:[%s9351_s1 + $0x9d0] sm:$0xff]  }
 0x111   :  { %6760 = vmatprep.subr.bf16.mxu0 %v7382_v44  ;;  %v7421_v44 = vld [vmem:[%s9351_s1 + $0x990] sm:$0xff]  }
 0x112   :  { %6781 = vmatpush3.bf16.msra.mxu1 %v7381_v43  ;;  %v7420_v43 = vld [vmem:[%s9351_s1 + $0x910] sm:$0xff]  }
 0x113   :  { %6782 = vmatprep.subr.bf16.mxu1 %v7383_v45  ;;  %v7422_v45 = vld [vmem:[%s9351_s1 + $0x948] sm:$0xff]  }
 0x114   :  { %6761 = vmatpush3.bf16.msra.mxu0 %v7384_v46  ;;  %v7423_v46 = vld [vmem:[%s9351_s1 + $0x9c8] sm:$0xff]  }
 0x115   :  { %6762 = vmatprep.subr.bf16.mxu0 %v7386_v48  ;;  %v7425_v48 = vld [vmem:[%s9351_s1 + $0x988] sm:$0xff]  }
 0x116   :  { %6783 = vmatpush3.bf16.msra.mxu1 %v7385_v47  ;;  %v7424_v47 = vld [vmem:[%s9351_s1 + $0x908] sm:$0xff]  }
 0x117   :  { %6784 = vmatprep.subr.bf16.mxu1 %v7387_v49  ;;  %v7426_v49 = vld [vmem:[%s9351_s1 + $0x940] sm:$0xff]  }
 0x118   :  { %6763 = vmatpush3.bf16.msra.mxu0 %v7388_v50  ;;  %v7427_v50 = vld [vmem:[%s9351_s1 + $0x9c0] sm:$0xff]  }
 0x119   :  { %6764 = vmatprep.subr.bf16.mxu0 %v7390_v52  ;;  %v7429_v52 = vld [vmem:[%s9351_s1 + $0x980] sm:$0xff]  }
 0x11a   :  { %6785 = vmatpush3.bf16.msra.mxu1 %v7389_v51  ;;  %v7428_v51 = vld [vmem:[%s9351_s1 + $0x900] sm:$0xff]  }
 0x11b   :  { %6786 = vmatprep.subr.bf16.mxu1 %v7391_v53  ;;  %v1289_v53 = vrot.slane %v8596_v61, %v7775_v41 }
 0x11c   :  { %6765 = vmatpush3.bf16.msra.mxu0 %v7392_v55  ;;  %v7432_v55 = vld [vmem:[%s9351_s1 + $0xaf8] sm:$0xff]  }
 0x11d   :  { %6766 = vmatprep.subr.bf16.mxu0 %v7394_v59  ;;  %v7435_v59 = vld [vmem:[%s9351_s1 + $0xa70] sm:$0xff]  }
 0x11e   :  { %6787 = vmatpush3.bf16.msra.mxu1 %v7393_v58  ;;  %v1305_v58 = vcombine.high %v1289_v53, %v1289_v53 }
 0x11f   :  { %6788 = vmatprep.subr.bf16.mxu1 %v7395_v62  ;;  %v7437_v62 = vld [vmem:[%s9351_s1 + $0xa30] sm:$0xff]  }
 0x120   :  { %6767 = vmatpush3.bf16.msra.mxu0 %v7396_v63  ;;  %v7438_v63 = vld [vmem:[%s9351_s1 + $0xab0] sm:$0xff]  }
 0x121   :  { %6796 = vmatprep.subr.bf16.mxu0 %v7398_v5 }
 0x122   :  { %6789 = vmatpush3.bf16.msra.mxu1 %v7397_v2  ;;  %v7439_v2 = vld [vmem:[%s9351_s1 + $0xa68] sm:$0xff]  }
 0x123   :  { %v6504_v14 = vpop.f32.mrf.mxu0  ;;  %5264 = vmatmul.mubr.bf16.vlgmr.msra.gmra.mxu0 %v1282_v4  ;;  %6818 = vmatprep.subr.bf16.mxu1 %v7399_v6  ;;  %v7440_v4 = vld [vmem:[%s9351_s1 + $0xae8] sm:$0xff]  }
 0x124   :  { %6797 = vmatpush3.bf16.msra.mxu0 %v7400_v8  ;;  %5343 = vmatprep.mubr.bf16.mxu0 %v1303_v7  ;;  %v7441_v7 = vld [vmem:[%s9351_s1 + $0xa28] sm:$0xff]  }
 0x125   :  { %v6526_v17 = vpop.f32.mrf.mxu1  ;;  %5304 = vmatmul.mubr.bf16.vlgmr.msra.gmra.mxu1 %v1304_v10  ;;  %v6505_v18 = vpop.f32.mrf.mxu0  ;;  %6798 = vmatprep.subr.bf16.mxu0 %v7402_v11  ;;  %v7442_v10 = vld [vmem:[%s9351_s1 + $0xaa8] sm:$0xff]  }
 0x126   :  { %6819 = vmatpush3.bf16.msra.mxu1 %v7401_v9  ;;  %v6506_v20 = vadd.f32 %v6505_v18, %v6504_v14  ;;  %5383 = vmatprep.mubr.bf16.mxu1 %v1307_v13  ;;  %v7443_v13 = vld [vmem:[%s9351_s1 + $0xa60] sm:$0xff]  }
 0x127   :  { %v6527_v22 = vpop.f32.mrf.mxu1  ;;  %v6507_v23 = vpop.f32.mrf.mxu0  ;;  %6820 = vmatprep.subr.bf16.mxu1 %v7403_v12  ;;  %v7446_v18 = vld [vmem:[%s9351_s1 + $0xaa0] sm:$0xff]  }
 0x128   :  { %v4786_v25 = vadd.f32 %v6506_v20, %v8541_v38  ;;  %v6528_v26 = vadd.f32 %v6527_v22, %v6526_v17  ;;  %6799 = vmatpush3.bf16.msra.mxu0 %v7404_v15  ;;  %v7416_v38 = vld [vmem:[%s9351_s1 + $0x918] sm:$0xff]   ;;  %v7444_v15 = vld [vmem:[%s9351_s1 + $0xae0] sm:$0xff]   ;;  %v7451_v23 = vld [vmem:[%s9351_s1 + $0xa50] sm:$0xff]  }
 0x129   :  { %v6529_v28 = vpop.f32.mrf.mxu1  ;;  %v6508_v29 = vpop.f32.mrf.mxu0  ;;  %6800 = vmatprep.subr.bf16.mxu0 %v7406_v19  ;;  %v7445_v17 = vld [vmem:[%s9351_s1 + $0xa20] sm:$0xff]   ;;  %v7447_v19 = vld [vmem:[%s9351_s1 + $0xa58] sm:$0xff]  }
 0x12a   :  { %v8652_v31 = vadd.f32 %v6528_v26, %v4786_v25  ;;  %6821 = vmatpush3.bf16.msra.mxu1 %v7405_v16  ;;  %v7448_v20 = vld [vmem:[%s9351_s1 + $0xad8] sm:$0xff]   ;;  %v7453_v25 = vld [vmem:[%s9351_s1 + $0xa10] sm:$0xff]   ;;  %v7456_v28 = vld [vmem:[%s9351_s1 + $0xac8] sm:$0xff]  }
 0x12b   :  { %v6530_v33 = vpop.f32.mrf.mxu1  ;;  %6822 = vmatprep.subr.bf16.mxu1 %v7407_v21  ;;  %v7449_v21 = vld [vmem:[%s9351_s1 + $0xa18] sm:$0xff]   ;;  %v7454_v26 = vld [vmem:[%s9351_s1 + $0xa90] sm:$0xff]   ;;  %v21_v29 = vld [vmem:[%s9350_s0 + $0x28] sm:$0xff] }
 0x12c   :  { %6801 = vmatpush3.bf16.msra.mxu0 %v7408_v24  ;;  %v7450_v22 = vld [vmem:[%s9351_s1 + $0xa98] sm:$0xff]   ;;  %v7452_v24 = vld [vmem:[%s9351_s1 + $0xad0] sm:$0xff]   ;;  %v7459_v33 = vld [vmem:[%s9351_s1 + $0xa40] sm:$0xff]  }
 0x12d   :  { %6802 = vmatprep.subr.bf16.mxu0 %v7410_v30  ;;  %v7457_v30 = vld [vmem:[%s9351_s1 + $0xa08] sm:$0xff]  }
 0x12e   :  { %6823 = vmatpush3.bf16.msra.mxu1 %v7409_v27  ;;  %v7455_v27 = vld [vmem:[%s9351_s1 + $0xa48] sm:$0xff]  }
 0x12f   :  { %6824 = vmatprep.subr.bf16.mxu1 %v7411_v32  ;;  %v1308_v32 = vcombine.high %v21_v29, %v21_v29 }
 0x130   :  { %6803 = vmatpush3.bf16.msra.mxu0 %v7412_v34  ;;  %v7458_v34 = vld [vmem:[%s9351_s1 + $0xa88] sm:$0xff]  }
 0x131   :  { %6804 = vmatprep.subr.bf16.mxu0 %v7414_v36  ;;  %v8808_v36 = vrot.slane %v1308_v32, %v7775_v41 }
 0x132   :  { %6825 = vmatpush3.bf16.msra.mxu1 %v7413_v35 }
 0x133   :  { %6826 = vmatprep.subr.bf16.mxu1 %v7415_v37  ;;  %v7460_v37 = vld [vmem:[%s9351_s1 + $0xac0] sm:$0xff]  }
 0x134   :  { %6805 = vmatpush3.bf16.msra.mxu0 %v7416_v38  ;;  %v7461_v38 = vld [vmem:[%s9351_s1 + $0xa00] sm:$0xff]  }
 0x135   :  { %6806 = vmatprep.subr.bf16.mxu0 %v7418_v40  ;;  %v1324_v40 = vcombine.high %v8808_v36, %v8808_v36 }
 0x136   :  { %6827 = vmatpush3.bf16.msra.mxu1 %v7417_v39 }
 0x137   :  { %6828 = vmatprep.subr.bf16.mxu1 %v7419_v42 }
 0x138   :  { %6807 = vmatpush3.bf16.msra.mxu0 %v7420_v43  ;;  %v7463_v43 = vld [vmem:[%s9351_s1 + $0xb78] sm:$0xff]  }
 0x139   :  { %6808 = vmatprep.subr.bf16.mxu0 %v7422_v45 }
 0x13a   :  { %6829 = vmatpush3.bf16.msra.mxu1 %v7421_v44  ;;  %v7462_v44 = vld [vmem:[%s9351_s1 + $0xa80] sm:$0xff]  }
 0x13b   :  { %6830 = vmatprep.subr.bf16.mxu1 %v7423_v46  ;;  %v1352_v46 = vrot.slane %v1324_v40, %v7775_v41  ;;  %v7504_v40 = vld [vmem:[%s9351_s1 + $0xc68] sm:$0xff]  }
 0x13c   :  { %6809 = vmatpush3.bf16.msra.mxu0 %v7424_v47  ;;  %v7464_v47 = vld [vmem:[%s9351_s1 + $0xbf8] sm:$0xff]  }
 0x13d   :  { %6810 = vmatprep.subr.bf16.mxu0 %v7426_v49 }
 0x13e   :  { %6831 = vmatpush3.bf16.msra.mxu1 %v7425_v48  ;;  %v7465_v48 = vld [vmem:[%s9351_s1 + $0xb38] sm:$0xff]  }
 0x13f   :  { %6832 = vmatprep.subr.bf16.mxu1 %v7427_v50  ;;  %v7467_v50 = vld [vmem:[%s9351_s1 + $0xb70] sm:$0xff]  }
 0x140   :  { %6811 = vmatpush3.bf16.msra.mxu0 %v7428_v51  ;;  %v7466_v51 = vld [vmem:[%s9351_s1 + $0xbb8] sm:$0xff]  }
 0x141   :  { %6840 = vmatprep.subr.bf16.mxu0 %v7431_v54  ;;  %v7468_v54 = vld [vmem:[%s9351_s1 + $0xbf0] sm:$0xff]  }
 0x142   :  { %6833 = vmatpush3.bf16.msra.mxu1 %v7429_v52  ;;  %v1356_v52 = vcombine.high %v1352_v46, %v1352_v46 }
 0x143   :  { %v6548_v61 = vpop.f32.mrf.mxu0  ;;  %5344 = vmatmul.mubr.bf16.vlgmr.msra.gmra.mxu0 %v1289_v53  ;;  %6862 = vmatprep.subr.bf16.mxu1 %v7432_v55  ;;  %v7469_v55 = vld [vmem:[%s9351_s1 + $0xb30] sm:$0xff]  }
 0x144   :  { %6841 = vmatpush3.bf16.msra.mxu0 %v7433_v56 }
 0x145   :  { %v6570_v0 = vpop.f32.mrf.mxu1  ;;  %5384 = vmatmul.mubr.bf16.vlgmr.msra.gmra.mxu1 %v1305_v58  ;;  %v6549_v1 = vpop.f32.mrf.mxu0  ;;  %6842 = vmatprep.subr.bf16.mxu0 %v7435_v59  ;;  %v7471_v58 = vld [vmem:[%s9351_s1 + $0xb68] sm:$0xff]  }
 0x146   :  { %6863 = vmatpush3.bf16.msra.mxu1 %v7434_v57  ;;  %v6550_v3 = vadd.f32 %v6549_v1, %v6548_v61 }
 0x147   :  { %v6571_v5 = vpop.f32.mrf.mxu1  ;;  %v6551_v6 = vpop.f32.mrf.mxu0  ;;  %6864 = vmatprep.subr.bf16.mxu1 %v7436_v60  ;;  %v7470_v60 = vld [vmem:[%s9351_s1 + $0xbb0] sm:$0xff]  }
 0x148   :  { %v4866_v8 = vadd.f32 %v6550_v3, %v8652_v31  ;;  %v6572_v9 = vadd.f32 %v6571_v5, %v6570_v0  ;;  %6843 = vmatpush3.bf16.msra.mxu0 %v7437_v62  ;;  %v1315_v31 = vrot.slane %v21_v29, %v7775_v41  ;;  %v7475_v5 = vld [vmem:[%s9351_s1 + $0xb60] sm:$0xff]  }
 0x149   :  { %v6573_v11 = vpop.f32.mrf.mxu1  ;;  %v6552_v12 = vpop.f32.mrf.mxu0  ;;  %6844 = vmatprep.subr.bf16.mxu0 %v7439_v2  ;;  %v7473_v2 = vld [vmem:[%s9351_s1 + $0xb28] sm:$0xff]   ;;  %v7494_v29 = vld [vmem:[%s9351_s1 + $0xb80] sm:$0xff]  }
 0x14a   :  { %v8753_v14 = vadd.f32 %v6572_v9, %v4866_v8  ;;  %6865 = vmatpush3.bf16.msra.mxu1 %v7438_v63  ;;  %v1323_v35 = vcombine.high %v1315_v31, %v1315_v31  ;;  %v1331_v42 = vrot.slane %v1315_v31, %v7775_v41  ;;  %v7472_v63 = vld [vmem:[%s9351_s1 + $0xbe8] sm:$0xff]   ;;  %v7476_v9 = vld [vmem:[%s9351_s1 + $0xbe0] sm:$0xff]   ;;  %v7479_v11 = vld [vmem:[%s9351_s1 + $0xb58] sm:$0xff]  }
 0x14b   :  { %v6574_v16 = vpop.f32.mrf.mxu1  ;;  %6866 = vmatprep.subr.bf16.mxu1 %v7440_v4  ;;  %v7478_v12 = vld [vmem:[%s9351_s1 + $0xba0] sm:$0xff]   ;;  %v7498_v31 = vld [vmem:[%s9351_s1 + $0xc38] sm:$0xff]  }
 0x14c   :  { %6845 = vmatpush3.bf16.msra.mxu0 %v7441_v7  ;;  %v1345_v39 = vrot.slane %v1323_v35, %v7775_v41  ;;  %v1353_v49 = vcombine.high %v1331_v42, %v1331_v42  ;;  %v7474_v7 = vld [vmem:[%s9351_s1 + $0xba8] sm:$0xff]   ;;  %v7482_v16 = vld [vmem:[%s9351_s1 + $0xb98] sm:$0xff]  }
 0x14d   :  { %6846 = vmatprep.subr.bf16.mxu0 %v7443_v13  ;;  %v7480_v13 = vld [vmem:[%s9351_s1 + $0xbd8] sm:$0xff]  }
 0x14e   :  { %6867 = vmatpush3.bf16.msra.mxu1 %v7442_v10  ;;  %5423 = vmatprep.mubr.bf16.mxu0 %v1345_v39  ;;  %v1355_v45 = vcombine.high %v1345_v39, %v1345_v39  ;;  %v7477_v10 = vld [vmem:[%s9351_s1 + $0xb20] sm:$0xff]  }
 0x14f   :  { %6868 = vmatprep.subr.bf16.mxu1 %v7444_v15  ;;  %v7483_v15 = vld [vmem:[%s9351_s1 + $0xb50] sm:$0xff]  }
 0x150   :  { %6847 = vmatpush3.bf16.msra.mxu0 %v7445_v17  ;;  %5463 = vmatprep.mubr.bf16.mxu1 %v1355_v45  ;;  %v7484_v17 = vld [vmem:[%s9351_s1 + $0xbd0] sm:$0xff]  }
 0x151   :  { %6848 = vmatprep.subr.bf16.mxu0 %v7447_v19  ;;  %v7487_v19 = vld [vmem:[%s9351_s1 + $0xb48] sm:$0xff]  }
 0x152   :  { %6869 = vmatpush3.bf16.msra.mxu1 %v7446_v18  ;;  %v7485_v18 = vld [vmem:[%s9351_s1 + $0xb10] sm:$0xff]  }
 0x153   :  { %6870 = vmatprep.subr.bf16.mxu1 %v7448_v20  ;;  %v7486_v20 = vld [vmem:[%s9351_s1 + $0xb90] sm:$0xff]  }
 0x154   :  { %6849 = vmatpush3.bf16.msra.mxu0 %v7449_v21  ;;  %v7488_v21 = vld [vmem:[%s9351_s1 + $0xbc8] sm:$0xff]  }
 0x155   :  { %6850 = vmatprep.subr.bf16.mxu0 %v7451_v23  ;;  %v7491_v23 = vld [vmem:[%s9351_s1 + $0xb40] sm:$0xff]  }
 0x156   :  { %6871 = vmatpush3.bf16.msra.mxu1 %v7450_v22  ;;  %v7489_v22 = vld [vmem:[%s9351_s1 + $0xb08] sm:$0xff]  }
 0x157   :  { %6872 = vmatprep.subr.bf16.mxu1 %v7452_v24  ;;  %v7490_v24 = vld [vmem:[%s9351_s1 + $0xb88] sm:$0xff]  }
 0x158   :  { %6851 = vmatpush3.bf16.msra.mxu0 %v7453_v25  ;;  %v7492_v25 = vld [vmem:[%s9351_s1 + $0xbc0] sm:$0xff]  }
 0x159   :  { %6852 = vmatprep.subr.bf16.mxu0 %v7455_v27  ;;  %v1338_v27 = vrot.slane %v8808_v36, %v7775_v41  ;;  %v7501_v36 = vld [vmem:[%s9351_s1 + $0xcf0] sm:$0xff]  }
 0x15a   :  { %6873 = vmatpush3.bf16.msra.mxu1 %v7454_v26  ;;  %v7493_v26 = vld [vmem:[%s9351_s1 + $0xb00] sm:$0xff]  }
 0x15b   :  { %6874 = vmatprep.subr.bf16.mxu1 %v7456_v28  ;;  %v7496_v28 = vld [vmem:[%s9351_s1 + $0xc78] sm:$0xff]   ;;  %v1354_v32 = vcombine.high %v1338_v27, %v1338_v27 }
 0x15c   :  { %6853 = vmatpush3.bf16.msra.mxu0 %v7457_v30  ;;  %v7497_v30 = vld [vmem:[%s9351_s1 + $0xcf8] sm:$0xff]  }
 0x15d   :  { %6854 = vmatprep.subr.bf16.mxu0 %v7459_v33  ;;  %v7500_v33 = vld [vmem:[%s9351_s1 + $0xc70] sm:$0xff]  }
 0x15e   :  { %6875 = vmatpush3.bf16.msra.mxu1 %v7458_v34  ;;  %v7499_v34 = vld [vmem:[%s9351_s1 + $0xcb8] sm:$0xff]  }
 0x15f   :  { %6876 = vmatprep.subr.bf16.mxu1 %v7460_v37  ;;  %v7502_v37 = vld [vmem:[%s9351_s1 + $0xc30] sm:$0xff]  }
 0x160   :  { %6855 = vmatpush3.bf16.msra.mxu0 %v7461_v38 }
 0x161   :  { %6884 = vmatprep.subr.bf16.mxu0 %v7463_v43  ;;  %v7503_v43 = vld [vmem:[%s9351_s1 + $0xcb0] sm:$0xff]  }
 0x162   :  { %6877 = vmatpush3.bf16.msra.mxu1 %v7462_v44 }
 0x163   :  { %v6592_v53 = vpop.f32.mrf.mxu0  ;;  %5424 = vmatmul.mubr.bf16.vlgmr.msra.gmra.mxu0 %v1331_v42  ;;  %6906 = vmatprep.subr.bf16.mxu1 %v7464_v47 }
 0x164   :  { %6885 = vmatpush3.bf16.msra.mxu0 %v7465_v48  ;;  %5503 = vmatprep.mubr.bf16.mxu0 %v1352_v46  ;;  %v7505_v46 = vld [vmem:[%s9351_s1 + $0xce8] sm:$0xff]  }
 0x165   :  { %v6614_v56 = vpop.f32.mrf.mxu1  ;;  %5464 = vmatmul.mubr.bf16.vlgmr.msra.gmra.mxu1 %v1353_v49  ;;  %v6593_v57 = vpop.f32.mrf.mxu0  ;;  %6886 = vmatprep.subr.bf16.mxu0 %v7467_v50  ;;  %v7506_v49 = vld [vmem:[%s9351_s1 + $0xc28] sm:$0xff]  }
 0x166   :  { %6907 = vmatpush3.bf16.msra.mxu1 %v7466_v51  ;;  %v6594_v59 = vadd.f32 %v6593_v57, %v6592_v53  ;;  %5543 = vmatprep.mubr.bf16.mxu1 %v1356_v52  ;;  %v7508_v52 = vld [vmem:[%s9351_s1 + $0xc60] sm:$0xff]  }
 0x167   :  { %v6615_v61 = vpop.f32.mrf.mxu1  ;;  %v6595_v62 = vpop.f32.mrf.mxu0  ;;  %6908 = vmatprep.subr.bf16.mxu1 %v7468_v54  ;;  %v7507_v54 = vld [vmem:[%s9351_s1 + $0xca8] sm:$0xff]   ;;  %v7510_v57 = vld [vmem:[%s9351_s1 + $0xc20] sm:$0xff]  }
 0x168   :  { %v4946_v0 = vadd.f32 %v6594_v59, %v8753_v14  ;;  %v6616_v1 = vadd.f32 %v6615_v61, %v6614_v56  ;;  %6887 = vmatpush3.bf16.msra.mxu0 %v7469_v55  ;;  %v7481_v14 = vld [vmem:[%s9351_s1 + $0xb18] sm:$0xff]   ;;  %v7509_v56 = vld [vmem:[%s9351_s1 + $0xce0] sm:$0xff]   ;;  %v7516_v62 = vld [vmem:[%s9351_s1 + $0xc50] sm:$0xff]  }
 0x169   :  { %v6617_v3 = vpop.f32.mrf.mxu1  ;;  %v6596_v4 = vpop.f32.mrf.mxu0  ;;  %6888 = vmatprep.subr.bf16.mxu0 %v7471_v58  ;;  %v7512_v58 = vld [vmem:[%s9351_s1 + $0xc58] sm:$0xff]   ;;  %v7511_v59 = vld [vmem:[%s9351_s1 + $0xca0] sm:$0xff]  }
 0x16a   :  { %v8861_v6 = vadd.f32 %v6616_v1, %v4946_v0  ;;  %6909 = vmatpush3.bf16.msra.mxu1 %v7470_v60  ;;  %v7513_v60 = vld [vmem:[%s9351_s1 + $0xcd8] sm:$0xff]   ;;  %v7517_v0 = vld [vmem:[%s9351_s1 + $0xcd0] sm:$0xff]   ;;  %v7521_v4 = vld [vmem:[%s9351_s1 + $0xcc8] sm:$0xff]  }
 0x16b   :  { %v6618_v8 = vpop.f32.mrf.mxu1  ;;  %6910 = vmatprep.subr.bf16.mxu1 %v7472_v63  ;;  %v7514_v61 = vld [vmem:[%s9351_s1 + $0xc18] sm:$0xff]   ;;  %v7518_v1 = vld [vmem:[%s9351_s1 + $0xc10] sm:$0xff]  }
 0x16c   :  { %6889 = vmatpush3.bf16.msra.mxu0 %v7473_v2  ;;  %v7515_v63 = vld [vmem:[%s9351_s1 + $0xc98] sm:$0xff]   ;;  %v7520_v2 = vld [vmem:[%s9351_s1 + $0xc48] sm:$0xff]   ;;  %v7519_v3 = vld [vmem:[%s9351_s1 + $0xc90] sm:$0xff]  }
 0x16d   :  { %6890 = vmatprep.subr.bf16.mxu0 %v7475_v5  ;;  %v22_v5 = vld [vmem:[%s9350_s0 + $0x30] sm:$0xff] }
 0x16e   :  { %6911 = vmatpush3.bf16.msra.mxu1 %v7474_v7  ;;  %v1364_v7 = vrot.slane %v22_v5, %v7775_v41  ;;  %v1357_v8 = vcombine.high %v22_v5, %v22_v5  ;;  %v7559_v5 = vld [vmem:[%s9351_s1 + $0xd80] sm:$0xff]  }
 0x16f   :  { %6912 = vmatprep.subr.bf16.mxu1 %v7476_v9  ;;  %v7524_v9 = vld [vmem:[%s9351_s1 + $0xc40] sm:$0xff]  }
 0x170   :  { %6891 = vmatpush3.bf16.msra.mxu0 %v7477_v10  ;;  %v7523_v10 = vld [vmem:[%s9351_s1 + $0xc88] sm:$0xff]  }
 0x171   :  { %6892 = vmatprep.subr.bf16.mxu0 %v7479_v11  ;;  %v1372_v11 = vcombine.high %v1364_v7, %v1364_v7 }
 0x172   :  { %6913 = vmatpush3.bf16.msra.mxu1 %v7478_v12  ;;  %v9020_v12 = vrot.slane %v1357_v8, %v7775_v41 }
 0x173   :  { %6914 = vmatprep.subr.bf16.mxu1 %v7480_v13  ;;  %v7525_v13 = vld [vmem:[%s9351_s1 + $0xcc0] sm:$0xff]  }
 0x174   :  { %6893 = vmatpush3.bf16.msra.mxu0 %v7481_v14  ;;  %v7526_v14 = vld [vmem:[%s9351_s1 + $0xc00] sm:$0xff]  }
 0x175   :  { %6894 = vmatprep.subr.bf16.mxu0 %v7483_v15  ;;  %v1394_v15 = vrot.slane %v1372_v11, %v7775_v41 }
 0x176   :  { %6915 = vmatpush3.bf16.msra.mxu1 %v7482_v16  ;;  %v1373_v16 = vcombine.high %v9020_v12, %v9020_v12 }
 0x177   :  { %6916 = vmatprep.subr.bf16.mxu1 %v7484_v17  ;;  %v1380_v17 = vrot.slane %v1364_v7, %v7775_v41  ;;  %v7563_v7 = vld [vmem:[%s9351_s1 + $0xe38] sm:$0xff]  }
 0x178   :  { %6895 = vmatpush3.bf16.msra.mxu0 %v7485_v18  ;;  %v7528_v18 = vld [vmem:[%s9351_s1 + $0xd78] sm:$0xff]  }
 0x179   :  { %6896 = vmatprep.subr.bf16.mxu0 %v7487_v19  ;;  %v7527_v19 = vld [vmem:[%s9351_s1 + $0xc80] sm:$0xff]  }
 0x17a   :  { %6917 = vmatpush3.bf16.msra.mxu1 %v7486_v20  ;;  %v1404_v20 = vcombine.high %v1394_v15, %v1394_v15 }
 0x17b   :  { %6918 = vmatprep.subr.bf16.mxu1 %v7488_v21  ;;  %v1401_v21 = vrot.slane %v1373_v16, %v7775_v41  ;;  %v7569_v16 = vld [vmem:[%s9351_s1 + $0xe68] sm:$0xff]  }
 0x17c   :  { %6897 = vmatpush3.bf16.msra.mxu0 %v7489_v22  ;;  %v7529_v22 = vld [vmem:[%s9351_s1 + $0xdf8] sm:$0xff]  }
 0x17d   :  { %6898 = vmatprep.subr.bf16.mxu0 %v7491_v23  ;;  %v7530_v23 = vld [vmem:[%s9351_s1 + $0xd38] sm:$0xff]  }
 0x17e   :  { %6919 = vmatpush3.bf16.msra.mxu1 %v7490_v24  ;;  %v1402_v24 = vcombine.high %v1380_v17, %v1380_v17 }
 0x17f   :  { %6920 = vmatprep.subr.bf16.mxu1 %v7492_v25  ;;  %v7532_v25 = vld [vmem:[%s9351_s1 + $0xd70] sm:$0xff]  }
 0x180   :  { %6899 = vmatpush3.bf16.msra.mxu0 %v7493_v26  ;;  %v7531_v26 = vld [vmem:[%s9351_s1 + $0xdb8] sm:$0xff]  }
 0x181   :  { %6928 = vmatprep.subr.bf16.mxu0 %v7496_v28 }
 0x182   :  { %6921 = vmatpush3.bf16.msra.mxu1 %v7494_v29  ;;  %v7533_v29 = vld [vmem:[%s9351_s1 + $0xdf0] sm:$0xff]  }
 0x183   :  { %v6636_v35 = vpop.f32.mrf.mxu0  ;;  %5504 = vmatmul.mubr.bf16.vlgmr.msra.gmra.mxu0 %v1338_v27  ;;  %6950 = vmatprep.subr.bf16.mxu1 %v7497_v30  ;;  %v1405_v27 = vcombine.high %v1401_v21, %v1401_v21  ;;  %v7534_v30 = vld [vmem:[%s9351_s1 + $0xd30] sm:$0xff]  }
 0x184   :  { %6929 = vmatpush3.bf16.msra.mxu0 %v7498_v31  ;;  %5583 = vmatprep.mubr.bf16.mxu0 %v1394_v15 }
 0x185   :  { %v6658_v38 = vpop.f32.mrf.mxu1  ;;  %5544 = vmatmul.mubr.bf16.vlgmr.msra.gmra.mxu1 %v1354_v32  ;;  %v6637_v39 = vpop.f32.mrf.mxu0  ;;  %6930 = vmatprep.subr.bf16.mxu0 %v7500_v33  ;;  %v7536_v33 = vld [vmem:[%s9351_s1 + $0xd68] sm:$0xff]  }
 0x186   :  { %6951 = vmatpush3.bf16.msra.mxu1 %v7499_v34  ;;  %v6638_v42 = vadd.f32 %v6637_v39, %v6636_v35  ;;  %5623 = vmatprep.mubr.bf16.mxu1 %v1404_v20  ;;  %v7535_v35 = vld [vmem:[%s9351_s1 + $0xdb0] sm:$0xff]  }
 0x187   :  { %v6659_v44 = vpop.f32.mrf.mxu1  ;;  %v6639_v45 = vpop.f32.mrf.mxu0  ;;  %6952 = vmatprep.subr.bf16.mxu1 %v7501_v36 }
 0x188   :  { %v5026_v47 = vadd.f32 %v6638_v42, %v8861_v6  ;;  %v6660_v48 = vadd.f32 %v6659_v44, %v6658_v38  ;;  %6931 = vmatpush3.bf16.msra.mxu0 %v7502_v37  ;;  %v7522_v6 = vld [vmem:[%s9351_s1 + $0xc08] sm:$0xff]   ;;  %v7540_v45 = vld [vmem:[%s9351_s1 + $0xd60] sm:$0xff]  }
 0x189   :  { %v6661_v50 = vpop.f32.mrf.mxu1  ;;  %v6640_v51 = vpop.f32.mrf.mxu0  ;;  %6932 = vmatprep.subr.bf16.mxu0 %v7504_v40  ;;  %v7537_v38 = vld [vmem:[%s9351_s1 + $0xde8] sm:$0xff]  }
 0x18a   :  { %v8962_v53 = vadd.f32 %v6660_v48, %v5026_v47  ;;  %6953 = vmatpush3.bf16.msra.mxu1 %v7503_v43  ;;  %v7538_v42 = vld [vmem:[%s9351_s1 + $0xd28] sm:$0xff]   ;;  %v7542_v50 = vld [vmem:[%s9351_s1 + $0xd20] sm:$0xff]   ;;  %v7544_v51 = vld [vmem:[%s9351_s1 + $0xd58] sm:$0xff]  }
 0x18b   :  { %v6662_v55 = vpop.f32.mrf.mxu1  ;;  %6954 = vmatprep.subr.bf16.mxu1 %v7505_v46  ;;  %v7539_v47 = vld [vmem:[%s9351_s1 + $0xda8] sm:$0xff]  }
 0x18c   :  { %6933 = vmatpush3.bf16.msra.mxu0 %v7506_v49  ;;  %v7541_v49 = vld [vmem:[%s9351_s1 + $0xde0] sm:$0xff]   ;;  %v7548_v55 = vld [vmem:[%s9351_s1 + $0xd50] sm:$0xff]  }
 0x18d   :  { %6934 = vmatprep.subr.bf16.mxu0 %v7508_v52  ;;  %v7543_v52 = vld [vmem:[%s9351_s1 + $0xda0] sm:$0xff]  }
 0x18e   :  { %6955 = vmatpush3.bf16.msra.mxu1 %v7507_v54  ;;  %v7546_v54 = vld [vmem:[%s9351_s1 + $0xd18] sm:$0xff]  }
 0x18f   :  { %6956 = vmatprep.subr.bf16.mxu1 %v7509_v56  ;;  %v7547_v56 = vld [vmem:[%s9351_s1 + $0xd98] sm:$0xff]  }
 0x190   :  { %6935 = vmatpush3.bf16.msra.mxu0 %v7510_v57  ;;  %v7549_v57 = vld [vmem:[%s9351_s1 + $0xdd0] sm:$0xff]  }
 0x191   :  { %6936 = vmatprep.subr.bf16.mxu0 %v7512_v58  ;;  %v7550_v58 = vld [vmem:[%s9351_s1 + $0xd10] sm:$0xff]  }
 0x192   :  { %6957 = vmatpush3.bf16.msra.mxu1 %v7511_v59  ;;  %v7552_v59 = vld [vmem:[%s9351_s1 + $0xd48] sm:$0xff]  }
 0x193   :  { %6958 = vmatprep.subr.bf16.mxu1 %v7513_v60  ;;  %v7551_v60 = vld [vmem:[%s9351_s1 + $0xd90] sm:$0xff]  }
 0x194   :  { %6937 = vmatpush3.bf16.msra.mxu0 %v7514_v61  ;;  %v7553_v61 = vld [vmem:[%s9351_s1 + $0xdc8] sm:$0xff]  }
 0x195   :  { %6938 = vmatprep.subr.bf16.mxu0 %v7516_v62  ;;  %v7554_v62 = vld [vmem:[%s9351_s1 + $0xd08] sm:$0xff]  }
 0x196   :  { %6959 = vmatpush3.bf16.msra.mxu1 %v7515_v63  ;;  %v7556_v63 = vld [vmem:[%s9351_s1 + $0xd40] sm:$0xff]  }
 0x197   :  { %6960 = vmatprep.subr.bf16.mxu1 %v7517_v0  ;;  %v7555_v0 = vld [vmem:[%s9351_s1 + $0xd88] sm:$0xff]  }
 0x198   :  { %6939 = vmatpush3.bf16.msra.mxu0 %v7518_v1  ;;  %v7557_v1 = vld [vmem:[%s9351_s1 + $0xdc0] sm:$0xff]  }
 0x199   :  { %6940 = vmatprep.subr.bf16.mxu0 %v7520_v2  ;;  %v7558_v2 = vld [vmem:[%s9351_s1 + $0xd00] sm:$0xff]  }
 0x19a   :  { %6961 = vmatpush3.bf16.msra.mxu1 %v7519_v3  ;;  %v1387_v3 = vrot.slane %v9020_v12, %v7775_v41  ;;  %v7566_v12 = vld [vmem:[%s9351_s1 + $0xef0] sm:$0xff]  }
 0x19b   :  { %6962 = vmatprep.subr.bf16.mxu1 %v7521_v4  ;;  %v7561_v4 = vld [vmem:[%s9351_s1 + $0xe78] sm:$0xff]  }
 0x19c   :  { %6941 = vmatpush3.bf16.msra.mxu0 %v7522_v6  ;;  %v7562_v6 = vld [vmem:[%s9351_s1 + $0xef8] sm:$0xff]   ;;  %v1403_v8 = vcombine.high %v1387_v3, %v1387_v3 }
 0x19d   :  { %6942 = vmatprep.subr.bf16.mxu0 %v7524_v9  ;;  %v7565_v9 = vld [vmem:[%s9351_s1 + $0xe70] sm:$0xff]  }
 0x19e   :  { %6963 = vmatpush3.bf16.msra.mxu1 %v7523_v10  ;;  %v7564_v10 = vld [vmem:[%s9351_s1 + $0xeb8] sm:$0xff]  }
 0x19f   :  { %6964 = vmatprep.subr.bf16.mxu1 %v7525_v13  ;;  %v7567_v13 = vld [vmem:[%s9351_s1 + $0xe30] sm:$0xff]  }
 0x1a0   :  { %6943 = vmatpush3.bf16.msra.mxu0 %v7526_v14 }
 0x1a1   :  { %6972 = vmatprep.subr.bf16.mxu0 %v7528_v18  ;;  %v7568_v18 = vld [vmem:[%s9351_s1 + $0xeb0] sm:$0xff]  }
 0x1a2   :  { %6965 = vmatpush3.bf16.msra.mxu1 %v7527_v19 }
 0x1a3   :  { %v6680_v28 = vpop.f32.mrf.mxu0  ;;  %5584 = vmatmul.mubr.bf16.vlgmr.msra.gmra.mxu0 %v1380_v17  ;;  %6994 = vmatprep.subr.bf16.mxu1 %v7529_v22 }
 0x1a4   :  { %6973 = vmatpush3.bf16.msra.mxu0 %v7530_v23  ;;  %5663 = vmatprep.mubr.bf16.mxu0 %v1401_v21  ;;  %v7570_v21 = vld [vmem:[%s9351_s1 + $0xee8] sm:$0xff]  }
 0x1a5   :  { %v6702_v31 = vpop.f32.mrf.mxu1  ;;  %5624 = vmatmul.mubr.bf16.vlgmr.msra.gmra.mxu1 %v1402_v24  ;;  %v6681_v32 = vpop.f32.mrf.mxu0  ;;  %6974 = vmatprep.subr.bf16.mxu0 %v7532_v25  ;;  %v7571_v24 = vld [vmem:[%s9351_s1 + $0xe28] sm:$0xff]  }
 0x1a6   :  { %6995 = vmatpush3.bf16.msra.mxu1 %v7531_v26  ;;  %v6682_v34 = vadd.f32 %v6681_v32, %v6680_v28  ;;  %5703 = vmatprep.mubr.bf16.mxu1 %v1405_v27  ;;  %v7573_v27 = vld [vmem:[%s9351_s1 + $0xe60] sm:$0xff]  }
 0x1a7   :  { %v6703_v36 = vpop.f32.mrf.mxu1  ;;  %v6683_v37 = vpop.f32.mrf.mxu0  ;;  %6996 = vmatprep.subr.bf16.mxu1 %v7533_v29  ;;  %v7572_v29 = vld [vmem:[%s9351_s1 + $0xea8] sm:$0xff]   ;;  %v7575_v32 = vld [vmem:[%s9351_s1 + $0xe20] sm:$0xff]  }
 0x1a8   :  { %v5106_v39 = vadd.f32 %v6682_v34, %v8962_v53  ;;  %v6704_v40 = vadd.f32 %v6703_v36, %v6702_v31  ;;  %6975 = vmatpush3.bf16.msra.mxu0 %v7534_v30  ;;  %v7545_v53 = vld [vmem:[%s9351_s1 + $0xdd8] sm:$0xff]   ;;  %v7574_v31 = vld [vmem:[%s9351_s1 + $0xee0] sm:$0xff]   ;;  %v7581_v37 = vld [vmem:[%s9351_s1 + $0xe50] sm:$0xff]  }
 0x1a9   :  { %v6705_v43 = vpop.f32.mrf.mxu1  ;;  %v6684_v44 = vpop.f32.mrf.mxu0  ;;  %6976 = vmatprep.subr.bf16.mxu0 %v7536_v33  ;;  %v7577_v33 = vld [vmem:[%s9351_s1 + $0xe58] sm:$0xff]   ;;  %v7576_v34 = vld [vmem:[%s9351_s1 + $0xea0] sm:$0xff]  }
 0x1aa   :  { %v9073_v46 = vadd.f32 %v6704_v40, %v5106_v39  ;;  %6997 = vmatpush3.bf16.msra.mxu1 %v7535_v35  ;;  %v7578_v35 = vld [vmem:[%s9351_s1 + $0xed8] sm:$0xff]   ;;  %v7582_v39 = vld [vmem:[%s9351_s1 + $0xed0] sm:$0xff]   ;;  %v7586_v44 = vld [vmem:[%s9351_s1 + $0xec8] sm:$0xff]  }
 0x1ab   :  { %v6706_v48 = vpop.f32.mrf.mxu1  ;;  %6998 = vmatprep.subr.bf16.mxu1 %v7537_v38  ;;  %v7579_v36 = vld [vmem:[%s9351_s1 + $0xe18] sm:$0xff]   ;;  %v7583_v40 = vld [vmem:[%s9351_s1 + $0xe10] sm:$0xff]  }
 0x1ac   :  { %6977 = vmatpush3.bf16.msra.mxu0 %v7538_v42  ;;  %v7580_v38 = vld [vmem:[%s9351_s1 + $0xe98] sm:$0xff]   ;;  %v7585_v42 = vld [vmem:[%s9351_s1 + $0xe48] sm:$0xff]   ;;  %v7584_v43 = vld [vmem:[%s9351_s1 + $0xe90] sm:$0xff]  }
 0x1ad   :  { %6978 = vmatprep.subr.bf16.mxu0 %v7540_v45  ;;  %v23_v45 = vld [vmem:[%s9350_s0 + $0x38] sm:$0xff] }
 0x1ae   :  { %6999 = vmatpush3.bf16.msra.mxu1 %v7539_v47  ;;  %v1413_v47 = vrot.slane %v23_v45, %v7775_v41  ;;  %v1406_v48 = vcombine.high %v23_v45, %v23_v45 }
 0x1af   :  { %7000 = vmatprep.subr.bf16.mxu1 %v7541_v49  ;;  %v7589_v49 = vld [vmem:[%s9351_s1 + $0xe40] sm:$0xff]  }
 0x1b0   :  { %6979 = vmatpush3.bf16.msra.mxu0 %v7542_v50  ;;  %v7588_v50 = vld [vmem:[%s9351_s1 + $0xe88] sm:$0xff]  }
 0x1b1   :  { %6980 = vmatprep.subr.bf16.mxu0 %v7544_v51  ;;  %v1421_v51 = vcombine.high %v1413_v47, %v1413_v47 }
 0x1b2   :  { %7001 = vmatpush3.bf16.msra.mxu1 %v7543_v52  ;;  %v9232_v52 = vrot.slane %v1406_v48, %v7775_v41 }
 0x1b3   :  { %7002 = vmatprep.subr.bf16.mxu1 %v7545_v53  ;;  %v7590_v53 = vld [vmem:[%s9351_s1 + $0xec0] sm:$0xff]  }
 0x1b4   :  { %6981 = vmatpush3.bf16.msra.mxu0 %v7546_v54  ;;  %v7591_v54 = vld [vmem:[%s9351_s1 + $0xe00] sm:$0xff]  }
 0x1b5   :  { %6982 = vmatprep.subr.bf16.mxu0 %v7548_v55  ;;  %v1443_v55 = vrot.slane %v1421_v51, %v7775_v41 }
 0x1b6   :  { %7003 = vmatpush3.bf16.msra.mxu1 %v7547_v56  ;;  %v1422_v56 = vcombine.high %v9232_v52, %v9232_v52 }
 0x1b7   :  { %7004 = vmatprep.subr.bf16.mxu1 %v7549_v57  ;;  %v1429_v57 = vrot.slane %v1413_v47, %v7775_v41 }
 0x1b8   :  { %6983 = vmatpush3.bf16.msra.mxu0 %v7550_v58  ;;  %v7593_v58 = vld [vmem:[%s9351_s1 + $0xf78] sm:$0xff]  }
 0x1b9   :  { %6984 = vmatprep.subr.bf16.mxu0 %v7552_v59  ;;  %v7592_v59 = vld [vmem:[%s9351_s1 + $0xe80] sm:$0xff]  }
 0x1ba   :  { %7005 = vmatpush3.bf16.msra.mxu1 %v7551_v60  ;;  %v1453_v60 = vcombine.high %v1443_v55, %v1443_v55 }
 0x1bb   :  { %7006 = vmatprep.subr.bf16.mxu1 %v7553_v61  ;;  %v1450_v61 = vrot.slane %v1422_v56, %v7775_v41 }
 0x1bc   :  { %6985 = vmatpush3.bf16.msra.mxu0 %v7554_v62  ;;  %v7594_v62 = vld [vmem:[%s9351_s1 + $0xff8] sm:$0xff]  }
 0x1bd   :  { %6986 = vmatprep.subr.bf16.mxu0 %v7556_v63  ;;  %v7595_v63 = vld [vmem:[%s9351_s1 + $0xf38] sm:$0xff]  }
 0x1be   :  { %7007 = vmatpush3.bf16.msra.mxu1 %v7555_v0  ;;  %v1451_v0 = vcombine.high %v1429_v57, %v1429_v57 }
 0x1bf   :  { %7008 = vmatprep.subr.bf16.mxu1 %v7557_v1  ;;  %v7597_v1 = vld [vmem:[%s9351_s1 + $0xf70] sm:$0xff]  }
 0x1c0   :  { %6987 = vmatpush3.bf16.msra.mxu0 %v7558_v2  ;;  %v7596_v2 = vld [vmem:[%s9351_s1 + $0xfb8] sm:$0xff]  }
 0x1c1   :  { %7016 = vmatprep.subr.bf16.mxu0 %v7561_v4 }
 0x1c2   :  { %7009 = vmatpush3.bf16.msra.mxu1 %v7559_v5  ;;  %v7598_v5 = vld [vmem:[%s9351_s1 + $0xff0] sm:$0xff]  }
 0x1c3   :  { %v6724_v11 = vpop.f32.mrf.mxu0  ;;  %5664 = vmatmul.mubr.bf16.vlgmr.msra.gmra.mxu0 %v1387_v3  ;;  %7038 = vmatprep.subr.bf16.mxu1 %v7562_v6  ;;  %v1454_v3 = vcombine.high %v1450_v61, %v1450_v61  ;;  %v7599_v6 = vld [vmem:[%s9351_s1 + $0xf30] sm:$0xff]  }
 0x1c4   :  { %7017 = vmatpush3.bf16.msra.mxu0 %v7563_v7  ;;  %5743 = vmatprep.mubr.bf16.mxu0 %v1443_v55 }
 0x1c5   :  { %v6746_v14 = vpop.f32.mrf.mxu1  ;;  %5704 = vmatmul.mubr.bf16.vlgmr.msra.gmra.mxu1 %v1403_v8  ;;  %v6725_v15 = vpop.f32.mrf.mxu0  ;;  %7018 = vmatprep.subr.bf16.mxu0 %v7565_v9  ;;  %v7601_v9 = vld [vmem:[%s9351_s1 + $0xf68] sm:$0xff]  }
 0x1c6   :  { %7039 = vmatpush3.bf16.msra.mxu1 %v7564_v10  ;;  %v6726_v17 = vadd.f32 %v6725_v15, %v6724_v11  ;;  %5783 = vmatprep.mubr.bf16.mxu1 %v1453_v60  ;;  %v7600_v11 = vld [vmem:[%s9351_s1 + $0xfb0] sm:$0xff]  }
 0x1c7   :  { %v6747_v19 = vpop.f32.mrf.mxu1  ;;  %v6727_v20 = vpop.f32.mrf.mxu0  ;;  %7040 = vmatprep.subr.bf16.mxu1 %v7566_v12 }
 0x1c8   :  { %v5186_v22 = vadd.f32 %v6726_v17, %v9073_v46  ;;  %v6748_v23 = vadd.f32 %v6747_v19, %v6746_v14  ;;  %7019 = vmatpush3.bf16.msra.mxu0 %v7567_v13  ;;  %v7587_v46 = vld [vmem:[%s9351_s1 + $0xe08] sm:$0xff]   ;;  %v7605_v20 = vld [vmem:[%s9351_s1 + $0xf60] sm:$0xff]  }
 0x1c9   :  { %v6749_v25 = vpop.f32.mrf.mxu1  ;;  %v6728_v26 = vpop.f32.mrf.mxu0  ;;  %7020 = vmatprep.subr.bf16.mxu0 %v7569_v16  ;;  %v7602_v14 = vld [vmem:[%s9351_s1 + $0xfe8] sm:$0xff]  }
 0x1ca   :  { %v9174_v28 = vadd.f32 %v6748_v23, %v5186_v22  ;;  %7041 = vmatpush3.bf16.msra.mxu1 %v7568_v18  ;;  %v7603_v17 = vld [vmem:[%s9351_s1 + $0xf28] sm:$0xff]   ;;  %v7607_v25 = vld [vmem:[%s9351_s1 + $0xf20] sm:$0xff]   ;;  %v7609_v26 = vld [vmem:[%s9351_s1 + $0xf58] sm:$0xff]  }
 0x1cb   :  { %v6750_v30 = vpop.f32.mrf.mxu1  ;;  %7042 = vmatprep.subr.bf16.mxu1 %v7570_v21  ;;  %v7604_v22 = vld [vmem:[%s9351_s1 + $0xfa8] sm:$0xff]  }
 0x1cc   :  { %7021 = vmatpush3.bf16.msra.mxu0 %v7571_v24  ;;  %v7606_v24 = vld [vmem:[%s9351_s1 + $0xfe0] sm:$0xff]   ;;  %v7613_v30 = vld [vmem:[%s9351_s1 + $0xf50] sm:$0xff]  }
 0x1cd   :  { %7022 = vmatprep.subr.bf16.mxu0 %v7573_v27  ;;  %v7608_v27 = vld [vmem:[%s9351_s1 + $0xfa0] sm:$0xff]  }
 0x1ce   :  { %7043 = vmatpush3.bf16.msra.mxu1 %v7572_v29  ;;  %v7611_v29 = vld [vmem:[%s9351_s1 + $0xf18] sm:$0xff]  }
 0x1cf   :  { %7044 = vmatprep.subr.bf16.mxu1 %v7574_v31  ;;  %v7612_v31 = vld [vmem:[%s9351_s1 + $0xf98] sm:$0xff]  }
 0x1d0   :  { %7023 = vmatpush3.bf16.msra.mxu0 %v7575_v32  ;;  %v7614_v32 = vld [vmem:[%s9351_s1 + $0xfd0] sm:$0xff]  }
 0x1d1   :  { %7024 = vmatprep.subr.bf16.mxu0 %v7577_v33  ;;  %v7615_v33 = vld [vmem:[%s9351_s1 + $0xf10] sm:$0xff]  }
 0x1d2   :  { %7045 = vmatpush3.bf16.msra.mxu1 %v7576_v34  ;;  %v7617_v34 = vld [vmem:[%s9351_s1 + $0xf48] sm:$0xff]  }
 0x1d3   :  { %7046 = vmatprep.subr.bf16.mxu1 %v7578_v35  ;;  %v7616_v35 = vld [vmem:[%s9351_s1 + $0xf90] sm:$0xff]  }
 0x1d4   :  { %7025 = vmatpush3.bf16.msra.mxu0 %v7579_v36  ;;  %v7618_v36 = vld [vmem:[%s9351_s1 + $0xfc8] sm:$0xff]  }
 0x1d5   :  { %7026 = vmatprep.subr.bf16.mxu0 %v7581_v37  ;;  %v7619_v37 = vld [vmem:[%s9351_s1 + $0xf08] sm:$0xff]  }
 0x1d6   :  { %7047 = vmatpush3.bf16.msra.mxu1 %v7580_v38 }
 0x1d7   :  { %7048 = vmatprep.subr.bf16.mxu1 %v7582_v39 }
 0x1d8   :  { %7027 = vmatpush3.bf16.msra.mxu0 %v7583_v40 }
 0x1d9   :  { %7028 = vmatprep.subr.bf16.mxu0 %v7585_v42 }
 0x1da   :  { %7049 = vmatpush3.bf16.msra.mxu1 %v7584_v43 }
 0x1db   :  { %7050 = vmatprep.subr.bf16.mxu1 %v7586_v44 }
 0x1dc   :  { %7029 = vmatpush3.bf16.msra.mxu0 %v7587_v46 }
 0x1dd   :  { %7030 = vmatprep.subr.bf16.mxu0 %v7589_v49 }
 0x1de   :  { %7051 = vmatpush3.bf16.msra.mxu1 %v7588_v50 }
 0x1df   :  { %7052 = vmatprep.subr.bf16.mxu1 %v7590_v53 }
 0x1e0   :  { %7031 = vmatpush3.bf16.msra.mxu0 %v7591_v54 }
 0x1e1   :  { %7060 = vmatprep.subr.bf16.mxu0 %v7593_v58 }
 0x1e2   :  { %7053 = vmatpush3.bf16.msra.mxu1 %v7592_v59 }
 0x1e3   :  { %v6768_v4 = vpop.f32.mrf.mxu0  ;;  %5744 = vmatmul.mubr.bf16.vlgmr.msra.gmra.mxu0 %v1429_v57  ;;  %7082 = vmatprep.subr.bf16.mxu1 %v7594_v62 }
 0x1e4   :  { %7061 = vmatpush3.bf16.msra.mxu0 %v7595_v63  ;;  %5823 = vmatprep.mubr.bf16.mxu0 %v1450_v61 }
 0x1e5   :  { %v6790_v7 = vpop.f32.mrf.mxu1  ;;  %5784 = vmatmul.mubr.bf16.vlgmr.msra.gmra.mxu1 %v1451_v0  ;;  %v6769_v8 = vpop.f32.mrf.mxu0  ;;  %7062 = vmatprep.subr.bf16.mxu0 %v7597_v1 }
 0x1e6   :  { %7083 = vmatpush3.bf16.msra.mxu1 %v7596_v2  ;;  %v6770_v10 = vadd.f32 %v6769_v8, %v6768_v4  ;;  %5863 = vmatprep.mubr.bf16.mxu1 %v1454_v3 }
 0x1e7   :  { %v6791_v12 = vpop.f32.mrf.mxu1  ;;  %v6771_v13 = vpop.f32.mrf.mxu0  ;;  %7084 = vmatprep.subr.bf16.mxu1 %v7598_v5 }
 0x1e8   :  { %v5266_v15 = vadd.f32 %v6770_v10, %v9174_v28  ;;  %v6792_v16 = vadd.f32 %v6791_v12, %v6790_v7  ;;  %7063 = vmatpush3.bf16.msra.mxu0 %v7599_v6  ;;  %v7610_v28 = vld [vmem:[%s9351_s1 + $0xfd8] sm:$0xff]  }
 0x1e9   :  { %v6793_v18 = vpop.f32.mrf.mxu1  ;;  %v6772_v19 = vpop.f32.mrf.mxu0  ;;  %7064 = vmatprep.subr.bf16.mxu0 %v7601_v9 }
 0x1ea   :  { %v5306_v21 = vadd.f32 %v6792_v16, %v5266_v15  ;;  %7085 = vmatpush3.bf16.msra.mxu1 %v7600_v11 }
 0x1eb   :  { %v6794_v23 = vpop.f32.mrf.mxu1  ;;  %7086 = vmatprep.subr.bf16.mxu1 %v7602_v14 }
 0x1ec   :  { %7065 = vmatpush3.bf16.msra.mxu0 %v7603_v17 }
 0x1ed   :  { %7066 = vmatprep.subr.bf16.mxu0 %v7605_v20 }
 0x1ee   :  { %7087 = vmatpush3.bf16.msra.mxu1 %v7604_v22 }
 0x1ef   :  { %7088 = vmatprep.subr.bf16.mxu1 %v7606_v24 }
 0x1f0   :  { %7067 = vmatpush3.bf16.msra.mxu0 %v7607_v25 }
 0x1f1   :  { %7068 = vmatprep.subr.bf16.mxu0 %v7609_v26 }
 0x1f2   :  { %7089 = vmatpush3.bf16.msra.mxu1 %v7608_v27 }
 0x1f3   :  { %7090 = vmatprep.subr.bf16.mxu1 %v7610_v28 }
 0x1f4   :  { %7069 = vmatpush3.bf16.msra.mxu0 %v7611_v29 }
 0x1f5   :  { %7070 = vmatprep.subr.bf16.mxu0 %v7613_v30 }
 0x1f6   :  { %7091 = vmatpush3.bf16.msra.mxu1 %v7612_v31 }
 0x1f7   :  { %7092 = vmatprep.subr.bf16.mxu1 %v7614_v32 }
 0x1f8   :  { %7071 = vmatpush3.bf16.msra.mxu0 %v7615_v33 }
 0x1f9   :  { %8 = vsyncpa [#allocation3], 0  ;;  %7072 = vmatprep.subr.bf16.mxu0 %v7617_v34  ;;  %v7621_v38 = vld [vmem:[%s9351_s1 + $0xf40] sm:$0xff]   ;;  %v7620_v39 = vld [vmem:[%s9351_s1 + $0xf88] sm:$0xff]   ;;  %v1436_v43 = vrot.slane %v9232_v52, %v7775_v41  ;;  %vm5871_vm0 = vcmask 74752  }
 0x1fa   :  { %7093 = vmatpush3.bf16.msra.mxu1 %v7616_v35  ;;  %v7622_v40 = vld [vmem:[%s9351_s1 + $0xfc0] sm:$0xff]  }
 0x1fb   :  { %7094 = vmatprep.subr.bf16.mxu1 %v7618_v36  ;;  %v7623_v42 = vld [vmem:[%s9351_s1 + $0xf00] sm:$0xff]   ;;  %v1452_v45 = vcombine.high %v1436_v43, %v1436_v43 }
 0x1fc   :  { %7073 = vmatpush3.bf16.msra.mxu0 %v7619_v37  ;;  %v7624_v44 = vld [vmem:[%s9351_s1 + $0xf80] sm:$0xff]   ;;  %s7649_s1 = smov [#allocation2]  }
 0x1fd   :  { %7074 = vmatprep.subr.bf16.mxu0 %v7621_v38  ;;  %s5879_s4 = sshll.u32 %s7649_s1, 4  ;;  %s5880_s4 = int_to_ptr.vmem [resolvable:$true] %s5879_s4 }
 0x1fe   :  { %7095 = vmatpush3.bf16.msra.mxu1 %v7620_v39  ;;  %s7626_s5 = scalar_lea.vmem %s5880_s4, 32  ;;  %p7631_p1 = scmp.lt.s32.totalorder %s5880_s4, %s5880_s4 }
 0x1ff   :  { %7096 = vmatprep.subr.bf16.mxu1 %v7622_v40  ;;  %p7627_p0 = scmp.ne.s32.totalorder %s5880_s4, %s7626_s5  ;;  %p7632_p2 = scmp.lt.s32.totalorder %s7626_s5, %s7626_s5 }
 0x200   :  { %7075 = vmatpush3.bf16.msra.mxu0 %v7623_v42 }
 0x201   :  { %p7633_p3 = por %p7632_p2, %p7631_p1 }
 0x202   :  { %7097 = vmatpush3.bf16.msra.mxu1 %v7624_v44 }
 0x203   :  { %v6812_v46 = vpop.f32.mrf.mxu0  ;;  %5824 = vmatmul.mubr.bf16.vlgmr.msra.gmra.mxu0 %v1436_v43  ;;  %p7634_p4 = pnand %p7633_p3, %p7627_p0 }
 0x205   :  { %v6834_v47 = vpop.f32.mrf.mxu1  ;;  %5864 = vmatmul.mubr.bf16.vlgmr.msra.gmra.mxu1 %v1452_v45  ;;  %v6813_v48 = vpop.f32.mrf.mxu0 }
 0x206   :  { %v6814_v49 = vadd.f32 %v6813_v48, %v6812_v46 }
 0x207   :  { %v6835_v50 = vpop.f32.mrf.mxu1  ;;  %v6815_v51 = vpop.f32.mrf.mxu0 }
 0x208   :  { %v5346_v53 = vadd.f32 %v6814_v49, %v5306_v21  ;;  %v6836_v54 = vadd.f32 %v6835_v50, %v6834_v47 }
 0x209   :  { %v6837_v41 = vpop.f32.mrf.mxu1  ;;  %v6816_v52 = vpop.f32.mrf.mxu0 }
 0x20a   :  { %v5386_v55 = vadd.f32 %v6836_v54, %v5346_v53 }
 0x20b   :  { %v6838_v56 = vpop.f32.mrf.mxu1 }
 0x223   :  { %v6856_v57 = vpop.f32.mrf.mxu0 }
 0x225   :  { %v6878_v58 = vpop.f32.mrf.mxu1  ;;  %v6857_v59 = vpop.f32.mrf.mxu0 }
 0x226   :  { %v6858_v60 = vadd.f32 %v6857_v59, %v6856_v57 }
 0x227   :  { %v6879_v61 = vpop.f32.mrf.mxu1  ;;  %v6859_v62 = vpop.f32.mrf.mxu0 }
 0x228   :  { %v5426_v63 = vadd.f32 %v6858_v60, %v5386_v55  ;;  %v6880_v0 = vadd.f32 %v6879_v61, %v6878_v58 }
 0x229   :  { %v6881_v1 = vpop.f32.mrf.mxu1  ;;  %v6860_v2 = vpop.f32.mrf.mxu0 }
 0x22a   :  { %v5466_v3 = vadd.f32 %v6880_v0, %v5426_v63 }
 0x22b   :  { %v6882_v4 = vpop.f32.mrf.mxu1 }
 0x243   :  { %v6900_v5 = vpop.f32.mrf.mxu0 }
 0x245   :  { %v6922_v6 = vpop.f32.mrf.mxu1  ;;  %v6901_v7 = vpop.f32.mrf.mxu0 }
 0x246   :  { %v6902_v8 = vadd.f32 %v6901_v7, %v6900_v5 }
 0x247   :  { %v6923_v9 = vpop.f32.mrf.mxu1  ;;  %v6903_v10 = vpop.f32.mrf.mxu0 }
 0x248   :  { %v5506_v11 = vadd.f32 %v6902_v8, %v5466_v3  ;;  %v6924_v12 = vadd.f32 %v6923_v9, %v6922_v6 }
 0x249   :  { %v6925_v13 = vpop.f32.mrf.mxu1  ;;  %v6904_v14 = vpop.f32.mrf.mxu0 }
 0x24a   :  { %v5546_v15 = vadd.f32 %v6924_v12, %v5506_v11 }
 0x24b   :  { %v6926_v16 = vpop.f32.mrf.mxu1 }
 0x263   :  { %v6944_v17 = vpop.f32.mrf.mxu0 }
 0x265   :  { %v6966_v18 = vpop.f32.mrf.mxu1  ;;  %v6945_v19 = vpop.f32.mrf.mxu0 }
 0x266   :  { %v6946_v20 = vadd.f32 %v6945_v19, %v6944_v17 }
 0x267   :  { %v6967_v21 = vpop.f32.mrf.mxu1  ;;  %v6947_v22 = vpop.f32.mrf.mxu0 }
 0x268   :  { %v5586_v23 = vadd.f32 %v6946_v20, %v5546_v15  ;;  %v6968_v24 = vadd.f32 %v6967_v21, %v6966_v18 }
 0x269   :  { %v6969_v25 = vpop.f32.mrf.mxu1  ;;  %v6948_v26 = vpop.f32.mrf.mxu0 }
 0x26a   :  { %v5626_v27 = vadd.f32 %v6968_v24, %v5586_v23 }
 0x26b   :  { %v6970_v28 = vpop.f32.mrf.mxu1 }
 0x283   :  { %v6988_v29 = vpop.f32.mrf.mxu0 }
 0x285   :  { %v7010_v30 = vpop.f32.mrf.mxu1  ;;  %v6989_v31 = vpop.f32.mrf.mxu0 }
 0x286   :  { %v6990_v46 = vadd.f32 %v6989_v31, %v6988_v29 }
 0x287   :  { %v7011_v32 = vpop.f32.mrf.mxu1  ;;  %v6991_v33 = vpop.f32.mrf.mxu0 }
 0x288   :  { %v5666_v47 = vadd.f32 %v6990_v46, %v5626_v27  ;;  %v7012_v48 = vadd.f32 %v7011_v32, %v7010_v30 }
 0x289   :  { %v7013_v34 = vpop.f32.mrf.mxu1  ;;  %v6992_v35 = vpop.f32.mrf.mxu0 }
 0x28a   :  { %v5706_v50 = vadd.f32 %v7012_v48, %v5666_v47 }
 0x28b   :  { %v7014_v36 = vpop.f32.mrf.mxu1 }
 0x2a3   :  { %v7032_v37 = vpop.f32.mrf.mxu0 }
 0x2a5   :  { %v7054_v38 = vpop.f32.mrf.mxu1  ;;  %v7033_v39 = vpop.f32.mrf.mxu0 }
 0x2a6   :  { %v7034_v49 = vadd.f32 %v7033_v39, %v7032_v37 }
 0x2a7   :  { %v7055_v40 = vpop.f32.mrf.mxu1  ;;  %v7035_v42 = vpop.f32.mrf.mxu0 }
 0x2a8   :  { %v5746_v51 = vadd.f32 %v7034_v49, %v5706_v50  ;;  %v7056_v53 = vadd.f32 %v7055_v40, %v7054_v38 }
 0x2a9   :  { %v7057_v43 = vpop.f32.mrf.mxu1  ;;  %v7036_v44 = vpop.f32.mrf.mxu0 }
 0x2aa   :  { %v5786_v55 = vadd.f32 %v7056_v53, %v5746_v51 }
 0x2ab   :  { %v7058_v45 = vpop.f32.mrf.mxu1 }
 0x2c3   :  { %v7076_v54 = vpop.f32.mrf.mxu0 }
 0x2c5   :  { %v7098_v41 = vpop.f32.mrf.mxu1  ;;  %v7077_v52 = vpop.f32.mrf.mxu0 }
 0x2c6   :  { %v7078_v56 = vadd.f32 %v7077_v52, %v7076_v54 }
 0x2c7   :  { %v7099_v57 = vpop.f32.mrf.mxu1  ;;  %v7079_v58 = vpop.f32.mrf.mxu0 }
 0x2c8   :  { %v5826_v59 = vadd.f32 %v7078_v56, %v5786_v55  ;;  %v7100_v60 = vadd.f32 %v7099_v57, %v7098_v41 }
 0x2c9   :  { %v7101_v61 = vpop.f32.mrf.mxu1  ;;  %v7080_v62 = vpop.f32.mrf.mxu0 }
 0x2ca   :  { %v5866_v63 = vadd.f32 %v7100_v60, %v5826_v59 }
 0x2cb   :  { %v7102_v0 = vpop.f32.mrf.mxu1 }
 0x2cc   :  { %5872 = vst.msk [vmem:[#allocation2] sm:$0x3] %vm5871_vm0, %v5866_v63 }
 0x2cd   :  { %7637 = shalt.err (!%p7634_p4)
}
 0x2ce   :  { %5882 = dma.vmem_to_hbm [thread:$0]  %s5880_s4, 32, %s9353_s3, [#allocation3]  }
 0x2cf   :  { %7646 = dma.done.wait [#allocation3], 32  }
 0x2d0   :  { %7647 = vsyncadd [#allocation3], 4294967264 }
 0x2d1   :  { %5886 = vsyncpa [#allocation3], 1 }

</bundles_post_ra>
